<compile_context>
chip_gen: v5e
topology: v5e:2x2
jax: 0.10.0
libtpu: 0.0.40
codegen_flags: <defaults>
</compile_context>

<pallas_src>
import functools

import jax
import jax.numpy as jnp
import numpy as np
from jax.experimental import pallas as pl
from jax.experimental.pallas import tpu as pltpu

EPS = 1e-5  # nn.BatchNorm3d default eps


# ----------------------------------------------------------------------------
# BN(train) folded to one scale/shift FMA (one-pass stats) + ELU
# ----------------------------------------------------------------------------
def _bn_elu(acc, mask, inv_cnt, gamma, beta):
    """acc: (C, Lp) f32; mask: (1, Lp) f32 (1.0 at valid positions);
    gamma/beta: (C, 1) f32; inv_cnt: 1/num_valid (static python float)."""
    am = acc * mask
    mean = jnp.sum(am, axis=1, keepdims=True) * inv_cnt              # (C, 1)
    ex2 = jnp.sum(am * acc, axis=1, keepdims=True) * inv_cnt         # E[x^2]
    var = ex2 - mean * mean                                          # biased
    scale = gamma * jax.lax.rsqrt(var + EPS)
    shift = beta - mean * scale
    y = acc * scale + shift
    # ELU(alpha=1); clamp the unselected branch so exp never overflows.
    return jnp.where(y > 0, y, jnp.exp(jnp.minimum(y, 0.0)) - 1.0)


# ----------------------------------------------------------------------------
# Fused kernel: two x (K-stacked conv matmul + BN(train) + ELU)
# ----------------------------------------------------------------------------
def _conv_block_kernel(x_ref, mask_ref, wa_ref, wb_ref, bn_ref,     # inputs
                       o_ref,                                       # output
                       xext_ref, ima_ref, hext_ref, imb_ref,        # scratch
                       *, cin, cmid, cout, L, Lp, off, taps, inv_cnt):
    # x_ref   : (Cin, L)         bf16  channels-first, spatially padded, flat
    # mask_ref: (1, Lp)          f32   1.0 at interior (valid output) positions
    # wa_ref  : (Cmid, 27*Cin)   bf16  K-stacked stage-A weights (tap-major K)
    # wb_ref  : (Cout, 27*Cmid)  bf16  K-stacked stage-B weights
    # bn_ref  : (Cmax, 4)        f32   cols = [gamma_a, beta_a, gamma_b, beta_b]
    # o_ref   : (Cout, Lp)       bf16  lane-dense output over padded flat grid
    # xext_ref: (Cin, Lp+2*off)  bf16  x with lane slack for the shifted views
    # ima_ref : (27*Cin, Lp)     bf16  stage-A stacked (im2col) operand
    # hext_ref: (Cmid, Lp+2*off) bf16  inter-stage activation with lane slack
    # imb_ref : (27*Cmid, Lp)    bf16  stage-B stacked operand
    mask = mask_ref[...]

    # --- stage A operand: x with 128-aligned lane slack (only slack zeroed) ---
    xext_ref[:, 0:off] = jnp.zeros((cin, off), xext_ref.dtype)
    xext_ref[:, off:off + L] = x_ref[...]
    xext_ref[:, off + L:] = jnp.zeros((cin, off + Lp - L), xext_ref.dtype)

    # 27 shifted lane-slices stacked along the contraction axis; the lane
    # realign per tap is paid once here, the matmul then reads aligned data.
    for t, o in enumerate(taps):
        ima_ref[t * cin:(t + 1) * cin, :] = xext_ref[:, off + o:off + o + Lp]

    # --- stage A: Conv3d(Cin->Cmid) as ONE (Cmid,27*Cin)@(27*Cin,Lp) matmul ---
    # (conv bias omitted: batch-stat BN cancels a per-channel constant shift)
    acc = jnp.dot(wa_ref[...], ima_ref[...], preferred_element_type=jnp.float32)
    h = _bn_elu(acc, mask, inv_cnt, bn_ref[0:cmid, 0:1], bn_ref[0:cmid, 1:2])

    # Stage-B input: masked h (mask == stage-B conv zero padding).  Only the
    # slack columns are zero-filled; the interior is fully overwritten.
    hext_ref[:, 0:off] = jnp.zeros((cmid, off), hext_ref.dtype)
    hext_ref[:, off:off + Lp] = (h * mask).astype(hext_ref.dtype)
    hext_ref[:, off + Lp:] = jnp.zeros((cmid, off), hext_ref.dtype)

    for t, o in enumerate(taps):
        imb_ref[t * cmid:(t + 1) * cmid, :] = hext_ref[:, off + o:off + o + Lp]

    # --- stage B: Conv3d(Cmid->Cout) as ONE matmul, then BN + ELU -------------
    acc = jnp.dot(wb_ref[...], imb_ref[...], preferred_element_type=jnp.float32)
    y = _bn_elu(acc, mask, inv_cnt, bn_ref[0:cout, 2:3], bn_ref[0:cout, 3:4])
    # Non-interior columns hold BN/ELU of out-of-range conv results; they are
    # masked out of the statistics above and cropped by the wrapper.
    o_ref[...] = y.astype(o_ref.dtype)


# ----------------------------------------------------------------------------
# Wrapper: NCDHW in / NCDHW out.  Only cheap, fusable layout plumbing outside.
# ----------------------------------------------------------------------------
def conv_block_forward(x_ncdhw, params):
    N, Cin, D, H, W = x_ncdhw.shape
    Cmid = int(params["w_a"].shape[0])
    Cout = int(params["w_b"].shape[0])
    Dp, Hp, Wp = D + 2, H + 2, W + 2
    L = N * Dp * Hp * Wp                        # flat padded spatial positions
    Lp = ((L + 127) // 128) * 128               # 128-aligned lane extent
    M_valid = N * D * H * W                     # valid conv-output positions
    max_off = Hp * Wp + Wp + 1                  # largest |tap offset|
    OFF = ((max_off + 127) // 128) * 128        # 128-aligned lane slack
    LEXT = Lp + 2 * OFF
    # flat offset of tap (kd, kh, kw); order matches the weight packing below
    taps = [(kd - 1) * Hp * Wp + (kh - 1) * Wp + (kw - 1)
            for kd in range(3) for kh in range(3) for kw in range(3)]

    # channels-first + spatial zero pad + flatten + bf16 cast (single fusion;
    # the reshape is a bitcast).  Lane slack / Lp padding is added in-kernel.
    x_cf = jnp.transpose(x_ncdhw, (1, 0, 2, 3, 4))
    x_cf = jnp.pad(x_cf, ((0, 0), (0, 0), (1, 1), (1, 1), (1, 1)))
    x_flat = x_cf.reshape(Cin, L).astype(jnp.bfloat16)

    # Interior-position mask (1, Lp): input-independent -> constant folded.
    # TODO(synk): generate in-kernel via broadcasted_iota once exact integer
    # div/mod by non-power-of-2 constants is guaranteed in Mosaic.
    m3 = jnp.pad(jnp.ones((D, H, W), jnp.float32), ((1, 1), (1, 1), (1, 1)))
    mask = jnp.pad(jnp.tile(m3.reshape(1, -1), (1, N)), ((0, 0), (0, Lp - L)))

    # PyTorch weight (O, I, kd, kh, kw) -> K-stacked (O, 27*I), tap-major K:
    # column = (kd*9 + kh*3 + kw)*I + i, matching the ima/imb row layout.
    def packw(w):
        O, I = int(w.shape[0]), int(w.shape[1])
        return jnp.transpose(w, (0, 2, 3, 4, 1)).reshape(O, 27 * I) \
                  .astype(jnp.bfloat16)

    wa = packw(params["w_a"])
    wb = packw(params["w_b"])

    # gamma/beta for both stages packed into one tiny (Cmax, 4) operand.
    Cmax = max(Cmid, Cout)
    padc = lambda v: jnp.pad(v, (0, Cmax - v.shape[0]))
    bn = jnp.stack([padc(params["g_a"]), padc(params["bt_a"]),
                    padc(params["g_b"]), padc(params["bt_b"])], axis=1)

    kernel = functools.partial(
        _conv_block_kernel, cin=Cin, cmid=Cmid, cout=Cout, L=L, Lp=Lp, off=OFF,
        taps=taps, inv_cnt=1.0 / M_valid)

    out_flat = pl.pallas_call(
        kernel,
        out_shape=jax.ShapeDtypeStruct((Cout, Lp), jnp.bfloat16),
        in_specs=[
            pl.BlockSpec((Cin, L), lambda: (0, 0)),
            pl.BlockSpec((1, Lp), lambda: (0, 0)),
            pl.BlockSpec((Cmid, 27 * Cin), lambda: (0, 0)),
            pl.BlockSpec((Cout, 27 * Cmid), lambda: (0, 0)),
            pl.BlockSpec((Cmax, 4), lambda: (0, 0)),
        ],
        out_specs=pl.BlockSpec((Cout, Lp), lambda: (0, 0)),
        scratch_shapes=[
            pltpu.VMEM((Cin, LEXT), jnp.bfloat16),       # x + lane slack
            pltpu.VMEM((27 * Cin, Lp), jnp.bfloat16),    # stage-A K-stack
            pltpu.VMEM((Cmid, LEXT), jnp.bfloat16),      # h + lane slack
            pltpu.VMEM((27 * Cmid, Lp), jnp.bfloat16),   # stage-B K-stack
        ],
        compiler_params=pltpu.CompilerParams(
            vmem_limit_bytes=32 * 1024 * 1024),
    )(x_flat, mask, wa, wb, bn)

    # bf16 (Cout, Lp) -> crop fake columns + pad ring -> NCDHW f32
    # (slice + reshape + transpose + convert fuse into one XLA op).
    out = out_flat[:, :L].reshape(Cout, N, Dp, Hp, Wp)[
        :, :, 1:D + 1, 1:H + 1, 1:W + 1]
    return jnp.transpose(out, (1, 0, 2, 3, 4)).astype(jnp.float32)


# ----------------------------------------------------------------------------
# Pure-JAX f32 reference (lax.conv) for correctness checking
# ----------------------------------------------------------------------------
def reference_forward(x, params):
    def stage(x, w, b, g, bt):
        y = jax.lax.conv_general_dilated(
            x, w, window_strides=(1, 1, 1),
            padding=((1, 1), (1, 1), (1, 1)),
            dimension_numbers=("NCDHW", "OIDHW", "NCDHW"))
        y = y + b[None, :, None, None, None]
        mean = jnp.mean(y, axis=(0, 2, 3, 4), keepdims=True)
        var = jnp.mean((y - mean) ** 2, axis=(0, 2, 3, 4), keepdims=True)
        yn = (y - mean) / jnp.sqrt(var + EPS)
        y = yn * g[None, :, None, None, None] + bt[None, :, None, None, None]
        return jnp.where(y > 0, y, jnp.exp(y) - 1.0)

    x = stage(x, params["w_a"], params["b_a"], params["g_a"], params["bt_a"])
    x = stage(x, params["w_b"], params["b_b"], params["g_b"], params["bt_b"])
    return x


# ----------------------------------------------------------------------------
# Deterministic parameter init (ConvBlock(in=4, out=8) -> mid=(4+8)//2=6)
# ----------------------------------------------------------------------------
def init_params(key, in_ch, out_ch, k=3):
    mid = (in_ch + out_ch) // 2
    ks = jax.random.split(key, 4)
    fan_a = in_ch * k ** 3
    fan_b = mid * k ** 3
    return {
        "w_a": jax.random.normal(ks[0], (mid, in_ch, k, k, k), jnp.float32)
               / np.sqrt(fan_a),
        "b_a": jax.random.normal(ks[1], (mid,), jnp.float32) * 0.1,
        "g_a": jnp.ones((mid,), jnp.float32),
        "bt_a": jnp.zeros((mid,), jnp.float32),
        "w_b": jax.random.normal(ks[2], (out_ch, mid, k, k, k), jnp.float32)
               / np.sqrt(fan_b),
        "b_b": jax.random.normal(ks[3], (out_ch,), jnp.float32) * 0.1,
        "g_b": jnp.ones((out_ch,), jnp.float32),
        "bt_b": jnp.zeros((out_ch,), jnp.float32),
    }
    # TODO(synk): BatchNorm running_mean/running_var buffer updates (a training
    # side effect) are not modeled; forward output in training mode is identical.


if __name__ == "__main__":
    key = jax.random.PRNGKey(0)
    k_x, k_p = jax.random.split(key)

    N, Cin, Cout, D, H, W = 2, 4, 8, 8, 8, 8
    x = jax.random.normal(k_x, (N, Cin, D, H, W), jnp.float32)
    params = init_params(k_p, Cin, Cout)

    out = jax.block_until_ready(jax.jit(conv_block_forward)(x, params))

    ref = reference_forward(x, params)
    assert out.shape == (N, Cout, D, H, W), out.shape
    # bf16 MXU operands + bf16 writeback (f32 accumulate / BN / ELU) -> 2e-2 tol
    np.testing.assert_allclose(np.asarray(out), np.asarray(ref),
                               rtol=2e-2, atol=2e-2)
    print("KERNEL_OK")
</pallas_src>

<mosaic_0001>
module attributes {stable_mosaic.version = 11 : i64} {
  func.func @_conv_block_kernel(%arg0: memref<4x2000xbf16, #tpu.memory_space<vmem>>, %arg1: memref<1x2048xf32, #tpu.memory_space<vmem>>, %arg2: memref<6x108xbf16, #tpu.memory_space<vmem>>, %arg3: memref<8x162xbf16, #tpu.memory_space<vmem>>, %arg4: memref<8x4xf32, #tpu.memory_space<vmem>>, %arg5: memref<8x2048xbf16, #tpu.memory_space<vmem>>, %arg6: memref<4x2304xbf16, #tpu.memory_space<vmem>>, %arg7: memref<108x2048xbf16, #tpu.memory_space<vmem>>, %arg8: memref<6x2304xbf16, #tpu.memory_space<vmem>>, %arg9: memref<162x2048xbf16, #tpu.memory_space<vmem>>) attributes {dimension_semantics = [], scalar_prefetch = 0 : i64, scratch_operands = 4 : i64, tpu.core_type = #tpu.core_type<tc>} {
    %c0 = arith.constant 0 : index
    %c0_0 = arith.constant 0 : index
    %0 = vector.load %arg1[%c0, %c0_0] : memref<1x2048xf32, #tpu.memory_space<vmem>>, vector<1x2048xf32>
    %cst = arith.constant 0.000000e+00 : bf16
    %1 = vector.broadcast %cst : bf16 to vector<4x128xbf16>
    %c0_1 = arith.constant 0 : index
    %c0_2 = arith.constant 0 : index
    %2 = vector.load %arg6[%c0_1, %c0_2] : memref<4x2304xbf16, #tpu.memory_space<vmem>>, vector<4x128xbf16>
    tpu.vector_store %arg6[%c0_1, %c0_2], %1 {strides = array<i32>} : memref<4x2304xbf16, #tpu.memory_space<vmem>>, vector<4x128xbf16>,
    %c0_3 = arith.constant 0 : index
    %c0_4 = arith.constant 0 : index
    %3 = vector.load %arg0[%c0_3, %c0_4] : memref<4x2000xbf16, #tpu.memory_space<vmem>>, vector<4x2000xbf16>
    %c0_5 = arith.constant 0 : index
    %c128 = arith.constant 128 : index
    %4 = vector.load %arg6[%c0_5, %c128] : memref<4x2304xbf16, #tpu.memory_space<vmem>>, vector<4x2000xbf16>
    tpu.vector_store %arg6[%c0_5, %c128], %3 {strides = array<i32>} : memref<4x2304xbf16, #tpu.memory_space<vmem>>, vector<4x2000xbf16>,
    %cst_6 = arith.constant 0.000000e+00 : bf16
    %5 = vector.broadcast %cst_6 : bf16 to vector<4x176xbf16>
    %c0_7 = arith.constant 0 : index
    %c2128 = arith.constant 2128 : index
    %6 = vector.load %arg6[%c0_7, %c2128] : memref<4x2304xbf16, #tpu.memory_space<vmem>>, vector<4x176xbf16>
    tpu.vector_store %arg6[%c0_7, %c2128], %5 {strides = array<i32>} : memref<4x2304xbf16, #tpu.memory_space<vmem>>, vector<4x176xbf16>,
    %c0_8 = arith.constant 0 : index
    %c17 = arith.constant 17 : index
    %7 = vector.load %arg6[%c0_8, %c17] : memref<4x2304xbf16, #tpu.memory_space<vmem>>, vector<4x2048xbf16>
    %c0_9 = arith.constant 0 : index
    %c0_10 = arith.constant 0 : index
    %8 = vector.load %arg7[%c0_9, %c0_10] : memref<108x2048xbf16, #tpu.memory_space<vmem>>, vector<4x2048xbf16>
    tpu.vector_store %arg7[%c0_9, %c0_10], %7 {strides = array<i32>} : memref<108x2048xbf16, #tpu.memory_space<vmem>>, vector<4x2048xbf16>,
    %c0_11 = arith.constant 0 : index
    %c18 = arith.constant 18 : index
    %9 = vector.load %arg6[%c0_11, %c18] : memref<4x2304xbf16, #tpu.memory_space<vmem>>, vector<4x2048xbf16>
    %c4 = arith.constant 4 : index
    %c0_12 = arith.constant 0 : index
    %10 = vector.load %arg7[%c4, %c0_12] : memref<108x2048xbf16, #tpu.memory_space<vmem>>, vector<4x2048xbf16>
    tpu.vector_store %arg7[%c4, %c0_12], %9 {strides = array<i32>} : memref<108x2048xbf16, #tpu.memory_space<vmem>>, vector<4x2048xbf16>,
    %c0_13 = arith.constant 0 : index
    %c19 = arith.constant 19 : index
    %11 = vector.load %arg6[%c0_13, %c19] : memref<4x2304xbf16, #tpu.memory_space<vmem>>, vector<4x2048xbf16>
    %c8 = arith.constant 8 : index
    %c0_14 = arith.constant 0 : index
    %12 = vector.load %arg7[%c8, %c0_14] : memref<108x2048xbf16, #tpu.memory_space<vmem>>, vector<4x2048xbf16>
    tpu.vector_store %arg7[%c8, %c0_14], %11 {strides = array<i32>} : memref<108x2048xbf16, #tpu.memory_space<vmem>>, vector<4x2048xbf16>,
    %c0_15 = arith.constant 0 : index
    %c27 = arith.constant 27 : index
    %13 = vector.load %arg6[%c0_15, %c27] : memref<4x2304xbf16, #tpu.memory_space<vmem>>, vector<4x2048xbf16>
    %c12 = arith.constant 12 : index
    %c0_16 = arith.constant 0 : index
    %14 = vector.load %arg7[%c12, %c0_16] : memref<108x2048xbf16, #tpu.memory_space<vmem>>, vector<4x2048xbf16>
    tpu.vector_store %arg7[%c12, %c0_16], %13 {strides = array<i32>} : memref<108x2048xbf16, #tpu.memory_space<vmem>>, vector<4x2048xbf16>,
    %c0_17 = arith.constant 0 : index
    %c28 = arith.constant 28 : index
    %15 = vector.load %arg6[%c0_17, %c28] : memref<4x2304xbf16, #tpu.memory_space<vmem>>, vector<4x2048xbf16>
    %c16 = arith.constant 16 : index
    %c0_18 = arith.constant 0 : index
    %16 = vector.load %arg7[%c16, %c0_18] : memref<108x2048xbf16, #tpu.memory_space<vmem>>, vector<4x2048xbf16>
    tpu.vector_store %arg7[%c16, %c0_18], %15 {strides = array<i32>} : memref<108x2048xbf16, #tpu.memory_space<vmem>>, vector<4x2048xbf16>,
    %c0_19 = arith.constant 0 : index
    %c29 = arith.constant 29 : index
    %17 = vector.load %arg6[%c0_19, %c29] : memref<4x2304xbf16, #tpu.memory_space<vmem>>, vector<4x2048xbf16>
    %c20 = arith.constant 20 : index
    %c0_20 = arith.constant 0 : index
    %18 = vector.load %arg7[%c20, %c0_20] : memref<108x2048xbf16, #tpu.memory_space<vmem>>, vector<4x2048xbf16>
    tpu.vector_store %arg7[%c20, %c0_20], %17 {strides = array<i32>} : memref<108x2048xbf16, #tpu.memory_space<vmem>>, vector<4x2048xbf16>,
    %c0_21 = arith.constant 0 : index
    %c37 = arith.constant 37 : index
    %19 = vector.load %arg6[%c0_21, %c37] : memref<4x2304xbf16, #tpu.memory_space<vmem>>, vector<4x2048xbf16>
    %c24 = arith.constant 24 : index
    %c0_22 = arith.constant 0 : index
    %20 = vector.load %arg7[%c24, %c0_22] : memref<108x2048xbf16, #tpu.memory_space<vmem>>, vector<4x2048xbf16>
    tpu.vector_store %arg7[%c24, %c0_22], %19 {strides = array<i32>} : memref<108x2048xbf16, #tpu.memory_space<vmem>>, vector<4x2048xbf16>,
    %c0_23 = arith.constant 0 : index
    %c38 = arith.constant 38 : index
    %21 = vector.load %arg6[%c0_23, %c38] : memref<4x2304xbf16, #tpu.memory_space<vmem>>, vector<4x2048xbf16>
    %c28_24 = arith.constant 28 : index
    %c0_25 = arith.constant 0 : index
    %22 = vector.load %arg7[%c28_24, %c0_25] : memref<108x2048xbf16, #tpu.memory_space<vmem>>, vector<4x2048xbf16>
    tpu.vector_store %arg7[%c28_24, %c0_25], %21 {strides = array<i32>} : memref<108x2048xbf16, #tpu.memory_space<vmem>>, vector<4x2048xbf16>,
    %c0_26 = arith.constant 0 : index
    %c39 = arith.constant 39 : index
    %23 = vector.load %arg6[%c0_26, %c39] : memref<4x2304xbf16, #tpu.memory_space<vmem>>, vector<4x2048xbf16>
    %c32 = arith.constant 32 : index
    %c0_27 = arith.constant 0 : index
    %24 = vector.load %arg7[%c32, %c0_27] : memref<108x2048xbf16, #tpu.memory_space<vmem>>, vector<4x2048xbf16>
    tpu.vector_store %arg7[%c32, %c0_27], %23 {strides = array<i32>} : memref<108x2048xbf16, #tpu.memory_space<vmem>>, vector<4x2048xbf16>,
    %c0_28 = arith.constant 0 : index
    %c117 = arith.constant 117 : index
    %25 = vector.load %arg6[%c0_28, %c117] : memref<4x2304xbf16, #tpu.memory_space<vmem>>, vector<4x2048xbf16>
    %c36 = arith.constant 36 : index
    %c0_29 = arith.constant 0 : index
    %26 = vector.load %arg7[%c36, %c0_29] : memref<108x2048xbf16, #tpu.memory_space<vmem>>, vector<4x2048xbf16>
    tpu.vector_store %arg7[%c36, %c0_29], %25 {strides = array<i32>} : memref<108x2048xbf16, #tpu.memory_space<vmem>>, vector<4x2048xbf16>,
    %c0_30 = arith.constant 0 : index
    %c118 = arith.constant 118 : index
    %27 = vector.load %arg6[%c0_30, %c118] : memref<4x2304xbf16, #tpu.memory_space<vmem>>, vector<4x2048xbf16>
    %c40 = arith.constant 40 : index
    %c0_31 = arith.constant 0 : index
    %28 = vector.load %arg7[%c40, %c0_31] : memref<108x2048xbf16, #tpu.memory_space<vmem>>, vector<4x2048xbf16>
    tpu.vector_store %arg7[%c40, %c0_31], %27 {strides = array<i32>} : memref<108x2048xbf16, #tpu.memory_space<vmem>>, vector<4x2048xbf16>,
    %c0_32 = arith.constant 0 : index
    %c119 = arith.constant 119 : index
    %29 = vector.load %arg6[%c0_32, %c119] : memref<4x2304xbf16, #tpu.memory_space<vmem>>, vector<4x2048xbf16>
    %c44 = arith.constant 44 : index
    %c0_33 = arith.constant 0 : index
    %30 = vector.load %arg7[%c44, %c0_33] : memref<108x2048xbf16, #tpu.memory_space<vmem>>, vector<4x2048xbf16>
    tpu.vector_store %arg7[%c44, %c0_33], %29 {strides = array<i32>} : memref<108x2048xbf16, #tpu.memory_space<vmem>>, vector<4x2048xbf16>,
    %c0_34 = arith.constant 0 : index
    %c127 = arith.constant 127 : index
    %31 = vector.load %arg6[%c0_34, %c127] : memref<4x2304xbf16, #tpu.memory_space<vmem>>, vector<4x2048xbf16>
    %c48 = arith.constant 48 : index
    %c0_35 = arith.constant 0 : index
    %32 = vector.load %arg7[%c48, %c0_35] : memref<108x2048xbf16, #tpu.memory_space<vmem>>, vector<4x2048xbf16>
    tpu.vector_store %arg7[%c48, %c0_35], %31 {strides = array<i32>} : memref<108x2048xbf16, #tpu.memory_space<vmem>>, vector<4x2048xbf16>,
    %c0_36 = arith.constant 0 : index
    %c128_37 = arith.constant 128 : index
    %33 = vector.load %arg6[%c0_36, %c128_37] : memref<4x2304xbf16, #tpu.memory_space<vmem>>, vector<4x2048xbf16>
    %c52 = arith.constant 52 : index
    %c0_38 = arith.constant 0 : index
    %34 = vector.load %arg7[%c52, %c0_38] : memref<108x2048xbf16, #tpu.memory_space<vmem>>, vector<4x2048xbf16>
    tpu.vector_store %arg7[%c52, %c0_38], %33 {strides = array<i32>} : memref<108x2048xbf16, #tpu.memory_space<vmem>>, vector<4x2048xbf16>,
    %c0_39 = arith.constant 0 : index
    %c129 = arith.constant 129 : index
    %35 = vector.load %arg6[%c0_39, %c129] : memref<4x2304xbf16, #tpu.memory_space<vmem>>, vector<4x2048xbf16>
    %c56 = arith.constant 56 : index
    %c0_40 = arith.constant 0 : index
    %36 = vector.load %arg7[%c56, %c0_40] : memref<108x2048xbf16, #tpu.memory_space<vmem>>, vector<4x2048xbf16>
    tpu.vector_store %arg7[%c56, %c0_40], %35 {strides = array<i32>} : memref<108x2048xbf16, #tpu.memory_space<vmem>>, vector<4x2048xbf16>,
    %c0_41 = arith.constant 0 : index
    %c137 = arith.constant 137 : index
    %37 = vector.load %arg6[%c0_41, %c137] : memref<4x2304xbf16, #tpu.memory_space<vmem>>, vector<4x2048xbf16>
    %c60 = arith.constant 60 : index
    %c0_42 = arith.constant 0 : index
    %38 = vector.load %arg7[%c60, %c0_42] : memref<108x2048xbf16, #tpu.memory_space<vmem>>, vector<4x2048xbf16>
    tpu.vector_store %arg7[%c60, %c0_42], %37 {strides = array<i32>} : memref<108x2048xbf16, #tpu.memory_space<vmem>>, vector<4x2048xbf16>,
    %c0_43 = arith.constant 0 : index
    %c138 = arith.constant 138 : index
    %39 = vector.load %arg6[%c0_43, %c138] : memref<4x2304xbf16, #tpu.memory_space<vmem>>, vector<4x2048xbf16>
    %c64 = arith.constant 64 : index
    %c0_44 = arith.constant 0 : index
    %40 = vector.load %arg7[%c64, %c0_44] : memref<108x2048xbf16, #tpu.memory_space<vmem>>, vector<4x2048xbf16>
    tpu.vector_store %arg7[%c64, %c0_44], %39 {strides = array<i32>} : memref<108x2048xbf16, #tpu.memory_space<vmem>>, vector<4x2048xbf16>,
    %c0_45 = arith.constant 0 : index
    %c139 = arith.constant 139 : index
    %41 = vector.load %arg6[%c0_45, %c139] : memref<4x2304xbf16, #tpu.memory_space<vmem>>, vector<4x2048xbf16>
    %c68 = arith.constant 68 : index
    %c0_46 = arith.constant 0 : index
    %42 = vector.load %arg7[%c68, %c0_46] : memref<108x2048xbf16, #tpu.memory_space<vmem>>, vector<4x2048xbf16>
    tpu.vector_store %arg7[%c68, %c0_46], %41 {strides = array<i32>} : memref<108x2048xbf16, #tpu.memory_space<vmem>>, vector<4x2048xbf16>,
    %c0_47 = arith.constant 0 : index
    %c217 = arith.constant 217 : index
    %43 = vector.load %arg6[%c0_47, %c217] : memref<4x2304xbf16, #tpu.memory_space<vmem>>, vector<4x2048xbf16>
    %c72 = arith.constant 72 : index
    %c0_48 = arith.constant 0 : index
    %44 = vector.load %arg7[%c72, %c0_48] : memref<108x2048xbf16, #tpu.memory_space<vmem>>, vector<4x2048xbf16>
    tpu.vector_store %arg7[%c72, %c0_48], %43 {strides = array<i32>} : memref<108x2048xbf16, #tpu.memory_space<vmem>>, vector<4x2048xbf16>,
    %c0_49 = arith.constant 0 : index
    %c218 = arith.constant 218 : index
    %45 = vector.load %arg6[%c0_49, %c218] : memref<4x2304xbf16, #tpu.memory_space<vmem>>, vector<4x2048xbf16>
    %c76 = arith.constant 76 : index
    %c0_50 = arith.constant 0 : index
    %46 = vector.load %arg7[%c76, %c0_50] : memref<108x2048xbf16, #tpu.memory_space<vmem>>, vector<4x2048xbf16>
    tpu.vector_store %arg7[%c76, %c0_50], %45 {strides = array<i32>} : memref<108x2048xbf16, #tpu.memory_space<vmem>>, vector<4x2048xbf16>,
    %c0_51 = arith.constant 0 : index
    %c219 = arith.constant 219 : index
    %47 = vector.load %arg6[%c0_51, %c219] : memref<4x2304xbf16, #tpu.memory_space<vmem>>, vector<4x2048xbf16>
    %c80 = arith.constant 80 : index
    %c0_52 = arith.constant 0 : index
    %48 = vector.load %arg7[%c80, %c0_52] : memref<108x2048xbf16, #tpu.memory_space<vmem>>, vector<4x2048xbf16>
    tpu.vector_store %arg7[%c80, %c0_52], %47 {strides = array<i32>} : memref<108x2048xbf16, #tpu.memory_space<vmem>>, vector<4x2048xbf16>,
    %c0_53 = arith.constant 0 : index
    %c227 = arith.constant 227 : index
    %49 = vector.load %arg6[%c0_53, %c227] : memref<4x2304xbf16, #tpu.memory_space<vmem>>, vector<4x2048xbf16>
    %c84 = arith.constant 84 : index
    %c0_54 = arith.constant 0 : index
    %50 = vector.load %arg7[%c84, %c0_54] : memref<108x2048xbf16, #tpu.memory_space<vmem>>, vector<4x2048xbf16>
    tpu.vector_store %arg7[%c84, %c0_54], %49 {strides = array<i32>} : memref<108x2048xbf16, #tpu.memory_space<vmem>>, vector<4x2048xbf16>,
    %c0_55 = arith.constant 0 : index
    %c228 = arith.constant 228 : index
    %51 = vector.load %arg6[%c0_55, %c228] : memref<4x2304xbf16, #tpu.memory_space<vmem>>, vector<4x2048xbf16>
    %c88 = arith.constant 88 : index
    %c0_56 = arith.constant 0 : index
    %52 = vector.load %arg7[%c88, %c0_56] : memref<108x2048xbf16, #tpu.memory_space<vmem>>, vector<4x2048xbf16>
    tpu.vector_store %arg7[%c88, %c0_56], %51 {strides = array<i32>} : memref<108x2048xbf16, #tpu.memory_space<vmem>>, vector<4x2048xbf16>,
    %c0_57 = arith.constant 0 : index
    %c229 = arith.constant 229 : index
    %53 = vector.load %arg6[%c0_57, %c229] : memref<4x2304xbf16, #tpu.memory_space<vmem>>, vector<4x2048xbf16>
    %c92 = arith.constant 92 : index
    %c0_58 = arith.constant 0 : index
    %54 = vector.load %arg7[%c92, %c0_58] : memref<108x2048xbf16, #tpu.memory_space<vmem>>, vector<4x2048xbf16>
    tpu.vector_store %arg7[%c92, %c0_58], %53 {strides = array<i32>} : memref<108x2048xbf16, #tpu.memory_space<vmem>>, vector<4x2048xbf16>,
    %c0_59 = arith.constant 0 : index
    %c237 = arith.constant 237 : index
    %55 = vector.load %arg6[%c0_59, %c237] : memref<4x2304xbf16, #tpu.memory_space<vmem>>, vector<4x2048xbf16>
    %c96 = arith.constant 96 : index
    %c0_60 = arith.constant 0 : index
    %56 = vector.load %arg7[%c96, %c0_60] : memref<108x2048xbf16, #tpu.memory_space<vmem>>, vector<4x2048xbf16>
    tpu.vector_store %arg7[%c96, %c0_60], %55 {strides = array<i32>} : memref<108x2048xbf16, #tpu.memory_space<vmem>>, vector<4x2048xbf16>,
    %c0_61 = arith.constant 0 : index
    %c238 = arith.constant 238 : index
    %57 = vector.load %arg6[%c0_61, %c238] : memref<4x2304xbf16, #tpu.memory_space<vmem>>, vector<4x2048xbf16>
    %c100 = arith.constant 100 : index
    %c0_62 = arith.constant 0 : index
    %58 = vector.load %arg7[%c100, %c0_62] : memref<108x2048xbf16, #tpu.memory_space<vmem>>, vector<4x2048xbf16>
    tpu.vector_store %arg7[%c100, %c0_62], %57 {strides = array<i32>} : memref<108x2048xbf16, #tpu.memory_space<vmem>>, vector<4x2048xbf16>,
    %c0_63 = arith.constant 0 : index
    %c239 = arith.constant 239 : index
    %59 = vector.load %arg6[%c0_63, %c239] : memref<4x2304xbf16, #tpu.memory_space<vmem>>, vector<4x2048xbf16>
    %c104 = arith.constant 104 : index
    %c0_64 = arith.constant 0 : index
    %60 = vector.load %arg7[%c104, %c0_64] : memref<108x2048xbf16, #tpu.memory_space<vmem>>, vector<4x2048xbf16>
    tpu.vector_store %arg7[%c104, %c0_64], %59 {strides = array<i32>} : memref<108x2048xbf16, #tpu.memory_space<vmem>>, vector<4x2048xbf16>,
    %c0_65 = arith.constant 0 : index
    %c0_66 = arith.constant 0 : index
    %61 = vector.load %arg2[%c0_65, %c0_66] : memref<6x108xbf16, #tpu.memory_space<vmem>>, vector<6x108xbf16>
    %c0_67 = arith.constant 0 : index
    %c0_68 = arith.constant 0 : index
    %62 = vector.load %arg7[%c0_67, %c0_68] : memref<108x2048xbf16, #tpu.memory_space<vmem>>, vector<108x2048xbf16>
    %cst_69 = arith.constant dense<0.000000e+00> : vector<6x2048xf32>
    %63 = tpu.matmul %61, %62, %cst_69 {dimension_numbers = #tpu.dot_dimension_numbers<[1], [0], [0], [1], [0, 0, 1, 1], [], []>} : vector<6x108xbf16>, vector<108x2048xbf16>, vector<6x2048xf32> -> vector<6x2048xf32>
    %c0_70 = arith.constant 0 : index
    %c0_71 = arith.constant 0 : index
    %64 = vector.load %arg4[%c0_70, %c0_71] : memref<8x4xf32, #tpu.memory_space<vmem>>, vector<6x1xf32>
    %c0_72 = arith.constant 0 : index
    %c1 = arith.constant 1 : index
    %65 = vector.load %arg4[%c0_72, %c1] : memref<8x4xf32, #tpu.memory_space<vmem>>, vector<6x1xf32>
    %66 = vector.broadcast %0 : vector<1x2048xf32> to vector<6x2048xf32>
    %67 = arith.mulf %63, %66 : vector<6x2048xf32>
    %cst_73 = arith.constant dense<0.000000e+00> : vector<6xf32>
    %68 = vector.multi_reduction <add>, %67, %cst_73 [1] : vector<6x2048xf32> to vector<6xf32>
    %69 = vector.shape_cast %68 : vector<6xf32> to vector<6x1xf32>
    %cst_74 = arith.constant 9.765625E-4 : f32
    %70 = vector.broadcast %cst_74 : f32 to vector<6x1xf32>
    %71 = arith.mulf %69, %70 : vector<6x1xf32>
    %72 = arith.mulf %67, %63 : vector<6x2048xf32>
    %cst_75 = arith.constant dense<0.000000e+00> : vector<6xf32>
    %73 = vector.multi_reduction <add>, %72, %cst_75 [1] : vector<6x2048xf32> to vector<6xf32>
    %74 = vector.shape_cast %73 : vector<6xf32> to vector<6x1xf32>
    %cst_76 = arith.constant 9.765625E-4 : f32
    %75 = vector.broadcast %cst_76 : f32 to vector<6x1xf32>
    %76 = arith.mulf %74, %75 : vector<6x1xf32>
    %77 = arith.mulf %71, %71 : vector<6x1xf32>
    %78 = arith.subf %76, %77 : vector<6x1xf32>
    %cst_77 = arith.constant 9.99999974E-6 : f32
    %79 = vector.broadcast %cst_77 : f32 to vector<6x1xf32>
    %80 = arith.addf %78, %79 : vector<6x1xf32>
    %81 = math.rsqrt %80 : vector<6x1xf32>
    %82 = arith.mulf %64, %81 : vector<6x1xf32>
    %83 = arith.mulf %71, %82 : vector<6x1xf32>
    %84 = arith.subf %65, %83 : vector<6x1xf32>
    %85 = vector.broadcast %82 : vector<6x1xf32> to vector<6x2048xf32>
    %86 = arith.mulf %63, %85 : vector<6x2048xf32>
    %87 = vector.broadcast %84 : vector<6x1xf32> to vector<6x2048xf32>
    %88 = arith.addf %86, %87 : vector<6x2048xf32>
    %cst_78 = arith.constant 0.000000e+00 : f32
    %89 = vector.broadcast %cst_78 : f32 to vector<6x2048xf32>
    %90 = arith.cmpf ogt, %88, %89 : vector<6x2048xf32>
    %cst_79 = arith.constant 0.000000e+00 : f32
    %91 = vector.broadcast %cst_79 : f32 to vector<6x2048xf32>
    %92 = arith.minimumf %88, %91 : vector<6x2048xf32>
    %93 = math.exp %92 : vector<6x2048xf32>
    %cst_80 = arith.constant 1.000000e+00 : f32
    %94 = vector.broadcast %cst_80 : f32 to vector<6x2048xf32>
    %95 = arith.subf %93, %94 : vector<6x2048xf32>
    %96 = arith.select %90, %88, %95 : vector<6x2048xi1>, vector<6x2048xf32>
    %cst_81 = arith.constant 0.000000e+00 : bf16
    %97 = vector.broadcast %cst_81 : bf16 to vector<6x128xbf16>
    %c0_82 = arith.constant 0 : index
    %c0_83 = arith.constant 0 : index
    %98 = vector.load %arg8[%c0_82, %c0_83] : memref<6x2304xbf16, #tpu.memory_space<vmem>>, vector<6x128xbf16>
    tpu.vector_store %arg8[%c0_82, %c0_83], %97 {strides = array<i32>} : memref<6x2304xbf16, #tpu.memory_space<vmem>>, vector<6x128xbf16>,
    %99 = vector.broadcast %0 : vector<1x2048xf32> to vector<6x2048xf32>
    %100 = arith.mulf %96, %99 : vector<6x2048xf32>
    %101 = arith.truncf %100 : vector<6x2048xf32> to vector<6x2048xbf16>
    %c0_84 = arith.constant 0 : index
    %c128_85 = arith.constant 128 : index
    %102 = vector.load %arg8[%c0_84, %c128_85] : memref<6x2304xbf16, #tpu.memory_space<vmem>>, vector<6x2048xbf16>
    tpu.vector_store %arg8[%c0_84, %c128_85], %101 {strides = array<i32>} : memref<6x2304xbf16, #tpu.memory_space<vmem>>, vector<6x2048xbf16>,
    %cst_86 = arith.constant 0.000000e+00 : bf16
    %103 = vector.broadcast %cst_86 : bf16 to vector<6x128xbf16>
    %c0_87 = arith.constant 0 : index
    %c2176 = arith.constant 2176 : index
    %104 = vector.load %arg8[%c0_87, %c2176] : memref<6x2304xbf16, #tpu.memory_space<vmem>>, vector<6x128xbf16>
    tpu.vector_store %arg8[%c0_87, %c2176], %103 {strides = array<i32>} : memref<6x2304xbf16, #tpu.memory_space<vmem>>, vector<6x128xbf16>,
    %c0_88 = arith.constant 0 : index
    %c17_89 = arith.constant 17 : index
    %105 = vector.load %arg8[%c0_88, %c17_89] : memref<6x2304xbf16, #tpu.memory_space<vmem>>, vector<6x2048xbf16>
    %c0_90 = arith.constant 0 : index
    %c0_91 = arith.constant 0 : index
    %106 = vector.load %arg9[%c0_90, %c0_91] : memref<162x2048xbf16, #tpu.memory_space<vmem>>, vector<6x2048xbf16>
    tpu.vector_store %arg9[%c0_90, %c0_91], %105 {strides = array<i32>} : memref<162x2048xbf16, #tpu.memory_space<vmem>>, vector<6x2048xbf16>,
    %c0_92 = arith.constant 0 : index
    %c18_93 = arith.constant 18 : index
    %107 = vector.load %arg8[%c0_92, %c18_93] : memref<6x2304xbf16, #tpu.memory_space<vmem>>, vector<6x2048xbf16>
    %c6 = arith.constant 6 : index
    %c0_94 = arith.constant 0 : index
    %108 = vector.load %arg9[%c6, %c0_94] : memref<162x2048xbf16, #tpu.memory_space<vmem>>, vector<6x2048xbf16>
    tpu.vector_store %arg9[%c6, %c0_94], %107 {strides = array<i32>} : memref<162x2048xbf16, #tpu.memory_space<vmem>>, vector<6x2048xbf16>,
    %c0_95 = arith.constant 0 : index
    %c19_96 = arith.constant 19 : index
    %109 = vector.load %arg8[%c0_95, %c19_96] : memref<6x2304xbf16, #tpu.memory_space<vmem>>, vector<6x2048xbf16>
    %c12_97 = arith.constant 12 : index
    %c0_98 = arith.constant 0 : index
    %110 = vector.load %arg9[%c12_97, %c0_98] : memref<162x2048xbf16, #tpu.memory_space<vmem>>, vector<6x2048xbf16>
    tpu.vector_store %arg9[%c12_97, %c0_98], %109 {strides = array<i32>} : memref<162x2048xbf16, #tpu.memory_space<vmem>>, vector<6x2048xbf16>,
    %c0_99 = arith.constant 0 : index
    %c27_100 = arith.constant 27 : index
    %111 = vector.load %arg8[%c0_99, %c27_100] : memref<6x2304xbf16, #tpu.memory_space<vmem>>, vector<6x2048xbf16>
    %c18_101 = arith.constant 18 : index
    %c0_102 = arith.constant 0 : index
    %112 = vector.load %arg9[%c18_101, %c0_102] : memref<162x2048xbf16, #tpu.memory_space<vmem>>, vector<6x2048xbf16>
    tpu.vector_store %arg9[%c18_101, %c0_102], %111 {strides = array<i32>} : memref<162x2048xbf16, #tpu.memory_space<vmem>>, vector<6x2048xbf16>,
    %c0_103 = arith.constant 0 : index
    %c28_104 = arith.constant 28 : index
    %113 = vector.load %arg8[%c0_103, %c28_104] : memref<6x2304xbf16, #tpu.memory_space<vmem>>, vector<6x2048xbf16>
    %c24_105 = arith.constant 24 : index
    %c0_106 = arith.constant 0 : index
    %114 = vector.load %arg9[%c24_105, %c0_106] : memref<162x2048xbf16, #tpu.memory_space<vmem>>, vector<6x2048xbf16>
    tpu.vector_store %arg9[%c24_105, %c0_106], %113 {strides = array<i32>} : memref<162x2048xbf16, #tpu.memory_space<vmem>>, vector<6x2048xbf16>,
    %c0_107 = arith.constant 0 : index
    %c29_108 = arith.constant 29 : index
    %115 = vector.load %arg8[%c0_107, %c29_108] : memref<6x2304xbf16, #tpu.memory_space<vmem>>, vector<6x2048xbf16>
    %c30 = arith.constant 30 : index
    %c0_109 = arith.constant 0 : index
    %116 = vector.load %arg9[%c30, %c0_109] : memref<162x2048xbf16, #tpu.memory_space<vmem>>, vector<6x2048xbf16>
    tpu.vector_store %arg9[%c30, %c0_109], %115 {strides = array<i32>} : memref<162x2048xbf16, #tpu.memory_space<vmem>>, vector<6x2048xbf16>,
    %c0_110 = arith.constant 0 : index
    %c37_111 = arith.constant 37 : index
    %117 = vector.load %arg8[%c0_110, %c37_111] : memref<6x2304xbf16, #tpu.memory_space<vmem>>, vector<6x2048xbf16>
    %c36_112 = arith.constant 36 : index
    %c0_113 = arith.constant 0 : index
    %118 = vector.load %arg9[%c36_112, %c0_113] : memref<162x2048xbf16, #tpu.memory_space<vmem>>, vector<6x2048xbf16>
    tpu.vector_store %arg9[%c36_112, %c0_113], %117 {strides = array<i32>} : memref<162x2048xbf16, #tpu.memory_space<vmem>>, vector<6x2048xbf16>,
    %c0_114 = arith.constant 0 : index
    %c38_115 = arith.constant 38 : index
    %119 = vector.load %arg8[%c0_114, %c38_115] : memref<6x2304xbf16, #tpu.memory_space<vmem>>, vector<6x2048xbf16>
    %c42 = arith.constant 42 : index
    %c0_116 = arith.constant 0 : index
    %120 = vector.load %arg9[%c42, %c0_116] : memref<162x2048xbf16, #tpu.memory_space<vmem>>, vector<6x2048xbf16>
    tpu.vector_store %arg9[%c42, %c0_116], %119 {strides = array<i32>} : memref<162x2048xbf16, #tpu.memory_space<vmem>>, vector<6x2048xbf16>,
    %c0_117 = arith.constant 0 : index
    %c39_118 = arith.constant 39 : index
    %121 = vector.load %arg8[%c0_117, %c39_118] : memref<6x2304xbf16, #tpu.memory_space<vmem>>, vector<6x2048xbf16>
    %c48_119 = arith.constant 48 : index
    %c0_120 = arith.constant 0 : index
    %122 = vector.load %arg9[%c48_119, %c0_120] : memref<162x2048xbf16, #tpu.memory_space<vmem>>, vector<6x2048xbf16>
    tpu.vector_store %arg9[%c48_119, %c0_120], %121 {strides = array<i32>} : memref<162x2048xbf16, #tpu.memory_space<vmem>>, vector<6x2048xbf16>,
    %c0_121 = arith.constant 0 : index
    %c117_122 = arith.constant 117 : index
    %123 = vector.load %arg8[%c0_121, %c117_122] : memref<6x2304xbf16, #tpu.memory_space<vmem>>, vector<6x2048xbf16>
    %c54 = arith.constant 54 : index
    %c0_123 = arith.constant 0 : index
    %124 = vector.load %arg9[%c54, %c0_123] : memref<162x2048xbf16, #tpu.memory_space<vmem>>, vector<6x2048xbf16>
    tpu.vector_store %arg9[%c54, %c0_123], %123 {strides = array<i32>} : memref<162x2048xbf16, #tpu.memory_space<vmem>>, vector<6x2048xbf16>,
    %c0_124 = arith.constant 0 : index
    %c118_125 = arith.constant 118 : index
    %125 = vector.load %arg8[%c0_124, %c118_125] : memref<6x2304xbf16, #tpu.memory_space<vmem>>, vector<6x2048xbf16>
    %c60_126 = arith.constant 60 : index
    %c0_127 = arith.constant 0 : index
    %126 = vector.load %arg9[%c60_126, %c0_127] : memref<162x2048xbf16, #tpu.memory_space<vmem>>, vector<6x2048xbf16>
    tpu.vector_store %arg9[%c60_126, %c0_127], %125 {strides = array<i32>} : memref<162x2048xbf16, #tpu.memory_space<vmem>>, vector<6x2048xbf16>,
    %c0_128 = arith.constant 0 : index
    %c119_129 = arith.constant 119 : index
    %127 = vector.load %arg8[%c0_128, %c119_129] : memref<6x2304xbf16, #tpu.memory_space<vmem>>, vector<6x2048xbf16>
    %c66 = arith.constant 66 : index
    %c0_130 = arith.constant 0 : index
    %128 = vector.load %arg9[%c66, %c0_130] : memref<162x2048xbf16, #tpu.memory_space<vmem>>, vector<6x2048xbf16>
    tpu.vector_store %arg9[%c66, %c0_130], %127 {strides = array<i32>} : memref<162x2048xbf16, #tpu.memory_space<vmem>>, vector<6x2048xbf16>,
    %c0_131 = arith.constant 0 : index
    %c127_132 = arith.constant 127 : index
    %129 = vector.load %arg8[%c0_131, %c127_132] : memref<6x2304xbf16, #tpu.memory_space<vmem>>, vector<6x2048xbf16>
    %c72_133 = arith.constant 72 : index
    %c0_134 = arith.constant 0 : index
    %130 = vector.load %arg9[%c72_133, %c0_134] : memref<162x2048xbf16, #tpu.memory_space<vmem>>, vector<6x2048xbf16>
    tpu.vector_store %arg9[%c72_133, %c0_134], %129 {strides = array<i32>} : memref<162x2048xbf16, #tpu.memory_space<vmem>>, vector<6x2048xbf16>,
    %c0_135 = arith.constant 0 : index
    %c128_136 = arith.constant 128 : index
    %131 = vector.load %arg8[%c0_135, %c128_136] : memref<6x2304xbf16, #tpu.memory_space<vmem>>, vector<6x2048xbf16>
    %c78 = arith.constant 78 : index
    %c0_137 = arith.constant 0 : index
    %132 = vector.load %arg9[%c78, %c0_137] : memref<162x2048xbf16, #tpu.memory_space<vmem>>, vector<6x2048xbf16>
    tpu.vector_store %arg9[%c78, %c0_137], %131 {strides = array<i32>} : memref<162x2048xbf16, #tpu.memory_space<vmem>>, vector<6x2048xbf16>,
    %c0_138 = arith.constant 0 : index
    %c129_139 = arith.constant 129 : index
    %133 = vector.load %arg8[%c0_138, %c129_139] : memref<6x2304xbf16, #tpu.memory_space<vmem>>, vector<6x2048xbf16>
    %c84_140 = arith.constant 84 : index
    %c0_141 = arith.constant 0 : index
    %134 = vector.load %arg9[%c84_140, %c0_141] : memref<162x2048xbf16, #tpu.memory_space<vmem>>, vector<6x2048xbf16>
    tpu.vector_store %arg9[%c84_140, %c0_141], %133 {strides = array<i32>} : memref<162x2048xbf16, #tpu.memory_space<vmem>>, vector<6x2048xbf16>,
    %c0_142 = arith.constant 0 : index
    %c137_143 = arith.constant 137 : index
    %135 = vector.load %arg8[%c0_142, %c137_143] : memref<6x2304xbf16, #tpu.memory_space<vmem>>, vector<6x2048xbf16>
    %c90 = arith.constant 90 : index
    %c0_144 = arith.constant 0 : index
    %136 = vector.load %arg9[%c90, %c0_144] : memref<162x2048xbf16, #tpu.memory_space<vmem>>, vector<6x2048xbf16>
    tpu.vector_store %arg9[%c90, %c0_144], %135 {strides = array<i32>} : memref<162x2048xbf16, #tpu.memory_space<vmem>>, vector<6x2048xbf16>,
    %c0_145 = arith.constant 0 : index
    %c138_146 = arith.constant 138 : index
    %137 = vector.load %arg8[%c0_145, %c138_146] : memref<6x2304xbf16, #tpu.memory_space<vmem>>, vector<6x2048xbf16>
    %c96_147 = arith.constant 96 : index
    %c0_148 = arith.constant 0 : index
    %138 = vector.load %arg9[%c96_147, %c0_148] : memref<162x2048xbf16, #tpu.memory_space<vmem>>, vector<6x2048xbf16>
    tpu.vector_store %arg9[%c96_147, %c0_148], %137 {strides = array<i32>} : memref<162x2048xbf16, #tpu.memory_space<vmem>>, vector<6x2048xbf16>,
    %c0_149 = arith.constant 0 : index
    %c139_150 = arith.constant 139 : index
    %139 = vector.load %arg8[%c0_149, %c139_150] : memref<6x2304xbf16, #tpu.memory_space<vmem>>, vector<6x2048xbf16>
    %c102 = arith.constant 102 : index
    %c0_151 = arith.constant 0 : index
    %140 = vector.load %arg9[%c102, %c0_151] : memref<162x2048xbf16, #tpu.memory_space<vmem>>, vector<6x2048xbf16>
    tpu.vector_store %arg9[%c102, %c0_151], %139 {strides = array<i32>} : memref<162x2048xbf16, #tpu.memory_space<vmem>>, vector<6x2048xbf16>,
    %c0_152 = arith.constant 0 : index
    %c217_153 = arith.constant 217 : index
    %141 = vector.load %arg8[%c0_152, %c217_153] : memref<6x2304xbf16, #tpu.memory_space<vmem>>, vector<6x2048xbf16>
    %c108 = arith.constant 108 : index
    %c0_154 = arith.constant 0 : index
    %142 = vector.load %arg9[%c108, %c0_154] : memref<162x2048xbf16, #tpu.memory_space<vmem>>, vector<6x2048xbf16>
    tpu.vector_store %arg9[%c108, %c0_154], %141 {strides = array<i32>} : memref<162x2048xbf16, #tpu.memory_space<vmem>>, vector<6x2048xbf16>,
    %c0_155 = arith.constant 0 : index
    %c218_156 = arith.constant 218 : index
    %143 = vector.load %arg8[%c0_155, %c218_156] : memref<6x2304xbf16, #tpu.memory_space<vmem>>, vector<6x2048xbf16>
    %c114 = arith.constant 114 : index
    %c0_157 = arith.constant 0 : index
    %144 = vector.load %arg9[%c114, %c0_157] : memref<162x2048xbf16, #tpu.memory_space<vmem>>, vector<6x2048xbf16>
    tpu.vector_store %arg9[%c114, %c0_157], %143 {strides = array<i32>} : memref<162x2048xbf16, #tpu.memory_space<vmem>>, vector<6x2048xbf16>,
    %c0_158 = arith.constant 0 : index
    %c219_159 = arith.constant 219 : index
    %145 = vector.load %arg8[%c0_158, %c219_159] : memref<6x2304xbf16, #tpu.memory_space<vmem>>, vector<6x2048xbf16>
    %c120 = arith.constant 120 : index
    %c0_160 = arith.constant 0 : index
    %146 = vector.load %arg9[%c120, %c0_160] : memref<162x2048xbf16, #tpu.memory_space<vmem>>, vector<6x2048xbf16>
    tpu.vector_store %arg9[%c120, %c0_160], %145 {strides = array<i32>} : memref<162x2048xbf16, #tpu.memory_space<vmem>>, vector<6x2048xbf16>,
    %c0_161 = arith.constant 0 : index
    %c227_162 = arith.constant 227 : index
    %147 = vector.load %arg8[%c0_161, %c227_162] : memref<6x2304xbf16, #tpu.memory_space<vmem>>, vector<6x2048xbf16>
    %c126 = arith.constant 126 : index
    %c0_163 = arith.constant 0 : index
    %148 = vector.load %arg9[%c126, %c0_163] : memref<162x2048xbf16, #tpu.memory_space<vmem>>, vector<6x2048xbf16>
    tpu.vector_store %arg9[%c126, %c0_163], %147 {strides = array<i32>} : memref<162x2048xbf16, #tpu.memory_space<vmem>>, vector<6x2048xbf16>,
    %c0_164 = arith.constant 0 : index
    %c228_165 = arith.constant 228 : index
    %149 = vector.load %arg8[%c0_164, %c228_165] : memref<6x2304xbf16, #tpu.memory_space<vmem>>, vector<6x2048xbf16>
    %c132 = arith.constant 132 : index
    %c0_166 = arith.constant 0 : index
    %150 = vector.load %arg9[%c132, %c0_166] : memref<162x2048xbf16, #tpu.memory_space<vmem>>, vector<6x2048xbf16>
    tpu.vector_store %arg9[%c132, %c0_166], %149 {strides = array<i32>} : memref<162x2048xbf16, #tpu.memory_space<vmem>>, vector<6x2048xbf16>,
    %c0_167 = arith.constant 0 : index
    %c229_168 = arith.constant 229 : index
    %151 = vector.load %arg8[%c0_167, %c229_168] : memref<6x2304xbf16, #tpu.memory_space<vmem>>, vector<6x2048xbf16>
    %c138_169 = arith.constant 138 : index
    %c0_170 = arith.constant 0 : index
    %152 = vector.load %arg9[%c138_169, %c0_170] : memref<162x2048xbf16, #tpu.memory_space<vmem>>, vector<6x2048xbf16>
    tpu.vector_store %arg9[%c138_169, %c0_170], %151 {strides = array<i32>} : memref<162x2048xbf16, #tpu.memory_space<vmem>>, vector<6x2048xbf16>,
    %c0_171 = arith.constant 0 : index
    %c237_172 = arith.constant 237 : index
    %153 = vector.load %arg8[%c0_171, %c237_172] : memref<6x2304xbf16, #tpu.memory_space<vmem>>, vector<6x2048xbf16>
    %c144 = arith.constant 144 : index
    %c0_173 = arith.constant 0 : index
    %154 = vector.load %arg9[%c144, %c0_173] : memref<162x2048xbf16, #tpu.memory_space<vmem>>, vector<6x2048xbf16>
    tpu.vector_store %arg9[%c144, %c0_173], %153 {strides = array<i32>} : memref<162x2048xbf16, #tpu.memory_space<vmem>>, vector<6x2048xbf16>,
    %c0_174 = arith.constant 0 : index
    %c238_175 = arith.constant 238 : index
    %155 = vector.load %arg8[%c0_174, %c238_175] : memref<6x2304xbf16, #tpu.memory_space<vmem>>, vector<6x2048xbf16>
    %c150 = arith.constant 150 : index
    %c0_176 = arith.constant 0 : index
    %156 = vector.load %arg9[%c150, %c0_176] : memref<162x2048xbf16, #tpu.memory_space<vmem>>, vector<6x2048xbf16>
    tpu.vector_store %arg9[%c150, %c0_176], %155 {strides = array<i32>} : memref<162x2048xbf16, #tpu.memory_space<vmem>>, vector<6x2048xbf16>,
    %c0_177 = arith.constant 0 : index
    %c239_178 = arith.constant 239 : index
    %157 = vector.load %arg8[%c0_177, %c239_178] : memref<6x2304xbf16, #tpu.memory_space<vmem>>, vector<6x2048xbf16>
    %c156 = arith.constant 156 : index
    %c0_179 = arith.constant 0 : index
    %158 = vector.load %arg9[%c156, %c0_179] : memref<162x2048xbf16, #tpu.memory_space<vmem>>, vector<6x2048xbf16>
    tpu.vector_store %arg9[%c156, %c0_179], %157 {strides = array<i32>} : memref<162x2048xbf16, #tpu.memory_space<vmem>>, vector<6x2048xbf16>,
    %c0_180 = arith.constant 0 : index
    %c0_181 = arith.constant 0 : index
    %159 = vector.load %arg3[%c0_180, %c0_181] : memref<8x162xbf16, #tpu.memory_space<vmem>>, vector<8x162xbf16>
    %c0_182 = arith.constant 0 : index
    %c0_183 = arith.constant 0 : index
    %160 = vector.load %arg9[%c0_182, %c0_183] : memref<162x2048xbf16, #tpu.memory_space<vmem>>, vector<162x2048xbf16>
    %cst_184 = arith.constant dense<0.000000e+00> : vector<8x2048xf32>
    %161 = tpu.matmul %159, %160, %cst_184 {dimension_numbers = #tpu.dot_dimension_numbers<[1], [0], [0], [1], [0, 0, 1, 1], [], []>} : vector<8x162xbf16>, vector<162x2048xbf16>, vector<8x2048xf32> -> vector<8x2048xf32>
    %c0_185 = arith.constant 0 : index
    %c2 = arith.constant 2 : index
    %162 = vector.load %arg4[%c0_185, %c2] : memref<8x4xf32, #tpu.memory_space<vmem>>, vector<8x1xf32>
    %c0_186 = arith.constant 0 : index
    %c3 = arith.constant 3 : index
    %163 = vector.load %arg4[%c0_186, %c3] : memref<8x4xf32, #tpu.memory_space<vmem>>, vector<8x1xf32>
    %164 = vector.broadcast %0 : vector<1x2048xf32> to vector<8x2048xf32>
    %165 = arith.mulf %161, %164 : vector<8x2048xf32>
    %cst_187 = arith.constant dense<0.000000e+00> : vector<8xf32>
    %166 = vector.multi_reduction <add>, %165, %cst_187 [1] : vector<8x2048xf32> to vector<8xf32>
    %167 = vector.shape_cast %166 : vector<8xf32> to vector<8x1xf32>
    %cst_188 = arith.constant 9.765625E-4 : f32
    %168 = vector.broadcast %cst_188 : f32 to vector<8x1xf32>
    %169 = arith.mulf %167, %168 : vector<8x1xf32>
    %170 = arith.mulf %165, %161 : vector<8x2048xf32>
    %cst_189 = arith.constant dense<0.000000e+00> : vector<8xf32>
    %171 = vector.multi_reduction <add>, %170, %cst_189 [1] : vector<8x2048xf32> to vector<8xf32>
    %172 = vector.shape_cast %171 : vector<8xf32> to vector<8x1xf32>
    %cst_190 = arith.constant 9.765625E-4 : f32
    %173 = vector.broadcast %cst_190 : f32 to vector<8x1xf32>
    %174 = arith.mulf %172, %173 : vector<8x1xf32>
    %175 = arith.mulf %169, %169 : vector<8x1xf32>
    %176 = arith.subf %174, %175 : vector<8x1xf32>
    %cst_191 = arith.constant 9.99999974E-6 : f32
    %177 = vector.broadcast %cst_191 : f32 to vector<8x1xf32>
    %178 = arith.addf %176, %177 : vector<8x1xf32>
    %179 = math.rsqrt %178 : vector<8x1xf32>
    %180 = arith.mulf %162, %179 : vector<8x1xf32>
    %181 = arith.mulf %169, %180 : vector<8x1xf32>
    %182 = arith.subf %163, %181 : vector<8x1xf32>
    %183 = vector.broadcast %180 : vector<8x1xf32> to vector<8x2048xf32>
    %184 = arith.mulf %161, %183 : vector<8x2048xf32>
    %185 = vector.broadcast %182 : vector<8x1xf32> to vector<8x2048xf32>
    %186 = arith.addf %184, %185 : vector<8x2048xf32>
    %cst_192 = arith.constant 0.000000e+00 : f32
    %187 = vector.broadcast %cst_192 : f32 to vector<8x2048xf32>
    %188 = arith.cmpf ogt, %186, %187 : vector<8x2048xf32>
    %cst_193 = arith.constant 0.000000e+00 : f32
    %189 = vector.broadcast %cst_193 : f32 to vector<8x2048xf32>
    %190 = arith.minimumf %186, %189 : vector<8x2048xf32>
    %191 = math.exp %190 : vector<8x2048xf32>
    %cst_194 = arith.constant 1.000000e+00 : f32
    %192 = vector.broadcast %cst_194 : f32 to vector<8x2048xf32>
    %193 = arith.subf %191, %192 : vector<8x2048xf32>
    %194 = arith.select %188, %186, %193 : vector<8x2048xi1>, vector<8x2048xf32>
    %195 = arith.truncf %194 : vector<8x2048xf32> to vector<8x2048xbf16>
    %c0_195 = arith.constant 0 : index
    %c0_196 = arith.constant 0 : index
    %196 = vector.load %arg5[%c0_195, %c0_196] : memref<8x2048xbf16, #tpu.memory_space<vmem>>, vector<8x2048xbf16>
    tpu.vector_store %arg5[%c0_195, %c0_196], %195 {strides = array<i32>} : memref<8x2048xbf16, #tpu.memory_space<vmem>>, vector<8x2048xbf16>,
    return
  }
}

</mosaic_0001>

<bundles_post_ra>
// kernel: conv_block_forward.1
= control target key start
LH: loop header
LB: loop body
LE: loop exit
PB: predicated region body
PF: predicated region fallthrough
CT: control target
= control target key end

     0   :  { %vm31_vm0 = vcmask 1041408   ;;  %vm32_vm1 = vcmask 1043458   ;;  %vm34_vm2 = vcmask 1045508   ;;  %v10245_v2 = vmov 0   ;;  %s10247_s26 = smov 110   ;;  %s10248_s27 = smov 109   ;;  %s14844_s0 = inlined_call_operand.vmem [shape: bf16[4,2000], index: 0, kind: input, shape index: {}]   ;;  %s14845_s2 = inlined_call_operand.vmem [shape: bf16[6,108], index: 2, kind: input, shape index: {}]   ;;  %s14846_s1 = inlined_call_operand.vmem [shape: f32[1,2048], index: 1, kind: input, shape index: {}]   ;;  %s14847_s4 = inlined_call_operand.vmem [shape: f32[8,4], index: 4, kind: input, shape index: {}]   ;;  %s14848_s3 = inlined_call_operand.vmem [shape: bf16[8,162], index: 3, kind: input, shape index: {}]   ;;  %s14849_s5 = inlined_call_operand.vmem [shape: bf16[8,2048], index: 5, kind: output, shape index: {}]  }
   0x1   :  { %v24_v0 = vld [vmem:[%s14844_s0] sm:$0xff]  ;;  %v25_v1 = vld [vmem:[%s14844_s0 + $0x8] sm:$0xff]  ;;  %23 = vst [vmem:[#allocation2] sm:$0x3] %v10245_v2  ;;  %vm36_vm3 = vcmask 654342   ;;  %10147 = vset.pattern.permute.xlu2 %v10245_v2  ;;  %vm33_vm4 = vmor %vm32_vm1, %vm31_vm0  ;;  %vm39_vm5 = vcmask 1042048  }
   0x2   :  { %28 = vst [vmem:[#allocation2 + $0x2] sm:$0xff] %v24_v0  ;;  %v26_v3 = vld [vmem:[%s14844_s0 + $0x10] sm:$0xff]  ;;  %vm35_vm6 = vmor %vm34_vm2, %vm33_vm4  ;;  %v27_v4 = vld [vmem:[%s14844_s0 + $0x18] sm:$0xff]  ;;  %s10246_s0 = smov 111   ;;  %s10249_s28 = smov 101   ;;  %vm105_vm9 = vcmask 1043456  }
   0x3   :  { %29 = vst [vmem:[#allocation2 + $0xa] sm:$0xff] %v25_v1  ;;  %vm37_vm7 = vmor %vm36_vm3, %vm35_vm6  ;;  %s10250_s29 = smov 100   ;;  %vm107_vm10 = vcmask 908288   ;;  %s10251_s30 = smov 99   ;;  %vm14875_vm11 = vcmask 900096   ;;  %vm14874_vm12 = vcmask 891904  }
   0x4   :  { %3802 = vst [vmem:[#allocation4] sm:$0x7] %v10245_v2  ;;  %vm40_vm8 = vmor %vm32_vm1, %vm39_vm5  ;;  %s10252_s6 = smov 91   ;;  %s10253_s7 = smov 90   ;;  %vm14873_vm13 = vcmask 826368   ;;  %vm493_vm14 = vcmask 818176  }
   0x5   :  { %3835 = vst [vmem:[#allocation4 + $0x44] sm:$0x7] %v10245_v2  ;;  %s10254_s8 = smov 89   ;;  %s10255_s9 = smov 11   ;;  %vm14872_vm15 = vcmask 809984   ;;  %vm14871_vm0 = vcmask 744448  }
   0x6   :  { %30 = vst [vmem:[#allocation2 + $0x12] sm:$0xff] %v26_v3  ;;  %s10256_s10 = smov 10   ;;  %s10257_s11 = smov 9   ;;  %vm14870_vm1 = vcmask 736256   ;;  %vm879_vm2 = vcmask 728064   ;;  %vm14869_vm3 = vcmask 89088  }
   0x7   :  { %38 = vst.msk [vmem:[#allocation2 + $0x1a] sm:$0xff] %vm37_vm7, %v27_v4  ;;  %s10258_s12 = smov 1   ;;  %s10259_s13 = smov 127   ;;  %vm14868_vm4 = vcmask 80896   ;;  %vm14867_vm5 = vcmask 72704   ;;  %vm1265_vm6 = vcmask 7168  }
   0x8   :  { %41 = vst.msk [vmem:[#allocation2 + $0x20] sm:$0xf] %vm40_vm8, %v10245_v2  ;;  %s10260_s14 = smov 119   ;;  %s10261_s15 = smov 118   ;;  %vm14855_vm7 = vcmask 1039360   ;;  %vm14850_vm8 = vcmask 973824  }
   0x9   :  { %v10319_v5 = vld [vmem:[#allocation2] sm:$0xff]  ;;  %s10262_s16 = smov 117   ;;  %s10263_s17 = smov 39  }
   0xa   :  { %v10321_v6 = vld [vmem:[#allocation2 + $0x8] sm:$0xff]  ;;  %48 = vst [vmem:[#allocation1] ss:$2 sm:$0xff] %v10319_v5  ;;  %s10264_s18 = smov 38   ;;  %s10265_s19 = smov 37  }
   0xb   :  { %51 = vst [vmem:[#allocation1 + $0x10] ss:$2 sm:$0xff] %v10321_v6  ;;  %s10266_s20 = smov 29   ;;  %s14864_s21 = smov 28  }
   0xc   :  { %s14862_s22 = smov 27   ;;  %s10269_s23 = smov 19  }
   0xd   :  { %v10325_v7 = vld [vmem:[#allocation2 + $0x10] sm:$0xff]  ;;  %s10270_s24 = smov 18   ;;  %s10271_s25 = smov 17  }
   0xe   :  { %54 = vst [vmem:[#allocation1 + $0x20] ss:$2 sm:$0xff] %v10325_v7  ;;  %v10328_v8 = vld [vmem:[#allocation2 + $0x18] sm:$0xff] }
   0xf   :  { %57 = vst [vmem:[#allocation1 + $0x30] ss:$2 sm:$0xff] %v10328_v8  ;;  %v46_v10 = vld [vmem:[#allocation2 + $0x20] sm:$0x3] }
  0x10   :  { %v143_v25 = vld [vmem:[#allocation2 + $0x20] sm:$0x3] }
  0x11   :  { %v58_v9 = vld.sshfl [vmem:[#allocation1] sm:$0xff pattern:$0x75643120]  ;;  %v60_v13 = vld.sshfl [vmem:[#allocation1 + $0x8] sm:$0xff pattern:$0x75643120] }
  0x12   :  { %v62_v11 = vld.sshfl [vmem:[#allocation1 + $0x10] sm:$0xff pattern:$0x75643120]  ;;  %78 = vrot.lane.b32.xlu0 %v58_v9, %s10246_s0  ;;  %v64_v12 = vld.sshfl [vmem:[#allocation1 + $0x18] sm:$0xff pattern:$0x75643120] }
  0x13   :  { %82 = vrot.lane.b32.xlu1 %v62_v11, %s10246_s0  ;;  %149 = vst [vmem:[#allocation1 + $0x11] ss:$2 sm:$0xff] %v10321_v6  ;;  %v240_v29 = vld [vmem:[#allocation2 + $0x20] sm:$0x3] }
  0x14   :  { %75 = vst [vmem:[#allocation1] ss:$2 sm:$0xff] %v46_v10  ;;  %v336_v41 = vld [vmem:[#allocation2 + $0x20] sm:$0x3] }
  0x15   :  { %v66_v14 = vld.sshfl [vmem:[#allocation1 + $0x20] sm:$0xff pattern:$0x75643120]  ;;  %v68_v15 = vld.sshfl [vmem:[#allocation1 + $0x28] sm:$0xff pattern:$0x75643120] }
  0x16   :  { %86 = vrot.lane.b32.xlu2 %v66_v14, %s10246_s0  ;;  %v72_v16 = vld.sshfl [vmem:[#allocation1 + $0x38] sm:$0xff pattern:$0x75643120]  ;;  %v70_v17 = vld.sshfl [vmem:[#allocation1 + $0x30] sm:$0xff pattern:$0x75643120] }
  0x17   :  { %152 = vst [vmem:[#allocation1 + $0x21] ss:$2 sm:$0xff] %v10325_v7  ;;  %v433_v51 = vld [vmem:[#allocation2 + $0x20] sm:$0x3] }
  0x18   :  { %155 = vst [vmem:[#allocation1 + $0x31] ss:$2 sm:$0xff] %v10328_v8  ;;  %v529_v62 = vld [vmem:[#allocation2 + $0x20] sm:$0x3] }
  0x1a   :  { %80 = vrot.lane.b32.xlu0 %v60_v13, %s10246_s0  ;;  %v162_v18 = vld.sshfl [vmem:[#allocation1 + $0x18] sm:$0xff pattern:$0x75643120]  ;;  %v160_v19 = vld.sshfl [vmem:[#allocation1 + $0x10] sm:$0xff pattern:$0x75643120] }
  0x1b   :  { %84 = vrot.lane.b32.xlu1 %v64_v12, %s10246_s0  ;;  %v76_v20 = vld.sshfl [vmem:[#allocation1] sm:$0xff pattern:$0x75643120]  ;;  %245 = vst [vmem:[#allocation1 + $0x10] ss:$2 sm:$0xff] %v10321_v6 }
  0x1c   :  { %146 = vst [vmem:[#allocation1 + $0x1] ss:$2 sm:$0xff] %v10319_v5 }
  0x1e   :  { %88 = vrot.lane.b32.xlu2 %v68_v15, %s10246_s0  ;;  %v166_v21 = vld.sshfl [vmem:[#allocation1 + $0x28] sm:$0xff pattern:$0x75643120]  ;;  %v164_v22 = vld.sshfl [vmem:[#allocation1 + $0x20] sm:$0xff pattern:$0x75643120] }
  0x1f   :  { %v170_v23 = vld.sshfl [vmem:[#allocation1 + $0x38] sm:$0xff pattern:$0x75643120]  ;;  %v168_v24 = vld.sshfl [vmem:[#allocation1 + $0x30] sm:$0xff pattern:$0x75643120] }
  0x20   :  { %248 = vst [vmem:[#allocation1 + $0x20] ss:$2 sm:$0xff] %v10325_v7 }
  0x21   :  { %251 = vst [vmem:[#allocation1 + $0x30] ss:$2 sm:$0xff] %v10328_v8 }
  0x22   :  { %90 = vrot.lane.b32.xlu0 %v70_v17, %s10246_s0  ;;  %v258_v30 = vld.sshfl [vmem:[#allocation1 + $0x18] sm:$0xff pattern:$0x75643120]  ;;  %v256_v34 = vld.sshfl [vmem:[#allocation1 + $0x10] sm:$0xff pattern:$0x75643120] }
  0x23   :  { %92 = vrot.lane.b32.xlu1 %v72_v16, %s10246_s0  ;;  %v158_v26 = vld.sshfl [vmem:[#allocation1 + $0x8] sm:$0xff pattern:$0x75643120]  ;;  %v156_v27 = vld.sshfl [vmem:[#allocation1] sm:$0xff pattern:$0x75643120] }
  0x24   :  { %173 = vst [vmem:[#allocation1 + $0x1] ss:$2 sm:$0xff] %v143_v25 }
  0x25   :  { %342 = vst [vmem:[#allocation1 + $0x11] ss:$2 sm:$0xff] %v10321_v6 }
  0x26   :  { %94 = vrot.lane.b32.xlu2 %v76_v20, %s10246_s0 }
  0x27   :  { %v260_v36 = vld.sshfl [vmem:[#allocation1 + $0x20] sm:$0xff pattern:$0x75643120]  ;;  %v262_v37 = vld.sshfl [vmem:[#allocation1 + $0x28] sm:$0xff pattern:$0x75643120] }
  0x28   :  { %v266_v33 = vld.sshfl [vmem:[#allocation1 + $0x38] sm:$0xff pattern:$0x75643120]  ;;  %v264_v35 = vld.sshfl [vmem:[#allocation1 + $0x30] sm:$0xff pattern:$0x75643120] }
  0x29   :  { %348 = vst [vmem:[#allocation1 + $0x31] ss:$2 sm:$0xff] %v10328_v8 }
  0x2a   :  { %182 = vrot.lane.b32.xlu0 %v162_v18, %s10247_s26  ;;  %345 = vst [vmem:[#allocation1 + $0x21] ss:$2 sm:$0xff] %v10325_v7 }
  0x2b   :  { %184 = vrot.lane.b32.xlu1 %v164_v22, %s10247_s26  ;;  %v174_v28 = vld.sshfl [vmem:[#allocation1] sm:$0xff pattern:$0x75643120]  ;;  %v626_v22 = vld [vmem:[#allocation2 + $0x20] sm:$0x3] }
  0x2c   :  { %242 = vst [vmem:[#allocation1] ss:$2 sm:$0xff] %v10319_v5  ;;  %v355_v42 = vld.sshfl [vmem:[#allocation1 + $0x18] sm:$0xff pattern:$0x75643120] }
  0x2d   :  { %v353_v45 = vld.sshfl [vmem:[#allocation1 + $0x10] sm:$0xff pattern:$0x75643120] }
  0x2e   :  { %180 = vrot.lane.b32.xlu2 %v160_v19, %s10247_s26  ;;  %438 = vst [vmem:[#allocation1 + $0x10] ss:$2 sm:$0xff] %v10321_v6 }
  0x30   :  { %v363_v43 = vld.sshfl [vmem:[#allocation1 + $0x38] sm:$0xff pattern:$0x75643120]  ;;  %v361_v44 = vld.sshfl [vmem:[#allocation1 + $0x30] sm:$0xff pattern:$0x75643120] }
  0x31   :  { %444 = vst [vmem:[#allocation1 + $0x30] ss:$2 sm:$0xff] %v10328_v8  ;;  %v357_v47 = vld.sshfl [vmem:[#allocation1 + $0x20] sm:$0xff pattern:$0x75643120] }
  0x32   :  { %176 = vrot.lane.b32.xlu0 %v156_v27, %s10247_s26  ;;  %v359_v48 = vld.sshfl [vmem:[#allocation1 + $0x28] sm:$0xff pattern:$0x75643120] }
  0x33   :  { %178 = vrot.lane.b32.xlu1 %v158_v26, %s10247_s26  ;;  %v254_v31 = vld.sshfl [vmem:[#allocation1 + $0x8] sm:$0xff pattern:$0x75643120]  ;;  %v252_v32 = vld.sshfl [vmem:[#allocation1] sm:$0xff pattern:$0x75643120] }
  0x34   :  { %269 = vst [vmem:[#allocation1] ss:$2 sm:$0xff] %v240_v29 }
  0x35   :  { %441 = vst [vmem:[#allocation1 + $0x20] ss:$2 sm:$0xff] %v10325_v7  ;;  %v451_v55 = vld.sshfl [vmem:[#allocation1 + $0x18] sm:$0xff pattern:$0x75643120] }
  0x36   :  { %186 = vrot.lane.b32.xlu2 %v166_v21, %s10247_s26  ;;  %v449_v56 = vld.sshfl [vmem:[#allocation1 + $0x10] sm:$0xff pattern:$0x75643120] }
  0x37   :  { %535 = vst [vmem:[#allocation1 + $0x11] ss:$2 sm:$0xff] %v10321_v6 }
  0x38   :  { %v459_v52 = vld.sshfl [vmem:[#allocation1 + $0x38] sm:$0xff pattern:$0x75643120]  ;;  %v457_v53 = vld.sshfl [vmem:[#allocation1 + $0x30] sm:$0xff pattern:$0x75643120] }
  0x39   :  { %541 = vst [vmem:[#allocation1 + $0x31] ss:$2 sm:$0xff] %v10328_v8 }
  0x3a   :  { %188 = vrot.lane.b32.xlu0 %v168_v24, %s10247_s26 }
  0x3b   :  { %190 = vrot.lane.b32.xlu1 %v170_v23, %s10247_s26  ;;  %v270_v38 = vld.sshfl [vmem:[#allocation1] sm:$0xff pattern:$0x75643120] }
  0x3c   :  { %339 = vst [vmem:[#allocation1 + $0x1] ss:$2 sm:$0xff] %v10319_v5  ;;  %v453_v57 = vld.sshfl [vmem:[#allocation1 + $0x20] sm:$0xff pattern:$0x75643120] }
  0x3d   :  { %v455_v58 = vld.sshfl [vmem:[#allocation1 + $0x28] sm:$0xff pattern:$0x75643120] }
  0x3e   :  { %192 = vrot.lane.b32.xlu2 %v174_v28, %s10247_s26  ;;  %538 = vst [vmem:[#allocation1 + $0x21] ss:$2 sm:$0xff] %v10325_v7  ;;  %v548_v13 = vld.sshfl [vmem:[#allocation1 + $0x18] sm:$0xff pattern:$0x75643120] }
  0x3f   :  { %v546_v14 = vld.sshfl [vmem:[#allocation1 + $0x10] sm:$0xff pattern:$0x75643120] }
  0x40   :  { %v10398_v3 = vld.sshfl [vmem:[#allocation1 + $0x38] sm:$0xff pattern:$0x75643120]  ;;  %v10400_v4 = vld.sshfl [vmem:[#allocation1 + $0x30] sm:$0xff pattern:$0x75643120] }
  0x41   :  { %637 = vst [vmem:[#allocation1 + $0x30] ss:$2 sm:$0xff] %v10328_v8 }
  0x42   :  { %272 = vrot.lane.b32.xlu0 %v252_v32, %s10248_s27  ;;  %631 = vst [vmem:[#allocation1 + $0x10] ss:$2 sm:$0xff] %v10321_v6 }
  0x43   :  { %274 = vrot.lane.b32.xlu1 %v254_v31, %s10248_s27  ;;  %v351_v39 = vld.sshfl [vmem:[#allocation1 + $0x8] sm:$0xff pattern:$0x75643120]  ;;  %v349_v40 = vld.sshfl [vmem:[#allocation1] sm:$0xff pattern:$0x75643120] }
  0x44   :  { %366 = vst [vmem:[#allocation1 + $0x1] ss:$2 sm:$0xff] %v336_v41 }
  0x45   :  { %v550_v12 = vld.sshfl [vmem:[#allocation1 + $0x20] sm:$0xff pattern:$0x75643120]  ;;  %v552_v16 = vld.sshfl [vmem:[#allocation1 + $0x28] sm:$0xff pattern:$0x75643120] }
  0x46   :  { %276 = vrot.lane.b32.xlu2 %v256_v34, %s10248_s27  ;;  %634 = vst [vmem:[#allocation1 + $0x20] ss:$2 sm:$0xff] %v10325_v7 }
  0x4a   :  { %278 = vrot.lane.b32.xlu0 %v258_v30, %s10248_s27 }
  0x4b   :  { %280 = vrot.lane.b32.xlu1 %v260_v36, %s10248_s27  ;;  %v367_v46 = vld.sshfl [vmem:[#allocation1] sm:$0xff pattern:$0x75643120] }
  0x4c   :  { %435 = vst [vmem:[#allocation1] ss:$2 sm:$0xff] %v10319_v5 }
  0x4e   :  { %282 = vrot.lane.b32.xlu2 %v262_v37, %s10248_s27  ;;  %v10434_v37 = vld.sshfl [vmem:[#allocation1 + $0x38] sm:$0xff pattern:$0x75643120] }
  0x52   :  { %284 = vrot.lane.b32.xlu0 %v264_v35, %s10248_s27 }
  0x53   :  { %286 = vrot.lane.b32.xlu1 %v266_v33, %s10248_s27  ;;  %v447_v49 = vld.sshfl [vmem:[#allocation1 + $0x8] sm:$0xff pattern:$0x75643120]  ;;  %v445_v50 = vld.sshfl [vmem:[#allocation1] sm:$0xff pattern:$0x75643120] }
  0x54   :  { %462 = vst [vmem:[#allocation1] ss:$2 sm:$0xff] %v433_v51 }
  0x56   :  { %288 = vrot.lane.b32.xlu2 %v270_v38, %s10248_s27 }
  0x5a   :  { %369 = vrot.lane.b32.xlu0 %v349_v40, %s10249_s28  ;;  %v10436_v40 = vld.sshfl [vmem:[#allocation1 + $0x30] sm:$0xff pattern:$0x75643120] }
  0x5b   :  { %371 = vrot.lane.b32.xlu1 %v351_v39, %s10249_s28  ;;  %v463_v54 = vld.sshfl [vmem:[#allocation1] sm:$0xff pattern:$0x75643120]  ;;  %734 = vst [vmem:[#allocation1 + $0x31] ss:$2 sm:$0xff] %v10328_v8 }
  0x5c   :  { %532 = vst [vmem:[#allocation1 + $0x1] ss:$2 sm:$0xff] %v10319_v5 }
  0x5e   :  { %373 = vrot.lane.b32.xlu2 %v353_v45, %s10249_s28 }
  0x62   :  { %375 = vrot.lane.b32.xlu0 %v355_v42, %s10249_s28 }
  0x63   :  { %377 = vrot.lane.b32.xlu1 %v357_v47, %s10249_s28  ;;  %v544_v60 = vld.sshfl [vmem:[#allocation1 + $0x8] sm:$0xff pattern:$0x75643120]  ;;  %v542_v61 = vld.sshfl [vmem:[#allocation1] sm:$0xff pattern:$0x75643120] }
  0x64   :  { %559 = vst [vmem:[#allocation1 + $0x1] ss:$2 sm:$0xff] %v529_v62 }
  0x66   :  { %379 = vrot.lane.b32.xlu2 %v359_v48, %s10249_s28 }
  0x6a   :  { %381 = vrot.lane.b32.xlu0 %v361_v44, %s10249_s28 }
  0x6b   :  { %383 = vrot.lane.b32.xlu1 %v363_v43, %s10249_s28  ;;  %v10404_v10 = vld.sshfl [vmem:[#allocation1] sm:$0xff pattern:$0x75643120] }
  0x6c   :  { %628 = vst [vmem:[#allocation1] ss:$2 sm:$0xff] %v10319_v5 }
  0x6e   :  { %385 = vrot.lane.b32.xlu2 %v367_v46, %s10249_s28 }
  0x70   :  { %v87_v59 = vpop.permute.xlu2 %86 }
  0x71   :  { %v100_v63 = vrot.slane %v87_v59, 4 }
  0x72   :  { %465 = vrot.lane.b32.xlu0 %v445_v50, %s10250_s29 }
  0x73   :  { %467 = vrot.lane.b32.xlu1 %v447_v49, %s10250_s29  ;;  %v10417_v19 = vld.sshfl [vmem:[#allocation1 + $0x8] sm:$0xff pattern:$0x75643120]  ;;  %v10419_v21 = vld.sshfl [vmem:[#allocation1] sm:$0xff pattern:$0x75643120] }
  0x74   :  { %655 = vst [vmem:[#allocation1] ss:$2 sm:$0xff] %v626_v22 }
  0x76   :  { %469 = vrot.lane.b32.xlu2 %v449_v56, %s10250_s29 }
  0x78   :  { %v10390_v0 = vpop.permute.xlu2 %88 }
  0x79   :  { %v101_v1 = vrot.slane %v10390_v0, 4 }
  0x7a   :  { %471 = vrot.lane.b32.xlu0 %v451_v55, %s10250_s29  ;;  %v642_v55 = vld.sshfl [vmem:[#allocation1 + $0x10] sm:$0xff pattern:$0x75643120] }
  0x7b   :  { %473 = vrot.lane.b32.xlu1 %v453_v57, %s10250_s29  ;;  %v115_v2 = vsel %vm105_vm9, %v100_v63, %v101_v1  ;;  %v10438_v43 = vld.sshfl [vmem:[#allocation1] sm:$0xff pattern:$0x75643120] }
  0x7c   :  { %v116_v9 = vsel %vm107_vm10, %v87_v59, %v115_v2  ;;  %725 = vst [vmem:[#allocation1 + $0x1] ss:$2 sm:$0xff] %v10319_v5 }
  0x7d   :  { %135 = vst [vmem:[#allocation3 + $0x20] sm:$0x33] %v116_v9 }
  0x7e   :  { %475 = vrot.lane.b32.xlu2 %v455_v58, %s10250_s29  ;;  %v648_v58 = vld.sshfl [vmem:[#allocation1 + $0x28] sm:$0xff pattern:$0x75643120] }
  0x80   :  { %v95_v11 = vpop.permute.xlu2 %94 }
  0x81   :  { %v104_v38 = vrot.slane %v95_v11, 4 }
  0x82   :  { %477 = vrot.lane.b32.xlu0 %v457_v53, %s10250_s29  ;;  %v646_v53 = vld.sshfl [vmem:[#allocation1 + $0x20] sm:$0xff pattern:$0x75643120] }
  0x83   :  { %479 = vrot.lane.b32.xlu1 %v459_v52, %s10250_s29  ;;  %v644_v52 = vld.sshfl [vmem:[#allocation1 + $0x18] sm:$0xff pattern:$0x75643120]  ;;  %731 = vst [vmem:[#allocation1 + $0x21] ss:$2 sm:$0xff] %v10325_v7 }
  0x84   :  { %v79_v15 = vpop.permute.xlu0 %78  ;;  %728 = vst [vmem:[#allocation1 + $0x11] ss:$2 sm:$0xff] %v10321_v6  ;;  %v737_v9 = vld.sshfl [vmem:[#allocation1 + $0x8] sm:$0xff pattern:$0x75643120] }
  0x85   :  { %v83_v17 = vpop.permute.xlu1 %82  ;;  %v96_v24 = vrot.slane %v79_v15, 4  ;;  %v735_v11 = vld.sshfl [vmem:[#allocation1] sm:$0xff pattern:$0x75643120] }
  0x86   :  { %481 = vrot.lane.b32.xlu2 %v463_v54, %s10250_s29  ;;  %v98_v23 = vrot.slane %v83_v17, 4 }
  0x88   :  { %v10413_v18 = vpop.permute.xlu2 %180 }
  0x89   :  { %v196_v54 = vrot.slane %v10413_v18, 4 }
  0x8a   :  { %562 = vrot.lane.b32.xlu0 %v542_v61, %s10251_s30 }
  0x8b   :  { %564 = vrot.lane.b32.xlu1 %v544_v60, %s10251_s30 }
  0x8c   :  { %v81_v20 = vpop.permute.xlu0 %80 }
  0x8d   :  { %v85_v25 = vpop.permute.xlu1 %84  ;;  %v97_v26 = vrot.slane %v81_v20, 4 }
  0x8e   :  { %v99_v27 = vrot.slane %v85_v25, 4  ;;  %566 = vrot.lane.b32.xlu2 %v546_v14, %s10251_s30 }
  0x8f   :  { %v106_v28 = vsel %vm105_vm9, %v96_v24, %v97_v26  ;;  %v109_v29 = vsel %vm105_vm9, %v97_v26, %v98_v23 }
  0x90   :  { %v111_v30 = vsel %vm105_vm9, %v98_v23, %v99_v27  ;;  %v113_v31 = vsel %vm105_vm9, %v99_v27, %v100_v63  ;;  %v108_v32 = vsel %vm107_vm10, %v79_v15, %v106_v28  ;;  %v10427_v33 = vpop.permute.xlu2 %186  ;;  %v110_v36 = vsel %vm107_vm10, %v81_v20, %v109_v29  ;;  %v10487_v23 = vld.sshfl [vmem:[#allocation1 + $0x38] sm:$0xff pattern:$0x75643120]  ;;  %v10491_v27 = vld.sshfl [vmem:[#allocation1 + $0x30] sm:$0xff pattern:$0x75643120] }
  0x91   :  { %v112_v34 = vsel %vm107_vm10, %v83_v17, %v111_v30  ;;  %v114_v35 = vsel %vm107_vm10, %v85_v25, %v113_v31  ;;  %131 = vst [vmem:[#allocation3] sm:$0x33] %v108_v32  ;;  %v199_v57 = vrot.slane %v10427_v33, 4 }
  0x92   :  { %133 = vst [vmem:[#allocation3 + $0x10] sm:$0x33] %v112_v34  ;;  %568 = vrot.lane.b32.xlu0 %v548_v13, %s10251_s30 }
  0x93   :  { %134 = vst [vmem:[#allocation3 + $0x18] sm:$0x33] %v114_v35  ;;  %570 = vrot.lane.b32.xlu1 %v550_v12, %s10251_s30  ;;  %v722_v12 = vld [vmem:[#allocation2 + $0x20] sm:$0x3] }
  0x94   :  { %132 = vst [vmem:[#allocation3 + $0x8] sm:$0x33] %v110_v36  ;;  %v91_v39 = vpop.permute.xlu0 %90 }
  0x95   :  { %v93_v41 = vpop.permute.xlu1 %92  ;;  %v102_v42 = vrot.slane %v91_v39, 4  ;;  %752 = vst [vmem:[#allocation1 + $0x1] ss:$2 sm:$0xff] %v722_v12 }
  0x96   :  { %v103_v44 = vrot.slane %v93_v41, 4  ;;  %572 = vrot.lane.b32.xlu2 %v552_v16, %s10251_s30  ;;  %830 = vst [vmem:[#allocation1 + $0x30] ss:$2 sm:$0xff] %v10328_v8 }
  0x97   :  { %v117_v45 = vsel %vm105_vm9, %v101_v1, %v102_v42 }
  0x98   :  { %v121_v46 = vsel %vm105_vm9, %v103_v44, %v104_v38  ;;  %v118_v47 = vsel %vm107_vm10, %v10390_v0, %v117_v45  ;;  %v119_v48 = vsel %vm105_vm9, %v102_v42, %v103_v44  ;;  %v10450_v49 = vpop.permute.xlu2 %192  ;;  %v739_v38 = vld.sshfl [vmem:[#allocation1 + $0x10] sm:$0xff pattern:$0x75643120]  ;;  %v741_v42 = vld.sshfl [vmem:[#allocation1 + $0x18] sm:$0xff pattern:$0x75643120] }
  0x99   :  { %v122_v50 = vsel %vm107_vm10, %v93_v41, %v121_v46  ;;  %v120_v51 = vsel %vm107_vm10, %v91_v39, %v119_v48  ;;  %136 = vst [vmem:[#allocation3 + $0x28] sm:$0x33] %v118_v47  ;;  %v743_v41 = vld.sshfl [vmem:[#allocation1 + $0x20] sm:$0xff pattern:$0x75643120] }
  0x9a   :  { %138 = vst [vmem:[#allocation3 + $0x38] sm:$0x33] %v122_v50  ;;  %574 = vrot.lane.b32.xlu0 %v10400_v4, %s10251_s30  ;;  %v745_v46 = vld.sshfl [vmem:[#allocation1 + $0x28] sm:$0xff pattern:$0x75643120] }
  0x9b   :  { %137 = vst [vmem:[#allocation3 + $0x30] sm:$0x33] %v120_v51  ;;  %576 = vrot.lane.b32.xlu1 %v10398_v3, %s10251_s30 }
  0x9c   :  { %v183_v56 = vpop.permute.xlu0 %182  ;;  %v10489_v24 = vld.sshfl [vmem:[#allocation1] sm:$0xff pattern:$0x75643120]  ;;  %824 = vst [vmem:[#allocation1 + $0x10] ss:$2 sm:$0xff] %v10321_v6 }
  0x9d   :  { %v185_v59 = vpop.permute.xlu1 %184  ;;  %v197_v60 = vrot.slane %v183_v56, 4  ;;  %821 = vst [vmem:[#allocation1] ss:$2 sm:$0xff] %v10319_v5 }
  0x9e   :  { %v198_v61 = vrot.slane %v185_v59, 4  ;;  %578 = vrot.lane.b32.xlu2 %v10404_v10, %s10251_s30  ;;  %827 = vst [vmem:[#allocation1 + $0x20] ss:$2 sm:$0xff] %v10325_v7 }
  0x9f   :  { %v208_v62 = vsel %vm105_vm9, %v196_v54, %v197_v60 }
  0xa0   :  { %v209_v63 = vsel %vm14875_vm11, %v10413_v18, %v208_v62  ;;  %v210_v0 = vsel %vm105_vm9, %v197_v60, %v198_v61  ;;  %v212_v1 = vsel %vm105_vm9, %v198_v61, %v199_v57  ;;  %v10469_v2 = vpop.permute.xlu2 %276 }
  0xa1   :  { %v211_v3 = vsel %vm14875_vm11, %v183_v56, %v210_v0  ;;  %230 = vst [vmem:[#allocation3 + $0x10] sm:$0xcc] %v209_v63  ;;  %v213_v4 = vsel %vm14875_vm11, %v185_v59, %v212_v1 }
  0xa2   :  { %231 = vst [vmem:[#allocation3 + $0x18] sm:$0xcc] %v211_v3  ;;  %658 = vrot.lane.b32.xlu0 %v10419_v21, %s10252_s6  ;;  %v202_v21 = vrot.slane %v10450_v49, 4 }
  0xa3   :  { %232 = vst [vmem:[#allocation3 + $0x20] sm:$0xcc] %v213_v4  ;;  %660 = vrot.lane.b32.xlu1 %v10417_v19, %s10252_s6  ;;  %v10538_v4 = vld.sshfl [vmem:[#allocation1 + $0x38] sm:$0xff pattern:$0x75643120] }
  0xa4   :  { %v177_v10 = vpop.permute.xlu0 %176 }
  0xa5   :  { %v179_v13 = vpop.permute.xlu1 %178  ;;  %v194_v14 = vrot.slane %v177_v10, 4 }
  0xa6   :  { %v195_v15 = vrot.slane %v179_v13, 4  ;;  %662 = vrot.lane.b32.xlu2 %v642_v55, %s10252_s6 }
  0xa8   :  { %v206_v16 = vsel %vm105_vm9, %v195_v15, %v196_v54  ;;  %v203_v17 = vsel %vm105_vm9, %v194_v14, %v195_v15  ;;  %v10480_v18 = vpop.permute.xlu2 %282  ;;  %v819_v54 = vld [vmem:[#allocation2 + $0x20] sm:$0x3] }
  0xa9   :  { %v207_v20 = vsel %vm14875_vm11, %v179_v13, %v206_v16  ;;  %v205_v19 = vsel %vm14875_vm11, %v177_v10, %v203_v17  ;;  %v295_v51 = vrot.slane %v10480_v18, 4 }
  0xaa   :  { %229 = vst [vmem:[#allocation3 + $0x8] sm:$0xcc] %v207_v20  ;;  %664 = vrot.lane.b32.xlu0 %v644_v52, %s10252_s6 }
  0xab   :  { %228 = vst [vmem:[#allocation3] sm:$0xcc] %v205_v19  ;;  %666 = vrot.lane.b32.xlu1 %v646_v53, %s10252_s6  ;;  %v831_v53 = vld.sshfl [vmem:[#allocation1] sm:$0xff pattern:$0x75643120] }
  0xac   :  { %v189_v22 = vpop.permute.xlu0 %188 }
  0xad   :  { %v191_v25 = vpop.permute.xlu1 %190  ;;  %v200_v26 = vrot.slane %v189_v22, 4 }
  0xae   :  { %v201_v28 = vrot.slane %v191_v25, 4  ;;  %668 = vrot.lane.b32.xlu2 %v648_v58, %s10252_s6 }
  0xaf   :  { %v214_v29 = vsel %vm105_vm9, %v199_v57, %v200_v26 }
  0xb0   :  { %v215_v30 = vsel %vm14875_vm11, %v10427_v33, %v214_v29  ;;  %v216_v31 = vsel %vm105_vm9, %v200_v26, %v201_v28  ;;  %v218_v32 = vsel %vm105_vm9, %v201_v28, %v202_v21  ;;  %v10501_v34 = vpop.permute.xlu2 %288  ;;  %v292_v33 = vrot.slane %v10469_v2, 4  ;;  %v839_v21 = vld.sshfl [vmem:[#allocation1 + $0x20] sm:$0xff pattern:$0x75643120] }
  0xb1   :  { %v217_v35 = vsel %vm14875_vm11, %v189_v22, %v216_v31  ;;  %233 = vst [vmem:[#allocation3 + $0x28] sm:$0xcc] %v215_v30  ;;  %v219_v36 = vsel %vm14875_vm11, %v191_v25, %v218_v32  ;;  %v298_v1 = vrot.slane %v10501_v34, 4  ;;  %v837_v22 = vld.sshfl [vmem:[#allocation1 + $0x18] sm:$0xff pattern:$0x75643120] }
  0xb2   :  { %234 = vst [vmem:[#allocation3 + $0x30] sm:$0xcc] %v217_v35  ;;  %670 = vrot.lane.b32.xlu0 %v10436_v40, %s10252_s6  ;;  %v841_v28 = vld.sshfl [vmem:[#allocation1 + $0x28] sm:$0xff pattern:$0x75643120] }
  0xb3   :  { %235 = vst [vmem:[#allocation3 + $0x38] sm:$0xcc] %v219_v36  ;;  %672 = vrot.lane.b32.xlu1 %v10434_v37, %s10252_s6  ;;  %v915_v35 = vld [vmem:[#allocation2 + $0x20] sm:$0x3] }
  0xb4   :  { %v273_v39 = vpop.permute.xlu0 %272  ;;  %924 = vst [vmem:[#allocation1 + $0x21] ss:$2 sm:$0xff] %v10325_v7 }
  0xb5   :  { %v275_v44 = vpop.permute.xlu1 %274  ;;  %v290_v45 = vrot.slane %v273_v39, 4 }
  0xb6   :  { %v291_v47 = vrot.slane %v275_v44, 4  ;;  %674 = vrot.lane.b32.xlu2 %v10438_v43, %s10252_s6  ;;  %v10522_v43 = vld.sshfl [vmem:[#allocation1 + $0x8] sm:$0xff pattern:$0x75643120] }
  0xb7   :  { %848 = vst [vmem:[#allocation1] ss:$2 sm:$0xff] %v819_v54 }
  0xb8   :  { %v302_v37 = vsel %vm105_vm9, %v291_v47, %v292_v33  ;;  %v299_v40 = vsel %vm105_vm9, %v290_v45, %v291_v47  ;;  %v10516_v48 = vpop.permute.xlu2 %373 }
  0xb9   :  { %v303_v49 = vsel %vm14874_vm12, %v275_v44, %v302_v37  ;;  %v301_v50 = vsel %vm14874_vm12, %v273_v39, %v299_v40 }
  0xba   :  { %325 = vst [vmem:[#allocation3 + $0x48] sm:$0x33] %v303_v49  ;;  %755 = vrot.lane.b32.xlu0 %v735_v11, %s10253_s7  ;;  %v10542_v11 = vld.sshfl [vmem:[#allocation1 + $0x30] sm:$0xff pattern:$0x75643120] }
  0xbb   :  { %324 = vst [vmem:[#allocation3 + $0x40] sm:$0x33] %v301_v50  ;;  %757 = vrot.lane.b32.xlu1 %v737_v9, %s10253_s7 }
  0xbc   :  { %v279_v52 = vpop.permute.xlu0 %278  ;;  %927 = vst [vmem:[#allocation1 + $0x31] ss:$2 sm:$0xff] %v10328_v8  ;;  %v389_v8 = vrot.slane %v10516_v48, 4 }
  0xbd   :  { %v281_v55 = vpop.permute.xlu1 %280  ;;  %v293_v56 = vrot.slane %v279_v52, 4 }
  0xbe   :  { %v294_v57 = vrot.slane %v281_v55, 4  ;;  %759 = vrot.lane.b32.xlu2 %v739_v38, %s10253_s7 }
  0xbf   :  { %v304_v58 = vsel %vm105_vm9, %v292_v33, %v293_v56 }
  0xc0   :  { %v308_v59 = vsel %vm105_vm9, %v294_v57, %v295_v51  ;;  %v305_v60 = vsel %vm14874_vm12, %v10469_v2, %v304_v58  ;;  %v306_v61 = vsel %vm105_vm9, %v293_v56, %v294_v57  ;;  %v10531_v62 = vpop.permute.xlu2 %379  ;;  %v10540_v2 = vld.sshfl [vmem:[#allocation1] sm:$0xff pattern:$0x75643120] }
  0xc1   :  { %v309_v63 = vsel %vm14874_vm12, %v281_v55, %v308_v59  ;;  %v307_v0 = vsel %vm14874_vm12, %v279_v52, %v306_v61  ;;  %326 = vst [vmem:[#allocation3 + $0x50] sm:$0x33] %v305_v60  ;;  %v392_v7 = vrot.slane %v10531_v62, 4  ;;  %v936_v59 = vld.sshfl [vmem:[#allocation1 + $0x20] sm:$0xff pattern:$0x75643120] }
  0xc2   :  { %328 = vst [vmem:[#allocation3 + $0x60] sm:$0x33] %v309_v63  ;;  %761 = vrot.lane.b32.xlu0 %v741_v42, %s10253_s7  ;;  %v938_v63 = vld.sshfl [vmem:[#allocation1 + $0x28] sm:$0xff pattern:$0x75643120] }
  0xc3   :  { %327 = vst [vmem:[#allocation3 + $0x58] sm:$0x33] %v307_v0  ;;  %763 = vrot.lane.b32.xlu1 %v743_v41, %s10253_s7  ;;  %v10610_v0 = vld [vmem:[#allocation2 + $0x10] sm:$0xff] }
  0xc4   :  { %v285_v3 = vpop.permute.xlu0 %284  ;;  %918 = vst [vmem:[#allocation1 + $0x1] ss:$2 sm:$0xff] %v10319_v5 }
  0xc5   :  { %v287_v9 = vpop.permute.xlu1 %286  ;;  %v296_v10 = vrot.slane %v285_v3, 4  ;;  %1020 = vst [vmem:[#allocation1 + $0x20] ss:$2 sm:$0xff] %v10610_v0 }
  0xc6   :  { %v297_v12 = vrot.slane %v287_v9, 4  ;;  %765 = vrot.lane.b32.xlu2 %v745_v46, %s10253_s7 }
  0xc7   :  { %v310_v13 = vsel %vm105_vm9, %v295_v51, %v296_v10 }
  0xc8   :  { %v311_v14 = vsel %vm14874_vm12, %v10480_v18, %v310_v13  ;;  %v312_v15 = vsel %vm105_vm9, %v296_v10, %v297_v12  ;;  %v314_v16 = vsel %vm105_vm9, %v297_v12, %v298_v1  ;;  %v10552_v17 = vpop.permute.xlu2 %385  ;;  %v835_v18 = vld.sshfl [vmem:[#allocation1 + $0x10] sm:$0xff pattern:$0x75643120] }
  0xc9   :  { %v313_v20 = vsel %vm14874_vm12, %v285_v3, %v312_v15  ;;  %329 = vst [vmem:[#allocation3 + $0x68] sm:$0x33] %v311_v14  ;;  %v315_v5 = vsel %vm14874_vm12, %v287_v9, %v314_v16  ;;  %v395_v40 = vrot.slane %v10552_v17, 4  ;;  %v10612_v1 = vld [vmem:[#allocation2 + $0x8] sm:$0xff] }
  0xca   :  { %330 = vst [vmem:[#allocation3 + $0x70] sm:$0x33] %v313_v20  ;;  %767 = vrot.lane.b32.xlu0 %v10491_v27, %s10253_s7  ;;  %v942_v16 = vld.sshfl [vmem:[#allocation1 + $0x38] sm:$0xff pattern:$0x75643120] }
  0xcb   :  { %331 = vst [vmem:[#allocation3 + $0x78] sm:$0x33] %v315_v5  ;;  %769 = vrot.lane.b32.xlu1 %v10487_v23, %s10253_s7  ;;  %v928_v34 = vld.sshfl [vmem:[#allocation1] sm:$0xff pattern:$0x75643120] }
  0xcc   :  { %v370_v19 = vpop.permute.xlu0 %369  ;;  %921 = vst [vmem:[#allocation1 + $0x11] ss:$2 sm:$0xff] %v10321_v6  ;;  %v10574_v6 = vld.sshfl [vmem:[#allocation1 + $0x8] sm:$0xff pattern:$0x75643120] }
  0xcd   :  { %v372_v25 = vpop.permute.xlu1 %371  ;;  %v387_v26 = vrot.slane %v370_v19, 4  ;;  %945 = vst [vmem:[#allocation1 + $0x1] ss:$2 sm:$0xff] %v915_v35  ;;  %v940_v17 = vld.sshfl [vmem:[#allocation1 + $0x30] sm:$0xff pattern:$0x75643120] }
  0xce   :  { %v388_v29 = vrot.slane %v372_v25, 4  ;;  %771 = vrot.lane.b32.xlu2 %v10489_v24, %s10253_s7 }
  0xd0   :  { %v399_v23 = vsel %vm105_vm9, %v388_v29, %v389_v8  ;;  %v396_v27 = vsel %vm105_vm9, %v387_v26, %v388_v29  ;;  %v10567_v30 = vpop.permute.xlu2 %469 }
  0xd1   :  { %v400_v31 = vsel %vm14873_vm13, %v372_v25, %v399_v23  ;;  %v398_v32 = vsel %vm14873_vm13, %v370_v19, %v396_v27  ;;  %v485_v61 = vrot.slane %v10567_v30, 4 }
  0xd2   :  { %422 = vst [vmem:[#allocation3 + $0x48] sm:$0xcc] %v400_v31  ;;  %851 = vrot.lane.b32.xlu0 %v831_v53, %s10254_s8 }
  0xd3   :  { %421 = vst [vmem:[#allocation3 + $0x40] sm:$0xcc] %v398_v32  ;;  %853 = vrot.lane.b32.xlu1 %v10522_v43, %s10254_s8  ;;  %v10592_v43 = vld [vmem:[#allocation2] sm:$0xff]  ;;  %v932_v60 = vld.sshfl [vmem:[#allocation1 + $0x10] sm:$0xff pattern:$0x75643120] }
  0xd4   :  { %v376_v24 = vpop.permute.xlu0 %375  ;;  %v10590_v49 = vld.sshfl [vmem:[#allocation1] sm:$0xff pattern:$0x75643120]  ;;  %v934_v10 = vld.sshfl [vmem:[#allocation1 + $0x18] sm:$0xff pattern:$0x75643120] }
  0xd5   :  { %v378_v36 = vpop.permute.xlu1 %377  ;;  %v390_v33 = vrot.slane %v376_v24, 4  ;;  %1014 = vst [vmem:[#allocation1] ss:$2 sm:$0xff] %v10592_v43 }
  0xd6   :  { %v391_v38 = vrot.slane %v378_v36, 4  ;;  %855 = vrot.lane.b32.xlu2 %v835_v18, %s10254_s8  ;;  %1017 = vst [vmem:[#allocation1 + $0x10] ss:$2 sm:$0xff] %v10612_v1  ;;  %v1012_v18 = vld [vmem:[#allocation2 + $0x20] sm:$0x3] }
  0xd7   :  { %v401_v39 = vsel %vm105_vm9, %v389_v8, %v390_v33  ;;  %v10630_v8 = vld [vmem:[#allocation2 + $0x18] sm:$0xff] }
  0xd8   :  { %v405_v41 = vsel %vm105_vm9, %v391_v38, %v392_v7  ;;  %v402_v42 = vsel %vm14873_vm13, %v10516_v48, %v401_v39  ;;  %v403_v44 = vsel %vm105_vm9, %v390_v33, %v391_v38  ;;  %v10583_v45 = vpop.permute.xlu2 %475  ;;  %1023 = vst [vmem:[#allocation1 + $0x30] ss:$2 sm:$0xff] %v10630_v8 }
  0xd9   :  { %v406_v46 = vsel %vm14873_vm13, %v378_v36, %v405_v41  ;;  %v404_v47 = vsel %vm14873_vm13, %v376_v24, %v403_v44  ;;  %423 = vst [vmem:[#allocation3 + $0x50] sm:$0xcc] %v402_v42 }
  0xda   :  { %425 = vst [vmem:[#allocation3 + $0x60] sm:$0xcc] %v406_v46  ;;  %857 = vrot.lane.b32.xlu0 %v837_v22, %s10254_s8 }
  0xdb   :  { %424 = vst [vmem:[#allocation3 + $0x58] sm:$0xcc] %v404_v47  ;;  %859 = vrot.lane.b32.xlu1 %v839_v21, %s10254_s8 }
  0xdc   :  { %v382_v37 = vpop.permute.xlu0 %381  ;;  %v10628_v5 = vld.sshfl [vmem:[#allocation1 + $0x8] sm:$0xff pattern:$0x75643120]  ;;  %v1024_v22 = vld.sshfl [vmem:[#allocation1] sm:$0xff pattern:$0x75643120] }
  0xdd   :  { %v384_v48 = vpop.permute.xlu1 %383  ;;  %v393_v50 = vrot.slane %v382_v37, 4  ;;  %1041 = vst [vmem:[#allocation1] ss:$2 sm:$0xff] %v1012_v18 }
  0xde   :  { %v394_v51 = vrot.slane %v384_v48, 4  ;;  %861 = vrot.lane.b32.xlu2 %v841_v28, %s10254_s8 }
  0xdf   :  { %v407_v52 = vsel %vm105_vm9, %v392_v7, %v393_v50  ;;  %v10646_v24 = vld.sshfl [vmem:[#allocation1 + $0x38] sm:$0xff pattern:$0x75643120] }
  0xe0   :  { %v408_v53 = vsel %vm14873_vm13, %v10531_v62, %v407_v52  ;;  %v409_v54 = vsel %vm105_vm9, %v393_v50, %v394_v51  ;;  %v411_v55 = vsel %vm105_vm9, %v394_v51, %v395_v40  ;;  %v10601_v56 = vpop.permute.xlu2 %481  ;;  %v1030_v40 = vld.sshfl [vmem:[#allocation1 + $0x18] sm:$0xff pattern:$0x75643120]  ;;  %v1034_v51 = vld.sshfl [vmem:[#allocation1 + $0x28] sm:$0xff pattern:$0x75643120] }
  0xe1   :  { %v410_v57 = vsel %vm14873_vm13, %v382_v37, %v409_v54  ;;  %426 = vst [vmem:[#allocation3 + $0x68] sm:$0xcc] %v408_v53  ;;  %v412_v58 = vsel %vm14873_vm13, %v384_v48, %v411_v55  ;;  %v1032_v37 = vld.sshfl [vmem:[#allocation1 + $0x20] sm:$0xff pattern:$0x75643120] }
  0xe2   :  { %427 = vst [vmem:[#allocation3 + $0x70] sm:$0xcc] %v410_v57  ;;  %863 = vrot.lane.b32.xlu0 %v10542_v11, %s10254_s8 }
  0xe3   :  { %428 = vst [vmem:[#allocation3 + $0x78] sm:$0xcc] %v412_v58  ;;  %865 = vrot.lane.b32.xlu1 %v10538_v4, %s10254_s8 }
  0xe4   :  { %v466_v62 = vpop.permute.xlu0 %465  ;;  %v10650_v36 = vld.sshfl [vmem:[#allocation1] sm:$0xff pattern:$0x75643120]  ;;  %1117 = vst [vmem:[#allocation1 + $0x21] ss:$2 sm:$0xff] %v10610_v0 }
  0xe5   :  { %v468_v3 = vpop.permute.xlu1 %467  ;;  %v483_v9 = vrot.slane %v466_v62, 4  ;;  %1111 = vst [vmem:[#allocation1 + $0x1] ss:$2 sm:$0xff] %v10592_v43 }
  0xe6   :  { %v484_v11 = vrot.slane %v468_v3, 4  ;;  %867 = vrot.lane.b32.xlu2 %v10540_v2, %s10254_s8  ;;  %v488_v2 = vrot.slane %v10583_v45, 4 }
  0xe8   :  { %v495_v4 = vsel %vm105_vm9, %v484_v11, %v485_v61  ;;  %v492_v12 = vsel %vm105_vm9, %v483_v9, %v484_v11  ;;  %v10620_v13 = vpop.permute.xlu2 %566 }
  0xe9   :  { %v496_v14 = vsel %vm493_vm14, %v468_v3, %v495_v4  ;;  %v494_v15 = vsel %vm493_vm14, %v466_v62, %v492_v12  ;;  %v582_v48 = vrot.slane %v10620_v13, 4 }
  0xea   :  { %518 = vst [vmem:[#allocation3 + $0x88] sm:$0x33] %v496_v14  ;;  %948 = vrot.lane.b32.xlu0 %v928_v34, %s10255_s9 }
  0xeb   :  { %517 = vst [vmem:[#allocation3 + $0x80] sm:$0x33] %v494_v15  ;;  %950 = vrot.lane.b32.xlu1 %v10574_v6, %s10255_s9  ;;  %v491_v6 = vrot.slane %v10601_v56, 4 }
  0xec   :  { %v472_v20 = vpop.permute.xlu0 %471  ;;  %v10683_v62 = vld.sshfl [vmem:[#allocation1] sm:$0xff pattern:$0x75643120] }
  0xed   :  { %v474_v19 = vpop.permute.xlu1 %473  ;;  %v486_v21 = vrot.slane %v472_v20, 4 }
  0xee   :  { %v487_v25 = vrot.slane %v474_v19, 4  ;;  %952 = vrot.lane.b32.xlu2 %v932_v60, %s10255_s9  ;;  %v10680_v60 = vld.sshfl [vmem:[#allocation1 + $0x8] sm:$0xff pattern:$0x75643120] }
  0xef   :  { %v497_v26 = vsel %vm105_vm9, %v485_v61, %v486_v21 }
  0xf0   :  { %v501_v28 = vsel %vm105_vm9, %v487_v25, %v488_v2  ;;  %v498_v29 = vsel %vm493_vm14, %v10567_v30, %v497_v26  ;;  %v499_v23 = vsel %vm105_vm9, %v486_v21, %v487_v25  ;;  %v10639_v27 = vpop.permute.xlu2 %572  ;;  %v10648_v30 = vld.sshfl [vmem:[#allocation1 + $0x30] sm:$0xff pattern:$0x75643120] }
  0xf1   :  { %v502_v31 = vsel %vm493_vm14, %v474_v19, %v501_v28  ;;  %v500_v32 = vsel %vm493_vm14, %v472_v20, %v499_v23  ;;  %519 = vst [vmem:[#allocation3 + $0x90] sm:$0x33] %v498_v29 }
  0xf2   :  { %521 = vst [vmem:[#allocation3 + $0xa0] sm:$0x33] %v502_v31  ;;  %954 = vrot.lane.b32.xlu0 %v934_v10, %s10255_s9 }
  0xf3   :  { %520 = vst [vmem:[#allocation3 + $0x98] sm:$0x33] %v500_v32  ;;  %956 = vrot.lane.b32.xlu1 %v936_v59, %s10255_s9  ;;  %v1129_v32 = vld.sshfl [vmem:[#allocation1 + $0x20] sm:$0xff pattern:$0x75643120] }
  0xf4   :  { %v478_v7 = vpop.permute.xlu0 %477  ;;  %1120 = vst [vmem:[#allocation1 + $0x31] ss:$2 sm:$0xff] %v10630_v8 }
  0xf5   :  { %v480_v34 = vpop.permute.xlu1 %479  ;;  %v489_v35 = vrot.slane %v478_v7, 4 }
  0xf6   :  { %v490_v33 = vrot.slane %v480_v34, 4  ;;  %958 = vrot.lane.b32.xlu2 %v938_v63, %s10255_s9  ;;  %v1108_v63 = vld [vmem:[#allocation2 + $0x20] sm:$0x3] }
  0xf7   :  { %v503_v38 = vsel %vm105_vm9, %v488_v2, %v489_v35  ;;  %1138 = vst [vmem:[#allocation1 + $0x1] ss:$2 sm:$0xff] %v1108_v63 }
  0xf8   :  { %v504_v39 = vsel %vm493_vm14, %v10583_v45, %v503_v38  ;;  %v505_v41 = vsel %vm105_vm9, %v489_v35, %v490_v33  ;;  %v507_v42 = vsel %vm105_vm9, %v490_v33, %v491_v6  ;;  %v10660_v44 = vpop.permute.xlu2 %578  ;;  %v1028_v45 = vld.sshfl [vmem:[#allocation1 + $0x10] sm:$0xff pattern:$0x75643120] }
  0xf9   :  { %v506_v46 = vsel %vm493_vm14, %v478_v7, %v505_v41  ;;  %522 = vst [vmem:[#allocation3 + $0xa8] sm:$0x33] %v504_v39  ;;  %v508_v47 = vsel %vm493_vm14, %v480_v34, %v507_v42  ;;  %v1131_v39 = vld.sshfl [vmem:[#allocation1 + $0x28] sm:$0xff pattern:$0x75643120] }
  0xfa   :  { %523 = vst [vmem:[#allocation3 + $0xb0] sm:$0x33] %v506_v46  ;;  %960 = vrot.lane.b32.xlu0 %v940_v17, %s10255_s9  ;;  %v588_v17 = vrot.slane %v10660_v44, 4 }
  0xfb   :  { %524 = vst [vmem:[#allocation3 + $0xb8] sm:$0x33] %v508_v47  ;;  %962 = vrot.lane.b32.xlu1 %v942_v16, %s10255_s9  ;;  %v10702_v21 = vld.sshfl [vmem:[#allocation1 + $0x30] sm:$0xff pattern:$0x75643120] }
  0xfc   :  { %v563_v50 = vpop.permute.xlu0 %562  ;;  %1114 = vst [vmem:[#allocation1 + $0x11] ss:$2 sm:$0xff] %v10612_v1 }
  0xfd   :  { %v565_v52 = vpop.permute.xlu1 %564  ;;  %v580_v53 = vrot.slane %v563_v50, 4  ;;  %1213 = vst [vmem:[#allocation1 + $0x20] ss:$2 sm:$0xff] %v10610_v0 }
  0xfe   :  { %v581_v54 = vrot.slane %v565_v52, 4  ;;  %964 = vrot.lane.b32.xlu2 %v10590_v49, %s10255_s9  ;;  %v585_v49 = vrot.slane %v10639_v27, 4 }
 0x100   :  { %v592_v55 = vsel %vm105_vm9, %v581_v54, %v582_v48  ;;  %v589_v56 = vsel %vm105_vm9, %v580_v53, %v581_v54  ;;  %v10673_v57 = vpop.permute.xlu2 %662 }
 0x101   :  { %v593_v58 = vsel %vm14872_vm15, %v565_v52, %v592_v55  ;;  %v591_v59 = vsel %vm14872_vm15, %v563_v50, %v589_v56 }
 0x102   :  { %615 = vst [vmem:[#allocation3 + $0x88] sm:$0xcc] %v593_v58  ;;  %1044 = vrot.lane.b32.xlu0 %v1024_v22, %s10256_s10 }
 0x103   :  { %614 = vst [vmem:[#allocation3 + $0x80] sm:$0xcc] %v591_v59  ;;  %1046 = vrot.lane.b32.xlu1 %v10628_v5, %s10256_s10  ;;  %v10698_v5 = vld.sshfl [vmem:[#allocation1 + $0x38] sm:$0xff pattern:$0x75643120] }
 0x104   :  { %v569_v61 = vpop.permute.xlu0 %568  ;;  %1216 = vst [vmem:[#allocation1 + $0x30] ss:$2 sm:$0xff] %v10630_v8  ;;  %v1127_v8 = vld.sshfl [vmem:[#allocation1 + $0x18] sm:$0xff pattern:$0x75643120] }
 0x105   :  { %v571_v3 = vpop.permute.xlu1 %570  ;;  %v583_v9 = vrot.slane %v569_v61, 4  ;;  %v1125_v6 = vld.sshfl [vmem:[#allocation1 + $0x10] sm:$0xff pattern:$0x75643120] }
 0x106   :  { %v584_v10 = vrot.slane %v571_v3, 4  ;;  %1048 = vrot.lane.b32.xlu2 %v1028_v45, %s10256_s10  ;;  %1210 = vst [vmem:[#allocation1 + $0x10] ss:$2 sm:$0xff] %v10612_v1 }
 0x107   :  { %v594_v11 = vsel %vm105_vm9, %v582_v48, %v583_v9 }
 0x108   :  { %v598_v4 = vsel %vm105_vm9, %v584_v10, %v585_v49  ;;  %v595_v12 = vsel %vm14872_vm15, %v10620_v13, %v594_v11  ;;  %v596_v14 = vsel %vm105_vm9, %v583_v9, %v584_v10  ;;  %v10691_v15 = vpop.permute.xlu2 %668  ;;  %v10700_v13 = vld.sshfl [vmem:[#allocation1] sm:$0xff pattern:$0x75643120] }
 0x109   :  { %v599_v16 = vsel %vm14872_vm15, %v571_v3, %v598_v4  ;;  %v597_v2 = vsel %vm14872_vm15, %v569_v61, %v596_v14  ;;  %616 = vst [vmem:[#allocation3 + $0x90] sm:$0xcc] %v595_v12  ;;  %v681_v0 = vrot.slane %v10691_v15, 4  ;;  %v10760_v61 = vld.sshfl [vmem:[#allocation1 + $0x28] sm:$0xff pattern:$0x75643120] }
 0x10a   :  { %618 = vst [vmem:[#allocation3 + $0xa0] sm:$0xcc] %v599_v16  ;;  %1050 = vrot.lane.b32.xlu0 %v1030_v40, %s10256_s10 }
 0x10b   :  { %617 = vst [vmem:[#allocation3 + $0x98] sm:$0xcc] %v597_v2  ;;  %1052 = vrot.lane.b32.xlu1 %v1032_v37, %s10256_s10 }
 0x10c   :  { %v575_v20 = vpop.permute.xlu0 %574  ;;  %1207 = vst [vmem:[#allocation1] ss:$2 sm:$0xff] %v10592_v43 }
 0x10d   :  { %v577_v18 = vpop.permute.xlu1 %576  ;;  %v586_v19 = vrot.slane %v575_v20, 4 }
 0x10e   :  { %v587_v22 = vrot.slane %v577_v18, 4  ;;  %1054 = vrot.lane.b32.xlu2 %v1034_v51, %s10256_s10 }
 0x10f   :  { %v600_v25 = vsel %vm105_vm9, %v585_v49, %v586_v19 }
 0x110   :  { %v601_v26 = vsel %vm14872_vm15, %v10639_v27, %v600_v25  ;;  %v602_v28 = vsel %vm105_vm9, %v586_v19, %v587_v22  ;;  %v604_v29 = vsel %vm105_vm9, %v587_v22, %v588_v17  ;;  %v10712_v23 = vpop.permute.xlu2 %674  ;;  %v678_v27 = vrot.slane %v10673_v57, 4  ;;  %v1221_v17 = vld.sshfl [vmem:[#allocation1 + $0x10] sm:$0xff pattern:$0x75643120] }
 0x111   :  { %v603_v31 = vsel %vm14872_vm15, %v575_v20, %v602_v28  ;;  %619 = vst [vmem:[#allocation3 + $0xa8] sm:$0xcc] %v601_v26  ;;  %v605_v43 = vsel %vm14872_vm15, %v577_v18, %v604_v29  ;;  %v684_v59 = vrot.slane %v10712_v23, 4  ;;  %v10778_v20 = vld [vmem:[#allocation2 + $0xa] sm:$0xff] }
 0x112   :  { %620 = vst [vmem:[#allocation3 + $0xb0] sm:$0xcc] %v603_v31  ;;  %1056 = vrot.lane.b32.xlu0 %v10648_v30, %s10256_s10  ;;  %v1223_v19 = vld.sshfl [vmem:[#allocation1 + $0x18] sm:$0xff pattern:$0x75643120] }
 0x113   :  { %621 = vst [vmem:[#allocation3 + $0xb8] sm:$0xcc] %v605_v43  ;;  %1058 = vrot.lane.b32.xlu1 %v10646_v24, %s10256_s10  ;;  %v10721_v34 = vld.sshfl [vmem:[#allocation1 + $0x8] sm:$0xff pattern:$0x75643120] }
 0x114   :  { %v659_v7 = vpop.permute.xlu0 %658  ;;  %v10723_v35 = vld.sshfl [vmem:[#allocation1] sm:$0xff pattern:$0x75643120]  ;;  %v1205_v24 = vld [vmem:[#allocation2 + $0x20] sm:$0x3] }
 0x115   :  { %v661_v33 = vpop.permute.xlu1 %660  ;;  %v676_v38 = vrot.slane %v659_v7, 4  ;;  %1234 = vst [vmem:[#allocation1] ss:$2 sm:$0xff] %v1205_v24 }
 0x116   :  { %v677_v30 = vrot.slane %v661_v33, 4  ;;  %1060 = vrot.lane.b32.xlu2 %v10650_v36, %s10256_s10  ;;  %v10740_v36 = vld [vmem:[#allocation2 + $0x2] sm:$0xff]  ;;  %1306 = vst [vmem:[#allocation1 + $0x11] ss:$2 sm:$0xff] %v10778_v20 }
 0x118   :  { %v688_v41 = vsel %vm105_vm9, %v677_v30, %v678_v27  ;;  %v685_v42 = vsel %vm105_vm9, %v676_v38, %v677_v30  ;;  %v10731_v44 = vpop.permute.xlu2 %759  ;;  %v1229_v30 = vld.sshfl [vmem:[#allocation1 + $0x30] sm:$0xff pattern:$0x75643120] }
 0x119   :  { %v689_v46 = vsel %vm14871_vm0, %v661_v33, %v688_v41  ;;  %v687_v47 = vsel %vm14871_vm0, %v659_v7, %v685_v42  ;;  %v1300_v33 = vld [vmem:[#allocation2 + $0x1a] sm:$0xff] }
 0x11a   :  { %711 = vst [vmem:[#allocation3 + $0xc8] sm:$0x33] %v689_v46  ;;  %1141 = vrot.lane.b32.xlu0 %v10683_v62, %s10257_s11  ;;  %v10762_v62 = vld [vmem:[#allocation2 + $0x12] sm:$0xff] }
 0x11b   :  { %710 = vst [vmem:[#allocation3 + $0xc0] sm:$0x33] %v687_v47  ;;  %1143 = vrot.lane.b32.xlu1 %v10680_v60, %s10257_s11  ;;  %v10758_v60 = vld.sshfl [vmem:[#allocation1 + $0x20] sm:$0xff pattern:$0x75643120] }
 0x11c   :  { %v665_v1 = vpop.permute.xlu0 %664  ;;  %v10743_v48 = vld.sshfl [vmem:[#allocation1] sm:$0xff pattern:$0x75643120]  ;;  %1309 = vst [vmem:[#allocation1 + $0x21] ss:$2 sm:$0xff] %v10762_v62 }
 0x11d   :  { %v667_v37 = vpop.permute.xlu1 %666  ;;  %v679_v40 = vrot.slane %v665_v1, 4  ;;  %1303 = vst [vmem:[#allocation1 + $0x1] ss:$2 sm:$0xff] %v10740_v36 }
 0x11e   :  { %v680_v45 = vrot.slane %v667_v37, 4  ;;  %1145 = vrot.lane.b32.xlu2 %v1125_v6, %s10257_s11 }
 0x11f   :  { %v690_v50 = vsel %vm105_vm9, %v678_v27, %v679_v40  ;;  %v1315_v27 = vld.sshfl [vmem:[#allocation1 + $0x10] sm:$0xff pattern:$0x75643120] }
 0x120   :  { %v694_v51 = vsel %vm105_vm9, %v680_v45, %v681_v0  ;;  %v691_v52 = vsel %vm14871_vm0, %v10673_v57, %v690_v50  ;;  %v692_v53 = vsel %vm105_vm9, %v679_v40, %v680_v45  ;;  %v10751_v54 = vpop.permute.xlu2 %765  ;;  %1331 = vst [vmem:[#allocation3 + $0x190] sm:$0xcc] %v1315_v27  ;;  %v10813_v45 = vld [vmem:[#allocation2 + $0x1a] sm:$0xff] }
 0x121   :  { %v695_v55 = vsel %vm14871_vm0, %v667_v37, %v694_v51  ;;  %v693_v56 = vsel %vm14871_vm0, %v665_v1, %v692_v53  ;;  %712 = vst [vmem:[#allocation3 + $0xd0] sm:$0x33] %v691_v52 }
 0x122   :  { %714 = vst [vmem:[#allocation3 + $0xe0] sm:$0x33] %v695_v55  ;;  %1147 = vrot.lane.b32.xlu0 %v1127_v8, %s10257_s11 }
 0x123   :  { %713 = vst [vmem:[#allocation3 + $0xd8] sm:$0x33] %v693_v56  ;;  %1149 = vrot.lane.b32.xlu1 %v1129_v32, %s10257_s11  ;;  %v1317_v26 = vld.sshfl [vmem:[#allocation1 + $0x20] sm:$0xff pattern:$0x75643120] }
 0x124   :  { %v671_v58 = vpop.permute.xlu0 %670  ;;  %v1313_v3 = vld.sshfl [vmem:[#allocation1] sm:$0xff pattern:$0x75643120]  ;;  %v1314_v10 = vld.sshfl [vmem:[#allocation1 + $0x8] sm:$0xff pattern:$0x75643120] }
 0x125   :  { %v673_v57 = vpop.permute.xlu1 %672  ;;  %v682_v49 = vrot.slane %v671_v58, 4  ;;  %1329 = vst [vmem:[#allocation3 + $0x180] sm:$0xcc] %v1313_v3  ;;  %v1316_v32 = vld.sshfl [vmem:[#allocation1 + $0x18] sm:$0xff pattern:$0x75643120] }
 0x126   :  { %v683_v63 = vrot.slane %v673_v57, 4  ;;  %1151 = vrot.lane.b32.xlu2 %v1131_v39, %s10257_s11  ;;  %1343 = vst [vmem:[#allocation1] ss:$2 sm:$0xff] %v10740_v36  ;;  %v1231_v39 = vld.sshfl [vmem:[#allocation1 + $0x38] sm:$0xff pattern:$0x75643120] }
 0x127   :  { %v696_v9 = vsel %vm105_vm9, %v681_v0, %v682_v49  ;;  %1330 = vst [vmem:[#allocation3 + $0x188] sm:$0xcc] %v1314_v10  ;;  %v1341_v0 = vld [vmem:[#allocation2 + $0x22] sm:$0x3] }
 0x128   :  { %v697_v11 = vsel %vm14871_vm0, %v10691_v15, %v696_v9  ;;  %v698_v4 = vsel %vm105_vm9, %v682_v49, %v683_v63  ;;  %v700_v12 = vsel %vm105_vm9, %v683_v63, %v684_v59  ;;  %v10771_v14 = vpop.permute.xlu2 %771  ;;  %v775_v15 = vrot.slane %v10731_v44, 4  ;;  %1333 = vst [vmem:[#allocation3 + $0x1a0] sm:$0xcc] %v1317_v26 }
 0x129   :  { %v699_v16 = vsel %vm14871_vm0, %v671_v58, %v698_v4  ;;  %715 = vst [vmem:[#allocation3 + $0xe8] sm:$0x33] %v697_v11  ;;  %v701_v2 = vsel %vm14871_vm0, %v673_v57, %v700_v12  ;;  %v781_v40 = vrot.slane %v10771_v14, 4 }
 0x12a   :  { %716 = vst [vmem:[#allocation3 + $0xf0] sm:$0x33] %v699_v16  ;;  %1153 = vrot.lane.b32.xlu0 %v10702_v21, %s10257_s11  ;;  %v1318_v21 = vld.sshfl [vmem:[#allocation1 + $0x28] sm:$0xff pattern:$0x75643120] }
 0x12b   :  { %717 = vst [vmem:[#allocation3 + $0xf8] sm:$0x33] %v701_v2  ;;  %1155 = vrot.lane.b32.xlu1 %v10698_v5, %s10257_s11 }
 0x12c   :  { %v756_v18 = vpop.permute.xlu0 %755  ;;  %1349 = vst [vmem:[#allocation1 + $0x20] ss:$2 sm:$0xff] %v10762_v62 }
 0x12d   :  { %v758_v22 = vpop.permute.xlu1 %757  ;;  %v773_v25 = vrot.slane %v756_v18, 4  ;;  %1334 = vst [vmem:[#allocation3 + $0x1a8] sm:$0xcc] %v1318_v21  ;;  %v1355_v1 = vld.sshfl [vmem:[#allocation1 + $0x8] sm:$0xff pattern:$0x75643120] }
 0x12e   :  { %v774_v28 = vrot.slane %v758_v22, 4  ;;  %1157 = vrot.lane.b32.xlu2 %v10700_v13, %s10257_s11  ;;  %v778_v13 = vrot.slane %v10751_v54, 4  ;;  %1346 = vst [vmem:[#allocation1 + $0x10] ss:$2 sm:$0xff] %v10778_v20 }
 0x12f   :  { %1332 = vst [vmem:[#allocation3 + $0x198] sm:$0xcc] %v1316_v32 }
 0x130   :  { %v785_v29 = vsel %vm105_vm9, %v774_v28, %v775_v15  ;;  %v782_v5 = vsel %vm105_vm9, %v773_v25, %v774_v28  ;;  %v10788_v23 = vpop.permute.xlu2 %855  ;;  %1312 = vst [vmem:[#allocation1 + $0x31] ss:$2 sm:$0xff] %v1300_v33  ;;  %v1437_v28 = vld [vmem:[#allocation2 + $0x22] sm:$0x3] }
 0x131   :  { %v786_v31 = vsel %vm14870_vm1, %v758_v22, %v785_v29  ;;  %v784_v43 = vsel %vm14870_vm1, %v756_v18, %v782_v5 }
 0x132   :  { %808 = vst [vmem:[#allocation3 + $0xc8] sm:$0xcc] %v786_v31  ;;  %1237 = vrot.lane.b32.xlu0 %v10723_v35, %s10258_s12 }
 0x133   :  { %807 = vst [vmem:[#allocation3 + $0xc0] sm:$0xcc] %v784_v43  ;;  %1239 = vrot.lane.b32.xlu1 %v10721_v34, %s10258_s12  ;;  %v1363_v4 = vld.sshfl [vmem:[#allocation1 + $0x28] sm:$0xff pattern:$0x75643120] }
 0x134   :  { %v762_v8 = vpop.permute.xlu0 %761 }
 0x135   :  { %v764_v6 = vpop.permute.xlu1 %763  ;;  %v776_v7 = vrot.slane %v762_v8, 4  ;;  %v1359_v22 = vld.sshfl [vmem:[#allocation1 + $0x18] sm:$0xff pattern:$0x75643120] }
 0x136   :  { %v777_v38 = vrot.slane %v764_v6, 4  ;;  %1241 = vrot.lane.b32.xlu2 %v1221_v17, %s10258_s12  ;;  %v1361_v17 = vld.sshfl [vmem:[#allocation1 + $0x20] sm:$0xff pattern:$0x75643120] }
 0x137   :  { %v787_v35 = vsel %vm105_vm9, %v775_v15, %v776_v7  ;;  %v1319_v55 = vld.sshfl [vmem:[#allocation1 + $0x30] sm:$0xff pattern:$0x75643120]  ;;  %v1320_v56 = vld.sshfl [vmem:[#allocation1 + $0x38] sm:$0xff pattern:$0x75643120] }
 0x138   :  { %v791_v34 = vsel %vm105_vm9, %v777_v38, %v778_v13  ;;  %v788_v24 = vsel %vm14870_vm1, %v10731_v44, %v787_v35  ;;  %v789_v41 = vsel %vm105_vm9, %v776_v7, %v777_v38  ;;  %v10805_v42 = vpop.permute.xlu2 %861  ;;  %v1353_v44 = vld.sshfl [vmem:[#allocation1] sm:$0xff pattern:$0x75643120]  ;;  %1352 = vst [vmem:[#allocation1 + $0x30] ss:$2 sm:$0xff] %v10813_v45 }
 0x139   :  { %v792_v46 = vsel %vm14870_vm1, %v764_v6, %v791_v34  ;;  %v790_v47 = vsel %vm14870_vm1, %v762_v8, %v789_v41  ;;  %809 = vst [vmem:[#allocation3 + $0xd0] sm:$0xcc] %v788_v24  ;;  %v874_v25 = vrot.slane %v10805_v42, 4 }
 0x13a   :  { %811 = vst [vmem:[#allocation3 + $0xe0] sm:$0xcc] %v792_v46  ;;  %1243 = vrot.lane.b32.xlu0 %v1223_v19, %s10258_s12 }
 0x13b   :  { %810 = vst [vmem:[#allocation3 + $0xd8] sm:$0xcc] %v790_v47  ;;  %1245 = vrot.lane.b32.xlu1 %v10758_v60, %s10258_s12 }
 0x13c   :  { %v768_v37 = vpop.permute.xlu0 %767  ;;  %1370 = vst [vmem:[#allocation1] ss:$2 sm:$0xff] %v1341_v0 }
 0x13d   :  { %v770_v50 = vpop.permute.xlu1 %769  ;;  %v779_v51 = vrot.slane %v768_v37, 4  ;;  %1335 = vst [vmem:[#allocation3 + $0x1b0] sm:$0xcc] %v1319_v55 }
 0x13e   :  { %v780_v52 = vrot.slane %v770_v50, 4  ;;  %1247 = vrot.lane.b32.xlu2 %v10760_v61, %s10258_s12  ;;  %1336 = vst [vmem:[#allocation3 + $0x1b8] sm:$0xcc] %v1320_v56 }
 0x13f   :  { %v793_v53 = vsel %vm105_vm9, %v778_v13, %v779_v51  ;;  %v10835_v12 = vld.sshfl [vmem:[#allocation1 + $0x38] sm:$0xff pattern:$0x75643120]  ;;  %v1365_v14 = vld.sshfl [vmem:[#allocation1 + $0x30] sm:$0xff pattern:$0x75643120] }
 0x140   :  { %v794_v58 = vsel %vm14870_vm1, %v10751_v54, %v793_v53  ;;  %v795_v59 = vsel %vm105_vm9, %v779_v51, %v780_v52  ;;  %v797_v60 = vsel %vm105_vm9, %v780_v52, %v781_v40  ;;  %v10822_v57 = vpop.permute.xlu2 %867  ;;  %v871_v54 = vrot.slane %v10788_v23, 4  ;;  %1449 = vst [vmem:[#allocation1 + $0x31] ss:$2 sm:$0xff] %v10813_v45 }
 0x141   :  { %v796_v49 = vsel %vm14870_vm1, %v768_v37, %v795_v59  ;;  %812 = vst [vmem:[#allocation3 + $0xe8] sm:$0xcc] %v794_v58  ;;  %v798_v61 = vsel %vm14870_vm1, %v770_v50, %v797_v60  ;;  %v877_v38 = vrot.slane %v10822_v57, 4 }
 0x142   :  { %813 = vst [vmem:[#allocation3 + $0xf0] sm:$0xcc] %v796_v49  ;;  %1249 = vrot.lane.b32.xlu0 %v1229_v30, %s10258_s12 }
 0x143   :  { %814 = vst [vmem:[#allocation3 + $0xf8] sm:$0xcc] %v798_v61  ;;  %1251 = vrot.lane.b32.xlu1 %v1231_v39, %s10258_s12  ;;  %v10830_v3 = vld.sshfl [vmem:[#allocation1] sm:$0xff pattern:$0x75643120] }
 0x144   :  { %v852_v63 = vpop.permute.xlu0 %851  ;;  %1440 = vst [vmem:[#allocation1 + $0x1] ss:$2 sm:$0xff] %v10740_v36 }
 0x145   :  { %v854_v9 = vpop.permute.xlu1 %853  ;;  %v869_v10 = vrot.slane %v852_v63, 4  ;;  %1446 = vst [vmem:[#allocation1 + $0x21] ss:$2 sm:$0xff] %v10762_v62 }
 0x146   :  { %v870_v11 = vrot.slane %v854_v9, 4  ;;  %1253 = vrot.lane.b32.xlu2 %v10743_v48, %s10258_s12  ;;  %v1357_v48 = vld.sshfl [vmem:[#allocation1 + $0x10] sm:$0xff pattern:$0x75643120] }
 0x147   :  { %1443 = vst [vmem:[#allocation1 + $0x11] ss:$2 sm:$0xff] %v10778_v20  ;;  %v10862_v35 = vld.sshfl [vmem:[#allocation1 + $0x38] sm:$0xff pattern:$0x75643120] }
 0x148   :  { %v881_v16 = vsel %vm105_vm9, %v870_v11, %v871_v54  ;;  %v878_v2 = vsel %vm105_vm9, %v869_v10, %v870_v11  ;;  %v10840_v15 = vpop.permute.xlu2 %952  ;;  %v1534_v11 = vld [vmem:[#allocation2 + $0x22] sm:$0x3] }
 0x149   :  { %v882_v18 = vsel %vm879_vm2, %v854_v9, %v881_v16  ;;  %v880_v19 = vsel %vm879_vm2, %v852_v63, %v878_v2  ;;  %v968_v52 = vrot.slane %v10840_v15, 4 }
 0x14a   :  { %904 = vst [vmem:[#allocation3 + $0x108] sm:$0x33] %v882_v18  ;;  %1373 = vrot.lane.b32.xlu0 %v1353_v44, %s10259_s13 }
 0x14b   :  { %903 = vst [vmem:[#allocation3 + $0x100] sm:$0x33] %v880_v19  ;;  %1375 = vrot.lane.b32.xlu1 %v1355_v1, %s10259_s13  ;;  %v1452_v5 = vld.sshfl [vmem:[#allocation1 + $0x8] sm:$0xff pattern:$0x75643120] }
 0x14c   :  { %v858_v26 = vpop.permute.xlu0 %857  ;;  %v1450_v43 = vld.sshfl [vmem:[#allocation1] sm:$0xff pattern:$0x75643120]  ;;  %v1460_v55 = vld.sshfl [vmem:[#allocation1 + $0x28] sm:$0xff pattern:$0x75643120] }
 0x14d   :  { %v860_v21 = vpop.permute.xlu1 %859  ;;  %v872_v29 = vrot.slane %v858_v26, 4  ;;  %1467 = vst [vmem:[#allocation1 + $0x1] ss:$2 sm:$0xff] %v1437_v28  ;;  %v1458_v50 = vld.sshfl [vmem:[#allocation1 + $0x20] sm:$0xff pattern:$0x75643120] }
 0x14e   :  { %v873_v31 = vrot.slane %v860_v21, 4  ;;  %1377 = vrot.lane.b32.xlu2 %v1357_v48, %s10259_s13  ;;  %v1456_v51 = vld.sshfl [vmem:[#allocation1 + $0x18] sm:$0xff pattern:$0x75643120]  ;;  %1542 = vst [vmem:[#allocation1 + $0x20] ss:$2 sm:$0xff] %v10762_v62 }
 0x14f   :  { %v883_v13 = vsel %vm105_vm9, %v871_v54, %v872_v29 }
 0x150   :  { %v887_v8 = vsel %vm105_vm9, %v873_v31, %v874_v25  ;;  %v884_v27 = vsel %vm879_vm2, %v10788_v23, %v883_v13  ;;  %v885_v32 = vsel %vm105_vm9, %v872_v29, %v873_v31  ;;  %v10855_v6 = vpop.permute.xlu2 %958  ;;  %v10864_v23 = vld.sshfl [vmem:[#allocation1 + $0x30] sm:$0xff pattern:$0x75643120] }
 0x151   :  { %v888_v7 = vsel %vm879_vm2, %v860_v21, %v887_v8  ;;  %v886_v33 = vsel %vm879_vm2, %v858_v26, %v885_v32  ;;  %905 = vst [vmem:[#allocation3 + $0x110] sm:$0x33] %v884_v27 }
 0x152   :  { %907 = vst [vmem:[#allocation3 + $0x120] sm:$0x33] %v888_v7  ;;  %1379 = vrot.lane.b32.xlu0 %v1359_v22, %s10259_s13 }
 0x153   :  { %906 = vst [vmem:[#allocation3 + $0x118] sm:$0x33] %v886_v33  ;;  %1381 = vrot.lane.b32.xlu1 %v1361_v17, %s10259_s13 }
 0x154   :  { %v864_v39 = vpop.permute.xlu0 %863  ;;  %1545 = vst [vmem:[#allocation1 + $0x30] ss:$2 sm:$0xff] %v10813_v45  ;;  %v10868_v41 = vld.sshfl [vmem:[#allocation1] sm:$0xff pattern:$0x75643120] }
 0x155   :  { %v866_v30 = vpop.permute.xlu1 %865  ;;  %v875_v34 = vrot.slane %v864_v39, 4  ;;  %1536 = vst [vmem:[#allocation1] ss:$2 sm:$0xff] %v10740_v36 }
 0x156   :  { %v876_v24 = vrot.slane %v866_v30, 4  ;;  %1383 = vrot.lane.b32.xlu2 %v1363_v4, %s10259_s13 }
 0x157   :  { %v889_v46 = vsel %vm105_vm9, %v874_v25, %v875_v34 }
 0x158   :  { %v890_v47 = vsel %vm879_vm2, %v10805_v42, %v889_v46  ;;  %v891_v0 = vsel %vm105_vm9, %v875_v34, %v876_v24  ;;  %v893_v1 = vsel %vm105_vm9, %v876_v24, %v877_v38  ;;  %v10876_v44 = vpop.permute.xlu2 %964  ;;  %v1454_v42 = vld.sshfl [vmem:[#allocation1 + $0x10] sm:$0xff pattern:$0x75643120]  ;;  %v1556_v24 = vld.sshfl [vmem:[#allocation1 + $0x28] sm:$0xff pattern:$0x75643120] }
 0x159   :  { %v892_v37 = vsel %vm879_vm2, %v864_v39, %v891_v0  ;;  %908 = vst [vmem:[#allocation3 + $0x128] sm:$0x33] %v890_v47  ;;  %v894_v40 = vsel %vm879_vm2, %v866_v30, %v893_v1  ;;  %v974_v25 = vrot.slane %v10876_v44, 4  ;;  %v1554_v39 = vld.sshfl [vmem:[#allocation1 + $0x20] sm:$0xff pattern:$0x75643120] }
 0x15a   :  { %909 = vst [vmem:[#allocation3 + $0x130] sm:$0x33] %v892_v37  ;;  %1385 = vrot.lane.b32.xlu0 %v1365_v14, %s10259_s13 }
 0x15b   :  { %910 = vst [vmem:[#allocation3 + $0x138] sm:$0x33] %v894_v40  ;;  %1387 = vrot.lane.b32.xlu1 %v10835_v12, %s10259_s13  ;;  %v10912_v26 = vld.sshfl [vmem:[#allocation1 + $0x38] sm:$0xff pattern:$0x75643120] }
 0x15c   :  { %v949_v53 = vpop.permute.xlu0 %948  ;;  %1539 = vst [vmem:[#allocation1 + $0x10] ss:$2 sm:$0xff] %v10778_v20  ;;  %v10896_v63 = vld.sshfl [vmem:[#allocation1 + $0x8] sm:$0xff pattern:$0x75643120] }
 0x15d   :  { %v951_v56 = vpop.permute.xlu1 %950  ;;  %v966_v58 = vrot.slane %v949_v53, 4  ;;  %v1546_v10 = vld.sshfl [vmem:[#allocation1] sm:$0xff pattern:$0x75643120]  ;;  %1639 = vst [vmem:[#allocation1 + $0x21] ss:$2 sm:$0xff] %v10762_v62 }
 0x15e   :  { %v967_v59 = vrot.slane %v951_v56, 4  ;;  %1389 = vrot.lane.b32.xlu2 %v10830_v3, %s10259_s13  ;;  %v971_v3 = vrot.slane %v10855_v6, 4  ;;  %1563 = vst [vmem:[#allocation1] ss:$2 sm:$0xff] %v1534_v11 }
 0x15f   :  { %v10914_v28 = vld.sshfl [vmem:[#allocation1 + $0x30] sm:$0xff pattern:$0x75643120] }
 0x160   :  { %v978_v60 = vsel %vm105_vm9, %v967_v59, %v968_v52  ;;  %v975_v57 = vsel %vm105_vm9, %v966_v58, %v967_v59  ;;  %v10890_v49 = vpop.permute.xlu2 %1048  ;;  %1642 = vst [vmem:[#allocation1 + $0x31] ss:$2 sm:$0xff] %v10813_v45 }
 0x161   :  { %v979_v61 = vsel %vm14869_vm3, %v951_v56, %v978_v60  ;;  %v977_v54 = vsel %vm14869_vm3, %v949_v53, %v975_v57  ;;  %v1064_v30 = vrot.slane %v10890_v49, 4 }
 0x162   :  { %1001 = vst [vmem:[#allocation3 + $0x108] sm:$0xcc] %v979_v61  ;;  %1470 = vrot.lane.b32.xlu0 %v1450_v43, %s10260_s14 }
 0x163   :  { %1000 = vst [vmem:[#allocation3 + $0x100] sm:$0xcc] %v977_v54  ;;  %1472 = vrot.lane.b32.xlu1 %v1452_v5, %s10260_s14  ;;  %v1552_v38 = vld.sshfl [vmem:[#allocation1 + $0x18] sm:$0xff pattern:$0x75643120] }
 0x164   :  { %v955_v9 = vpop.permute.xlu0 %954 }
 0x165   :  { %v957_v4 = vpop.permute.xlu1 %956  ;;  %v969_v12 = vrot.slane %v955_v9, 4  ;;  %v10916_v21 = vld.sshfl [vmem:[#allocation1] sm:$0xff pattern:$0x75643120] }
 0x166   :  { %v970_v14 = vrot.slane %v957_v4, 4  ;;  %1474 = vrot.lane.b32.xlu2 %v1454_v42, %s10260_s14  ;;  %1633 = vst [vmem:[#allocation1 + $0x1] ss:$2 sm:$0xff] %v10740_v36  ;;  %v1630_v42 = vld [vmem:[#allocation2 + $0x22] sm:$0x3] }
 0x167   :  { %v980_v16 = vsel %vm105_vm9, %v968_v52, %v969_v12 }
 0x168   :  { %v984_v2 = vsel %vm105_vm9, %v970_v14, %v971_v3  ;;  %v981_v17 = vsel %vm14869_vm3, %v10840_v15, %v980_v16  ;;  %v982_v18 = vsel %vm105_vm9, %v969_v12, %v970_v14  ;;  %v10905_v19 = vpop.permute.xlu2 %1054 }
 0x169   :  { %v985_v48 = vsel %vm14869_vm3, %v957_v4, %v984_v2  ;;  %v983_v22 = vsel %vm14869_vm3, %v955_v9, %v982_v18  ;;  %1002 = vst [vmem:[#allocation3 + $0x110] sm:$0xcc] %v981_v17  ;;  %v10966_v9 = vld.sshfl [vmem:[#allocation1 + $0x30] sm:$0xff pattern:$0x75643120] }
 0x16a   :  { %1004 = vst [vmem:[#allocation3 + $0x120] sm:$0xcc] %v985_v48  ;;  %1476 = vrot.lane.b32.xlu0 %v1456_v51, %s10260_s14 }
 0x16b   :  { %1003 = vst [vmem:[#allocation3 + $0x118] sm:$0xcc] %v983_v22  ;;  %1478 = vrot.lane.b32.xlu1 %v1458_v50, %s10260_s14 }
 0x16c   :  { %v961_v15 = vpop.permute.xlu0 %960 }
 0x16d   :  { %v963_v29 = vpop.permute.xlu1 %962  ;;  %v972_v5 = vrot.slane %v961_v15, 4  ;;  %v10948_v40 = vld.sshfl [vmem:[#allocation1 + $0x8] sm:$0xff pattern:$0x75643120] }
 0x16e   :  { %v973_v31 = vrot.slane %v963_v29, 4  ;;  %1480 = vrot.lane.b32.xlu2 %v1460_v55, %s10260_s14  ;;  %v1643_v51 = vld.sshfl [vmem:[#allocation1] sm:$0xff pattern:$0x75643120] }
 0x16f   :  { %v986_v43 = vsel %vm105_vm9, %v971_v3, %v972_v5  ;;  %1660 = vst [vmem:[#allocation1 + $0x1] ss:$2 sm:$0xff] %v1630_v42  ;;  %v10964_v3 = vld.sshfl [vmem:[#allocation1 + $0x38] sm:$0xff pattern:$0x75643120] }
 0x170   :  { %v987_v13 = vsel %vm14869_vm3, %v10855_v6, %v986_v43  ;;  %v988_v8 = vsel %vm105_vm9, %v972_v5, %v973_v31  ;;  %v990_v27 = vsel %vm105_vm9, %v973_v31, %v974_v25  ;;  %v10926_v32 = vpop.permute.xlu2 %1060  ;;  %v1550_v6 = vld.sshfl [vmem:[#allocation1 + $0x10] sm:$0xff pattern:$0x75643120]  ;;  %1738 = vst [vmem:[#allocation1 + $0x30] ss:$2 sm:$0xff] %v10813_v45 }
 0x171   :  { %v989_v7 = vsel %vm14869_vm3, %v961_v15, %v988_v8  ;;  %1005 = vst [vmem:[#allocation3 + $0x128] sm:$0xcc] %v987_v13  ;;  %v991_v33 = vsel %vm14869_vm3, %v963_v29, %v990_v27  ;;  %v1651_v15 = vld.sshfl [vmem:[#allocation1 + $0x20] sm:$0xff pattern:$0x75643120] }
 0x172   :  { %1006 = vst [vmem:[#allocation3 + $0x130] sm:$0xcc] %v989_v7  ;;  %1482 = vrot.lane.b32.xlu0 %v10864_v23, %s10260_s14  ;;  %v1653_v31 = vld.sshfl [vmem:[#allocation1 + $0x28] sm:$0xff pattern:$0x75643120] }
 0x173   :  { %1007 = vst [vmem:[#allocation3 + $0x138] sm:$0xcc] %v991_v33  ;;  %1484 = vrot.lane.b32.xlu1 %v10862_v35, %s10260_s14 }
 0x174   :  { %v1045_v34 = vpop.permute.xlu0 %1044  ;;  %1636 = vst [vmem:[#allocation1 + $0x11] ss:$2 sm:$0xff] %v10778_v20 }
 0x175   :  { %v1047_v46 = vpop.permute.xlu1 %1046  ;;  %v1062_v47 = vrot.slane %v1045_v34, 4  ;;  %1735 = vst [vmem:[#allocation1 + $0x20] ss:$2 sm:$0xff] %v10762_v62 }
 0x176   :  { %v1063_v0 = vrot.slane %v1047_v46, 4  ;;  %1486 = vrot.lane.b32.xlu2 %v10868_v41, %s10260_s14  ;;  %v1067_v41 = vrot.slane %v10905_v19, 4 }
 0x178   :  { %v1074_v23 = vsel %vm105_vm9, %v1063_v0, %v1064_v30  ;;  %v1071_v35 = vsel %vm105_vm9, %v1062_v47, %v1063_v0  ;;  %v10941_v1 = vpop.permute.xlu2 %1145 }
 0x179   :  { %v1075_v44 = vsel %vm14868_vm4, %v1047_v46, %v1074_v23  ;;  %v1073_v37 = vsel %vm14868_vm4, %v1045_v34, %v1071_v35  ;;  %v1161_v29 = vrot.slane %v10941_v1, 4 }
 0x17a   :  { %1097 = vst [vmem:[#allocation3 + $0x148] sm:$0x33] %v1075_v44  ;;  %1566 = vrot.lane.b32.xlu0 %v1546_v10, %s10261_s15  ;;  %v10968_v10 = vld.sshfl [vmem:[#allocation1] sm:$0xff pattern:$0x75643120] }
 0x17b   :  { %1096 = vst [vmem:[#allocation3 + $0x140] sm:$0x33] %v1073_v37  ;;  %1568 = vrot.lane.b32.xlu1 %v10896_v63, %s10261_s15  ;;  %v1070_v63 = vrot.slane %v10926_v32, 4  ;;  %v1649_v25 = vld.sshfl [vmem:[#allocation1 + $0x18] sm:$0xff pattern:$0x75643120] }
 0x17c   :  { %v1051_v50 = vpop.permute.xlu0 %1050  ;;  %1729 = vst [vmem:[#allocation1] ss:$2 sm:$0xff] %v10740_v36 }
 0x17d   :  { %v1053_v52 = vpop.permute.xlu1 %1052  ;;  %v1065_v53 = vrot.slane %v1051_v50, 4 }
 0x17e   :  { %v1066_v55 = vrot.slane %v1053_v52, 4  ;;  %1570 = vrot.lane.b32.xlu2 %v1550_v6, %s10261_s15  ;;  %v1727_v6 = vld [vmem:[#allocation2 + $0x22] sm:$0x3] }
 0x17f   :  { %v1076_v56 = vsel %vm105_vm9, %v1064_v30, %v1065_v53 }
 0x180   :  { %v1080_v58 = vsel %vm105_vm9, %v1066_v55, %v1067_v41  ;;  %v1077_v59 = vsel %vm14868_vm4, %v10890_v49, %v1076_v56  ;;  %v1078_v60 = vsel %vm105_vm9, %v1065_v53, %v1066_v55  ;;  %v10957_v57 = vpop.permute.xlu2 %1151 }
 0x181   :  { %v1081_v61 = vsel %vm14868_vm4, %v1053_v52, %v1080_v58  ;;  %v1079_v54 = vsel %vm14868_vm4, %v1051_v50, %v1078_v60  ;;  %1098 = vst [vmem:[#allocation3 + $0x150] sm:$0x33] %v1077_v59  ;;  %v11018_v50 = vld.sshfl [vmem:[#allocation1 + $0x30] sm:$0xff pattern:$0x75643120] }
 0x182   :  { %1100 = vst [vmem:[#allocation3 + $0x160] sm:$0x33] %v1081_v61  ;;  %1572 = vrot.lane.b32.xlu0 %v1552_v38, %s10261_s15 }
 0x183   :  { %1099 = vst [vmem:[#allocation3 + $0x158] sm:$0x33] %v1079_v54  ;;  %1574 = vrot.lane.b32.xlu1 %v1554_v39, %s10261_s15  ;;  %v11000_v33 = vld.sshfl [vmem:[#allocation1 + $0x8] sm:$0xff pattern:$0x75643120] }
 0x184   :  { %v1057_v49 = vpop.permute.xlu0 %1056  ;;  %v1739_v39 = vld.sshfl [vmem:[#allocation1] sm:$0xff pattern:$0x75643120] }
 0x185   :  { %v1059_v11 = vpop.permute.xlu1 %1058  ;;  %v1068_v4 = vrot.slane %v1057_v49, 4  ;;  %1756 = vst [vmem:[#allocation1] ss:$2 sm:$0xff] %v1727_v6 }
 0x186   :  { %v1069_v12 = vrot.slane %v1059_v11, 4  ;;  %1576 = vrot.lane.b32.xlu2 %v1556_v24, %s10261_s15 }
 0x187   :  { %v1082_v14 = vsel %vm105_vm9, %v1067_v41, %v1068_v4  ;;  %v11016_v41 = vld.sshfl [vmem:[#allocation1 + $0x38] sm:$0xff pattern:$0x75643120] }
 0x188   :  { %v1083_v16 = vsel %vm14868_vm4, %v10905_v19, %v1082_v14  ;;  %v1084_v2 = vsel %vm105_vm9, %v1068_v4, %v1069_v12  ;;  %v1086_v17 = vsel %vm105_vm9, %v1069_v12, %v1070_v63  ;;  %v10978_v18 = vpop.permute.xlu2 %1157  ;;  %v1647_v19 = vld.sshfl [vmem:[#allocation1 + $0x10] sm:$0xff pattern:$0x75643120]  ;;  %1835 = vst [vmem:[#allocation1 + $0x31] ss:$2 sm:$0xff] %v10813_v45 }
 0x189   :  { %v1085_v48 = vsel %vm14868_vm4, %v1057_v49, %v1084_v2  ;;  %1101 = vst [vmem:[#allocation3 + $0x168] sm:$0x33] %v1083_v16  ;;  %v1087_v22 = vsel %vm14868_vm4, %v1059_v11, %v1086_v17  ;;  %v1747_v49 = vld.sshfl [vmem:[#allocation1 + $0x20] sm:$0xff pattern:$0x75643120] }
 0x18a   :  { %1102 = vst [vmem:[#allocation3 + $0x170] sm:$0x33] %v1085_v48  ;;  %1578 = vrot.lane.b32.xlu0 %v10914_v28, %s10261_s15  ;;  %v1749_v12 = vld.sshfl [vmem:[#allocation1 + $0x28] sm:$0xff pattern:$0x75643120] }
 0x18b   :  { %1103 = vst [vmem:[#allocation3 + $0x178] sm:$0x33] %v1087_v22  ;;  %1580 = vrot.lane.b32.xlu1 %v10912_v26, %s10261_s15 }
 0x18c   :  { %v1142_v5 = vpop.permute.xlu0 %1141  ;;  %1732 = vst [vmem:[#allocation1 + $0x10] ss:$2 sm:$0xff] %v10778_v20 }
 0x18d   :  { %v1144_v43 = vpop.permute.xlu1 %1143  ;;  %v1159_v13 = vrot.slane %v1142_v5, 4  ;;  %1832 = vst [vmem:[#allocation1 + $0x21] ss:$2 sm:$0xff] %v10762_v62 }
 0x18e   :  { %v1160_v8 = vrot.slane %v1144_v43, 4  ;;  %1582 = vrot.lane.b32.xlu2 %v10916_v21, %s10261_s15  ;;  %v1164_v21 = vrot.slane %v10957_v57, 4 }
 0x190   :  { %v1171_v28 = vsel %vm105_vm9, %v1160_v8, %v1161_v29  ;;  %v1168_v26 = vsel %vm105_vm9, %v1159_v13, %v1160_v8  ;;  %v10993_v27 = vpop.permute.xlu2 %1241 }
 0x191   :  { %v1172_v32 = vsel %vm14867_vm5, %v1144_v43, %v1171_v28  ;;  %v1170_v7 = vsel %vm14867_vm5, %v1142_v5, %v1168_v26  ;;  %v1257_v11 = vrot.slane %v10993_v27, 4 }
 0x192   :  { %1194 = vst [vmem:[#allocation3 + $0x148] sm:$0xcc] %v1172_v32  ;;  %1663 = vrot.lane.b32.xlu0 %v1643_v51, %s10262_s16  ;;  %v11020_v51 = vld.sshfl [vmem:[#allocation1] sm:$0xff pattern:$0x75643120] }
 0x193   :  { %1193 = vst [vmem:[#allocation3 + $0x140] sm:$0xcc] %v1170_v7  ;;  %1665 = vrot.lane.b32.xlu1 %v10948_v40, %s10262_s16  ;;  %v1167_v40 = vrot.slane %v10978_v18, 4  ;;  %v1745_v63 = vld.sshfl [vmem:[#allocation1 + $0x18] sm:$0xff pattern:$0x75643120] }
 0x194   :  { %v1148_v38 = vpop.permute.xlu0 %1147  ;;  %1826 = vst [vmem:[#allocation1 + $0x1] ss:$2 sm:$0xff] %v10740_v36 }
 0x195   :  { %v1150_v30 = vpop.permute.xlu1 %1149  ;;  %v1162_v34 = vrot.slane %v1148_v38, 4 }
 0x196   :  { %v1163_v24 = vrot.slane %v1150_v30, 4  ;;  %1667 = vrot.lane.b32.xlu2 %v1647_v19, %s10262_s16  ;;  %v1823_v19 = vld [vmem:[#allocation2 + $0x22] sm:$0x3] }
 0x197   :  { %v1173_v46 = vsel %vm105_vm9, %v1161_v29, %v1162_v34 }
 0x198   :  { %v1177_v47 = vsel %vm105_vm9, %v1163_v24, %v1164_v21  ;;  %v1174_v0 = vsel %vm14867_vm5, %v10941_v1, %v1173_v46  ;;  %v1175_v23 = vsel %vm105_vm9, %v1162_v34, %v1163_v24  ;;  %v11009_v35 = vpop.permute.xlu2 %1247 }
 0x199   :  { %v1178_v44 = vsel %vm14867_vm5, %v1150_v30, %v1177_v47  ;;  %v1176_v37 = vsel %vm14867_vm5, %v1148_v38, %v1175_v23  ;;  %1195 = vst [vmem:[#allocation3 + $0x150] sm:$0xcc] %v1174_v0  ;;  %v11070_v38 = vld.sshfl [vmem:[#allocation1 + $0x30] sm:$0xff pattern:$0x75643120] }
 0x19a   :  { %1197 = vst [vmem:[#allocation3 + $0x160] sm:$0xcc] %v1178_v44  ;;  %1669 = vrot.lane.b32.xlu0 %v1649_v25, %s10262_s16 }
 0x19b   :  { %1196 = vst [vmem:[#allocation3 + $0x158] sm:$0xcc] %v1176_v37  ;;  %1671 = vrot.lane.b32.xlu1 %v1651_v15, %s10262_s16  ;;  %v11052_v22 = vld.sshfl [vmem:[#allocation1 + $0x8] sm:$0xff pattern:$0x75643120] }
 0x19c   :  { %v1154_v1 = vpop.permute.xlu0 %1153  ;;  %v1836_v15 = vld.sshfl [vmem:[#allocation1] sm:$0xff pattern:$0x75643120] }
 0x19d   :  { %v1156_v42 = vpop.permute.xlu1 %1155  ;;  %v1165_v52 = vrot.slane %v1154_v1, 4  ;;  %1853 = vst [vmem:[#allocation1 + $0x1] ss:$2 sm:$0xff] %v1823_v19  ;;  %v11129_v19 = vld [vmem:[#allocation2 + $0x2] sm:$0xff] }
 0x19e   :  { %v1166_v53 = vrot.slane %v1156_v42, 4  ;;  %1673 = vrot.lane.b32.xlu2 %v1653_v31, %s10262_s16 }
 0x19f   :  { %v1179_v55 = vsel %vm105_vm9, %v1164_v21, %v1165_v52  ;;  %v11068_v21 = vld.sshfl [vmem:[#allocation1 + $0x38] sm:$0xff pattern:$0x75643120] }
 0x1a0   :  { %v1180_v56 = vsel %vm14867_vm5, %v10957_v57, %v1179_v55  ;;  %v1181_v58 = vsel %vm105_vm9, %v1165_v52, %v1166_v53  ;;  %v1183_v59 = vsel %vm105_vm9, %v1166_v53, %v1167_v40  ;;  %v11030_v60 = vpop.permute.xlu2 %1253  ;;  %v1743_v57 = vld.sshfl [vmem:[#allocation1 + $0x10] sm:$0xff pattern:$0x75643120]  ;;  %1931 = vst [vmem:[#allocation1 + $0x30] ss:$2 sm:$0xff] %v10813_v45 }
 0x1a1   :  { %v1182_v61 = vsel %vm14867_vm5, %v1154_v1, %v1181_v58  ;;  %1198 = vst [vmem:[#allocation3 + $0x168] sm:$0xcc] %v1180_v56  ;;  %v1184_v54 = vsel %vm14867_vm5, %v1156_v42, %v1183_v59  ;;  %v1846_v52 = vld.sshfl [vmem:[#allocation1 + $0x28] sm:$0xff pattern:$0x75643120] }
 0x1a2   :  { %1199 = vst [vmem:[#allocation3 + $0x170] sm:$0xcc] %v1182_v61  ;;  %1675 = vrot.lane.b32.xlu0 %v10966_v9, %s10262_s16 }
 0x1a3   :  { %1200 = vst [vmem:[#allocation3 + $0x178] sm:$0xcc] %v1184_v54  ;;  %1677 = vrot.lane.b32.xlu1 %v10964_v3, %s10262_s16 }
 0x1a4   :  { %v1238_v4 = vpop.permute.xlu0 %1237  ;;  %1829 = vst [vmem:[#allocation1 + $0x11] ss:$2 sm:$0xff] %v10778_v20 }
 0x1a5   :  { %v1240_v14 = vpop.permute.xlu1 %1239  ;;  %v1255_v16 = vrot.slane %v1238_v4, 4 }
 0x1a6   :  { %v1256_v2 = vrot.slane %v1240_v14, 4  ;;  %1679 = vrot.lane.b32.xlu2 %v10968_v10, %s10262_s16  ;;  %v1260_v10 = vrot.slane %v11009_v35, 4 }
 0x1a8   :  { %v1267_v9 = vsel %vm105_vm9, %v1256_v2, %v1257_v11  ;;  %v1264_v3 = vsel %vm105_vm9, %v1255_v16, %v1256_v2  ;;  %v11045_v17 = vpop.permute.xlu2 %1377 }
 0x1a9   :  { %v1268_v18 = vsel %vm1265_vm6, %v1240_v14, %v1267_v9  ;;  %v1266_v48 = vsel %vm1265_vm6, %v1238_v4, %v1264_v3  ;;  %v1393_v1 = vrot.slane %v11045_v17, 4 }
 0x1aa   :  { %1290 = vst [vmem:[#allocation3 + $0x188] sm:$0x33] %v1268_v18  ;;  %1759 = vrot.lane.b32.xlu0 %v1739_v39, %s10263_s17  ;;  %v11072_v39 = vld.sshfl [vmem:[#allocation1] sm:$0xff pattern:$0x75643120] }
 0x1ab   :  { %1289 = vst [vmem:[#allocation3 + $0x180] sm:$0x33] %v1266_v48  ;;  %1761 = vrot.lane.b32.xlu1 %v11000_v33, %s10263_s17  ;;  %v1263_v33 = vrot.slane %v11030_v60, 4  ;;  %v1842_v40 = vld.sshfl [vmem:[#allocation1 + $0x18] sm:$0xff pattern:$0x75643120] }
 0x1ac   :  { %v1244_v25 = vpop.permute.xlu0 %1243  ;;  %1922 = vst [vmem:[#allocation1] ss:$2 sm:$0xff] %v10740_v36  ;;  %v1844_v36 = vld.sshfl [vmem:[#allocation1 + $0x20] sm:$0xff pattern:$0x75643120] }
 0x1ad   :  { %v1246_v29 = vpop.permute.xlu1 %1245  ;;  %v1258_v5 = vrot.slane %v1244_v25, 4  ;;  %1928 = vst [vmem:[#allocation1 + $0x20] ss:$2 sm:$0xff] %v10762_v62  ;;  %v11122_v48 = vld.sshfl [vmem:[#allocation1 + $0x38] sm:$0xff pattern:$0x75643120] }
 0x1ae   :  { %v1259_v31 = vrot.slane %v1246_v29, 4  ;;  %1763 = vrot.lane.b32.xlu2 %v1743_v57, %s10263_s17 }
 0x1af   :  { %v1269_v43 = vsel %vm105_vm9, %v1257_v11, %v1258_v5 }
 0x1b0   :  { %v1273_v13 = vsel %vm105_vm9, %v1259_v31, %v1260_v10  ;;  %v1270_v8 = vsel %vm1265_vm6, %v10993_v27, %v1269_v43  ;;  %v1271_v28 = vsel %vm105_vm9, %v1258_v5, %v1259_v31  ;;  %v11061_v26 = vpop.permute.xlu2 %1383 }
 0x1b1   :  { %v1274_v32 = vsel %vm1265_vm6, %v1246_v29, %v1273_v13  ;;  %v1272_v7 = vsel %vm1265_vm6, %v1244_v25, %v1271_v28  ;;  %1291 = vst [vmem:[#allocation3 + $0x190] sm:$0x33] %v1270_v8 }
 0x1b2   :  { %1293 = vst [vmem:[#allocation3 + $0x1a0] sm:$0x33] %v1274_v32  ;;  %1765 = vrot.lane.b32.xlu0 %v1745_v63, %s10263_s17  ;;  %v1920_v63 = vld [vmem:[#allocation2 + $0x22] sm:$0x3] }
 0x1b3   :  { %1292 = vst [vmem:[#allocation3 + $0x198] sm:$0x33] %v1272_v7  ;;  %1767 = vrot.lane.b32.xlu1 %v1747_v49, %s10263_s17  ;;  %v11104_v62 = vld.sshfl [vmem:[#allocation1 + $0x8] sm:$0xff pattern:$0x75643120] }
 0x1b4   :  { %v1250_v27 = vpop.permute.xlu0 %1249  ;;  %v11107_v54 = vld.sshfl [vmem:[#allocation1] sm:$0xff pattern:$0x75643120] }
 0x1b5   :  { %v1252_v6 = vpop.permute.xlu1 %1251  ;;  %v1261_v30 = vrot.slane %v1250_v27, 4  ;;  %1949 = vst [vmem:[#allocation1] ss:$2 sm:$0xff] %v1920_v63 }
 0x1b6   :  { %v1262_v34 = vrot.slane %v1252_v6, 4  ;;  %1769 = vrot.lane.b32.xlu2 %v1749_v12, %s10263_s17 }
 0x1b7   :  { %v1275_v24 = vsel %vm105_vm9, %v1260_v10, %v1261_v30 }
 0x1b8   :  { %v1276_v46 = vsel %vm1265_vm6, %v11009_v35, %v1275_v24  ;;  %v1277_v47 = vsel %vm105_vm9, %v1261_v30, %v1262_v34  ;;  %v1279_v0 = vsel %vm105_vm9, %v1262_v34, %v1263_v33  ;;  %v11082_v23 = vpop.permute.xlu2 %1389  ;;  %v1840_v35 = vld.sshfl [vmem:[#allocation1 + $0x10] sm:$0xff pattern:$0x75643120]  ;;  %v1940_v33 = vld.sshfl [vmem:[#allocation1 + $0x20] sm:$0xff pattern:$0x75643120] }
 0x1b9   :  { %v1278_v44 = vsel %vm1265_vm6, %v1250_v27, %v1277_v47  ;;  %1294 = vst [vmem:[#allocation3 + $0x1a8] sm:$0x33] %v1276_v46  ;;  %v1280_v37 = vsel %vm1265_vm6, %v1252_v6, %v1279_v0  ;;  %v1399_v18 = vrot.slane %v11082_v23, 4  ;;  %v1942_v30 = vld.sshfl [vmem:[#allocation1 + $0x28] sm:$0xff pattern:$0x75643120] }
 0x1ba   :  { %1295 = vst [vmem:[#allocation3 + $0x1b0] sm:$0x33] %v1278_v44  ;;  %1771 = vrot.lane.b32.xlu0 %v11018_v50, %s10263_s17  ;;  %v11147_v34 = vld [vmem:[#allocation2 + $0x12] sm:$0xff] }
 0x1bb   :  { %1296 = vst [vmem:[#allocation3 + $0x1b8] sm:$0x33] %v1280_v37  ;;  %1773 = vrot.lane.b32.xlu1 %v11016_v41, %s10263_s17 }
 0x1bc   :  { %v1374_v42 = vpop.permute.xlu0 %1373  ;;  %1925 = vst [vmem:[#allocation1 + $0x10] ss:$2 sm:$0xff] %v10778_v20  ;;  %v11126_v10 = vld.sshfl [vmem:[#allocation1] sm:$0xff pattern:$0x75643120] }
 0x1bd   :  { %v1376_v53 = vpop.permute.xlu1 %1375  ;;  %v1391_v55 = vrot.slane %v1374_v42, 4  ;;  %2019 = vst [vmem:[#allocation1 + $0x1] ss:$2 sm:$0xff] %v11129_v19 }
 0x1be   :  { %v1392_v56 = vrot.slane %v1376_v53, 4  ;;  %1775 = vrot.lane.b32.xlu2 %v11020_v51, %s10263_s17  ;;  %v1396_v51 = vrot.slane %v11061_v26, 4  ;;  %2025 = vst [vmem:[#allocation1 + $0x21] ss:$2 sm:$0xff] %v11147_v34 }
 0x1c0   :  { %v1403_v50 = vsel %vm105_vm9, %v1392_v56, %v1393_v1  ;;  %v1400_v41 = vsel %vm105_vm9, %v1391_v55, %v1392_v56  ;;  %v11097_v58 = vpop.permute.xlu2 %1474 }
 0x1c1   :  { %v1404_v59 = vsel %vm14855_vm7, %v1376_v53, %v1403_v50  ;;  %v1402_v60 = vsel %vm14855_vm7, %v1374_v42, %v1400_v41 }
 0x1c2   :  { %1426 = vst [vmem:[#allocation3 + $0x1c8] sm:$0x33] %v1404_v59  ;;  %1856 = vrot.lane.b32.xlu0 %v1836_v15, %s10264_s18 }
 0x1c3   :  { %1425 = vst [vmem:[#allocation3 + $0x1c0] sm:$0x33] %v1402_v60  ;;  %1858 = vrot.lane.b32.xlu1 %v11052_v22, %s10264_s18  ;;  %v11124_v22 = vld.sshfl [vmem:[#allocation1 + $0x30] sm:$0xff pattern:$0x75643120] }
 0x1c4   :  { %v1380_v61 = vpop.permute.xlu0 %1379  ;;  %2028 = vst [vmem:[#allocation1 + $0x31] ss:$2 sm:$0xff] %v10813_v45  ;;  %v1938_v7 = vld.sshfl [vmem:[#allocation1 + $0x18] sm:$0xff pattern:$0x75643120] }
 0x1c5   :  { %v1382_v49 = vpop.permute.xlu1 %1381  ;;  %v1394_v57 = vrot.slane %v1380_v61, 4  ;;  %v1936_v27 = vld.sshfl [vmem:[#allocation1 + $0x10] sm:$0xff pattern:$0x75643120] }
 0x1c6   :  { %v1395_v11 = vrot.slane %v1382_v49, 4  ;;  %1860 = vrot.lane.b32.xlu2 %v1840_v35, %s10264_s18  ;;  %2022 = vst [vmem:[#allocation1 + $0x11] ss:$2 sm:$0xff] %v10778_v20  ;;  %v11163_v20 = vld.sshfl [vmem:[#allocation1 + $0x8] sm:$0xff pattern:$0x75643120] }
 0x1c7   :  { %v1405_v4 = vsel %vm105_vm9, %v1393_v1, %v1394_v57 }
 0x1c8   :  { %v1409_v12 = vsel %vm105_vm9, %v1395_v11, %v1396_v51  ;;  %v1406_v14 = vsel %vm14855_vm7, %v11045_v17, %v1405_v4  ;;  %v1407_v16 = vsel %vm105_vm9, %v1394_v57, %v1395_v11  ;;  %v11115_v2 = vpop.permute.xlu2 %1480 }
 0x1c9   :  { %v1410_v9 = vsel %vm14855_vm7, %v1382_v49, %v1409_v12  ;;  %v1408_v3 = vsel %vm14855_vm7, %v1380_v61, %v1407_v16  ;;  %1427 = vst [vmem:[#allocation3 + $0x1d0] sm:$0x33] %v1406_v14 }
 0x1ca   :  { %1429 = vst [vmem:[#allocation3 + $0x1e0] sm:$0x33] %v1410_v9  ;;  %1862 = vrot.lane.b32.xlu0 %v1842_v40, %s10264_s18  ;;  %v2029_v40 = vld.sshfl [vmem:[#allocation1] sm:$0xff pattern:$0x75643120] }
 0x1cb   :  { %1428 = vst [vmem:[#allocation3 + $0x1d8] sm:$0x33] %v1408_v3  ;;  %1864 = vrot.lane.b32.xlu1 %v1844_v36, %s10264_s18  ;;  %v2016_v36 = vld [vmem:[#allocation2 + $0x22] sm:$0x3] }
 0x1cc   :  { %v1386_v17 = vpop.permute.xlu0 %1385  ;;  %2046 = vst [vmem:[#allocation1 + $0x1] ss:$2 sm:$0xff] %v2016_v36  ;;  %v2037_v3 = vld.sshfl [vmem:[#allocation1 + $0x20] sm:$0xff pattern:$0x75643120] }
 0x1cd   :  { %v1388_v25 = vpop.permute.xlu1 %1387  ;;  %v1397_v15 = vrot.slane %v1386_v17, 4 }
 0x1ce   :  { %v1398_v29 = vrot.slane %v1388_v25, 4  ;;  %1866 = vrot.lane.b32.xlu2 %v1846_v52, %s10264_s18 }
 0x1cf   :  { %v1411_v5 = vsel %vm105_vm9, %v1396_v51, %v1397_v15  ;;  %v11181_v51 = vld.sshfl [vmem:[#allocation1 + $0x30] sm:$0xff pattern:$0x75643120] }
 0x1d0   :  { %v1412_v31 = vsel %vm14855_vm7, %v11061_v26, %v1411_v5  ;;  %v1413_v43 = vsel %vm105_vm9, %v1397_v15, %v1398_v29  ;;  %v1415_v13 = vsel %vm105_vm9, %v1398_v29, %v1399_v18  ;;  %v11138_v8 = vpop.permute.xlu2 %1486  ;;  %v1490_v26 = vrot.slane %v11097_v58, 4  ;;  %v11202_v15 = vld [vmem:[#allocation2 + $0xa] sm:$0xff] }
 0x1d1   :  { %v1414_v28 = vsel %vm14855_vm7, %v1386_v17, %v1413_v43  ;;  %1430 = vst [vmem:[#allocation3 + $0x1e8] sm:$0x33] %v1412_v31  ;;  %v1416_v32 = vsel %vm14855_vm7, %v1388_v25, %v1415_v13  ;;  %v1496_v60 = vrot.slane %v11138_v8, 4  ;;  %v2039_v25 = vld.sshfl [vmem:[#allocation1 + $0x28] sm:$0xff pattern:$0x75643120] }
 0x1d2   :  { %1431 = vst [vmem:[#allocation3 + $0x1f0] sm:$0x33] %v1414_v28  ;;  %1868 = vrot.lane.b32.xlu0 %v11070_v38, %s10264_s18  ;;  %v2035_v31 = vld.sshfl [vmem:[#allocation1 + $0x18] sm:$0xff pattern:$0x75643120]  ;;  %vm14857_vm7 = vcmask 236544  }
 0x1d3   :  { %1432 = vst [vmem:[#allocation3 + $0x1f8] sm:$0x33] %v1416_v32  ;;  %1870 = vrot.lane.b32.xlu1 %v11068_v21, %s10264_s18  ;;  %v11183_v61 = vld.sshfl [vmem:[#allocation1] sm:$0xff pattern:$0x75643120] }
 0x1d4   :  { %v1471_v6 = vpop.permute.xlu0 %1470  ;;  %2115 = vst [vmem:[#allocation1] ss:$2 sm:$0xff] %v11129_v19 }
 0x1d5   :  { %v1473_v24 = vpop.permute.xlu1 %1472  ;;  %v1488_v46 = vrot.slane %v1471_v6, 4  ;;  %2121 = vst [vmem:[#allocation1 + $0x20] ss:$2 sm:$0xff] %v11147_v34 }
 0x1d6   :  { %v1489_v38 = vrot.slane %v1473_v24, 4  ;;  %1872 = vrot.lane.b32.xlu2 %v11072_v39, %s10264_s18  ;;  %v1493_v39 = vrot.slane %v11115_v2, 4 }
 0x1d8   :  { %v1500_v21 = vsel %vm105_vm9, %v1489_v38, %v1490_v26  ;;  %v1497_v47 = vsel %vm105_vm9, %v1488_v46, %v1489_v38  ;;  %v11155_v0 = vpop.permute.xlu2 %1570 }
 0x1d9   :  { %v1501_v23 = vsel %vm14850_vm8, %v1473_v24, %v1500_v21  ;;  %v1499_v44 = vsel %vm14850_vm8, %v1471_v6, %v1497_v47  ;;  %v1586_v18 = vrot.slane %v11155_v0, 4 }
 0x1da   :  { %1523 = vst [vmem:[#allocation3 + $0x1c8] sm:$0xcc] %v1501_v23  ;;  %1952 = vrot.lane.b32.xlu0 %v11107_v54, %s10265_s19 }
 0x1db   :  { %1522 = vst [vmem:[#allocation3 + $0x1c0] sm:$0xcc] %v1499_v44  ;;  %1954 = vrot.lane.b32.xlu1 %v11104_v62, %s10265_s19  ;;  %v11179_v62 = vld.sshfl [vmem:[#allocation1 + $0x38] sm:$0xff pattern:$0x75643120] }
 0x1dc   :  { %v1477_v37 = vpop.permute.xlu0 %1476  ;;  %2124 = vst [vmem:[#allocation1 + $0x30] ss:$2 sm:$0xff] %v10813_v45 }
 0x1dd   :  { %v1479_v35 = vpop.permute.xlu1 %1478  ;;  %v1491_v1 = vrot.slane %v1477_v37, 4 }
 0x1de   :  { %v1492_v42 = vrot.slane %v1479_v35, 4  ;;  %1956 = vrot.lane.b32.xlu2 %v1936_v27, %s10265_s19 }
 0x1df   :  { %v1502_v52 = vsel %vm105_vm9, %v1490_v26, %v1491_v1  ;;  %v2113_v26 = vld [vmem:[#allocation2 + $0x22] sm:$0x3] }
 0x1e0   :  { %v1506_v53 = vsel %vm105_vm9, %v1492_v42, %v1493_v39  ;;  %v1503_v55 = vsel %vm14850_vm8, %v11097_v58, %v1502_v52  ;;  %v1504_v56 = vsel %vm105_vm9, %v1491_v1, %v1492_v42  ;;  %v11172_v50 = vpop.permute.xlu2 %1576 }
 0x1e1   :  { %v1507_v41 = vsel %vm14850_vm8, %v1479_v35, %v1506_v53  ;;  %v1505_v59 = vsel %vm14850_vm8, %v1477_v37, %v1504_v56  ;;  %1524 = vst [vmem:[#allocation3 + $0x1d0] sm:$0xcc] %v1503_v55  ;;  %v1589_v32 = vrot.slane %v11172_v50, 4 }
 0x1e2   :  { %1526 = vst [vmem:[#allocation3 + $0x1e0] sm:$0xcc] %v1507_v41  ;;  %1958 = vrot.lane.b32.xlu0 %v1938_v7, %s10265_s19 }
 0x1e3   :  { %1525 = vst [vmem:[#allocation3 + $0x1d8] sm:$0xcc] %v1505_v59  ;;  %1960 = vrot.lane.b32.xlu1 %v1940_v33, %s10265_s19  ;;  %v2125_v33 = vld.sshfl [vmem:[#allocation1] sm:$0xff pattern:$0x75643120] }
 0x1e4   :  { %v1483_v58 = vpop.permute.xlu0 %1482  ;;  %v11235_v37 = vld.sshfl [vmem:[#allocation1 + $0x30] sm:$0xff pattern:$0x75643120] }
 0x1e5   :  { %v1485_v54 = vpop.permute.xlu1 %1484  ;;  %v1494_v63 = vrot.slane %v1483_v58, 4 }
 0x1e6   :  { %v1495_v49 = vrot.slane %v1485_v54, 4  ;;  %1962 = vrot.lane.b32.xlu2 %v1942_v30, %s10265_s19 }
 0x1e7   :  { %v1508_v57 = vsel %vm105_vm9, %v1493_v39, %v1494_v63  ;;  %v11233_v39 = vld.sshfl [vmem:[#allocation1 + $0x38] sm:$0xff pattern:$0x75643120] }
 0x1e8   :  { %v1509_v11 = vsel %vm14850_vm8, %v11115_v2, %v1508_v57  ;;  %v1510_v4 = vsel %vm105_vm9, %v1494_v63, %v1495_v49  ;;  %v1512_v12 = vsel %vm105_vm9, %v1495_v49, %v1496_v60  ;;  %v11193_v14 = vpop.permute.xlu2 %1582  ;;  %v2033_v2 = vld.sshfl [vmem:[#allocation1 + $0x10] sm:$0xff pattern:$0x75643120]  ;;  %2221 = vst [vmem:[#allocation1 + $0x31] ss:$2 sm:$0xff] %v10813_v45 }
 0x1e9   :  { %v1511_v16 = vsel %vm14850_vm8, %v1483_v58, %v1510_v4  ;;  %1527 = vst [vmem:[#allocation3 + $0x1e8] sm:$0xcc] %v1509_v11  ;;  %v1513_v9 = vsel %vm14850_vm8, %v1485_v54, %v1512_v12  ;;  %vm14851_vm8 = vcmask 965632   ;;  %v2133_v60 = vld.sshfl [vmem:[#allocation1 + $0x20] sm:$0xff pattern:$0x75643120] }
 0x1ea   :  { %1528 = vst [vmem:[#allocation3 + $0x1f0] sm:$0xcc] %v1511_v16  ;;  %1964 = vrot.lane.b32.xlu0 %v11124_v22, %s10265_s19  ;;  %v2135_v49 = vld.sshfl [vmem:[#allocation1 + $0x28] sm:$0xff pattern:$0x75643120] }
 0x1eb   :  { %1529 = vst [vmem:[#allocation3 + $0x1f8] sm:$0xcc] %v1513_v9  ;;  %1966 = vrot.lane.b32.xlu1 %v11122_v48, %s10265_s19 }
 0x1ec   :  { %v1567_v17 = vpop.permute.xlu0 %1566  ;;  %2118 = vst [vmem:[#allocation1 + $0x10] ss:$2 sm:$0xff] %v11202_v15 }
 0x1ed   :  { %v1569_v29 = vpop.permute.xlu1 %1568  ;;  %v1584_v5 = vrot.slane %v1567_v17, 4  ;;  %2218 = vst [vmem:[#allocation1 + $0x21] ss:$2 sm:$0xff] %v11147_v34 }
 0x1ee   :  { %v1585_v43 = vrot.slane %v1569_v29, 4  ;;  %1968 = vrot.lane.b32.xlu2 %v11126_v10, %s10265_s19  ;;  %v11217_v10 = vld.sshfl [vmem:[#allocation1 + $0x8] sm:$0xff pattern:$0x75643120] }
 0x1ef   :  { %2142 = vst [vmem:[#allocation1] ss:$2 sm:$0xff] %v2113_v26 }
 0x1f0   :  { %v1596_v48 = vsel %vm105_vm9, %v1585_v43, %v1586_v18  ;;  %v1593_v22 = vsel %vm105_vm9, %v1584_v5, %v1585_v43  ;;  %v11210_v13 = vpop.permute.xlu2 %1667 }
 0x1f1   :  { %v1597_v8 = vsel %vm14851_vm8, %v1569_v29, %v1596_v48  ;;  %v1595_v28 = vsel %vm14851_vm8, %v1567_v17, %v1593_v22  ;;  %v1683_v54 = vrot.slane %v11210_v13, 4 }
 0x1f2   :  { %1619 = vst [vmem:[#allocation3 + $0x208] sm:$0x33] %v1597_v8  ;;  %2049 = vrot.lane.b32.xlu0 %v2029_v40, %s10266_s20 }
 0x1f3   :  { %1618 = vst [vmem:[#allocation3 + $0x200] sm:$0x33] %v1595_v28  ;;  %2051 = vrot.lane.b32.xlu1 %v11163_v20, %s10266_s20  ;;  %v1592_v20 = vrot.slane %v11193_v14, 4  ;;  %v2131_v58 = vld.sshfl [vmem:[#allocation1 + $0x18] sm:$0xff pattern:$0x75643120] }
 0x1f4   :  { %v1573_v7 = vpop.permute.xlu0 %1572 }
 0x1f5   :  { %v1575_v27 = vpop.permute.xlu1 %1574  ;;  %v1587_v6 = vrot.slane %v1573_v7, 4 }
 0x1f6   :  { %v1588_v30 = vrot.slane %v1575_v27, 4  ;;  %2053 = vrot.lane.b32.xlu2 %v2033_v2, %s10266_s20  ;;  %v11237_v40 = vld.sshfl [vmem:[#allocation1] sm:$0xff pattern:$0x75643120] }
 0x1f7   :  { %v1598_v24 = vsel %vm105_vm9, %v1586_v18, %v1587_v6  ;;  %2212 = vst [vmem:[#allocation1 + $0x1] ss:$2 sm:$0xff] %v11129_v19  ;;  %v2209_v18 = vld [vmem:[#allocation2 + $0x22] sm:$0x3] }
 0x1f8   :  { %v1602_v46 = vsel %vm105_vm9, %v1588_v30, %v1589_v32  ;;  %v1599_v38 = vsel %vm14851_vm8, %v11155_v0, %v1598_v24  ;;  %v1600_v21 = vsel %vm105_vm9, %v1587_v6, %v1588_v30  ;;  %v11226_v47 = vpop.permute.xlu2 %1673 }
 0x1f9   :  { %v1603_v23 = vsel %vm14851_vm8, %v1575_v27, %v1602_v46  ;;  %v1601_v44 = vsel %vm14851_vm8, %v1573_v7, %v1600_v21  ;;  %1620 = vst [vmem:[#allocation3 + $0x210] sm:$0x33] %v1599_v38  ;;  %v11287_v7 = vld.sshfl [vmem:[#allocation1 + $0x30] sm:$0xff pattern:$0x75643120] }
 0x1fa   :  { %1622 = vst [vmem:[#allocation3 + $0x220] sm:$0x33] %v1603_v23  ;;  %2055 = vrot.lane.b32.xlu0 %v2035_v31, %s10266_s20 }
 0x1fb   :  { %1621 = vst [vmem:[#allocation3 + $0x218] sm:$0x33] %v1601_v44  ;;  %2057 = vrot.lane.b32.xlu1 %v2037_v3, %s10266_s20 }
 0x1fc   :  { %v1579_v0 = vpop.permute.xlu0 %1578 }
 0x1fd   :  { %v1581_v36 = vpop.permute.xlu1 %1580  ;;  %v1590_v35 = vrot.slane %v1579_v0, 4 }
 0x1fe   :  { %v1591_v1 = vrot.slane %v1581_v36, 4  ;;  %2059 = vrot.lane.b32.xlu2 %v2039_v25, %s10266_s20  ;;  %v11269_v9 = vld.sshfl [vmem:[#allocation1 + $0x8] sm:$0xff pattern:$0x75643120] }
 0x1ff   :  { %v1604_v42 = vsel %vm105_vm9, %v1589_v32, %v1590_v35  ;;  %v2222_v2 = vld.sshfl [vmem:[#allocation1] sm:$0xff pattern:$0x75643120]  ;;  %v11285_v32 = vld.sshfl [vmem:[#allocation1 + $0x38] sm:$0xff pattern:$0x75643120] }
 0x200   :  { %v1605_v52 = vsel %vm14851_vm8, %v11172_v50, %v1604_v42  ;;  %v1606_v53 = vsel %vm105_vm9, %v1590_v35, %v1591_v1  ;;  %v1608_v55 = vsel %vm105_vm9, %v1591_v1, %v1592_v20  ;;  %v11247_v56 = vpop.permute.xlu2 %1679  ;;  %v2129_v50 = vld.sshfl [vmem:[#allocation1 + $0x10] sm:$0xff pattern:$0x75643120]  ;;  %2239 = vst [vmem:[#allocation1 + $0x1] ss:$2 sm:$0xff] %v2209_v18 }
 0x201   :  { %v1607_v41 = vsel %vm14851_vm8, %v1579_v0, %v1606_v53  ;;  %1623 = vst [vmem:[#allocation3 + $0x228] sm:$0x33] %v1605_v52  ;;  %v1609_v59 = vsel %vm14851_vm8, %v1581_v36, %v1608_v55  ;;  %vm14852_vm8 = vcmask 957440   ;;  %v2230_v0 = vld.sshfl [vmem:[#allocation1 + $0x20] sm:$0xff pattern:$0x75643120] }
 0x202   :  { %1624 = vst [vmem:[#allocation3 + $0x230] sm:$0x33] %v1607_v41  ;;  %2061 = vrot.lane.b32.xlu0 %v11181_v51, %s10266_s20  ;;  %v2232_v1 = vld.sshfl [vmem:[#allocation1 + $0x28] sm:$0xff pattern:$0x75643120] }
 0x203   :  { %1625 = vst [vmem:[#allocation3 + $0x238] sm:$0x33] %v1609_v59  ;;  %2063 = vrot.lane.b32.xlu1 %v11179_v62, %s10266_s20 }
 0x204   :  { %v1664_v63 = vpop.permute.xlu0 %1663  ;;  %2215 = vst [vmem:[#allocation1 + $0x11] ss:$2 sm:$0xff] %v11202_v15 }
 0x205   :  { %v1666_v57 = vpop.permute.xlu1 %1665  ;;  %v1681_v11 = vrot.slane %v1664_v63, 4  ;;  %2317 = vst [vmem:[#allocation1 + $0x30] ss:$2 sm:$0xff] %v10813_v45 }
 0x206   :  { %v1682_v4 = vrot.slane %v1666_v57, 4  ;;  %2065 = vrot.lane.b32.xlu2 %v11183_v61, %s10266_s20  ;;  %v1686_v61 = vrot.slane %v11226_v47, 4  ;;  %2314 = vst [vmem:[#allocation1 + $0x20] ss:$2 sm:$0xff] %v11147_v34 }
 0x208   :  { %v1693_v51 = vsel %vm105_vm9, %v1682_v4, %v1683_v54  ;;  %v1690_v62 = vsel %vm105_vm9, %v1681_v11, %v1682_v4  ;;  %v11262_v12 = vpop.permute.xlu2 %1763 }
 0x209   :  { %v1694_v14 = vsel %vm14852_vm8, %v1666_v57, %v1693_v51  ;;  %v1692_v16 = vsel %vm14852_vm8, %v1664_v63, %v1690_v62  ;;  %v1779_v36 = vrot.slane %v11262_v12, 4 }
 0x20a   :  { %1716 = vst [vmem:[#allocation3 + $0x208] sm:$0xcc] %v1694_v14  ;;  %2145 = vrot.lane.b32.xlu0 %v2125_v33, %s14864_s21  ;;  %v11289_v33 = vld.sshfl [vmem:[#allocation1] sm:$0xff pattern:$0x75643120] }
 0x20b   :  { %1715 = vst [vmem:[#allocation3 + $0x200] sm:$0xcc] %v1692_v16  ;;  %2147 = vrot.lane.b32.xlu1 %v11217_v10, %s14864_s21  ;;  %v1689_v10 = vrot.slane %v11247_v56, 4  ;;  %v2228_v20 = vld.sshfl [vmem:[#allocation1 + $0x18] sm:$0xff pattern:$0x75643120] }
 0x20c   :  { %v1670_v3 = vpop.permute.xlu0 %1669  ;;  %2308 = vst [vmem:[#allocation1] ss:$2 sm:$0xff] %v11129_v19 }
 0x20d   :  { %v1672_v17 = vpop.permute.xlu1 %1671  ;;  %v1684_v25 = vrot.slane %v1670_v3, 4 }
 0x20e   :  { %v1685_v29 = vrot.slane %v1672_v17, 4  ;;  %2149 = vrot.lane.b32.xlu2 %v2129_v50, %s14864_s21  ;;  %v2306_v50 = vld [vmem:[#allocation2 + $0x22] sm:$0x3] }
 0x20f   :  { %v1695_v5 = vsel %vm105_vm9, %v1683_v54, %v1684_v25 }
 0x210   :  { %v1699_v31 = vsel %vm105_vm9, %v1685_v29, %v1686_v61  ;;  %v1696_v43 = vsel %vm14852_vm8, %v11210_v13, %v1695_v5  ;;  %v1697_v48 = vsel %vm105_vm9, %v1684_v25, %v1685_v29  ;;  %v11278_v22 = vpop.permute.xlu2 %1769 }
 0x211   :  { %v1700_v8 = vsel %vm14852_vm8, %v1672_v17, %v1699_v31  ;;  %v1698_v28 = vsel %vm14852_vm8, %v1670_v3, %v1697_v48  ;;  %1717 = vst [vmem:[#allocation3 + $0x210] sm:$0xcc] %v1696_v43  ;;  %v11339_v3 = vld.sshfl [vmem:[#allocation1 + $0x30] sm:$0xff pattern:$0x75643120] }
 0x212   :  { %1719 = vst [vmem:[#allocation3 + $0x220] sm:$0xcc] %v1700_v8  ;;  %2151 = vrot.lane.b32.xlu0 %v2131_v58, %s14864_s21 }
 0x213   :  { %1718 = vst [vmem:[#allocation3 + $0x218] sm:$0xcc] %v1698_v28  ;;  %2153 = vrot.lane.b32.xlu1 %v2133_v60, %s14864_s21  ;;  %v11321_v59 = vld.sshfl [vmem:[#allocation1 + $0x8] sm:$0xff pattern:$0x75643120] }
 0x214   :  { %v1676_v13 = vpop.permute.xlu0 %1675  ;;  %v2318_v58 = vld.sshfl [vmem:[#allocation1] sm:$0xff pattern:$0x75643120] }
 0x215   :  { %v1678_v26 = vpop.permute.xlu1 %1677  ;;  %v1687_v27 = vrot.slane %v1676_v13, 4  ;;  %2335 = vst [vmem:[#allocation1] ss:$2 sm:$0xff] %v2306_v50 }
 0x216   :  { %v1688_v6 = vrot.slane %v1678_v26, 4  ;;  %2155 = vrot.lane.b32.xlu2 %v2135_v49, %s14864_s21 }
 0x217   :  { %v1701_v30 = vsel %vm105_vm9, %v1686_v61, %v1687_v27  ;;  %v11337_v61 = vld.sshfl [vmem:[#allocation1 + $0x38] sm:$0xff pattern:$0x75643120] }
 0x218   :  { %v1702_v24 = vsel %vm14852_vm8, %v11226_v47, %v1701_v30  ;;  %v1703_v46 = vsel %vm105_vm9, %v1687_v27, %v1688_v6  ;;  %v1705_v38 = vsel %vm105_vm9, %v1688_v6, %v1689_v10  ;;  %v11299_v21 = vpop.permute.xlu2 %1775  ;;  %v2226_v47 = vld.sshfl [vmem:[#allocation1 + $0x10] sm:$0xff pattern:$0x75643120]  ;;  %2414 = vst [vmem:[#allocation1 + $0x31] ss:$2 sm:$0xff] %v10813_v45 }
 0x219   :  { %v1704_v23 = vsel %vm14852_vm8, %v1676_v13, %v1703_v46  ;;  %1720 = vst [vmem:[#allocation3 + $0x228] sm:$0xcc] %v1702_v24  ;;  %v1706_v44 = vsel %vm14852_vm8, %v1678_v26, %v1705_v38  ;;  %vm14853_vm8 = vcmask 318464   ;;  %v2326_v13 = vld.sshfl [vmem:[#allocation1 + $0x20] sm:$0xff pattern:$0x75643120] }
 0x21a   :  { %1721 = vst [vmem:[#allocation3 + $0x230] sm:$0xcc] %v1704_v23  ;;  %2157 = vrot.lane.b32.xlu0 %v11235_v37, %s14864_s21  ;;  %v2328_v6 = vld.sshfl [vmem:[#allocation1 + $0x28] sm:$0xff pattern:$0x75643120] }
 0x21b   :  { %1722 = vst [vmem:[#allocation3 + $0x238] sm:$0xcc] %v1706_v44  ;;  %2159 = vrot.lane.b32.xlu1 %v11233_v39, %s14864_s21 }
 0x21c   :  { %v1760_v35 = vpop.permute.xlu0 %1759  ;;  %2311 = vst [vmem:[#allocation1 + $0x10] ss:$2 sm:$0xff] %v11202_v15 }
 0x21d   :  { %v1762_v42 = vpop.permute.xlu1 %1761  ;;  %v1777_v52 = vrot.slane %v1760_v35, 4  ;;  %2411 = vst [vmem:[#allocation1 + $0x21] ss:$2 sm:$0xff] %v11147_v34 }
 0x21e   :  { %v1778_v53 = vrot.slane %v1762_v42, 4  ;;  %2161 = vrot.lane.b32.xlu2 %v11237_v40, %s14864_s21  ;;  %v1782_v40 = vrot.slane %v11278_v22, 4 }
 0x220   :  { %v1789_v37 = vsel %vm105_vm9, %v1778_v53, %v1779_v36  ;;  %v1786_v39 = vsel %vm105_vm9, %v1777_v52, %v1778_v53  ;;  %v11314_v55 = vpop.permute.xlu2 %1860 }
 0x221   :  { %v1790_v56 = vsel %vm14853_vm8, %v1762_v42, %v1789_v37  ;;  %v1788_v41 = vsel %vm14853_vm8, %v1760_v35, %v1786_v39  ;;  %v1876_v26 = vrot.slane %v11314_v55, 4 }
 0x222   :  { %1812 = vst [vmem:[#allocation3 + $0x248] sm:$0x33] %v1790_v56  ;;  %2242 = vrot.lane.b32.xlu0 %v2222_v2, %s14862_s22  ;;  %v11341_v2 = vld.sshfl [vmem:[#allocation1] sm:$0xff pattern:$0x75643120] }
 0x223   :  { %1811 = vst [vmem:[#allocation3 + $0x240] sm:$0x33] %v1788_v41  ;;  %2244 = vrot.lane.b32.xlu1 %v11269_v9, %s14862_s22  ;;  %v1785_v9 = vrot.slane %v11299_v21, 4  ;;  %v2324_v10 = vld.sshfl [vmem:[#allocation1 + $0x18] sm:$0xff pattern:$0x75643120] }
 0x224   :  { %v1766_v60 = vpop.permute.xlu0 %1765  ;;  %2405 = vst [vmem:[#allocation1 + $0x1] ss:$2 sm:$0xff] %v11129_v19 }
 0x225   :  { %v1768_v54 = vpop.permute.xlu1 %1767  ;;  %v1780_v63 = vrot.slane %v1766_v60, 4 }
 0x226   :  { %v1781_v49 = vrot.slane %v1768_v54, 4  ;;  %2246 = vrot.lane.b32.xlu2 %v2226_v47, %s14862_s22  ;;  %v2402_v47 = vld [vmem:[#allocation2 + $0x22] sm:$0x3] }
 0x227   :  { %v1791_v57 = vsel %vm105_vm9, %v1779_v36, %v1780_v63 }
 0x228   :  { %v1795_v11 = vsel %vm105_vm9, %v1781_v49, %v1782_v40  ;;  %v1792_v4 = vsel %vm14853_vm8, %v11262_v12, %v1791_v57  ;;  %v1793_v51 = vsel %vm105_vm9, %v1780_v63, %v1781_v49  ;;  %v11330_v62 = vpop.permute.xlu2 %1866 }
 0x229   :  { %v1796_v14 = vsel %vm14853_vm8, %v1768_v54, %v1795_v11  ;;  %v1794_v16 = vsel %vm14853_vm8, %v1766_v60, %v1793_v51  ;;  %1813 = vst [vmem:[#allocation3 + $0x250] sm:$0x33] %v1792_v4  ;;  %v11391_v60 = vld.sshfl [vmem:[#allocation1 + $0x30] sm:$0xff pattern:$0x75643120] }
 0x22a   :  { %1815 = vst [vmem:[#allocation3 + $0x260] sm:$0x33] %v1796_v14  ;;  %2248 = vrot.lane.b32.xlu0 %v2228_v20, %s14862_s22 }
 0x22b   :  { %1814 = vst [vmem:[#allocation3 + $0x258] sm:$0x33] %v1794_v16  ;;  %2250 = vrot.lane.b32.xlu1 %v2230_v0, %s14862_s22  ;;  %v11373_v44 = vld.sshfl [vmem:[#allocation1 + $0x8] sm:$0xff pattern:$0x75643120] }
 0x22c   :  { %v1772_v12 = vpop.permute.xlu0 %1771  ;;  %v2415_v0 = vld.sshfl [vmem:[#allocation1] sm:$0xff pattern:$0x75643120] }
 0x22d   :  { %v1774_v18 = vpop.permute.xlu1 %1773  ;;  %v1783_v17 = vrot.slane %v1772_v12, 4  ;;  %2432 = vst [vmem:[#allocation1 + $0x1] ss:$2 sm:$0xff] %v2402_v47 }
 0x22e   :  { %v1784_v25 = vrot.slane %v1774_v18, 4  ;;  %2252 = vrot.lane.b32.xlu2 %v2232_v1, %s14862_s22 }
 0x22f   :  { %v1797_v29 = vsel %vm105_vm9, %v1782_v40, %v1783_v17  ;;  %v11389_v40 = vld.sshfl [vmem:[#allocation1 + $0x38] sm:$0xff pattern:$0x75643120] }
 0x230   :  { %v1798_v5 = vsel %vm14853_vm8, %v11278_v22, %v1797_v29  ;;  %v1799_v31 = vsel %vm105_vm9, %v1783_v17, %v1784_v25  ;;  %v1801_v43 = vsel %vm105_vm9, %v1784_v25, %v1785_v9  ;;  %v11351_v48 = vpop.permute.xlu2 %1872  ;;  %v2322_v22 = vld.sshfl [vmem:[#allocation1 + $0x10] sm:$0xff pattern:$0x75643120]  ;;  %2510 = vst [vmem:[#allocation1 + $0x30] ss:$2 sm:$0xff] %v10813_v45 }
 0x231   :  { %v1800_v8 = vsel %vm14853_vm8, %v1772_v12, %v1799_v31  ;;  %1816 = vst [vmem:[#allocation3 + $0x268] sm:$0x33] %v1798_v5  ;;  %v1802_v28 = vsel %vm14853_vm8, %v1774_v18, %v1801_v43  ;;  %vm14854_vm8 = vcmask 310272   ;;  %v2425_v18 = vld.sshfl [vmem:[#allocation1 + $0x28] sm:$0xff pattern:$0x75643120] }
 0x232   :  { %1817 = vst [vmem:[#allocation3 + $0x270] sm:$0x33] %v1800_v8  ;;  %2254 = vrot.lane.b32.xlu0 %v11287_v7, %s14862_s22 }
 0x233   :  { %1818 = vst [vmem:[#allocation3 + $0x278] sm:$0x33] %v1802_v28  ;;  %2256 = vrot.lane.b32.xlu1 %v11285_v32, %s14862_s22 }
 0x234   :  { %v1857_v27 = vpop.permute.xlu0 %1856  ;;  %2408 = vst [vmem:[#allocation1 + $0x11] ss:$2 sm:$0xff] %v11202_v15 }
 0x235   :  { %v1859_v30 = vpop.permute.xlu1 %1858  ;;  %v1874_v24 = vrot.slane %v1857_v27, 4 }
 0x236   :  { %v1875_v46 = vrot.slane %v1859_v30, 4  ;;  %2258 = vrot.lane.b32.xlu2 %v11289_v33, %s14862_s22  ;;  %v1879_v33 = vrot.slane %v11330_v62, 4 }
 0x238   :  { %v1886_v7 = vsel %vm105_vm9, %v1875_v46, %v1876_v26  ;;  %v1883_v32 = vsel %vm105_vm9, %v1874_v24, %v1875_v46  ;;  %v11366_v38 = vpop.permute.xlu2 %1956 }
 0x239   :  { %v1887_v21 = vsel %vm14854_vm8, %v1859_v30, %v1886_v7  ;;  %v1885_v23 = vsel %vm14854_vm8, %v1857_v27, %v1883_v32  ;;  %v1972_v9 = vrot.slane %v11366_v38, 4 }
 0x23a   :  { %1909 = vst [vmem:[#allocation3 + $0x248] sm:$0xcc] %v1887_v21  ;;  %2338 = vrot.lane.b32.xlu0 %v2318_v58, %s10269_s23  ;;  %v11393_v58 = vld.sshfl [vmem:[#allocation1] sm:$0xff pattern:$0x75643120] }
 0x23b   :  { %1908 = vst [vmem:[#allocation3 + $0x240] sm:$0xcc] %v1885_v23  ;;  %2340 = vrot.lane.b32.xlu1 %v11321_v59, %s10269_s23  ;;  %v1882_v59 = vrot.slane %v11351_v48, 4  ;;  %v2421_v16 = vld.sshfl [vmem:[#allocation1 + $0x18] sm:$0xff pattern:$0x75643120] }
 0x23c   :  { %v1863_v20 = vpop.permute.xlu0 %1862  ;;  %2501 = vst [vmem:[#allocation1] ss:$2 sm:$0xff] %v11129_v19  ;;  %v2423_v19 = vld.sshfl [vmem:[#allocation1 + $0x20] sm:$0xff pattern:$0x75643120] }
 0x23d   :  { %v1865_v36 = vpop.permute.xlu1 %1864  ;;  %v1877_v35 = vrot.slane %v1863_v20, 4  ;;  %2507 = vst [vmem:[#allocation1 + $0x20] ss:$2 sm:$0xff] %v11147_v34 }
 0x23e   :  { %v1878_v1 = vrot.slane %v1865_v36, 4  ;;  %2342 = vrot.lane.b32.xlu2 %v2322_v22, %s10269_s23 }
 0x23f   :  { %v1888_v42 = vsel %vm105_vm9, %v1876_v26, %v1877_v35 }
 0x240   :  { %v1892_v52 = vsel %vm105_vm9, %v1878_v1, %v1879_v33  ;;  %v1889_v53 = vsel %vm14854_vm8, %v11314_v55, %v1888_v42  ;;  %v1890_v37 = vsel %vm105_vm9, %v1877_v35, %v1878_v1  ;;  %v11382_v39 = vpop.permute.xlu2 %1962 }
 0x241   :  { %v1893_v56 = vsel %vm14854_vm8, %v1865_v36, %v1892_v52  ;;  %v1891_v41 = vsel %vm14854_vm8, %v1863_v20, %v1890_v37  ;;  %1910 = vst [vmem:[#allocation3 + $0x250] sm:$0xcc] %v1889_v53  ;;  %v1975_v34 = vrot.slane %v11382_v39, 4 }
 0x242   :  { %1912 = vst [vmem:[#allocation3 + $0x260] sm:$0xcc] %v1893_v56  ;;  %2344 = vrot.lane.b32.xlu0 %v2324_v10, %s10269_s23 }
 0x243   :  { %1911 = vst [vmem:[#allocation3 + $0x258] sm:$0xcc] %v1891_v41  ;;  %2346 = vrot.lane.b32.xlu1 %v2326_v13, %s10269_s23  ;;  %v2511_v52 = vld.sshfl [vmem:[#allocation1] sm:$0xff pattern:$0x75643120] }
 0x244   :  { %v1869_v55 = vpop.permute.xlu0 %1868 }
 0x245   :  { %v1871_v50 = vpop.permute.xlu1 %1870  ;;  %v1880_v54 = vrot.slane %v1869_v55, 4 }
 0x246   :  { %v1881_v63 = vrot.slane %v1871_v50, 4  ;;  %2348 = vrot.lane.b32.xlu2 %v2328_v6, %s10269_s23 }
 0x247   :  { %v1894_v49 = vsel %vm105_vm9, %v1879_v33, %v1880_v54 }
 0x248   :  { %v1895_v57 = vsel %vm14854_vm8, %v11330_v62, %v1894_v49  ;;  %v1896_v11 = vsel %vm105_vm9, %v1880_v54, %v1881_v63  ;;  %v1898_v4 = vsel %vm105_vm9, %v1881_v63, %v1882_v59  ;;  %v1969_v51 = vpop.permute.xlu2 %1968  ;;  %v2419_v62 = vld.sshfl [vmem:[#allocation1 + $0x10] sm:$0xff pattern:$0x75643120] }
 0x249   :  { %v1897_v14 = vsel %vm14854_vm8, %v1869_v55, %v1896_v11  ;;  %1913 = vst [vmem:[#allocation3 + $0x268] sm:$0xcc] %v1895_v57  ;;  %v1899_v45 = vsel %vm14854_vm8, %v1871_v50, %v1898_v4  ;;  %vm14856_vm8 = vcmask 302080   ;;  %v1978_v24 = vrot.slane %v1969_v51, 4 }
 0x24a   :  { %1914 = vst [vmem:[#allocation3 + $0x270] sm:$0xcc] %v1897_v14  ;;  %2350 = vrot.lane.b32.xlu0 %v11339_v3, %s10269_s23  ;;  %v2519_v14 = vld.sshfl [vmem:[#allocation1 + $0x20] sm:$0xff pattern:$0x75643120] }
 0x24b   :  { %1915 = vst [vmem:[#allocation3 + $0x278] sm:$0xcc] %v1899_v45  ;;  %2352 = vrot.lane.b32.xlu1 %v11337_v61, %s10269_s23 }
 0x24c   :  { %v1953_v12 = vpop.permute.xlu0 %1952  ;;  %2504 = vst [vmem:[#allocation1 + $0x10] ss:$2 sm:$0xff] %v11202_v15 }
 0x24d   :  { %v1955_v17 = vpop.permute.xlu1 %1954  ;;  %v1970_v25 = vrot.slane %v1953_v12, 4 }
 0x24e   :  { %v1971_v29 = vrot.slane %v1955_v17, 4  ;;  %2354 = vrot.lane.b32.xlu2 %v11341_v2, %s10269_s23 }
 0x250   :  { %v1982_v3 = vsel %vm105_vm9, %v1971_v29, %v1972_v9  ;;  %v1979_v61 = vsel %vm105_vm9, %v1970_v25, %v1971_v29  ;;  %v11416_v5 = vpop.permute.xlu2 %2053 }
 0x251   :  { %v1983_v31 = vsel %vm14856_vm8, %v1955_v17, %v1982_v3  ;;  %v1981_v43 = vsel %vm14856_vm8, %v1953_v12, %v1979_v61  ;;  %v2069_v47 = vrot.slane %v11416_v5, 4  ;;  %v2523_v3 = vld.sshfl [vmem:[#allocation1 + $0x30] sm:$0xff pattern:$0x75643120] }
 0x252   :  { %2005 = vst [vmem:[#allocation3 + $0x288] sm:$0x33] %v1983_v31  ;;  %2435 = vrot.lane.b32.xlu0 %v2415_v0, %s10270_s24 }
 0x253   :  { %2004 = vst [vmem:[#allocation3 + $0x280] sm:$0x33] %v1981_v43  ;;  %2437 = vrot.lane.b32.xlu1 %v11373_v44, %s10270_s24  ;;  %v2517_v57 = vld.sshfl [vmem:[#allocation1 + $0x18] sm:$0xff pattern:$0x75643120] }
 0x254   :  { %v1959_v15 = vpop.permute.xlu0 %1958  ;;  %v2525_v43 = vld.sshfl [vmem:[#allocation1 + $0x38] sm:$0xff pattern:$0x75643120] }
 0x255   :  { %v1961_v2 = vpop.permute.xlu1 %1960  ;;  %v1973_v48 = vrot.slane %v1959_v15, 4 }
 0x256   :  { %v1974_v8 = vrot.slane %v1961_v2, 4  ;;  %2439 = vrot.lane.b32.xlu2 %v2419_v62, %s10270_s24  ;;  %v2521_v62 = vld.sshfl [vmem:[#allocation1 + $0x28] sm:$0xff pattern:$0x75643120] }
 0x257   :  { %v1984_v28 = vsel %vm105_vm9, %v1972_v9, %v1973_v48 }
 0x258   :  { %v1988_v10 = vsel %vm105_vm9, %v1974_v8, %v1975_v34  ;;  %v1985_v13 = vsel %vm14856_vm8, %v11366_v38, %v1984_v28  ;;  %v1986_v22 = vsel %vm105_vm9, %v1973_v48, %v1974_v8  ;;  %v11430_v26 = vpop.permute.xlu2 %2059 }
 0x259   :  { %v1989_v27 = vsel %vm14856_vm8, %v1961_v2, %v1988_v10  ;;  %v1987_v6 = vsel %vm14856_vm8, %v1959_v15, %v1986_v22  ;;  %2006 = vst [vmem:[#allocation3 + $0x290] sm:$0x33] %v1985_v13  ;;  %v2072_v55 = vrot.slane %v11430_v26, 4 }
 0x25a   :  { %2008 = vst [vmem:[#allocation3 + $0x2a0] sm:$0x33] %v1989_v27  ;;  %2441 = vrot.lane.b32.xlu0 %v2421_v16, %s10270_s24 }
 0x25b   :  { %2007 = vst [vmem:[#allocation3 + $0x298] sm:$0x33] %v1987_v6  ;;  %2443 = vrot.lane.b32.xlu1 %v2423_v19, %s10270_s24 }
 0x25c   :  { %v1965_v30 = vpop.permute.xlu0 %1964 }
 0x25d   :  { %v1967_v46 = vpop.permute.xlu1 %1966  ;;  %v1976_v7 = vrot.slane %v1965_v30, 4 }
 0x25e   :  { %v1977_v32 = vrot.slane %v1967_v46, 4  ;;  %2445 = vrot.lane.b32.xlu2 %v2425_v18, %s10270_s24 }
 0x25f   :  { %v1990_v38 = vsel %vm105_vm9, %v1975_v34, %v1976_v7 }
 0x260   :  { %v1991_v21 = vsel %vm14856_vm8, %v11382_v39, %v1990_v38  ;;  %v1992_v23 = vsel %vm105_vm9, %v1976_v7, %v1977_v32  ;;  %v1994_v44 = vsel %vm105_vm9, %v1977_v32, %v1978_v24  ;;  %v11442_v33 = vpop.permute.xlu2 %2065  ;;  %v2513_v39 = vld.sshfl [vmem:[#allocation1 + $0x8] sm:$0xff pattern:$0x75643120] }
 0x261   :  { %v1993_v20 = vsel %vm14856_vm8, %v1965_v30, %v1992_v23  ;;  %2009 = vst [vmem:[#allocation3 + $0x2a8] sm:$0x33] %v1991_v21  ;;  %v1995_v0 = vsel %vm14856_vm8, %v1967_v46, %v1994_v44  ;;  %v2075_v12 = vrot.slane %v11442_v33, 4  ;;  %vm14858_vm8 = vcmask 228352  }
 0x262   :  { %2010 = vst [vmem:[#allocation3 + $0x2b0] sm:$0x33] %v1993_v20  ;;  %2447 = vrot.lane.b32.xlu0 %v11391_v60, %s10270_s24 }
 0x263   :  { %2011 = vst [vmem:[#allocation3 + $0x2b8] sm:$0x33] %v1995_v0  ;;  %2449 = vrot.lane.b32.xlu1 %v11389_v40, %s10270_s24  ;;  %v2515_v40 = vld.sshfl [vmem:[#allocation1 + $0x10] sm:$0xff pattern:$0x75643120] }
 0x264   :  { %v2050_v36 = vpop.permute.xlu0 %2049 }
 0x265   :  { %v2052_v35 = vpop.permute.xlu1 %2051  ;;  %v2067_v1 = vrot.slane %v2050_v36, 4 }
 0x266   :  { %v2068_v42 = vrot.slane %v2052_v35, 4  ;;  %2451 = vrot.lane.b32.xlu2 %v11393_v58, %s10270_s24  ;;  %v2499_v58 = vld [vmem:[#allocation2 + $0x22] sm:$0x3] }
 0x267   :  { %2528 = vst [vmem:[#allocation1] ss:$2 sm:$0xff] %v2499_v58 }
 0x268   :  { %v2079_v53 = vsel %vm105_vm9, %v2068_v42, %v2069_v47  ;;  %v2076_v37 = vsel %vm105_vm9, %v2067_v1, %v2068_v42  ;;  %v11455_v56 = vpop.permute.xlu2 %2149 }
 0x269   :  { %v2080_v41 = vsel %vm14857_vm7, %v2052_v35, %v2079_v53  ;;  %v2078_v59 = vsel %vm14857_vm7, %v2050_v36, %v2076_v37  ;;  %v2165_v8 = vrot.slane %v11455_v56, 4 }
 0x26a   :  { %2102 = vst [vmem:[#allocation3 + $0x288] sm:$0xcc] %v2080_v41  ;;  %2531 = vrot.lane.b32.xlu0 %v2511_v52, %s10271_s25 }
 0x26b   :  { %2101 = vst [vmem:[#allocation3 + $0x280] sm:$0xcc] %v2078_v59  ;;  %2533 = vrot.lane.b32.xlu1 %v2513_v39, %s10271_s25 }
 0x26c   :  { %v2056_v60 = vpop.permute.xlu0 %2055 }
 0x26d   :  { %v2058_v50 = vpop.permute.xlu1 %2057  ;;  %v2070_v54 = vrot.slane %v2056_v60, 4 }
 0x26e   :  { %v2071_v63 = vrot.slane %v2058_v50, 4  ;;  %2535 = vrot.lane.b32.xlu2 %v2515_v40, %s10271_s25  ;;  %v2529_v48 = vld.sshfl [vmem:[#allocation1] sm:$0xff pattern:$0x75643120] }
 0x26f   :  { %v2081_v49 = vsel %vm105_vm9, %v2069_v47, %v2070_v54 }
 0x270   :  { %v2085_v11 = vsel %vm105_vm9, %v2071_v63, %v2072_v55  ;;  %v2082_v4 = vsel %vm14857_vm7, %v11416_v5, %v2081_v49  ;;  %v2083_v51 = vsel %vm105_vm9, %v2070_v54, %v2071_v63  ;;  %v11468_v45 = vpop.permute.xlu2 %2155 }
 0x271   :  { %v2086_v16 = vsel %vm14857_vm7, %v2058_v50, %v2085_v11  ;;  %v2084_v19 = vsel %vm14857_vm7, %v2056_v60, %v2083_v51  ;;  %2103 = vst [vmem:[#allocation3 + $0x290] sm:$0xcc] %v2082_v4  ;;  %v2168_v46 = vrot.slane %v11468_v45, 4 }
 0x272   :  { %2105 = vst [vmem:[#allocation3 + $0x2a0] sm:$0xcc] %v2086_v16  ;;  %2537 = vrot.lane.b32.xlu0 %v2517_v57, %s10271_s25 }
 0x273   :  { %2104 = vst [vmem:[#allocation3 + $0x298] sm:$0xcc] %v2084_v19  ;;  %2539 = vrot.lane.b32.xlu1 %v2519_v14, %s10271_s25 }
 0x274   :  { %v2062_v9 = vpop.permute.xlu0 %2061 }
 0x275   :  { %v2064_v18 = vpop.permute.xlu1 %2063  ;;  %v2073_v17 = vrot.slane %v2062_v9, 4 }
 0x276   :  { %v2074_v25 = vrot.slane %v2064_v18, 4  ;;  %2541 = vrot.lane.b32.xlu2 %v2521_v62, %s10271_s25 }
 0x277   :  { %v2087_v29 = vsel %vm105_vm9, %v2072_v55, %v2073_v17 }
 0x278   :  { %v2088_v61 = vsel %vm14857_vm7, %v11430_v26, %v2087_v29  ;;  %v2089_v5 = vsel %vm105_vm9, %v2073_v17, %v2074_v25  ;;  %v2091_v31 = vsel %vm105_vm9, %v2074_v25, %v2075_v12  ;;  %v2162_v34 = vpop.permute.xlu2 %2161 }
 0x279   :  { %v2090_v15 = vsel %vm14857_vm7, %v2062_v9, %v2089_v5  ;;  %2106 = vst [vmem:[#allocation3 + $0x2a8] sm:$0xcc] %v2088_v61  ;;  %v2092_v2 = vsel %vm14857_vm7, %v2064_v18, %v2091_v31  ;;  %v2171_v1 = vrot.slane %v2162_v34, 4  ;;  %vm14859_vm7 = vcmask 220160  }
 0x27a   :  { %2107 = vst [vmem:[#allocation3 + $0x2b0] sm:$0xcc] %v2090_v15  ;;  %2543 = vrot.lane.b32.xlu0 %v2523_v3, %s10271_s25 }
 0x27b   :  { %2108 = vst [vmem:[#allocation3 + $0x2b8] sm:$0xcc] %v2092_v2  ;;  %2545 = vrot.lane.b32.xlu1 %v2525_v43, %s10271_s25 }
 0x27c   :  { %v2146_v28 = vpop.permute.xlu0 %2145 }
 0x27d   :  { %v2148_v10 = vpop.permute.xlu1 %2147  ;;  %v2163_v13 = vrot.slane %v2146_v28, 4 }
 0x27e   :  { %v2164_v22 = vrot.slane %v2148_v10, 4  ;;  %2547 = vrot.lane.b32.xlu2 %v2529_v48, %s10271_s25 }
 0x280   :  { %v2175_v26 = vsel %vm105_vm9, %v2164_v22, %v2165_v8  ;;  %v2172_v27 = vsel %vm105_vm9, %v2163_v13, %v2164_v22  ;;  %v2247_v6 = vpop.permute.xlu2 %2246 }
 0x281   :  { %v2176_v30 = vsel %vm14858_vm8, %v2148_v10, %v2175_v26  ;;  %v2174_v24 = vsel %vm14858_vm8, %v2146_v28, %v2172_v27  ;;  %v2262_v60 = vrot.slane %v2247_v6, 4 }
 0x282   :  { %2198 = vst [vmem:[#allocation3 + $0x2c8] sm:$0x33] %v2176_v30 }
 0x283   :  { %2197 = vst [vmem:[#allocation3 + $0x2c0] sm:$0x33] %v2174_v24 }
 0x284   :  { %v2152_v7 = vpop.permute.xlu0 %2151 }
 0x285   :  { %v2154_v32 = vpop.permute.xlu1 %2153  ;;  %v2166_v38 = vrot.slane %v2152_v7, 4 }
 0x286   :  { %v2167_v21 = vrot.slane %v2154_v32, 4 }
 0x287   :  { %v2177_v23 = vsel %vm105_vm9, %v2165_v8, %v2166_v38 }
 0x288   :  { %v2181_v44 = vsel %vm105_vm9, %v2167_v21, %v2168_v46  ;;  %v2178_v33 = vsel %vm14858_vm8, %v11455_v56, %v2177_v23  ;;  %v2179_v20 = vsel %vm105_vm9, %v2166_v38, %v2167_v21  ;;  %v2253_v0 = vpop.permute.xlu2 %2252 }
 0x289   :  { %v2182_v47 = vsel %vm14858_vm8, %v2154_v32, %v2181_v44  ;;  %v2180_v36 = vsel %vm14858_vm8, %v2152_v7, %v2179_v20  ;;  %2199 = vst [vmem:[#allocation3 + $0x2d0] sm:$0x33] %v2178_v33  ;;  %v2265_v14 = vrot.slane %v2253_v0, 4 }
 0x28a   :  { %2201 = vst [vmem:[#allocation3 + $0x2e0] sm:$0x33] %v2182_v47 }
 0x28b   :  { %2200 = vst [vmem:[#allocation3 + $0x2d8] sm:$0x33] %v2180_v36 }
 0x28c   :  { %v2158_v35 = vpop.permute.xlu0 %2157 }
 0x28d   :  { %v2160_v42 = vpop.permute.xlu1 %2159  ;;  %v2169_v52 = vrot.slane %v2158_v35, 4 }
 0x28e   :  { %v2170_v53 = vrot.slane %v2160_v42, 4 }
 0x28f   :  { %v2183_v37 = vsel %vm105_vm9, %v2168_v46, %v2169_v52 }
 0x290   :  { %v2184_v39 = vsel %vm14858_vm8, %v11468_v45, %v2183_v37  ;;  %v2185_v56 = vsel %vm105_vm9, %v2169_v52, %v2170_v53  ;;  %v2187_v41 = vsel %vm105_vm9, %v2170_v53, %v2171_v1  ;;  %v2259_v59 = vpop.permute.xlu2 %2258 }
 0x291   :  { %v2186_v40 = vsel %vm14858_vm8, %v2158_v35, %v2185_v56  ;;  %2202 = vst [vmem:[#allocation3 + $0x2e8] sm:$0x33] %v2184_v39  ;;  %v2188_v55 = vsel %vm14858_vm8, %v2160_v42, %v2187_v41  ;;  %v2268_v5 = vrot.slane %v2259_v59, 4  ;;  %vm14860_vm8 = vcmask 154624  }
 0x292   :  { %2203 = vst [vmem:[#allocation3 + $0x2f0] sm:$0x33] %v2186_v40 }
 0x293   :  { %2204 = vst [vmem:[#allocation3 + $0x2f8] sm:$0x33] %v2188_v55 }
 0x294   :  { %v2243_v58 = vpop.permute.xlu0 %2242 }
 0x295   :  { %v2245_v50 = vpop.permute.xlu1 %2244  ;;  %v2260_v54 = vrot.slane %v2243_v58, 4 }
 0x296   :  { %v2261_v63 = vrot.slane %v2245_v50, 4 }
 0x298   :  { %v2272_v49 = vsel %vm105_vm9, %v2261_v63, %v2262_v60  ;;  %v2269_v57 = vsel %vm105_vm9, %v2260_v54, %v2261_v63  ;;  %v2343_v51 = vpop.permute.xlu2 %2342 }
 0x299   :  { %v2273_v11 = vsel %vm14859_vm7, %v2245_v50, %v2272_v49  ;;  %v2271_v4 = vsel %vm14859_vm7, %v2243_v58, %v2269_v57  ;;  %v2358_v13 = vrot.slane %v2343_v51, 4 }
 0x29a   :  { %2295 = vst [vmem:[#allocation3 + $0x2c8] sm:$0xcc] %v2273_v11 }
 0x29b   :  { %2294 = vst [vmem:[#allocation3 + $0x2c0] sm:$0xcc] %v2271_v4 }
 0x29c   :  { %v2249_v45 = vpop.permute.xlu0 %2248 }
 0x29d   :  { %v2251_v16 = vpop.permute.xlu1 %2250  ;;  %v2263_v19 = vrot.slane %v2249_v45, 4 }
 0x29e   :  { %v2264_v62 = vrot.slane %v2251_v16, 4 }
 0x29f   :  { %v2274_v9 = vsel %vm105_vm9, %v2262_v60, %v2263_v19 }
 0x2a0   :  { %v2278_v12 = vsel %vm105_vm9, %v2264_v62, %v2265_v14  ;;  %v2275_v18 = vsel %vm14859_vm7, %v2247_v6, %v2274_v9  ;;  %v2276_v17 = vsel %vm105_vm9, %v2263_v19, %v2264_v62  ;;  %v2349_v3 = vpop.permute.xlu2 %2348 }
 0x2a1   :  { %v2279_v25 = vsel %vm14859_vm7, %v2251_v16, %v2278_v12  ;;  %v2277_v29 = vsel %vm14859_vm7, %v2249_v45, %v2276_v17  ;;  %2296 = vst [vmem:[#allocation3 + $0x2d0] sm:$0xcc] %v2275_v18  ;;  %v2361_v38 = vrot.slane %v2349_v3, 4 }
 0x2a2   :  { %2298 = vst [vmem:[#allocation3 + $0x2e0] sm:$0xcc] %v2279_v25 }
 0x2a3   :  { %2297 = vst [vmem:[#allocation3 + $0x2d8] sm:$0xcc] %v2277_v29 }
 0x2a4   :  { %v2255_v61 = vpop.permute.xlu0 %2254 }
 0x2a5   :  { %v2257_v31 = vpop.permute.xlu1 %2256  ;;  %v2266_v43 = vrot.slane %v2255_v61, 4 }
 0x2a6   :  { %v2267_v34 = vrot.slane %v2257_v31, 4 }
 0x2a7   :  { %v2280_v15 = vsel %vm105_vm9, %v2265_v14, %v2266_v43 }
 0x2a8   :  { %v2281_v2 = vsel %vm14859_vm7, %v2253_v0, %v2280_v15  ;;  %v2282_v48 = vsel %vm105_vm9, %v2266_v43, %v2267_v34  ;;  %v2284_v8 = vsel %vm105_vm9, %v2267_v34, %v2268_v5  ;;  %v2355_v6 = vpop.permute.xlu2 %2354 }
 0x2a9   :  { %v2283_v28 = vsel %vm14859_vm7, %v2255_v61, %v2282_v48  ;;  %2299 = vst [vmem:[#allocation3 + $0x2e8] sm:$0xcc] %v2281_v2  ;;  %v2285_v10 = vsel %vm14859_vm7, %v2257_v31, %v2284_v8  ;;  %v2364_v53 = vrot.slane %v2355_v6, 4  ;;  %vm14861_vm7 = vcmask 146432  }
 0x2aa   :  { %2300 = vst [vmem:[#allocation3 + $0x2f0] sm:$0xcc] %v2283_v28 }
 0x2ab   :  { %2301 = vst [vmem:[#allocation3 + $0x2f8] sm:$0xcc] %v2285_v10 }
 0x2ac   :  { %v2339_v22 = vpop.permute.xlu0 %2338 }
 0x2ad   :  { %v2341_v26 = vpop.permute.xlu1 %2340  ;;  %v2356_v27 = vrot.slane %v2339_v22, 4 }
 0x2ae   :  { %v2357_v30 = vrot.slane %v2341_v26, 4 }
 0x2b0   :  { %v2368_v24 = vsel %vm105_vm9, %v2357_v30, %v2358_v13  ;;  %v2365_v46 = vsel %vm105_vm9, %v2356_v27, %v2357_v30  ;;  %v2440_v0 = vpop.permute.xlu2 %2439 }
 0x2b1   :  { %v2369_v7 = vsel %vm14860_vm8, %v2341_v26, %v2368_v24  ;;  %v2367_v32 = vsel %vm14860_vm8, %v2339_v22, %v2365_v46  ;;  %v2455_v54 = vrot.slane %v2440_v0, 4 }
 0x2b2   :  { %2391 = vst [vmem:[#allocation3 + $0x308] sm:$0x33] %v2369_v7 }
 0x2b3   :  { %2390 = vst [vmem:[#allocation3 + $0x300] sm:$0x33] %v2367_v32 }
 0x2b4   :  { %v2345_v21 = vpop.permute.xlu0 %2344 }
 0x2b5   :  { %v2347_v23 = vpop.permute.xlu1 %2346  ;;  %v2359_v44 = vrot.slane %v2345_v21, 4 }
 0x2b6   :  { %v2360_v33 = vrot.slane %v2347_v23, 4 }
 0x2b7   :  { %v2370_v20 = vsel %vm105_vm9, %v2358_v13, %v2359_v44 }
 0x2b8   :  { %v2374_v47 = vsel %vm105_vm9, %v2360_v33, %v2361_v38  ;;  %v2371_v36 = vsel %vm14860_vm8, %v2343_v51, %v2370_v20  ;;  %v2372_v35 = vsel %vm105_vm9, %v2359_v44, %v2360_v33  ;;  %v2446_v50 = vpop.permute.xlu2 %2445 }
 0x2b9   :  { %v2375_v1 = vsel %vm14860_vm8, %v2347_v23, %v2374_v47  ;;  %v2373_v42 = vsel %vm14860_vm8, %v2345_v21, %v2372_v35  ;;  %2392 = vst [vmem:[#allocation3 + $0x310] sm:$0x33] %v2371_v36  ;;  %v2458_v19 = vrot.slane %v2446_v50, 4 }
 0x2ba   :  { %2394 = vst [vmem:[#allocation3 + $0x320] sm:$0x33] %v2375_v1 }
 0x2bb   :  { %2393 = vst [vmem:[#allocation3 + $0x318] sm:$0x33] %v2373_v42 }
 0x2bc   :  { %v2351_v52 = vpop.permute.xlu0 %2350 }
 0x2bd   :  { %v2353_v37 = vpop.permute.xlu1 %2352  ;;  %v2362_v39 = vrot.slane %v2351_v52, 4 }
 0x2be   :  { %v2363_v56 = vrot.slane %v2353_v37, 4 }
 0x2bf   :  { %v2376_v41 = vsel %vm105_vm9, %v2361_v38, %v2362_v39 }
 0x2c0   :  { %v2377_v59 = vsel %vm14860_vm8, %v2349_v3, %v2376_v41  ;;  %v2378_v40 = vsel %vm105_vm9, %v2362_v39, %v2363_v56  ;;  %v2380_v55 = vsel %vm105_vm9, %v2363_v56, %v2364_v53  ;;  %v2452_v16 = vpop.permute.xlu2 %2451 }
 0x2c1   :  { %v2379_v60 = vsel %vm14860_vm8, %v2351_v52, %v2378_v40  ;;  %2395 = vst [vmem:[#allocation3 + $0x328] sm:$0x33] %v2377_v59  ;;  %v2381_v58 = vsel %vm14860_vm8, %v2353_v37, %v2380_v55  ;;  %v2461_v43 = vrot.slane %v2452_v16, 4  ;;  %vm14866_vm8 = vcmask 138240   ;;  %v9018_v16 = vld [vmem:[#allocation3 + $0x288] sm:$0xf] }
 0x2c2   :  { %2396 = vst [vmem:[#allocation3 + $0x330] sm:$0x33] %v2379_v60 }
 0x2c3   :  { %2397 = vst [vmem:[#allocation3 + $0x338] sm:$0x33] %v2381_v58 }
 0x2c4   :  { %v2436_v63 = vpop.permute.xlu0 %2435 }
 0x2c5   :  { %v2438_v49 = vpop.permute.xlu1 %2437  ;;  %v2453_v57 = vrot.slane %v2436_v63, 4 }
 0x2c6   :  { %v2454_v11 = vrot.slane %v2438_v49, 4 }
 0x2c8   :  { %v2465_v4 = vsel %vm105_vm9, %v2454_v11, %v2455_v54  ;;  %v2462_v51 = vsel %vm105_vm9, %v2453_v57, %v2454_v11  ;;  %v2536_v2 = vpop.permute.xlu2 %2535  ;;  %v9928_v57 = vld [vmem:[#allocation3 + $0x2bc] sm:$0xf0]  ;;  %v9929_v11 = vld [vmem:[#allocation3 + $0x2c4] sm:$0xf0] }
 0x2c9   :  { %v2466_v14 = vsel %vm14861_vm7, %v2438_v49, %v2465_v4  ;;  %v2464_v45 = vsel %vm14861_vm7, %v2436_v63, %v2462_v51  ;;  %v2551_v27 = vrot.slane %v2536_v2, 4 }
 0x2ca   :  { %2488 = vst [vmem:[#allocation3 + $0x308] sm:$0xcc] %v2466_v14 }
 0x2cb   :  { %2487 = vst [vmem:[#allocation3 + $0x300] sm:$0xcc] %v2464_v45 }
 0x2cc   :  { %v2442_v62 = vpop.permute.xlu0 %2441 }
 0x2cd   :  { %v2444_v9 = vpop.permute.xlu1 %2443  ;;  %v2456_v12 = vrot.slane %v2442_v62, 4 }
 0x2ce   :  { %v2457_v18 = vrot.slane %v2444_v9, 4 }
 0x2cf   :  { %v2467_v17 = vsel %vm105_vm9, %v2455_v54, %v2456_v12 }
 0x2d0   :  { %v2471_v25 = vsel %vm105_vm9, %v2457_v18, %v2458_v19  ;;  %v2468_v29 = vsel %vm14861_vm7, %v2440_v0, %v2467_v17  ;;  %v2469_v3 = vsel %vm105_vm9, %v2456_v12, %v2457_v18  ;;  %v2542_v7 = vpop.permute.xlu2 %2541  ;;  %v9012_v17 = vld [vmem:[#allocation3 + $0x2c0] sm:$0xf0] }
 0x2d1   :  { %v2472_v61 = vsel %vm14861_vm7, %v2444_v9, %v2471_v25  ;;  %v2470_v5 = vsel %vm14861_vm7, %v2442_v62, %v2469_v3  ;;  %2489 = vst [vmem:[#allocation3 + $0x310] sm:$0xcc] %v2468_v29  ;;  %v2554_v44 = vrot.slane %v2542_v7, 4  ;;  %v9082_v35 = vld [vmem:[#allocation3 + $0x308] sm:$0xf] }
 0x2d2   :  { %2491 = vst [vmem:[#allocation3 + $0x320] sm:$0xcc] %v2472_v61  ;;  %v9937_v53 = vld [vmem:[#allocation3 + $0x30c] sm:$0xf]  ;;  %v9074_v37 = vld [vmem:[#allocation3 + $0x300] sm:$0xf] }
 0x2d3   :  { %2490 = vst [vmem:[#allocation3 + $0x318] sm:$0xcc] %v2470_v5  ;;  %v9936_v39 = vld [vmem:[#allocation3 + $0x304] sm:$0xf]  ;;  %v9010_v29 = vld [vmem:[#allocation3 + $0x280] sm:$0xf] }
 0x2d4   :  { %v2448_v31 = vpop.permute.xlu0 %2447  ;;  %v9921_v3 = vld [vmem:[#allocation3 + $0x28c] sm:$0xf]  ;;  %v9011_v5 = vor.u32 %v9928_v57, %v9010_v29 }
 0x2d5   :  { %v2450_v34 = vpop.permute.xlu1 %2449  ;;  %v2459_v15 = vrot.slane %v2448_v31, 4  ;;  %v8764_v57 = vld [vmem:[#allocation3 + $0xc8] sm:$0xf0] }
 0x2d6   :  { %v2460_v48 = vrot.slane %v2450_v34, 4 }
 0x2d7   :  { %v2473_v8 = vsel %vm105_vm9, %v2458_v19, %v2459_v15  ;;  %v9020_v19 = vld [vmem:[#allocation3 + $0x2c8] sm:$0xf0] }
 0x2d8   :  { %v2474_v28 = vsel %vm14861_vm7, %v2446_v50, %v2473_v8  ;;  %v2475_v10 = vsel %vm105_vm9, %v2459_v15, %v2460_v48  ;;  %v2477_v13 = vsel %vm105_vm9, %v2460_v48, %v2461_v43  ;;  %v2548_v55 = vpop.permute.xlu2 %2547  ;;  %v9019_v43 = vor.u32 %v9929_v11, %v9018_v16  ;;  %v9864_v11 = vld [vmem:[#allocation3 + $0xbc] sm:$0xf0]  ;;  %v9849_v16 = vld [vmem:[#allocation3 + $0x44] sm:$0xf0] }
 0x2d9   :  { %v2476_v22 = vsel %vm14861_vm7, %v2448_v31, %v2475_v10  ;;  %2492 = vst [vmem:[#allocation3 + $0x328] sm:$0xcc] %v2474_v28  ;;  %v2478_v26 = vsel %vm14861_vm7, %v2450_v34, %v2477_v13  ;;  %vm3252_vm7 = vcmask 1045504   ;;  %v2557_v45 = vrot.slane %v2548_v55, 4  ;;  %v9920_v31 = vld [vmem:[#allocation3 + $0x284] sm:$0xf] }
 0x2da   :  { %2493 = vst [vmem:[#allocation3 + $0x330] sm:$0xcc] %v2476_v22  ;;  %v9023_v34 = vor.u32 %v9921_v3, %v9020_v19  ;;  %v9015_v8 = vor.u32 %v9920_v31, %v9012_v17  ;;  %v9913_v28 = vld [vmem:[#allocation3 + $0x244] sm:$0xf0]  ;;  %v8956_v10 = vld [vmem:[#allocation3 + $0x248] sm:$0xf0] }
 0x2db   :  { %2494 = vst [vmem:[#allocation3 + $0x338] sm:$0xcc] %v2478_v26  ;;  %v9912_v26 = vld [vmem:[#allocation3 + $0x23c] sm:$0xf0]  ;;  %v9856_v19 = vld [vmem:[#allocation3 + $0x84] sm:$0xf] }
 0x2dc   :  { %v2532_v6 = vpop.permute.xlu0 %2531  ;;  %v8818_v55 = vld [vmem:[#allocation3 + $0x100] sm:$0xf]  ;;  %v8698_v3 = vld [vmem:[#allocation3 + $0x8] sm:$0xf] }
 0x2dd   :  { %v2534_v30 = vpop.permute.xlu1 %2533  ;;  %v2549_v24 = vrot.slane %v2532_v6, 4 }
 0x2de   :  { %v2550_v46 = vrot.slane %v2534_v30, 4 }
 0x2e0   :  { %v2561_v32 = vsel %vm105_vm9, %v2550_v46, %v2551_v27  ;;  %v2558_v38 = vsel %vm105_vm9, %v2549_v24, %v2550_v46  ;;  %v8946_v24 = vld [vmem:[#allocation3 + $0x200] sm:$0xf]  ;;  %v9904_v46 = vld [vmem:[#allocation3 + $0x204] sm:$0xf] }
 0x2e1   :  { %v2562_v21 = vsel %vm14866_vm8, %v2534_v30, %v2561_v32  ;;  %v2560_v23 = vsel %vm14866_vm8, %v2532_v6, %v2558_v38  ;;  %v8954_v6 = vld [vmem:[#allocation3 + $0x208] sm:$0xf]  ;;  %v9905_v30 = vld [vmem:[#allocation3 + $0x20c] sm:$0xf]  ;;  %v8947_v38 = vor.u32 %v9912_v26, %v8946_v24  ;;  %v8699_v26 = vor.u32 %v9849_v16, %v8698_v3  ;;  %v8844_v3 = vld [vmem:[#allocation3 + $0x158] sm:$0xf0] }
 0x2e2   :  { %2584 = vst [vmem:[#allocation3 + $0x348] sm:$0x33] %v2562_v21  ;;  %v8959_v32 = vor.u32 %v9905_v30, %v8956_v10  ;;  %v9939_v10 = vld [vmem:[#allocation3 + $0x31c] sm:$0xf] }
 0x2e3   :  { %2583 = vst [vmem:[#allocation3 + $0x340] sm:$0x33] %v2560_v23  ;;  %v9897_v23 = vld [vmem:[#allocation3 + $0x1c4] sm:$0xf0] }
 0x2e4   :  { %v2538_v33 = vpop.permute.xlu0 %2537 }
 0x2e5   :  { %v2540_v20 = vpop.permute.xlu1 %2539  ;;  %v2552_v0 = vrot.slane %v2538_v33, 4 }
 0x2e6   :  { %v2553_v47 = vrot.slane %v2540_v20, 4 }
 0x2e7   :  { %v2563_v36 = vsel %vm105_vm9, %v2551_v27, %v2552_v0  ;;  %v8948_v27 = vld [vmem:[#allocation3 + $0x240] sm:$0xf0] }
 0x2e8   :  { %v2567_v1 = vsel %vm105_vm9, %v2553_v47, %v2554_v44  ;;  %v2564_v42 = vsel %vm14866_vm8, %v2536_v2, %v2563_v36  ;;  %v2565_v52 = vsel %vm105_vm9, %v2552_v0, %v2553_v47  ;;  %v8951_v21 = vor.u32 %v9904_v46, %v8948_v27  ;;  %v8890_v0 = vld [vmem:[#allocation3 + $0x188] sm:$0xf]  ;;  %v9889_v47 = vld [vmem:[#allocation3 + $0x18c] sm:$0xf]  ;;  %v8882_v36 = vld [vmem:[#allocation3 + $0x180] sm:$0xf] }
 0x2e9   :  { %v2568_v56 = vsel %vm14866_vm8, %v2540_v20, %v2567_v1  ;;  %v2566_v41 = vsel %vm14866_vm8, %v2538_v33, %v2565_v52  ;;  %2585 = vst [vmem:[#allocation3 + $0x350] sm:$0x33] %v2564_v42  ;;  %v9945_v59 = vld [vmem:[#allocation3 + $0x344] sm:$0x30]  ;;  %v9084_v40 = vld [vmem:[#allocation3 + $0x348] sm:$0x30]  ;;  %v8891_v1 = vor.u32 %v9897_v23, %v8890_v0 }
 0x2ea   :  { %2587 = vst [vmem:[#allocation3 + $0x360] sm:$0x33] %v2568_v56  ;;  %v9083_v60 = vor.u32 %v9945_v59, %v9082_v35  ;;  %v9087_v58 = vor.u32 %v9937_v53, %v9084_v40  ;;  %v9944_v50 = vld [vmem:[#allocation3 + $0x33c] sm:$0x30]  ;;  %v9076_v54 = vld [vmem:[#allocation3 + $0x340] sm:$0x30] }
 0x2eb   :  { %2586 = vst [vmem:[#allocation3 + $0x358] sm:$0x33] %v2566_v41  ;;  %v9075_v63 = vor.u32 %v9944_v50, %v9074_v37  ;;  %v9079_v49 = vor.u32 %v9936_v39, %v9076_v54  ;;  %v9896_v33 = vld [vmem:[#allocation3 + $0x1bc] sm:$0xf0]  ;;  %v8884_v20 = vld [vmem:[#allocation3 + $0x1c0] sm:$0xf0] }
 0x2ec   :  { %v3260_v4 = vsel %vm3252_vm7, %v9083_v60, 0  ;;  %v3263_v51 = vsel %vm3252_vm7, %v9087_v58, 0  ;;  %v2544_v14 = vpop.permute.xlu0 %2543  ;;  %v9888_v35 = vld [vmem:[#allocation3 + $0x184] sm:$0xf]  ;;  %v8883_v52 = vor.u32 %v9896_v33, %v8882_v36  ;;  %v9881_v37 = vld [vmem:[#allocation3 + $0x144] sm:$0xf0] }
 0x2ed   :  { %3328 = vmatpush.bf16.msra.mxu2 %v3260_v4  ;;  %3341 = vmatpush.bf16.msra.mxu3 %v3263_v51  ;;  %v2546_v62 = vpop.permute.xlu1 %2545  ;;  %v3254_v9 = vsel %vm3252_vm7, %v9075_v63, 0  ;;  %v3257_v12 = vsel %vm3252_vm7, %v9079_v49, 0  ;;  %v2555_v18 = vrot.slane %v2544_v14, 4  ;;  %v8887_v53 = vor.u32 %v9888_v35, %v8884_v20  ;;  %v8828_v39 = vld [vmem:[#allocation3 + $0x148] sm:$0xf0] }
 0x2ee   :  { %v2556_v25 = vrot.slane %v2546_v62, 4  ;;  %3302 = vmatpush.bf16.msra.mxu0 %v3254_v9  ;;  %3315 = vmatpush.bf16.msra.mxu1 %v3257_v12  ;;  %v9880_v56 = vld [vmem:[#allocation3 + $0x13c] sm:$0xf0]  ;;  %v8820_v41 = vld [vmem:[#allocation3 + $0x140] sm:$0xf0] }
 0x2ef   :  { %v2569_v61 = vsel %vm105_vm9, %v2554_v44, %v2555_v18  ;;  %v8892_v44 = vld [vmem:[#allocation3 + $0x1c8] sm:$0xf0]  ;;  %v8826_v59 = vld [vmem:[#allocation3 + $0x108] sm:$0xf]  ;;  %v9872_v60 = vld [vmem:[#allocation3 + $0x104] sm:$0xf]  ;;  %v8819_v54 = vor.u32 %v9880_v56, %v8818_v55 }
 0x2f0   :  { %v2570_v15 = vsel %vm14866_vm8, %v2542_v7, %v2569_v61  ;;  %v2571_v2 = vsel %vm105_vm9, %v2555_v18, %v2556_v25  ;;  %v2573_v48 = vsel %vm105_vm9, %v2556_v25, %v2557_v45  ;;  %v8955_v7 = vor.u32 %v9913_v28, %v8954_v6  ;;  %v9873_v40 = vld [vmem:[#allocation3 + $0x10c] sm:$0xf]  ;;  %v9865_v49 = vld [vmem:[#allocation3 + $0xc4] sm:$0xf0]  ;;  %v8756_v4 = vld [vmem:[#allocation3 + $0xc0] sm:$0xf0] }
 0x2f1   :  { %v2572_v13 = vsel %vm14866_vm8, %v2544_v14, %v2571_v2  ;;  %2588 = vst [vmem:[#allocation3 + $0x368] sm:$0x33] %v2570_v15  ;;  %v2574_v22 = vsel %vm14866_vm8, %v2546_v62, %v2573_v48  ;;  %3329 = vmatpush.bf16.msra.mxu2 %v9019_v43  ;;  %3342 = vmatpush.bf16.msra.mxu3 %v9023_v34  ;;  %v8754_v51 = vld [vmem:[#allocation3 + $0x80] sm:$0xf]  ;;  %v8762_v14 = vld [vmem:[#allocation3 + $0x88] sm:$0xf] }
 0x2f2   :  { %2589 = vst [vmem:[#allocation3 + $0x370] sm:$0x33] %v2572_v13  ;;  %3303 = vmatpush.bf16.msra.mxu0 %v9011_v5  ;;  %3316 = vmatpush.bf16.msra.mxu1 %v9015_v8  ;;  %v8895_v42 = vor.u32 %v9889_v47, %v8892_v44  ;;  %v8827_v58 = vor.u32 %v9881_v37, %v8826_v59  ;;  %v9857_v45 = vld [vmem:[#allocation3 + $0x8c] sm:$0xf]  ;;  %v9848_v12 = vld [vmem:[#allocation3 + $0x3c] sm:$0xf0] }
 0x2f3   :  { %2590 = vst [vmem:[#allocation3 + $0x378] sm:$0x33] %v2574_v22  ;;  %v8831_v50 = vor.u32 %v9873_v40, %v8828_v39  ;;  %v8823_v63 = vor.u32 %v9872_v60, %v8820_v41  ;;  %v8763_v62 = vor.u32 %v9865_v49, %v8762_v14  ;;  %v8767_v9 = vor.u32 %v9857_v45, %v8764_v57  ;;  %v9946_v18 = vld [vmem:[#allocation3 + $0x34c] sm:$0x30]  ;;  %v9092_v17 = vld [vmem:[#allocation3 + $0x350] sm:$0x30] }
 0x2f4   :  { %v8755_v25 = vor.u32 %v9864_v11, %v8754_v51  ;;  %v8759_v29 = vor.u32 %v9856_v19, %v8756_v4  ;;  %v8700_v61 = vld [vmem:[#allocation3 + $0x48] sm:$0xf0]  ;;  %v9947_v5 = vld [vmem:[#allocation3 + $0x354] sm:$0x30]  ;;  %v9100_v31 = vld [vmem:[#allocation3 + $0x358] sm:$0x30] }
 0x2f5   :  { %3330 = vmatpush.bf16.msra.mxu2 %v8955_v7  ;;  %3343 = vmatpush.bf16.msra.mxu3 %v8959_v32  ;;  %v8692_v43 = vld [vmem:[#allocation3 + $0x40] sm:$0xf0]  ;;  %v9090_v34 = vld [vmem:[#allocation3 + $0x310] sm:$0xf]  ;;  %v9938_v15 = vld [vmem:[#allocation3 + $0x314] sm:$0xf]  ;;  %v9103_v30 = vor.u32 %v9939_v10, %v9100_v31 }
 0x2f6   :  { %3304 = vmatpush.bf16.msra.mxu0 %v8947_v38  ;;  %3317 = vmatpush.bf16.msra.mxu1 %v8951_v21  ;;  %v9841_v2 = vld [vmem:[#allocation3 + $0xc] sm:$0xf]  ;;  %v9091_v48 = vor.u32 %v9946_v18, %v9090_v34  ;;  %v9095_v8 = vor.u32 %v9938_v15, %v9092_v17  ;;  %v9098_v28 = vld [vmem:[#allocation3 + $0x318] sm:$0xf]  ;;  %v8690_v13 = vld [vmem:[#allocation3] sm:$0xf] }
 0x2f7   :  { %v9840_v22 = vld [vmem:[#allocation3 + $0x4] sm:$0xf]  ;;  %v8703_v27 = vor.u32 %v9841_v2, %v8700_v61  ;;  %v9099_v6 = vor.u32 %v9947_v5, %v9098_v28  ;;  %v8691_v24 = vor.u32 %v9848_v12, %v8690_v13  ;;  %v9930_v7 = vld [vmem:[#allocation3 + $0x2cc] sm:$0xf0]  ;;  %v9028_v32 = vld [vmem:[#allocation3 + $0x2d0] sm:$0xf0] }
 0x2f8   :  { %v8695_v46 = vor.u32 %v9840_v22, %v8692_v43  ;;  %v3266_v38 = vsel %vm3252_vm7, %v9091_v48, 0  ;;  %v3269_v21 = vsel %vm3252_vm7, %v9095_v8, 0  ;;  %v11579_v23 = vld [vmem:[%s14845_s2] sm:$0x7]  ;;  %vm3248_vm8 = vcmask 883712  }
 0x2f9   :  { %3331 = vmatpush.bf16.msra.mxu2 %v8891_v1  ;;  %3344 = vmatpush.bf16.msra.mxu3 %v8895_v42  ;;  %v3272_v44 = vsel %vm3252_vm7, %v9099_v6, 0  ;;  %v3275_v33 = vsel %vm3252_vm7, %v9103_v30, 0  ;;  %v9931_v20 = vld [vmem:[#allocation3 + $0x2d4] sm:$0xf0]  ;;  %v9036_v0 = vld [vmem:[#allocation3 + $0x2d8] sm:$0xf0] }
 0x2fa   :  { %3305 = vmatpush.bf16.msra.mxu0 %v8883_v52  ;;  %3318 = vmatpush.bf16.msra.mxu1 %v8887_v53  ;;  %v9026_v47 = vld [vmem:[#allocation3 + $0x290] sm:$0xf]  ;;  %v9922_v36 = vld [vmem:[#allocation3 + $0x294] sm:$0xf]  ;;  %v9034_v42 = vld [vmem:[#allocation3 + $0x298] sm:$0xf] }
 0x2fb   :  { %v9027_v35 = vor.u32 %v9930_v7, %v9026_v47  ;;  %v9031_v1 = vor.u32 %v9922_v36, %v9028_v32  ;;  %v9923_v52 = vld [vmem:[#allocation3 + $0x29c] sm:$0xf]  ;;  %v9035_v53 = vor.u32 %v9931_v20, %v9034_v42  ;;  %v9914_v39 = vld [vmem:[#allocation3 + $0x24c] sm:$0xf0]  ;;  %v8964_v56 = vld [vmem:[#allocation3 + $0x250] sm:$0xf0] }
 0x2fc   :  { %v9039_v37 = vor.u32 %v9923_v52, %v9036_v0  ;;  %v9915_v41 = vld [vmem:[#allocation3 + $0x254] sm:$0xf0]  ;;  %v8972_v59 = vld [vmem:[#allocation3 + $0x258] sm:$0xf0]  ;;  %v8962_v40 = vld [vmem:[#allocation3 + $0x210] sm:$0xf] }
 0x2fd   :  { %3332 = vmatpush.bf16.msra.mxu2 %v8827_v58  ;;  %3345 = vmatpush.bf16.msra.mxu3 %v8831_v50  ;;  %v9906_v55 = vld [vmem:[#allocation3 + $0x214] sm:$0xf]  ;;  %v8963_v60 = vor.u32 %v9914_v39, %v8962_v40  ;;  %v8970_v50 = vld [vmem:[#allocation3 + $0x218] sm:$0xf]  ;;  %v9898_v57 = vld [vmem:[#allocation3 + $0x1cc] sm:$0xf0] }
 0x2fe   :  { %3306 = vmatpush.bf16.msra.mxu0 %v8819_v54  ;;  %3319 = vmatpush.bf16.msra.mxu1 %v8823_v63  ;;  %v8967_v58 = vor.u32 %v9906_v55, %v8964_v56  ;;  %v9907_v54 = vld [vmem:[#allocation3 + $0x21c] sm:$0xf]  ;;  %v8971_v63 = vor.u32 %v9915_v41, %v8970_v50  ;;  %v8900_v11 = vld [vmem:[#allocation3 + $0x1d0] sm:$0xf0]  ;;  %v9899_v4 = vld [vmem:[#allocation3 + $0x1d4] sm:$0xf0] }
 0x2ff   :  { %v8975_v49 = vor.u32 %v9907_v54, %v8972_v59  ;;  %v8908_v51 = vld [vmem:[#allocation3 + $0x1d8] sm:$0xf0]  ;;  %v8898_v14 = vld [vmem:[#allocation3 + $0x190] sm:$0xf]  ;;  %v9890_v45 = vld [vmem:[#allocation3 + $0x194] sm:$0xf] }
 0x300   :  { %v8899_v16 = vor.u32 %v9898_v57, %v8898_v14  ;;  %v8903_v19 = vor.u32 %v9890_v45, %v8900_v11  ;;  %v9882_v17 = vld [vmem:[#allocation3 + $0x14c] sm:$0xf0]  ;;  %v9874_v5 = vld [vmem:[#allocation3 + $0x114] sm:$0xf]  ;;  %v8842_v34 = vld [vmem:[#allocation3 + $0x118] sm:$0xf] }
 0x301   :  { %3333 = vmatpush.bf16.msra.mxu2 %v8763_v62  ;;  %3346 = vmatpush.bf16.msra.mxu3 %v8767_v9  ;;  %v8906_v62 = vld [vmem:[#allocation3 + $0x198] sm:$0xf]  ;;  %v9891_v9 = vld [vmem:[#allocation3 + $0x19c] sm:$0xf]  ;;  %v8834_v61 = vld [vmem:[#allocation3 + $0x110] sm:$0xf] }
 0x302   :  { %3307 = vmatpush.bf16.msra.mxu0 %v8755_v25  ;;  %3320 = vmatpush.bf16.msra.mxu1 %v8759_v29  ;;  %v8907_v12 = vor.u32 %v9899_v4, %v8906_v62  ;;  %v8911_v18 = vor.u32 %v9891_v9, %v8908_v51  ;;  %v8836_v25 = vld [vmem:[#allocation3 + $0x150] sm:$0xf0]  ;;  %v9883_v29 = vld [vmem:[#allocation3 + $0x154] sm:$0xf0]  ;;  %v8835_v31 = vor.u32 %v9882_v17, %v8834_v61  ;;  %v9875_v15 = vld [vmem:[#allocation3 + $0x11c] sm:$0xf] }
 0x303   :  { %v8839_v43 = vor.u32 %v9874_v5, %v8836_v25  ;;  %v8843_v2 = vor.u32 %v9883_v29, %v8842_v34  ;;  %v8847_v48 = vor.u32 %v9875_v15, %v8844_v3  ;;  %v9866_v8 = vld [vmem:[#allocation3 + $0xcc] sm:$0xf0]  ;;  %v8772_v28 = vld [vmem:[#allocation3 + $0xd0] sm:$0xf0]  ;;  %v9867_v10 = vld [vmem:[#allocation3 + $0xd4] sm:$0xf0] }
 0x304   :  { %v8780_v13 = vld [vmem:[#allocation3 + $0xd8] sm:$0xf0]  ;;  %v8770_v22 = vld [vmem:[#allocation3 + $0x90] sm:$0xf]  ;;  %v8708_v30 = vld [vmem:[#allocation3 + $0x50] sm:$0xf0] }
 0x305   :  { %3334 = vmatpush.bf16.msra.mxu2 %v8699_v26  ;;  %3347 = vmatpush.bf16.msra.mxu3 %v8703_v27  ;;  %v9858_v26 = vld [vmem:[#allocation3 + $0x94] sm:$0xf]  ;;  %v8778_v27 = vld [vmem:[#allocation3 + $0x98] sm:$0xf]  ;;  %v9850_v6 = vld [vmem:[#allocation3 + $0x4c] sm:$0xf0] }
 0x306   :  { %3308 = vmatpush.bf16.msra.mxu0 %v8691_v24  ;;  %3321 = vmatpush.bf16.msra.mxu1 %v8695_v46  ;;  %v8771_v24 = vor.u32 %v9866_v8, %v8770_v22  ;;  %v8775_v46 = vor.u32 %v9858_v26, %v8772_v28  ;;  %v9859_v7 = vld [vmem:[#allocation3 + $0x9c] sm:$0xf]  ;;  %v9948_v32 = vld [vmem:[#allocation3 + $0x35c] sm:$0x30]  ;;  %v9851_v20 = vld [vmem:[#allocation3 + $0x54] sm:$0xf0] }
 0x307   :  { %v9949_v0 = vld [vmem:[#allocation3 + $0x364] sm:$0x30]  ;;  %v9116_v47 = vld [vmem:[#allocation3 + $0x368] sm:$0x30]  ;;  %v8716_v36 = vld [vmem:[#allocation3 + $0x58] sm:$0xf0] }
 0x308   :  { %9138 = vmatmul.msk.bf16.vlgmr.msra.gmra.mxu2 %vm3248_vm8, %v11579_v23  ;;  %9139 = vmatmul.msk.bf16.vlgmr.msra.gmra.mxu3 %vm3248_vm8, %v11579_v23  ;;  %v9842_v42 = vld [vmem:[#allocation3 + $0x14] sm:$0xf]  ;;  %v9941_v39 = vld [vmem:[#allocation3 + $0x32c] sm:$0xf]  ;;  %v8714_v59 = vld [vmem:[#allocation3 + $0x18] sm:$0xf] }
 0x309   :  { %3380 = vmatpush.bf16.msrb.mxu2 %v3272_v44  ;;  %3393 = vmatpush.bf16.msrb.mxu3 %v3275_v33  ;;  %v8783_v44 = vor.u32 %v9859_v7, %v8780_v13  ;;  %v8706_v33 = vld [vmem:[#allocation3 + $0x10] sm:$0xf]  ;;  %v8711_v41 = vor.u32 %v9842_v42, %v8708_v30  ;;  %v9843_v40 = vld [vmem:[#allocation3 + $0x1c] sm:$0xf]  ;;  %v9044_v57 = vld [vmem:[#allocation3 + $0x2e0] sm:$0xf0] }
 0x30a   :  { %3354 = vmatpush.bf16.msrb.mxu0 %v3266_v38  ;;  %3367 = vmatpush.bf16.msrb.mxu1 %v3269_v21  ;;  %v9108_v38 = vld [vmem:[#allocation3 + $0x360] sm:$0x30]  ;;  %v8779_v21 = vor.u32 %v9867_v10, %v8778_v27  ;;  %v8707_v56 = vor.u32 %v9850_v6, %v8706_v33  ;;  %v8719_v50 = vor.u32 %v9843_v40, %v8716_v36  ;;  %v9933_v51 = vld [vmem:[#allocation3 + $0x2e4] sm:$0xf0]  ;;  %v9052_v14 = vld [vmem:[#allocation3 + $0x2e8] sm:$0xf0] }
 0x30b   :  { %9136 = vmatmul.msk.bf16.vlgmr.msra.gmra.mxu0 %vm3248_vm8, %v11579_v23  ;;  %9137 = vmatmul.msk.bf16.vlgmr.msra.gmra.mxu1 %vm3248_vm8, %v11579_v23  ;;  %v9042_v45 = vld [vmem:[#allocation3 + $0x2a0] sm:$0xf]  ;;  %v9050_v9 = vld [vmem:[#allocation3 + $0x2a8] sm:$0xf]  ;;  %v8980_v29 = vld [vmem:[#allocation3 + $0x260] sm:$0xf0] }
 0x30c   :  { %v9916_v25 = vld [vmem:[#allocation3 + $0x25c] sm:$0xf0]  ;;  %v9917_v3 = vld [vmem:[#allocation3 + $0x264] sm:$0xf0]  ;;  %v8988_v61 = vld [vmem:[#allocation3 + $0x268] sm:$0xf0] }
 0x30d   :  { %3381 = vmatpush.bf16.msrb.mxu2 %v9035_v53  ;;  %3394 = vmatpush.bf16.msrb.mxu3 %v9039_v37  ;;  %v9114_v37 = vld [vmem:[#allocation3 + $0x328] sm:$0xf]  ;;  %v8978_v5 = vld [vmem:[#allocation3 + $0x220] sm:$0xf]  ;;  %v8916_v10 = vld [vmem:[#allocation3 + $0x1e0] sm:$0xf0] }
 0x30e   :  { %3355 = vmatpush.bf16.msrb.mxu0 %v9027_v35  ;;  %3368 = vmatpush.bf16.msrb.mxu1 %v9031_v1  ;;  %v9106_v35 = vld [vmem:[#allocation3 + $0x320] sm:$0xf]  ;;  %v9940_v1 = vld [vmem:[#allocation3 + $0x324] sm:$0xf]  ;;  %v9115_v55 = vor.u32 %v9949_v0, %v9114_v37  ;;  %v8986_v15 = vld [vmem:[#allocation3 + $0x228] sm:$0xf] }
 0x30f   :  { %v9107_v52 = vor.u32 %v9948_v32, %v9106_v35  ;;  %v9111_v53 = vor.u32 %v9940_v1, %v9108_v38  ;;  %v9900_v28 = vld [vmem:[#allocation3 + $0x1dc] sm:$0xf0]  ;;  %v9901_v13 = vld [vmem:[#allocation3 + $0x1e4] sm:$0xf0]  ;;  %v8924_v22 = vld [vmem:[#allocation3 + $0x1e8] sm:$0xf0] }
 0x310   :  { %v3284_v11 = vsel %vm3252_vm7, %v9115_v55, 0  ;;  %v8914_v26 = vld [vmem:[#allocation3 + $0x1a0] sm:$0xf]  ;;  %v9892_v27 = vld [vmem:[#allocation3 + $0x1a4] sm:$0xf] }
 0x311   :  { %3382 = vmatpush.bf16.msrb.mxu2 %v8971_v63  ;;  %3395 = vmatpush.bf16.msrb.mxu3 %v8975_v49  ;;  %v3278_v54 = vsel %vm3252_vm7, %v9107_v52, 0  ;;  %v3281_v63 = vsel %vm3252_vm7, %v9111_v53, 0  ;;  %v9932_v49 = vld [vmem:[#allocation3 + $0x2dc] sm:$0xf0]  ;;  %v8915_v6 = vor.u32 %v9900_v28, %v8914_v26  ;;  %v8919_v30 = vor.u32 %v9892_v27, %v8916_v10  ;;  %v8860_v33 = vld [vmem:[#allocation3 + $0x168] sm:$0xf0] }
 0x312   :  { %3356 = vmatpush.bf16.msrb.mxu0 %v8963_v60  ;;  %3369 = vmatpush.bf16.msrb.mxu1 %v8967_v58  ;;  %v9119_v60 = vor.u32 %v9941_v39, %v9116_v47  ;;  %v8715_v58 = vor.u32 %v9851_v20, %v8714_v59  ;;  %v9884_v38 = vld [vmem:[#allocation3 + $0x15c] sm:$0xf0]  ;;  %v9876_v0 = vld [vmem:[#allocation3 + $0x124] sm:$0xf]  ;;  %v8858_v35 = vld [vmem:[#allocation3 + $0x128] sm:$0xf] }
 0x313   :  { %v8850_v20 = vld [vmem:[#allocation3 + $0x120] sm:$0xf]  ;;  %v9877_v1 = vld [vmem:[#allocation3 + $0x12c] sm:$0xf]  ;;  %v8788_v37 = vld [vmem:[#allocation3 + $0xe0] sm:$0xf0] }
 0x314   :  { %v3287_v4 = vsel %vm3252_vm7, %v9119_v60, 0  ;;  %v8851_v47 = vor.u32 %v9884_v38, %v8850_v20  ;;  %v8863_v52 = vor.u32 %v9877_v1, %v8860_v33  ;;  %v9868_v53 = vld [vmem:[#allocation3 + $0xdc] sm:$0xf0]  ;;  %v9869_v39 = vld [vmem:[#allocation3 + $0xe4] sm:$0xf0] }
 0x315   :  { %3383 = vmatpush.bf16.msrb.mxu2 %v8907_v12  ;;  %3396 = vmatpush.bf16.msrb.mxu3 %v8911_v18  ;;  %v9925_v12 = vld [vmem:[#allocation3 + $0x2ac] sm:$0xf]  ;;  %v9051_v18 = vor.u32 %v9933_v51, %v9050_v9  ;;  %v9860_v59 = vld [vmem:[#allocation3 + $0xa4] sm:$0xf]  ;;  %v8794_v40 = vld [vmem:[#allocation3 + $0xa8] sm:$0xf] }
 0x316   :  { %3357 = vmatpush.bf16.msrb.mxu0 %v8899_v16  ;;  %3370 = vmatpush.bf16.msrb.mxu1 %v8903_v19  ;;  %v9924_v16 = vld [vmem:[#allocation3 + $0x2a4] sm:$0xf]  ;;  %v9043_v19 = vor.u32 %v9932_v49, %v9042_v45  ;;  %v9055_v17 = vor.u32 %v9925_v12, %v9052_v14  ;;  %v9852_v55 = vld [vmem:[#allocation3 + $0x5c] sm:$0xf0]  ;;  %v9124_v49 = vld [vmem:[#allocation3 + $0x370] sm:$0x30] }
 0x317   :  { %v9047_v62 = vor.u32 %v9924_v16, %v9044_v57  ;;  %v8724_v60 = vld [vmem:[#allocation3 + $0x60] sm:$0xf0]  ;;  %v8795_v57 = vor.u32 %v9869_v39, %v8794_v40  ;;  %v9853_v51 = vld [vmem:[#allocation3 + $0x64] sm:$0xf0]  ;;  %v9951_v14 = vld [vmem:[#allocation3 + $0x374] sm:$0x30] }
 0x318   :  { %v9132_v45 = vld [vmem:[#allocation3 + $0x378] sm:$0x30]  ;;  %v8732_v16 = vld [vmem:[#allocation3 + $0x68] sm:$0xf0]  ;;  %v9844_v9 = vld [vmem:[#allocation3 + $0x24] sm:$0xf] }
 0x319   :  { %3384 = vmatpush.bf16.msrb.mxu2 %v8843_v2  ;;  %3397 = vmatpush.bf16.msrb.mxu3 %v8847_v48  ;;  %v9909_v2 = vld [vmem:[#allocation3 + $0x22c] sm:$0xf]  ;;  %v8987_v48 = vor.u32 %v9917_v3, %v8986_v15  ;;  %v8727_v3 = vor.u32 %v9844_v9, %v8724_v60  ;;  %v9060_v28 = vld [vmem:[#allocation3 + $0x2f0] sm:$0xf0]  ;;  %v9068_v26 = vld [vmem:[#allocation3 + $0x2f8] sm:$0xf0] }
 0x31a   :  { %3358 = vmatpush.bf16.msrb.mxu0 %v8835_v31  ;;  %3371 = vmatpush.bf16.msrb.mxu1 %v8839_v43  ;;  %v9908_v31 = vld [vmem:[#allocation3 + $0x224] sm:$0xf]  ;;  %v8979_v43 = vor.u32 %v9916_v25, %v8978_v5  ;;  %v8991_v8 = vor.u32 %v9909_v2, %v8988_v61  ;;  %v9943_v25 = vld [vmem:[#allocation3 + $0x33c] sm:$0xf]  ;;  %v8730_v61 = vld [vmem:[#allocation3 + $0x28] sm:$0xf] }
 0x31b   :  { %v8983_v34 = vor.u32 %v9908_v31, %v8980_v29  ;;  %v9845_v5 = vld [vmem:[#allocation3 + $0x2c] sm:$0xf]  ;;  %v9058_v27 = vld [vmem:[#allocation3 + $0x2b0] sm:$0xf]  ;;  %v9919_v33 = vld [vmem:[#allocation3 + $0x274] sm:$0xf0] }
 0x31c   :  { %v8735_v15 = vor.u32 %v9845_v5, %v8732_v16  ;;  %v9004_v20 = vld [vmem:[#allocation3 + $0x278] sm:$0xf0]  ;;  %v9002_v1 = vld [vmem:[#allocation3 + $0x238] sm:$0xf]  ;;  %v8932_v39 = vld [vmem:[#allocation3 + $0x1f0] sm:$0xf0] }
 0x31d   :  { %3385 = vmatpush.bf16.msrb.mxu2 %v8779_v21  ;;  %3398 = vmatpush.bf16.msrb.mxu3 %v8783_v44  ;;  %v8852_v21 = vld [vmem:[#allocation3 + $0x160] sm:$0xf0]  ;;  %v9885_v44 = vld [vmem:[#allocation3 + $0x164] sm:$0xf0]  ;;  %v9894_v40 = vld [vmem:[#allocation3 + $0x1b4] sm:$0xf] }
 0x31e   :  { %3359 = vmatpush.bf16.msrb.mxu0 %v8771_v24  ;;  %3372 = vmatpush.bf16.msrb.mxu1 %v8775_v46  ;;  %v8922_v24 = vld [vmem:[#allocation3 + $0x1a8] sm:$0xf]  ;;  %v9893_v46 = vld [vmem:[#allocation3 + $0x1ac] sm:$0xf]  ;;  %v8855_v36 = vor.u32 %v9876_v0, %v8852_v21  ;;  %v8859_v42 = vor.u32 %v9885_v44, %v8858_v35  ;;  %v9918_v21 = vld [vmem:[#allocation3 + $0x26c] sm:$0xf0]  ;;  %v8935_v60 = vor.u32 %v9894_v40, %v8932_v39 }
 0x31f   :  { %v8923_v7 = vor.u32 %v9901_v13, %v8922_v24  ;;  %v8927_v32 = vor.u32 %v9893_v46, %v8924_v22  ;;  %v9935_v22 = vld [vmem:[#allocation3 + $0x2f4] sm:$0xf0]  ;;  %v8996_v44 = vld [vmem:[#allocation3 + $0x270] sm:$0xf0]  ;;  %v8994_v0 = vld [vmem:[#allocation3 + $0x230] sm:$0xf] }
 0x320   :  { %v9066_v46 = vld [vmem:[#allocation3 + $0x2b8] sm:$0xf] }
 0x321   :  { %3386 = vmatpush.bf16.msrb.mxu2 %v8715_v58  ;;  %3399 = vmatpush.bf16.msrb.mxu3 %v8719_v50  ;;  %v8791_v50 = vor.u32 %v9860_v59, %v8788_v37  ;;  %v9902_v37 = vld [vmem:[#allocation3 + $0x1ec] sm:$0xf0] }
 0x322   :  { %3360 = vmatpush.bf16.msrb.mxu0 %v8707_v56  ;;  %3373 = vmatpush.bf16.msrb.mxu1 %v8711_v41  ;;  %v8796_v56 = vld [vmem:[#allocation3 + $0xe8] sm:$0xf0]  ;;  %v8786_v41 = vld [vmem:[#allocation3 + $0xa0] sm:$0xf]  ;;  %v8930_v59 = vld [vmem:[#allocation3 + $0x1b0] sm:$0xf] }
 0x323   :  { %v8787_v58 = vor.u32 %v9868_v53, %v8786_v41  ;;  %v8940_v41 = vld [vmem:[#allocation3 + $0x1f8] sm:$0xf0] }
 0x324   :  { %9142 = vmatmul.msk.bf16.vlgmr.msrb.gmra.mxu2 %vm3248_vm8, %v11579_v23  ;;  %9143 = vmatmul.msk.bf16.vlgmr.msrb.gmra.mxu3 %vm3248_vm8, %v11579_v23 }
 0x325   :  { %3432 = vmatpush.bf16.msra.mxu2 %v3284_v11  ;;  %3445 = vmatpush.bf16.msra.mxu3 %v3287_v4  ;;  %v8722_v4 = vld [vmem:[#allocation3 + $0x20] sm:$0xf] }
 0x326   :  { %3406 = vmatpush.bf16.msra.mxu0 %v3278_v54  ;;  %3419 = vmatpush.bf16.msra.mxu1 %v3281_v63  ;;  %v9861_v54 = vld [vmem:[#allocation3 + $0xac] sm:$0xf]  ;;  %v9950_v63 = vld [vmem:[#allocation3 + $0x36c] sm:$0x30]  ;;  %v8723_v29 = vor.u32 %v9852_v55, %v8722_v4  ;;  %v8931_v55 = vor.u32 %v9902_v37, %v8930_v59  ;;  %v8876_v4 = vld [vmem:[#allocation3 + $0x178] sm:$0xf0] }
 0x327   :  { %9140 = vmatmul.msk.bf16.vlgmr.msrb.gmra.mxu0 %vm3248_vm8, %v11579_v23  ;;  %9141 = vmatmul.msk.bf16.vlgmr.msrb.gmra.mxu1 %vm3248_vm8, %v11579_v23  ;;  %v8799_v11 = vor.u32 %v9861_v54, %v8796_v56  ;;  %v9903_v56 = vld [vmem:[#allocation3 + $0x1f4] sm:$0xf0] }
 0x329   :  { %3433 = vmatpush.bf16.msra.mxu2 %v9051_v18  ;;  %3446 = vmatpush.bf16.msra.mxu3 %v9055_v17  ;;  %v9130_v17 = vld [vmem:[#allocation3 + $0x338] sm:$0xf] }
 0x32a   :  { %3407 = vmatpush.bf16.msra.mxu0 %v9043_v19  ;;  %3420 = vmatpush.bf16.msra.mxu1 %v9047_v62  ;;  %v9122_v19 = vld [vmem:[#allocation3 + $0x330] sm:$0xf]  ;;  %v9942_v62 = vld [vmem:[#allocation3 + $0x334] sm:$0xf]  ;;  %v9131_v31 = vor.u32 %v9951_v14, %v9130_v17 }
 0x32b   :  { %v9123_v12 = vor.u32 %v9950_v63, %v9122_v19  ;;  %v9127_v18 = vor.u32 %v9942_v62, %v9124_v49  ;;  %v9886_v49 = vld [vmem:[#allocation3 + $0x16c] sm:$0xf0]  ;;  %v9878_v14 = vld [vmem:[#allocation3 + $0x134] sm:$0xf]  ;;  %v8874_v19 = vld [vmem:[#allocation3 + $0x138] sm:$0xf] }
 0x32c   :  { %v3296_v10 = vsel %vm3252_vm7, %v9131_v31, 0  ;;  %v9879_v62 = vld [vmem:[#allocation3 + $0x13c] sm:$0xf]  ;;  %v8804_v17 = vld [vmem:[#allocation3 + $0xf0] sm:$0xf0] }
 0x32d   :  { %3434 = vmatpush.bf16.msra.mxu2 %v8987_v48  ;;  %3447 = vmatpush.bf16.msra.mxu3 %v8991_v8  ;;  %v3290_v2 = vsel %vm3252_vm7, %v9123_v12, 0  ;;  %v3293_v48 = vsel %vm3252_vm7, %v9127_v18, 0  ;;  %v9934_v8 = vld [vmem:[#allocation3 + $0x2ec] sm:$0xf0]  ;;  %v8879_v12 = vor.u32 %v9879_v62, %v8876_v4 }
 0x32e   :  { %3408 = vmatpush.bf16.msra.mxu0 %v8979_v43  ;;  %3421 = vmatpush.bf16.msra.mxu1 %v8983_v34  ;;  %v9135_v43 = vor.u32 %v9943_v25, %v9132_v45  ;;  %v8731_v34 = vor.u32 %v9853_v51, %v8730_v61  ;;  %v8866_v51 = vld [vmem:[#allocation3 + $0x130] sm:$0xf]  ;;  %v9871_v25 = vld [vmem:[#allocation3 + $0xf4] sm:$0xf0]  ;;  %v9862_v61 = vld [vmem:[#allocation3 + $0xb4] sm:$0xf] }
 0x32f   :  { %v8867_v45 = vor.u32 %v9886_v49, %v8866_v51  ;;  %v9870_v18 = vld [vmem:[#allocation3 + $0xec] sm:$0xf0]  ;;  %v8807_v31 = vor.u32 %v9862_v61, %v8804_v17 }
 0x330   :  { %v3299_v13 = vsel %vm3252_vm7, %v9135_v43, 0  ;;  %v8810_v43 = vld [vmem:[#allocation3 + $0xb8] sm:$0xf] }
 0x331   :  { %3435 = vmatpush.bf16.msra.mxu2 %v8923_v7  ;;  %3448 = vmatpush.bf16.msra.mxu3 %v8927_v32  ;;  %v9927_v7 = vld [vmem:[#allocation3 + $0x2bc] sm:$0xf]  ;;  %v9067_v32 = vor.u32 %v9935_v22, %v9066_v46  ;;  %v9846_v22 = vld [vmem:[#allocation3 + $0x34] sm:$0xf] }
 0x332   :  { %3409 = vmatpush.bf16.msra.mxu0 %v8915_v6  ;;  %3422 = vmatpush.bf16.msra.mxu1 %v8919_v30  ;;  %v9926_v6 = vld [vmem:[#allocation3 + $0x2b4] sm:$0xf]  ;;  %v9059_v30 = vor.u32 %v9934_v8, %v9058_v27  ;;  %v9071_v38 = vor.u32 %v9927_v7, %v9068_v26 }
 0x333   :  { %v9063_v24 = vor.u32 %v9926_v6, %v9060_v28  ;;  %v8740_v8 = vld [vmem:[#allocation3 + $0x70] sm:$0xf0]  ;;  %v9855_v28 = vld [vmem:[#allocation3 + $0x74] sm:$0xf0] }
 0x334   :  { %v8743_v27 = vor.u32 %v9846_v22, %v8740_v8  ;;  %v8746_v6 = vld [vmem:[#allocation3 + $0x38] sm:$0xf] }
 0x335   :  { %3436 = vmatpush.bf16.msra.mxu2 %v8859_v42  ;;  %3449 = vmatpush.bf16.msra.mxu3 %v8863_v52  ;;  %v9911_v42 = vld [vmem:[#allocation3 + $0x23c] sm:$0xf]  ;;  %v9003_v52 = vor.u32 %v9919_v33, %v9002_v1 }
 0x336   :  { %3410 = vmatpush.bf16.msra.mxu0 %v8851_v47  ;;  %3423 = vmatpush.bf16.msra.mxu1 %v8855_v36  ;;  %v9910_v47 = vld [vmem:[#allocation3 + $0x234] sm:$0xf]  ;;  %v8995_v36 = vor.u32 %v9918_v21, %v8994_v0  ;;  %v9007_v53 = vor.u32 %v9911_v42, %v9004_v20 }
 0x337   :  { %v8999_v35 = vor.u32 %v9910_v47, %v8996_v44 }
 0x339   :  { %3437 = vmatpush.bf16.msra.mxu2 %v8795_v57  ;;  %3450 = vmatpush.bf16.msra.mxu3 %v8799_v11  ;;  %v8868_v57 = vld [vmem:[#allocation3 + $0x170] sm:$0xf0]  ;;  %v9887_v11 = vld [vmem:[#allocation3 + $0x174] sm:$0xf0] }
 0x33a   :  { %3411 = vmatpush.bf16.msra.mxu0 %v8787_v58  ;;  %3424 = vmatpush.bf16.msra.mxu1 %v8791_v50  ;;  %v8938_v58 = vld [vmem:[#allocation3 + $0x1b8] sm:$0xf]  ;;  %v9895_v50 = vld [vmem:[#allocation3 + $0x1bc] sm:$0xf]  ;;  %v8871_v16 = vor.u32 %v9878_v14, %v8868_v57  ;;  %v8875_v9 = vor.u32 %v9887_v11, %v8874_v19 }
 0x33b   :  { %v8939_v54 = vor.u32 %v9903_v56, %v8938_v58  ;;  %v8943_v63 = vor.u32 %v9895_v50, %v8940_v41 }
 0x33d   :  { %3438 = vmatpush.bf16.msra.mxu2 %v8731_v34  ;;  %3451 = vmatpush.bf16.msra.mxu3 %v8735_v15  ;;  %v9863_v34 = vld [vmem:[#allocation3 + $0xbc] sm:$0xf]  ;;  %v8811_v15 = vor.u32 %v9871_v25, %v8810_v43 }
 0x33e   :  { %3412 = vmatpush.bf16.msra.mxu0 %v8723_v29  ;;  %3425 = vmatpush.bf16.msra.mxu1 %v8727_v3  ;;  %v8812_v29 = vld [vmem:[#allocation3 + $0xf8] sm:$0xf0]  ;;  %v8802_v3 = vld [vmem:[#allocation3 + $0xb0] sm:$0xf] }
 0x33f   :  { %v8803_v5 = vor.u32 %v9870_v18, %v8802_v3 }
 0x340   :  { %9146 = vmatmul.msk.bf16.vlgmr.msra.gmra.mxu2 %vm3248_vm8, %v11579_v23  ;;  %9147 = vmatmul.msk.bf16.vlgmr.msra.gmra.mxu3 %vm3248_vm8, %v11579_v23 }
 0x341   :  { %3484 = vmatpush.bf16.msrb.mxu2 %v3296_v10  ;;  %3497 = vmatpush.bf16.msrb.mxu3 %v3299_v13  ;;  %v8748_v10 = vld [vmem:[#allocation3 + $0x78] sm:$0xf0]  ;;  %v8738_v13 = vld [vmem:[#allocation3 + $0x30] sm:$0xf] }
 0x342   :  { %3458 = vmatpush.bf16.msrb.mxu0 %v3290_v2  ;;  %3471 = vmatpush.bf16.msrb.mxu1 %v3293_v48  ;;  %v8815_v2 = vor.u32 %v9863_v34, %v8812_v29  ;;  %v9854_v48 = vld [vmem:[#allocation3 + $0x6c] sm:$0xf0] }
 0x343   :  { %9144 = vmatmul.msk.bf16.vlgmr.msra.gmra.mxu0 %vm3248_vm8, %v11579_v23  ;;  %9145 = vmatmul.msk.bf16.vlgmr.msra.gmra.mxu1 %vm3248_vm8, %v11579_v23  ;;  %v8739_v26 = vor.u32 %v9854_v48, %v8738_v13  ;;  %v11689_v48 = vld [vmem:[%s14846_s1 + $0x8] sm:$0xff] }
 0x345   :  { %3485 = vmatpush.bf16.msrb.mxu2 %v9067_v32  ;;  %3498 = vmatpush.bf16.msrb.mxu3 %v9071_v38 }
 0x346   :  { %3459 = vmatpush.bf16.msrb.mxu0 %v9059_v30  ;;  %3472 = vmatpush.bf16.msrb.mxu1 %v9063_v24  ;;  %v9847_v30 = vld [vmem:[#allocation3 + $0x3c] sm:$0xf]  ;;  %v8747_v24 = vor.u32 %v9855_v28, %v8746_v6 }
 0x347   :  { %v8751_v46 = vor.u32 %v9847_v30, %v8748_v10 }
 0x349   :  { %3486 = vmatpush.bf16.msrb.mxu2 %v9003_v52  ;;  %3499 = vmatpush.bf16.msrb.mxu3 %v9007_v53 }
 0x34a   :  { %3460 = vmatpush.bf16.msrb.mxu0 %v8995_v36  ;;  %3473 = vmatpush.bf16.msrb.mxu1 %v8999_v35 }
 0x34d   :  { %3487 = vmatpush.bf16.msrb.mxu2 %v8939_v54  ;;  %3500 = vmatpush.bf16.msrb.mxu3 %v8943_v63 }
 0x34e   :  { %3461 = vmatpush.bf16.msrb.mxu0 %v8931_v55  ;;  %3474 = vmatpush.bf16.msrb.mxu1 %v8935_v60 }
 0x351   :  { %3488 = vmatpush.bf16.msrb.mxu2 %v8875_v9  ;;  %3501 = vmatpush.bf16.msrb.mxu3 %v8879_v12 }
 0x352   :  { %3462 = vmatpush.bf16.msrb.mxu0 %v8867_v45  ;;  %3475 = vmatpush.bf16.msrb.mxu1 %v8871_v16 }
 0x355   :  { %3489 = vmatpush.bf16.msrb.mxu2 %v8811_v15  ;;  %3502 = vmatpush.bf16.msrb.mxu3 %v8815_v2 }
 0x356   :  { %3463 = vmatpush.bf16.msrb.mxu0 %v8803_v5  ;;  %3476 = vmatpush.bf16.msrb.mxu1 %v8807_v31 }
 0x359   :  { %3490 = vmatpush.bf16.msrb.mxu2 %v8747_v24  ;;  %3503 = vmatpush.bf16.msrb.mxu3 %v8751_v46 }
 0x35a   :  { %3464 = vmatpush.bf16.msrb.mxu0 %v8739_v26  ;;  %3477 = vmatpush.bf16.msrb.mxu1 %v8743_v27  ;;  %v11699_v27 = vperm.slane %v11689_v48, 0 }
 0x35c   :  { %9150 = vmatmul.msk.bf16.vlgmr.msrb.gmra.mxu2 %vm3248_vm8, %v11579_v23  ;;  %9151 = vmatmul.msk.bf16.vlgmr.msrb.gmra.mxu3 %vm3248_vm8, %v11579_v23  ;;  %14991 = vst [vmem:[#allocation14_spill] sm:$0xff] %v11699_v27 }
 0x35d   :  { %9148 = vmatmul.msk.bf16.vlgmr.msrb.gmra.mxu0 %vm3248_vm8, %v11579_v23  ;;  %9149 = vmatmul.msk.bf16.vlgmr.msrb.gmra.mxu1 %vm3248_vm8, %v11579_v23  ;;  %v21_v23 = vld [vmem:[%s14846_s1] sm:$0xff] }
 0x35e   :  { %v11638_v35 = vperm.slane %v21_v23, 0  ;;  %v11640_v1 = vperm.slane %v21_v23, 1  ;;  %v11650_v56 = vperm.slane %v21_v23, 2  ;;  %v11656_v60 = vperm.slane %v21_v23, 3 }
 0x35f   :  { %v11660_v49 = vperm.slane %v21_v23, 4  ;;  %v11672_v12 = vperm.slane %v21_v23, 5  ;;  %v11679_v5 = vperm.slane %v21_v23, 6  ;;  %v11695_v13 = vperm.slane %v21_v23, 7 }
 0x360   :  { %14983 = vst [vmem:[#allocation6_spill] sm:$0xff] %v11638_v35 }
 0x361   :  { %14984 = vst [vmem:[#allocation7_spill] sm:$0xff] %v11640_v1 }
 0x362   :  { %14985 = vst [vmem:[#allocation8_spill] sm:$0xff] %v11650_v56 }
 0x363   :  { %14986 = vst [vmem:[#allocation9_spill] sm:$0xff] %v11656_v60 }
 0x364   :  { %14987 = vst [vmem:[#allocation10_spill] sm:$0xff] %v11660_v49 }
 0x365   :  { %14988 = vst [vmem:[#allocation11_spill] sm:$0xff] %v11672_v12 }
 0x366   :  { %14989 = vst [vmem:[#allocation12_spill] sm:$0xff] %v11679_v5 }
 0x367   :  { %14990 = vst [vmem:[#allocation13_spill] sm:$0xff] %v11695_v13 }
 0x388   :  { %v11623_v7 = vpop.f32.mrf.mxu0  ;;  %v11625_v32 = vpop.f32.mrf.mxu1 }
 0x389   :  { %v3544_v37 = vmul.f32 %v11638_v35, %v11623_v7  ;;  %v3545_v39 = vmul.f32 %v11640_v1, %v11625_v32 }
 0x38b   :  { %v11627_v38 = vpop.f32.mrf.mxu2  ;;  %v11629_v21 = vpop.f32.mrf.mxu3  ;;  %v3594_v59 = vmul.f32 %v3544_v37, %v11623_v7  ;;  %v3595_v40 = vmul.f32 %v3545_v39, %v11625_v32  ;;  %v3560_v50 = vsel %vm3252_vm7, %v3544_v37, 0.0  ;;  %v3561_v54 = vsel %vm3252_vm7, %v3545_v39, 0.0 }
 0x38c   :  { %v3546_v55 = vmul.f32 %v11650_v56, %v11627_v38  ;;  %v3547_v51 = vmul.f32 %v11656_v60, %v11629_v21  ;;  %v3562_v14 = vadd.f32 %v3561_v54, %v3560_v50  ;;  %v11713_v37 = vperm.slane %v11689_v48, 1 }
 0x38d   :  { %v3610_v57 = vsel %vm3252_vm7, %v3594_v59, 0.0  ;;  %v3611_v11 = vsel %vm3252_vm7, %v3595_v40, 0.0 }
 0x38e   :  { %v3596_v4 = vmul.f32 %v3546_v55, %v11627_v38  ;;  %v3563_v45 = vsel %vm3252_vm7, %v3546_v55, 0.0  ;;  %v3612_v16 = vadd.f32 %v3611_v11, %v3610_v57  ;;  %v3597_v62 = vmul.f32 %v3547_v51, %v11629_v21  ;;  %14992 = vst [vmem:[#allocation15_spill] sm:$0xff] %v11713_v37 }
 0x38f   :  { %v3564_v18 = vadd.f32 %v3563_v45, %v3562_v14  ;;  %v3565_v17 = vsel %vm3252_vm7, %v3547_v51, 0.0  ;;  %v11718_v55 = vperm.slane %v11689_v48, 2  ;;  %v11729_v45 = vperm.slane %v11689_v48, 3 }
 0x390   :  { %v3312_v44 = vpop.f32.mrf.mxu0  ;;  %v3325_v33 = vpop.f32.mrf.mxu1  ;;  %v3613_v19 = vsel %vm3252_vm7, %v3596_v4, 0.0  ;;  %v3615_v29 = vsel %vm3252_vm7, %v3597_v62, 0.0 }
 0x391   :  { %v3614_v25 = vadd.f32 %v3613_v19, %v3612_v16  ;;  %v3566_v31 = vadd.f32 %v3565_v17, %v3564_v18  ;;  %14993 = vst [vmem:[#allocation16_spill] sm:$0xff] %v11718_v55 }
 0x392   :  { %14994 = vst [vmem:[#allocation17_spill] sm:$0xff] %v11729_v45 }
 0x393   :  { %v3338_v20 = vpop.f32.mrf.mxu2  ;;  %v3351_v0 = vpop.f32.mrf.mxu3  ;;  %v3616_v2 = vadd.f32 %v3615_v29, %v3614_v25 }
 0x3a4   :  { %v11631_v47 = vpop.f32.mrf.mxu0  ;;  %v11633_v36 = vpop.f32.mrf.mxu1 }
 0x3a5   :  { %v3548_v9 = vmul.f32 %v11660_v49, %v11631_v47  ;;  %v3549_v61 = vmul.f32 %v11672_v12, %v11633_v36 }
 0x3a7   :  { %v11642_v42 = vpop.f32.mrf.mxu2  ;;  %v11644_v52 = vpop.f32.mrf.mxu3  ;;  %v3598_v3 = vmul.f32 %v3548_v9, %v11631_v47  ;;  %v3567_v34 = vsel %vm3252_vm7, %v3548_v9, 0.0  ;;  %v3599_v28 = vmul.f32 %v3549_v61, %v11633_v36  ;;  %v3569_v26 = vsel %vm3252_vm7, %v3549_v61, 0.0 }
 0x3a8   :  { %v3550_v10 = vmul.f32 %v11679_v5, %v11642_v42  ;;  %v3568_v22 = vadd.f32 %v3567_v34, %v3566_v31  ;;  %v3551_v44 = vmul.f32 %v11695_v13, %v11644_v52 }
 0x3a9   :  { %v3617_v8 = vsel %vm3252_vm7, %v3598_v3, 0.0  ;;  %v3619_v24 = vsel %vm3252_vm7, %v3599_v28, 0.0  ;;  %v11743_v28 = vperm.slane %v11689_v48, 5 }
 0x3aa   :  { %v3618_v6 = vadd.f32 %v3617_v8, %v3616_v2  ;;  %v3600_v46 = vmul.f32 %v3550_v10, %v11642_v42  ;;  %v3570_v20 = vadd.f32 %v3569_v26, %v3568_v22  ;;  %v3571_v23 = vsel %vm3252_vm7, %v3550_v10, 0.0 }
 0x3ab   :  { %v3601_v40 = vmul.f32 %v3551_v44, %v11644_v52  ;;  %v3573_v50 = vsel %vm3252_vm7, %v3551_v44, 0.0  ;;  %v11740_v8 = vperm.slane %v11689_v48, 4  ;;  %14996 = vst [vmem:[#allocation19_spill] sm:$0xff] %v11743_v28 }
 0x3ac   :  { %v3364_v53 = vpop.f32.mrf.mxu0  ;;  %v3377_v41 = vpop.f32.mrf.mxu1  ;;  %v3621_v59 = vsel %vm3252_vm7, %v3600_v46, 0.0 }
 0x3ad   :  { %v3620_v41 = vadd.f32 %v3619_v24, %v3618_v6  ;;  %v3623_v4 = vsel %vm3252_vm7, %v3601_v40, 0.0  ;;  %14995 = vst [vmem:[#allocation18_spill] sm:$0xff] %v11740_v8 }
 0x3af   :  { %v3390_v58 = vpop.f32.mrf.mxu2  ;;  %v3403_v63 = vpop.f32.mrf.mxu3  ;;  %v3622_v57 = vadd.f32 %v3621_v59, %v3620_v41 }
 0x3b0   :  { %v3572_v58 = vadd.f32 %v3571_v23, %v3570_v20 }
 0x3b1   :  { %v3624_v18 = vadd.f32 %v3623_v4, %v3622_v57 }
 0x3b2   :  { %v3574_v19 = vadd.f32 %v3573_v50, %v3572_v58  ;;  %v11761_v58 = vperm.slane %v11689_v48, 6  ;;  %v11764_v50 = vperm.slane %v11689_v48, 7 }
 0x3b4   :  { %14997 = vst [vmem:[#allocation20_spill] sm:$0xff] %v11761_v58 }
 0x3b5   :  { %14998 = vst [vmem:[#allocation21_spill] sm:$0xff] %v11764_v50 }
 0x3c0   :  { %v11681_v43 = vpop.f32.mrf.mxu0  ;;  %v11684_v15 = vpop.f32.mrf.mxu1 }
 0x3c1   :  { %v3552_v53 = vmul.f32 %v11699_v27, %v11681_v43  ;;  %v3553_v63 = vmul.f32 %v11713_v37, %v11684_v15 }
 0x3c3   :  { %v11701_v30 = vpop.f32.mrf.mxu2  ;;  %v11707_v33 = vpop.f32.mrf.mxu3  ;;  %v3602_v54 = vmul.f32 %v3552_v53, %v11681_v43  ;;  %v3575_v51 = vsel %vm3252_vm7, %v3552_v53, 0.0  ;;  %v3603_v9 = vmul.f32 %v3553_v63, %v11684_v15  ;;  %v3577_v25 = vsel %vm3252_vm7, %v3553_v63, 0.0 }
 0x3c4   :  { %v3554_v14 = vmul.f32 %v11718_v55, %v11701_v30  ;;  %v3576_v17 = vadd.f32 %v3575_v51, %v3574_v19  ;;  %v3555_v3 = vmul.f32 %v11729_v45, %v11707_v33 }
 0x3c5   :  { %v3625_v62 = vsel %vm3252_vm7, %v3602_v54, 0.0  ;;  %v3627_v31 = vsel %vm3252_vm7, %v3603_v9, 0.0 }
 0x3c6   :  { %v3604_v29 = vmul.f32 %v3554_v14, %v11701_v30  ;;  %v3626_v61 = vadd.f32 %v3625_v62, %v3624_v18  ;;  %v3579_v34 = vsel %vm3252_vm7, %v3554_v14, 0.0  ;;  %v3578_v2 = vadd.f32 %v3577_v25, %v3576_v17 }
 0x3c7   :  { %v3605_v22 = vmul.f32 %v3555_v3, %v11707_v33  ;;  %v3581_v24 = vsel %vm3252_vm7, %v3555_v3, 0.0 }
 0x3c8   :  { %v3416_v0 = vpop.f32.mrf.mxu0  ;;  %v3429_v39 = vpop.f32.mrf.mxu1  ;;  %v3629_v10 = vsel %vm3252_vm7, %v3604_v29, 0.0  ;;  %v3628_v26 = vadd.f32 %v3627_v31, %v3626_v61  ;;  %v3580_v6 = vadd.f32 %v3579_v34, %v3578_v2 }
 0x3c9   :  { %v3631_v53 = vsel %vm3252_vm7, %v3605_v22, 0.0 }
 0x3ca   :  { %v3630_v20 = vadd.f32 %v3629_v10, %v3628_v26  ;;  %v3582_v39 = vadd.f32 %v3581_v24, %v3580_v6 }
 0x3cb   :  { %v3442_v11 = vpop.f32.mrf.mxu2  ;;  %v3455_v16 = vpop.f32.mrf.mxu3 }
 0x3cc   :  { %v3632_v54 = vadd.f32 %v3631_v53, %v3630_v20  ;;  %v5398_v20 = vld [vmem:[#allocation4 + $0x44] sm:$0x7] }
 0x3da   :  { %v11748_v46 = vpop.f32.mrf.mxu0  ;;  %v11750_v44 = vpop.f32.mrf.mxu1 }
 0x3db   :  { %v3556_v0 = vmul.f32 %v11740_v8, %v11748_v46  ;;  %v3557_v23 = vmul.f32 %v11743_v28, %v11750_v44 }
 0x3dd   :  { %v3583_v41 = vsel %vm3252_vm7, %v3556_v0, 0.0  ;;  %v3606_v59 = vmul.f32 %v3556_v0, %v11748_v46  ;;  %v3607_v40 = vmul.f32 %v3557_v23, %v11750_v44  ;;  %v3585_v11 = vsel %vm3252_vm7, %v3557_v23, 0.0 }
 0x3de   :  { %v3584_v63 = vadd.f32 %v3583_v41, %v3582_v39  ;;  %v5416_v0 = vrot.slane %v5398_v20, 6 }
 0x3df   :  { %v3633_v57 = vsel %vm3252_vm7, %v3606_v59, 0.0  ;;  %v11768_v51 = vpop.f32.mrf.mxu2  ;;  %v11770_v14 = vpop.f32.mrf.mxu3  ;;  %v3635_v16 = vsel %vm3252_vm7, %v3607_v40, 0.0 }
 0x3e0   :  { %v3634_v4 = vadd.f32 %v3633_v57, %v3632_v54  ;;  %v3558_v19 = vmul.f32 %v11761_v58, %v11768_v51  ;;  %v3559_v48 = vmul.f32 %v11764_v50, %v11770_v14  ;;  %v3586_v18 = vadd.f32 %v3585_v11, %v3584_v63 }
 0x3e1   :  { %v5425_v23 = vrot.slane %v5416_v0, 4 }
 0x3e2   :  { %v3468_v62 = vpop.f32.mrf.mxu0  ;;  %v3481_v9 = vpop.f32.mrf.mxu1  ;;  %v3587_v17 = vsel %vm3252_vm7, %v3558_v19, 0.0  ;;  %v3608_v25 = vmul.f32 %v3558_v19, %v11768_v51  ;;  %v3609_v29 = vmul.f32 %v3559_v48, %v11770_v14  ;;  %v3589_v3 = vsel %vm3252_vm7, %v3559_v48, 0.0 }
 0x3e3   :  { %v3636_v61 = vadd.f32 %v3635_v16, %v3634_v4  ;;  %v3588_v31 = vadd.f32 %v3587_v17, %v3586_v18  ;;  %v10142_v53 = vpack.i.bf16 %v5425_v23, %v5416_v0  ;;  %v3509_v62 = vld [vmem:[%s14847_s4] sm:$0x3f] }
 0x3e4   :  { %v3637_v34 = vsel %vm3252_vm7, %v3608_v25, 0.0  ;;  %v3639_v22 = vsel %vm3252_vm7, %v3609_v29, 0.0  ;;  %v10272_v29 = vmov 1  }
 0x3e5   :  { %v3590_v2 = vadd.f32 %v3589_v3, %v3588_v31  ;;  %v3638_v10 = vadd.f32 %v3637_v34, %v3636_v61  ;;  %10143 = vrot.lane.b32.xlu2 %v10142_v53, %s10259_s13 }
 0x3e7   :  { %v3494_v26 = vpop.f32.mrf.mxu2  ;;  %v3507_v6 = vpop.f32.mrf.mxu3  ;;  %3591 = vadd.xlane.f32.xlu0 %v3590_v2  ;;  %v3640_v24 = vadd.f32 %v3639_v22, %v3638_v10 }
 0x3e9   :  { %3641 = vadd.xlane.f32.xlu1 %v3640_v24 }
 0x43f   :  { %v11788_v3 = vpop.permute.xlu2 %10143 }
 0x45a   :  { %v3592_v39 = vpop.xlane.xlu0 %3591 }
 0x45b   :  { %v3593_v41 = vmul.f32 0.0009765625, %v3592_v39 }
 0x45c   :  { %v3642_v59 = vpop.xlane.xlu1 %3641 }
 0x45d   :  { %v3644_v40 = vmul.f32 %v3593_v41, %v3593_v41  ;;  %v3643_v54 = vmul.f32 0.0009765625, %v3642_v59 }
 0x45f   :  { %v3645_v63 = vsub.f32 %v3643_v54, %v3644_v40 }
 0x461   :  { %v3646_v57 = vadd.f32 1e-05, %v3645_v63 }
 0x463   :  { %10177 = vrsqrt.f32 %v3646_v57  ;;  %vm3653_vm8 = vweird.f32 %v3646_v57 }
 0x469   :  { %v10178_v11 = vpop.eup %10177 }
 0x46a   :  { %v3648_v4 = vmul.f32 %v10178_v11, %v3646_v57  ;;  %vm3654_vm7 = vweird.f32 %v10178_v11 }
 0x46b   :  { %vm3655_vm5 = vmor %vm3653_vm8, %vm3654_vm7 }
 0x46c   :  { %v3649_v16 = vmul.f32 %v10178_v11, %v3648_v4 }
 0x46e   :  { %v3650_v19 = vmul.f32 0.5, %v3649_v16 }
 0x470   :  { %v3651_v48 = vsub.f32 1.5, %v3650_v19 }
 0x472   :  { %v3652_v9 = vmul.f32 %v10178_v11, %v3651_v48 }
 0x474   :  { %v3656_v18 = vsel %vm3655_vm5, %v10178_v11, %v3652_v9 }
 0x475   :  { %v3657_v17 = vmul.f32 %v3656_v18, %v3509_v62 }
 0x477   :  { %3666 = vperm.xlu2 %10147, %v3657_v17   ;;  %v3658_v25 = vmul.f32 %v3657_v17, %v3593_v41 }
 0x47f   :  { %3660 = vrot.lane.b32.xlu2 %v3658_v25, %s10258_s12 }
 0x480   :  { %10148 = vset.pattern.permute.xlu2 %v10272_v29 }
 0x4d1   :  { %v3667_v61 = vpop.permute.xlu2 %3666 }
 0x4d2   :  { %v3675_v2 = vmul.f32 %v3667_v61, %v11642_v42  ;;  %v3676_v10 = vmul.f32 %v3667_v61, %v11644_v52  ;;  %v3677_v22 = vmul.f32 %v3667_v61, %v11681_v43  ;;  %v3678_v26 = vmul.f32 %v3667_v61, %v11684_v15 }
 0x4d3   :  { %v3673_v24 = vmul.f32 %v3667_v61, %v11631_v47  ;;  %v3674_v20 = vmul.f32 %v3667_v61, %v11633_v36  ;;  %v3669_v0 = vmul.f32 %v3667_v61, %v11623_v7  ;;  %v3670_v23 = vmul.f32 %v3667_v61, %v11625_v32 }
 0x4d4   :  { %v3681_v7 = vmul.f32 %v3667_v61, %v11748_v46  ;;  %v3682_v32 = vmul.f32 %v3667_v61, %v11750_v44  ;;  %v3683_v39 = vmul.f32 %v3667_v61, %v11768_v51  ;;  %v3684_v41 = vmul.f32 %v3667_v61, %v11770_v14 }
 0x4d5   :  { %v3671_v59 = vmul.f32 %v3667_v61, %v11627_v38  ;;  %v3672_v51 = vmul.f32 %v3667_v61, %v11629_v21  ;;  %v11837_v16 = vmul.f32 %v3667_v61, %v11701_v30  ;;  %v11843_v9 = vmul.f32 %v3667_v61, %v11707_v33 }
 0x4d9   :  { %v3661_v31 = vpop.permute.xlu2 %3660 }
 0x4da   :  { %v3663_v34 = vsub.f32 %v3509_v62, %v3661_v31 }
 0x4dc   :  { %3687 = vperm.xlu2 %10148, %v3663_v34  }
 0x536   :  { %v11794_v6 = vpop.permute.xlu2 %3687 }
 0x537   :  { %v11801_v53 = vadd.f32 %v11794_v6, %v3675_v2  ;;  %v11804_v42 = vadd.f32 %v11794_v6, %v3676_v10  ;;  %v11807_v52 = vadd.f32 %v11794_v6, %v3677_v22  ;;  %v11810_v43 = vadd.f32 %v11794_v6, %v3678_v26 }
 0x538   :  { %v11813_v47 = vadd.f32 %v11794_v6, %v3673_v24  ;;  %v11816_v36 = vadd.f32 %v11794_v6, %v3674_v20  ;;  %v11821_v15 = vadd.f32 %v11794_v6, %v3669_v0  ;;  %v11833_v11 = vadd.f32 %v11794_v6, %v3670_v23 }
 0x539   :  { %v3728_v40 = vmin.f32 %v11801_v53, 0.0  ;;  %v3729_v54 = vmin.f32 %v11804_v42, 0.0  ;;  %v3730_v63 = vmin.f32 %v11807_v52, 0.0  ;;  %v3731_v57 = vmin.f32 %v11810_v43, 0.0 }
 0x53a   :  { %v3726_v46 = vmin.f32 %v11813_v47, 0.0  ;;  %v3727_v44 = vmin.f32 %v11816_v36, 0.0  ;;  %v11840_v62 = vadd.f32 %v11794_v6, %v3681_v7  ;;  %v3722_v17 = vmin.f32 %v11821_v15, 0.0 }
 0x53b   :  { %v3750_v14 = vmul.f32 1.442695, %v3728_v40  ;;  %v3752_v4 = vmul.f32 1.442695, %v3729_v54  ;;  %v3754_v38 = vmul.f32 1.442695, %v3730_v63  ;;  %v11847_v21 = vadd.f32 %v11794_v6, %v3682_v32 }
 0x53c   :  { %v3756_v19 = vmul.f32 1.442695, %v3731_v57  ;;  %v3746_v48 = vmul.f32 1.442695, %v3726_v46  ;;  %v3748_v18 = vmul.f32 1.442695, %v3727_v44  ;;  %v11851_v30 = vadd.f32 %v11794_v6, %v3683_v39 }
 0x53d   :  { %10179 = vpow2.f32 %v3750_v14  ;;  %v3723_v25 = vmin.f32 %v11833_v11, 0.0  ;;  %v11854_v29 = vadd.f32 %v11794_v6, %v3684_v41  ;;  %vm3712_vm5 = vcmp.gt.f32.partialorder %v11801_v53, 0.0 }
 0x53e   :  { %10181 = vpow2.f32 %v3752_v4  ;;  %vm3713_vm7 = vcmp.gt.f32.partialorder %v11804_v42, 0.0  ;;  %v3738_v33 = vmul.f32 1.442695, %v3722_v17  ;;  %vm3714_vm8 = vcmp.gt.f32.partialorder %v11807_v52, 0.0 }
 0x53f   :  { %10183 = vpow2.f32 %v3754_v38  ;;  %vm3715_vm4 = vcmp.gt.f32.partialorder %v11810_v43, 0.0  ;;  %v3740_v61 = vmul.f32 1.442695, %v3723_v25  ;;  %vm3710_vm3 = vcmp.gt.f32.partialorder %v11813_v47, 0.0 }
 0x540   :  { %10185 = vpow2.f32 %v3756_v19  ;;  %v3734_v31 = vmin.f32 %v11840_v62, 0.0  ;;  %v3735_v34 = vmin.f32 %v11847_v21, 0.0  ;;  %v3736_v2 = vmin.f32 %v11851_v30, 0.0 }
 0x541   :  { %10187 = vpow2.f32 %v3746_v48  ;;  %vm3711_vm1 = vcmp.gt.f32.partialorder %v11816_v36, 0.0  ;;  %v3737_v10 = vmin.f32 %v11854_v29, 0.0  ;;  %v11867_v22 = vadd.f32 %v11794_v6, %v3671_v59 }
 0x542   :  { %10189 = vpow2.f32 %v3748_v18  ;;  %v11870_v26 = vadd.f32 %v11794_v6, %v3672_v51  ;;  %vm3706_vm0 = vcmp.gt.f32.partialorder %v11821_v15, 0.0  ;;  %v3762_v20 = vmul.f32 1.442695, %v3734_v31 }
 0x543   :  { %v10180_v24 = vpop.eup %10179  ;;  %10191 = vpow2.f32 %v3738_v33  ;;  %v3764_v0 = vmul.f32 1.442695, %v3735_v34  ;;  %v3766_v23 = vmul.f32 1.442695, %v3736_v2  ;;  %vm3707_vm15 = vcmp.gt.f32.partialorder %v11833_v11, 0.0 }
 0x544   :  { %v10182_v7 = vpop.eup %10181  ;;  %v9158_v32 = vadd.f32 -1.0, %v10180_v24  ;;  %10193 = vpow2.f32 %v3740_v61  ;;  %v3768_v39 = vmul.f32 1.442695, %v3737_v10  ;;  %vm3718_vm13 = vcmp.gt.f32.partialorder %v11840_v62, 0.0 }
 0x545   :  { %v10184_v41 = vpop.eup %10183  ;;  %v9159_v40 = vadd.f32 -1.0, %v10182_v7  ;;  %10195 = vpow2.f32 %v3762_v20  ;;  %v3724_v59 = vmin.f32 %v11867_v22, 0.0  ;;  %vm3719_vm12 = vcmp.gt.f32.partialorder %v11847_v21, 0.0 }
 0x546   :  { %v10186_v54 = vpop.eup %10185  ;;  %v9160_v63 = vadd.f32 -1.0, %v10184_v41  ;;  %v3792_v57 = vsel %vm3712_vm5, %v11801_v53, %v9158_v32  ;;  %10197 = vpow2.f32 %v3764_v0  ;;  %v3725_v46 = vmin.f32 %v11870_v26, 0.0 }
 0x547   :  { %v10188_v44 = vpop.eup %10187  ;;  %v9161_v51 = vadd.f32 -1.0, %v10186_v54  ;;  %v3793_v14 = vsel %vm3713_vm7, %v11804_v42, %v9159_v40  ;;  %v3809_v4 = vmul.f32 %v3792_v57, %v11679_v5  ;;  %vm3720_vm11 = vcmp.gt.f32.partialorder %v11851_v30, 0.0 }
 0x548   :  { %10199 = vpow2.f32 %v3766_v23  ;;  %v10190_v38 = vpop.eup %10189  ;;  %v3794_v53 = vsel %vm3714_vm8, %v11807_v52, %v9160_v63  ;;  %v3810_v19 = vmul.f32 %v3793_v14, %v11695_v13  ;;  %v9156_v48 = vadd.f32 -1.0, %v10188_v44 }
 0x549   :  { %vm3721_vm5 = vcmp.gt.f32.partialorder %v11854_v29, 0.0  ;;  %10201 = vpow2.f32 %v3768_v39  ;;  %v10192_v18 = vpop.eup %10191  ;;  %v3795_v42 = vsel %vm3715_vm4, %v11810_v43, %v9161_v51  ;;  %v3811_v17 = vmul.f32 %v3794_v53, %v11699_v27 }
 0x54a   :  { %v9157_v25 = vadd.f32 -1.0, %v10190_v38  ;;  %v3742_v33 = vmul.f32 1.442695, %v3724_v59  ;;  %v10194_v61 = vpop.eup %10193  ;;  %v3812_v31 = vmul.f32 %v3795_v42, %v11713_v37  ;;  %v3822_v34 = vpack.c.bf16 %v3810_v19, %v3809_v4 }
 0x54b   :  { %v3790_v52 = vsel %vm3710_vm3, %v11813_v47, %v9156_v48  ;;  %v9152_v2 = vadd.f32 -1.0, %v10192_v18  ;;  %v10196_v10 = vpop.eup %10195  ;;  %v9153_v20 = vadd.f32 -1.0, %v10194_v61  ;;  %v3744_v59 = vmul.f32 1.442695, %v3725_v46 }
 0x54c   :  { %v3791_v24 = vsel %vm3711_vm1, %v11816_v36, %v9157_v25  ;;  %v3807_v43 = vmul.f32 %v3790_v52, %v11660_v49  ;;  %10203 = vpow2.f32 %v3742_v33  ;;  %v10198_v0 = vpop.eup %10197  ;;  %v3823_v23 = vpack.c.bf16 %v3812_v31, %v3811_v17  ;;  %3830 = vst [vmem:[#allocation4 + $0x1c] sm:$0x77] %v3822_v34 }
 0x54d   :  { %v3808_v7 = vmul.f32 %v3791_v24, %v11672_v12  ;;  %v3786_v32 = vsel %vm3706_vm0, %v11821_v15, %v9152_v2  ;;  %v9164_v47 = vadd.f32 -1.0, %v10196_v10  ;;  %v3787_v41 = vsel %vm3707_vm15, %v11833_v11, %v9153_v20 }
 0x54e   :  { %v10200_v39 = vpop.eup %10199  ;;  %v3803_v36 = vmul.f32 %v3786_v32, %v11638_v35  ;;  %v9165_v40 = vadd.f32 -1.0, %v10198_v0  ;;  %3831 = vst [vmem:[#allocation4 + $0x24] sm:$0x77] %v3823_v23  ;;  %v3804_v57 = vmul.f32 %v3787_v41, %v11640_v1  ;;  %10205 = vpow2.f32 %v3744_v59 }
 0x54f   :  { %v10202_v54 = vpop.eup %10201  ;;  %v3821_v63 = vpack.c.bf16 %v3808_v7, %v3807_v43  ;;  %v9166_v44 = vadd.f32 -1.0, %v10200_v39  ;;  %v3798_v15 = vsel %vm3718_vm13, %v11840_v62, %v9164_v47  ;;  %v3700_v53 = vadd.f32 %v11794_v6, %v11837_v16 }
 0x550   :  { %v9167_v51 = vadd.f32 -1.0, %v10202_v54  ;;  %v3799_v14 = vsel %vm3719_vm12, %v11847_v21, %v9165_v40  ;;  %v3815_v11 = vmul.f32 %v3798_v15, %v11740_v8  ;;  %v3819_v46 = vpack.c.bf16 %v3804_v57, %v3803_v36 }
 0x551   :  { %3829 = vst [vmem:[#allocation4 + $0x14] sm:$0x77] %v3821_v63  ;;  %v3800_v4 = vsel %vm3720_vm11, %v11851_v30, %v9166_v44  ;;  %v3816_v38 = vmul.f32 %v3799_v14, %v11743_v28  ;;  %v3701_v48 = vadd.f32 %v11794_v6, %v11843_v9  ;;  %vm3708_vm11 = vcmp.gt.f32.partialorder %v11867_v22, 0.0 }
 0x552   :  { %v10204_v62 = vpop.eup %10203  ;;  %v3801_v19 = vsel %vm3721_vm5, %v11854_v29, %v9167_v51  ;;  %v3817_v21 = vmul.f32 %v3800_v4, %v11761_v58  ;;  %3827 = vst [vmem:[#allocation4 + $0x4] sm:$0x77] %v3819_v46  ;;  %v3732_v17 = vmin.f32 %v3700_v53, 0.0  ;;  %vm3709_vm12 = vcmp.gt.f32.partialorder %v11870_v26, 0.0 }
 0x553   :  { %v3818_v18 = vmul.f32 %v3801_v19, %v11764_v50  ;;  %v3825_v42 = vpack.c.bf16 %v3816_v38, %v3815_v11  ;;  %v9154_v30 = vadd.f32 -1.0, %v10204_v62  ;;  %v3733_v25 = vmin.f32 %v3701_v48, 0.0 }
 0x554   :  { %v10206_v61 = vpop.eup %10205  ;;  %v3758_v31 = vmul.f32 1.442695, %v3732_v17  ;;  %vm3716_vm13 = vcmp.gt.f32.partialorder %v3700_v53, 0.0  ;;  %vm3717_vm15 = vcmp.gt.f32.partialorder %v3701_v48, 0.0 }
 0x555   :  { %v3826_v16 = vpack.c.bf16 %v3818_v18, %v3817_v21  ;;  %3833 = vst [vmem:[#allocation4 + $0x34] sm:$0x77] %v3825_v42  ;;  %v3788_v33 = vsel %vm3708_vm11, %v11867_v22, %v9154_v30  ;;  %v3840_v29 = vld [vmem:[#allocation4 + $0x20] sm:$0x77]  ;;  %v9155_v6 = vadd.f32 -1.0, %v10206_v61 }
 0x556   :  { %3862 = vrot.lane.b32.xlu1 %v3840_v29, %s10246_s0  ;;  %v3760_v9 = vmul.f32 1.442695, %v3733_v25  ;;  %v3805_v52 = vmul.f32 %v3788_v33, %v11650_v56  ;;  %10207 = vpow2.f32 %v3758_v31  ;;  %v4311_v44 = vld [vmem:[#allocation4 + $0x20] sm:$0x77] }
 0x557   :  { %3834 = vst [vmem:[#allocation4 + $0x3c] sm:$0x77] %v3826_v16  ;;  %v3789_v2 = vsel %vm3709_vm12, %v11870_v26, %v9155_v6  ;;  %v4782_v62 = vld [vmem:[#allocation4 + $0x20] sm:$0x77] }
 0x558   :  { %v3839_v34 = vld [vmem:[#allocation4 + $0x18] sm:$0x77]  ;;  %10209 = vpow2.f32 %v3760_v9  ;;  %v3806_v10 = vmul.f32 %v3789_v2, %v11656_v60  ;;  %v5253_v16 = vld [vmem:[#allocation4 + $0x20] sm:$0x77] }
 0x559   :  { %3860 = vrot.lane.b32.xlu0 %v3839_v34, %s10246_s0  ;;  %v3836_v22 = vld [vmem:[#allocation4] sm:$0x77]  ;;  %v4310_v59 = vld [vmem:[#allocation4 + $0x18] sm:$0x77] }
 0x55a   :  { %3854 = vrot.lane.b32.xlu2 %v3836_v22, %s10246_s0  ;;  %v3820_v24 = vpack.c.bf16 %v3806_v10, %v3805_v52  ;;  %v4307_v20 = vld [vmem:[#allocation4] sm:$0x77]  ;;  %v4781_v46 = vld [vmem:[#allocation4 + $0x18] sm:$0x77] }
 0x55b   :  { %v4778_v51 = vld [vmem:[#allocation4] sm:$0x77]  ;;  %v5252_v42 = vld [vmem:[#allocation4 + $0x18] sm:$0x77] }
 0x55c   :  { %v10208_v43 = vpop.eup %10207  ;;  %3828 = vst [vmem:[#allocation4 + $0xc] sm:$0x77] %v3820_v24  ;;  %v5249_v21 = vld [vmem:[#allocation4] sm:$0x77]  ;;  %v11977_v6 = vld [vmem:[#allocation4 + $0x18] sm:$0x77] }
 0x55d   :  { %v9162_v23 = vadd.f32 -1.0, %v10208_v43  ;;  %v11969_v33 = vld [vmem:[#allocation4] sm:$0x77]  ;;  %v14897_v52 = vrot.slane %v11977_v6, 5 }
 0x55e   :  { %v10210_v0 = vpop.eup %10209  ;;  %4325 = vrot.lane.b32.xlu1 %v4307_v20, %s10250_s29  ;;  %v3843_v7 = vld [vmem:[#allocation4 + $0x38] sm:$0x77]  ;;  %v3844_v38 = vld [vmem:[#allocation4 + $0x40] sm:$0x7]  ;;  %v14902_v29 = vrot.slane %v11969_v33, 5 }
 0x55f   :  { %v9163_v32 = vadd.f32 -1.0, %v10210_v0  ;;  %v3796_v26 = vsel %vm3716_vm13, %v3700_v53, %v9162_v23  ;;  %v4314_v14 = vld [vmem:[#allocation4 + $0x38] sm:$0x77]  ;;  %v4315_v17 = vld [vmem:[#allocation4 + $0x40] sm:$0x7] }
 0x560   :  { %v3813_v39 = vmul.f32 %v3796_v26, %v11718_v55  ;;  %v5256_v31 = vld [vmem:[#allocation4 + $0x38] sm:$0x77]  ;;  %v11992_v10 = vld [vmem:[#allocation4 + $0x20] sm:$0x77] }
 0x561   :  { %3868 = vrot.lane.b32.xlu0 %v3843_v7, %s10246_s0  ;;  %v3797_v47 = vsel %vm3717_vm15, %v3701_v48, %v9163_v32  ;;  %v4785_v48 = vld [vmem:[#allocation4 + $0x38] sm:$0x77]  ;;  %v4786_v24 = vld [vmem:[#allocation4 + $0x40] sm:$0x7]  ;;  %v14894_v0 = vrot.slane %v11992_v10, 5 }
 0x562   :  { %v3814_v41 = vmul.f32 %v3797_v47, %v11729_v45  ;;  %v5326_v23 = vld [vmem:[#allocation4 + $0x4] sm:$0x77]  ;;  %v12005_v47 = vld [vmem:[#allocation4 + $0x38] sm:$0x77] }
 0x563   :  { %v3837_v36 = vld [vmem:[#allocation4 + $0x8] sm:$0x77]  ;;  %v3838_v63 = vld [vmem:[#allocation4 + $0x10] sm:$0x77]  ;;  %v5342_v7 = vrot.slane %v5326_v23, 5 }
 0x564   :  { %v3824_v40 = vpack.c.bf16 %v3814_v41, %v3813_v39  ;;  %3856 = vrot.lane.b32.xlu2 %v3837_v36, %s10246_s0  ;;  %v4308_v54 = vld [vmem:[#allocation4 + $0x8] sm:$0x77]  ;;  %v4309_v19 = vld [vmem:[#allocation4 + $0x10] sm:$0x77]  ;;  %v12003_v32 = vld [vmem:[#allocation4] sm:$0x77] }
 0x565   :  { %v4779_v4 = vld [vmem:[#allocation4 + $0x8] sm:$0x77]  ;;  %v4780_v61 = vld [vmem:[#allocation4 + $0x10] sm:$0x77]  ;;  %v5350_v26 = vrot.slane %v5342_v7, 4  ;;  %v14890_v41 = vrot.slane %v12003_v32, 6 }
 0x566   :  { %4331 = vrot.lane.b32.xlu1 %v4310_v59, %s10250_s29  ;;  %3832 = vst [vmem:[#allocation4 + $0x2c] sm:$0x77] %v3824_v40  ;;  %v5250_v30 = vld [vmem:[#allocation4 + $0x8] sm:$0x77]  ;;  %v5251_v39 = vld [vmem:[#allocation4 + $0x10] sm:$0x77] }
 0x567   :  { %v11979_v9 = vld [vmem:[#allocation4 + $0x8] sm:$0x77]  ;;  %5374 = vst [vmem:[#allocation5 + $0x240] sm:$0x88] %v5342_v7  ;;  %v14891_v36 = vrot.slane %v12005_v47, 5 }
 0x568   :  { %v14898_v2 = vrot.slane %v11979_v9, 5  ;;  %5382 = vst [vmem:[#allocation5 + $0x280] sm:$0x33] %v5350_v26  ;;  %v12230_v28 = vld [vmem:[#allocation4 + $0x38] sm:$0x77] }
 0x569   :  { %4327 = vrot.lane.b32.xlu0 %v4308_v54, %s10250_s29  ;;  %v4693_v45 = vld [vmem:[#allocation4 + $0x8] sm:$0x77]  ;;  %v4699_v37 = vld [vmem:[#allocation4 + $0x38] sm:$0x77] }
 0x56a   :  { %v12296_v13 = vld [vmem:[#allocation4 + $0x8] sm:$0x77]  ;;  %v12339_v35 = vld [vmem:[#allocation4 + $0x38] sm:$0x77] }
 0x56c   :  { %3858 = vrot.lane.b32.xlu2 %v3838_v63, %s10246_s0  ;;  %v12016_v63 = vld [vmem:[#allocation4 + $0x18] sm:$0x77] }
 0x56d   :  { %v4313_v57 = vld [vmem:[#allocation4 + $0x30] sm:$0x77]  ;;  %v3841_v15 = vld [vmem:[#allocation4 + $0x28] sm:$0x77] }
 0x56e   :  { %4337 = vrot.lane.b32.xlu1 %v4313_v57, %s10250_s29  ;;  %v3842_v11 = vld [vmem:[#allocation4 + $0x30] sm:$0x77]  ;;  %v4312_v18 = vld [vmem:[#allocation4 + $0x28] sm:$0x77] }
 0x56f   :  { %v4784_v53 = vld [vmem:[#allocation4 + $0x30] sm:$0x77]  ;;  %v4783_v34 = vld [vmem:[#allocation4 + $0x28] sm:$0x77] }
 0x570   :  { %v5255_v25 = vld [vmem:[#allocation4 + $0x30] sm:$0x77] }
 0x571   :  { %4333 = vrot.lane.b32.xlu0 %v4311_v44, %s10250_s29  ;;  %v11990_v22 = vld [vmem:[#allocation4 + $0x30] sm:$0x77] }
 0x572   :  { %v14893_v43 = vrot.slane %v11990_v22, 5 }
 0x574   :  { %3864 = vrot.lane.b32.xlu2 %v3841_v15, %s10246_s0  ;;  %v12020_v15 = vld [vmem:[#allocation4 + $0x8] sm:$0x77] }
 0x576   :  { %4796 = vrot.lane.b32.xlu1 %v4778_v51, %s10254_s8  ;;  %v5254_v51 = vld [vmem:[#allocation4 + $0x28] sm:$0x77] }
 0x579   :  { %4339 = vrot.lane.b32.xlu0 %v4314_v14, %s10250_s29  ;;  %v14880_v14 = vrot.slane %v12016_v63, 6 }
 0x57c   :  { %3866 = vrot.lane.b32.xlu2 %v3842_v11, %s10246_s0  ;;  %v5327_v11 = vld [vmem:[#allocation4 + $0xc] sm:$0x77] }
 0x57e   :  { %4802 = vrot.lane.b32.xlu1 %v4781_v46, %s10254_s8  ;;  %v14889_v46 = vrot.slane %v12020_v15, 6 }
 0x581   :  { %4798 = vrot.lane.b32.xlu0 %v4779_v4, %s10254_s8  ;;  %v5343_v4 = vrot.slane %v5327_v11, 5 }
 0x583   :  { %5375 = vst [vmem:[#allocation5 + $0x248] sm:$0x88] %v5343_v4 }
 0x584   :  { %3870 = vrot.lane.b32.xlu2 %v3844_v38, %s10246_s0  ;;  %s15225_s0 = smov 28  }
 0x586   :  { %4808 = vrot.lane.b32.xlu1 %v4784_v53, %s10254_s8 }
 0x589   :  { %4804 = vrot.lane.b32.xlu0 %v4782_v62, %s10254_s8 }
 0x58c   :  { %4329 = vrot.lane.b32.xlu2 %v4309_v19, %s10250_s29  ;;  %v5351_v19 = vrot.slane %v5343_v4, 4 }
 0x58e   :  { %5267 = vrot.lane.b32.xlu1 %v5249_v21, %s10258_s12  ;;  %5383 = vst [vmem:[#allocation5 + $0x288] sm:$0x33] %v5351_v19 }
 0x591   :  { %4810 = vrot.lane.b32.xlu0 %v4785_v48, %s10254_s8  ;;  %v12031_v48 = vld [vmem:[#allocation4 + $0x30] sm:$0x77] }
 0x594   :  { %4335 = vrot.lane.b32.xlu2 %v4312_v18, %s10250_s29 }
 0x596   :  { %5273 = vrot.lane.b32.xlu1 %v5252_v42, %s10258_s12 }
 0x599   :  { %5269 = vrot.lane.b32.xlu0 %v5250_v30, %s10258_s12 }
 0x59c   :  { %4341 = vrot.lane.b32.xlu2 %v4315_v17, %s10250_s29 }
 0x59e   :  { %5279 = vrot.lane.b32.xlu1 %v5255_v25, %s10258_s12  ;;  %v12035_v25 = vld [vmem:[#allocation4 + $0x20] sm:$0x77] }
 0x59f   :  { %v14879_v26 = vrot.slane %v12035_v25, 6 }
 0x5a1   :  { %5275 = vrot.lane.b32.xlu0 %v5253_v16, %s10258_s12  ;;  %v5328_v16 = vld [vmem:[#allocation4 + $0x14] sm:$0x77] }
 0x5a4   :  { %4800 = vrot.lane.b32.xlu2 %v4780_v61, %s10254_s8  ;;  %v5257_v61 = vld [vmem:[#allocation4 + $0x40] sm:$0x7] }
 0x5a6   :  { %3949 = vrot.lane.b32.xlu1 %v14902_v29, %s10247_s26 }
 0x5a9   :  { %5281 = vrot.lane.b32.xlu0 %v5256_v31, %s10258_s12  ;;  %v14877_v31 = vrot.slane %v12031_v48, 6 }
 0x5ac   :  { %4806 = vrot.lane.b32.xlu2 %v4783_v34, %s10254_s8  ;;  %v5344_v34 = vrot.slane %v5328_v16, 5  ;;  %v12065_v16 = vld [vmem:[#allocation4 + $0x28] sm:$0x77] }
 0x5ae   :  { %3955 = vrot.lane.b32.xlu1 %v14897_v52, %s10247_s26  ;;  %5376 = vst [vmem:[#allocation5 + $0x250] sm:$0x88] %v5344_v34 }
 0x5b1   :  { %3951 = vrot.lane.b32.xlu0 %v14898_v2, %s10247_s26  ;;  %v12193_v2 = vld [vmem:[#allocation4 + $0x8] sm:$0x77] }
 0x5b4   :  { %4812 = vrot.lane.b32.xlu2 %v4786_v24, %s10254_s8  ;;  %v3855_v20 = vpop.permute.xlu2 %3854 }
 0x5b5   :  { %v3872_v59 = vrot.slane %v3855_v20, 4 }
 0x5b6   :  { %3961 = vrot.lane.b32.xlu1 %v14893_v43, %s10247_s26 }
 0x5b9   :  { %3957 = vrot.lane.b32.xlu0 %v14894_v0, %s10247_s26  ;;  %v12174_v0 = vld [vmem:[#allocation4 + $0x38] sm:$0x77] }
 0x5bc   :  { %5271 = vrot.lane.b32.xlu2 %v5251_v39, %s10258_s12  ;;  %v5352_v39 = vrot.slane %v5344_v34, 4 }
 0x5be   :  { %4103 = vrot.lane.b32.xlu1 %v14890_v41, %s10248_s27  ;;  %v3857_v40 = vpop.permute.xlu2 %3856  ;;  %5384 = vst [vmem:[#allocation5 + $0x290] sm:$0x33] %v5352_v39 }
 0x5bf   :  { %v3873_v54 = vrot.slane %v3857_v40, 4 }
 0x5c1   :  { %3963 = vrot.lane.b32.xlu0 %v14891_v36, %s10247_s26  ;;  %v3881_v57 = vsel %vm105_vm9, %v3872_v59, %v3873_v54 }
 0x5c2   :  { %v3882_v44 = vsel %vm107_vm10, %v3855_v20, %v3881_v57 }
 0x5c3   :  { %3905 = vst [vmem:[#allocation5] sm:$0x77] %v3882_v44  ;;  %v4221_v44 = vld [vmem:[#allocation4] sm:$0x77] }
 0x5c4   :  { %5277 = vrot.lane.b32.xlu2 %v5254_v51, %s10258_s12  ;;  %v5329_v51 = vld [vmem:[#allocation4 + $0x1c] sm:$0x77] }
 0x5c6   :  { %4109 = vrot.lane.b32.xlu1 %v14880_v14, %s10248_s27  ;;  %v3859_v38 = vpop.permute.xlu2 %3858 }
 0x5c7   :  { %v3874_v53 = vrot.slane %v3859_v38, 4 }
 0x5c8   :  { %v3863_v62 = vpop.permute.xlu1 %3862 }
 0x5c9   :  { %4105 = vrot.lane.b32.xlu0 %v14889_v46, %s10248_s27  ;;  %v3876_v21 = vrot.slane %v3863_v62, 4  ;;  %v3883_v18 = vsel %vm105_vm9, %v3873_v54, %v3874_v53  ;;  %v12050_v54 = vld [vmem:[#allocation4 + $0x10] sm:$0x77] }
 0x5ca   :  { %v3884_v30 = vsel %vm107_vm10, %v3857_v40, %v3883_v18  ;;  %v14878_v19 = vrot.slane %v12050_v54, 5  ;;  %v12057_v18 = vld [vmem:[#allocation4 + $0x38] sm:$0x77] }
 0x5cb   :  { %v3861_v42 = vpop.permute.xlu0 %3860  ;;  %3906 = vst [vmem:[#allocation5 + $0x8] sm:$0x77] %v3884_v30 }
 0x5cc   :  { %v3875_v17 = vrot.slane %v3861_v42, 4  ;;  %5283 = vrot.lane.b32.xlu2 %v5257_v61, %s10258_s12 }
 0x5ce   :  { %v3885_v24 = vsel %vm105_vm9, %v3874_v53, %v3875_v17  ;;  %v3887_v20 = vsel %vm105_vm9, %v3875_v17, %v3876_v21  ;;  %4115 = vrot.lane.b32.xlu1 %v14877_v31, %s10248_s27  ;;  %v3865_v40 = vpop.permute.xlu2 %3864  ;;  %v4222_v31 = vld [vmem:[#allocation4 + $0x8] sm:$0x77] }
 0x5cf   :  { %v3886_v23 = vsel %vm107_vm10, %v3859_v38, %v3885_v24  ;;  %v3888_v7 = vsel %vm107_vm10, %v3861_v42, %v3887_v20  ;;  %v3877_v59 = vrot.slane %v3865_v40, 4  ;;  %v5345_v38 = vrot.slane %v5329_v51, 5  ;;  %v4224_v24 = vld [vmem:[#allocation4 + $0x18] sm:$0x77]  ;;  %v5330_v20 = vld [vmem:[#allocation4 + $0x24] sm:$0x77] }
 0x5d0   :  { %3907 = vst [vmem:[#allocation5 + $0x10] sm:$0x77] %v3886_v23  ;;  %v4326_v57 = vpop.permute.xlu1 %4325  ;;  %v4239_v42 = vrot.slane %v4221_v44, 7  ;;  %v5331_v23 = vld [vmem:[#allocation4 + $0x2c] sm:$0x77]  ;;  %v14881_v44 = vrot.slane %v12065_v16, 5 }
 0x5d1   :  { %3908 = vst [vmem:[#allocation5 + $0x18] sm:$0x77] %v3888_v7  ;;  %4111 = vrot.lane.b32.xlu0 %v14879_v26, %s10248_s27  ;;  %v3889_v11 = vsel %vm105_vm9, %v3876_v21, %v3877_v59  ;;  %v5353_v30 = vrot.slane %v5345_v38, 4  ;;  %v14876_v21 = vrot.slane %v12057_v18, 6  ;;  %v4242_v26 = vrot.slane %v4224_v24, 7 }
 0x5d2   :  { %v3890_v53 = vsel %vm107_vm10, %v3863_v62, %v3889_v11  ;;  %5377 = vst [vmem:[#allocation5 + $0x258] sm:$0x88] %v5345_v38  ;;  %v5346_v11 = vrot.slane %v5330_v20, 5  ;;  %v5332_v38 = vld [vmem:[#allocation4 + $0x34] sm:$0x77]  ;;  %v5347_v14 = vrot.slane %v5331_v23, 5 }
 0x5d3   :  { %v12053_v4 = vpop.permute.xlu0 %3868  ;;  %3909 = vst [vmem:[#allocation5 + $0x20] sm:$0x77] %v3890_v53  ;;  %v4343_v53 = vrot.slane %v4326_v57, 4 }
 0x5d4   :  { %3953 = vrot.lane.b32.xlu2 %v14878_v19, %s10247_s26  ;;  %v3879_v17 = vrot.slane %v12053_v4, 4  ;;  %5385 = vst [vmem:[#allocation5 + $0x298] sm:$0x33] %v5353_v30  ;;  %v5333_v19 = vld [vmem:[#allocation4 + $0x3c] sm:$0x77] }
 0x5d5   :  { %5378 = vst [vmem:[#allocation5 + $0x260] sm:$0x88] %v5346_v11 }
 0x5d6   :  { %4248 = vrot.lane.b32.xlu1 %v4239_v42, %s10249_s28  ;;  %v3867_v62 = vpop.permute.xlu2 %3866  ;;  %5379 = vst [vmem:[#allocation5 + $0x268] sm:$0x88] %v5347_v14 }
 0x5d7   :  { %v3878_v61 = vrot.slane %v3867_v62, 4 }
 0x5d8   :  { %v12070_v34 = vpop.permute.xlu1 %4331 }
 0x5d9   :  { %4117 = vrot.lane.b32.xlu0 %v14876_v21, %s10248_s27  ;;  %v3891_v7 = vsel %vm105_vm9, %v3877_v59, %v3878_v61  ;;  %v3893_v39 = vsel %vm105_vm9, %v3878_v61, %v3879_v17  ;;  %v5354_v59 = vrot.slane %v5346_v11, 4  ;;  %v5348_v61 = vrot.slane %v5332_v38, 5 }
 0x5da   :  { %v3892_v42 = vsel %vm107_vm10, %v3865_v40, %v3891_v7  ;;  %v3894_v30 = vsel %vm107_vm10, %v3867_v62, %v3893_v39  ;;  %v4240_v7 = vrot.slane %v4222_v31, 7  ;;  %v5355_v62 = vrot.slane %v5347_v14, 4 }
 0x5db   :  { %v12075_v51 = vpop.permute.xlu0 %4327  ;;  %3910 = vst [vmem:[#allocation5 + $0x28] sm:$0x77] %v3892_v42  ;;  %v5349_v39 = vrot.slane %v5333_v19, 5  ;;  %v12086_v42 = vld [vmem:[#allocation4 + $0x40] sm:$0x7]  ;;  %v5356_v23 = vrot.slane %v5348_v61, 4 }
 0x5dc   :  { %v4344_v21 = vrot.slane %v12075_v51, 4  ;;  %3911 = vst [vmem:[#allocation5 + $0x30] sm:$0x77] %v3894_v30  ;;  %3959 = vrot.lane.b32.xlu2 %v14881_v44, %s10247_s26  ;;  %v4227_v44 = vld [vmem:[#allocation4 + $0x30] sm:$0x77]  ;;  %v14883_v31 = vrot.slane %v12086_v42, 5 }
 0x5dd   :  { %5386 = vst [vmem:[#allocation5 + $0x2a0] sm:$0x33] %v5354_v59  ;;  %v4346_v19 = vrot.slane %v12070_v34, 4 }
 0x5de   :  { %v4352_v20 = vsel %vm105_vm9, %v4343_v53, %v4344_v21  ;;  %4254 = vrot.lane.b32.xlu1 %v4242_v26, %s10249_s28  ;;  %v3871_v24 = vpop.permute.xlu2 %3870  ;;  %5387 = vst [vmem:[#allocation5 + $0x2a8] sm:$0x33] %v5355_v62  ;;  %v5357_v53 = vrot.slane %v5349_v39, 4  ;;  %v12101_v62 = vld [vmem:[#allocation4 + $0x10] sm:$0x77] }
 0x5df   :  { %v4353_v40 = vsel %vm493_vm14, %v4326_v57, %v4352_v20  ;;  %v3880_v38 = vrot.slane %v3871_v24, 4  ;;  %5388 = vst [vmem:[#allocation5 + $0x2b0] sm:$0x33] %v5356_v23  ;;  %v12104_v23 = vld [vmem:[#allocation4] sm:$0x77] }
 0x5e0   :  { %4376 = vst [vmem:[#allocation5 + $0xc0] sm:$0x77] %v4353_v40  ;;  %v4338_v30 = vpop.permute.xlu1 %4337  ;;  %v4225_v40 = vld [vmem:[#allocation4 + $0x20] sm:$0x77] }
 0x5e1   :  { %4250 = vrot.lane.b32.xlu0 %v4240_v7, %s10249_s28  ;;  %v3895_v57 = vsel %vm105_vm9, %v3879_v17, %v3880_v38  ;;  %v4245_v7 = vrot.slane %v4227_v44, 7  ;;  %5380 = vst [vmem:[#allocation5 + $0x270] sm:$0x88] %v5348_v61  ;;  %v4243_v11 = vrot.slane %v4225_v40, 7 }
 0x5e2   :  { %v3896_v59 = vsel %vm107_vm10, %v12053_v4, %v3895_v57  ;;  %5389 = vst [vmem:[#allocation5 + $0x2b8] sm:$0x33] %v5357_v53  ;;  %vm14999_vm10 = vcmask 900096  }
 0x5e3   :  { %v4334_v26 = vpop.permute.xlu0 %4333  ;;  %3912 = vst [vmem:[#allocation5 + $0x38] sm:$0x77] %v3896_v59  ;;  %v4349_v59 = vrot.slane %v4338_v30, 4  ;;  %vm15001_vm0 = vmmov %vm14999_vm10 }
 0x5e4   :  { %v4347_v20 = vrot.slane %v4334_v26, 4  ;;  %3965 = vrot.lane.b32.xlu2 %v14883_v31, %s10247_s26  ;;  %5381 = vst [vmem:[#allocation5 + $0x278] sm:$0x88] %v5349_v39  ;;  %v14887_v39 = vrot.slane %v12104_v23, 5  ;;  %v12131_v31 = vld [vmem:[#allocation4 + $0x8] sm:$0x77]  ;;  %vm15002_vm1 = vmmov %vm15001_vm0 }
 0x5e5   :  { %vm15005_vm3 = vmmov %vm15001_vm0 }
 0x5e6   :  { %v4358_v17 = vsel %vm105_vm9, %v4346_v19, %v4347_v20  ;;  %4260 = vrot.lane.b32.xlu1 %v4245_v7, %s10249_s28  ;;  %v4330_v4 = vpop.permute.xlu2 %4329  ;;  %vm15006_vm4 = vmmov %vm15001_vm0 }
 0x5e7   :  { %v4359_v14 = vsel %vm493_vm14, %v12070_v34, %v4358_v17  ;;  %v4345_v24 = vrot.slane %v4330_v4, 4  ;;  %v14882_v34 = vrot.slane %v12101_v62, 6  ;;  %v4228_v17 = vld [vmem:[#allocation4 + $0x38] sm:$0x77]  ;;  %vm15009_vm7 = vmmov %vm15001_vm0 }
 0x5e8   :  { %4379 = vst [vmem:[#allocation5 + $0xd8] sm:$0x77] %v4359_v14  ;;  %v4797_v44 = vpop.permute.xlu1 %4796  ;;  %v4246_v14 = vrot.slane %v4228_v17, 7 }
 0x5e9   :  { %4256 = vrot.lane.b32.xlu0 %v4243_v11, %s10249_s28  ;;  %v4354_v61 = vsel %vm105_vm9, %v4344_v21, %v4345_v24  ;;  %v4356_v38 = vsel %vm105_vm9, %v4345_v24, %v4346_v19  ;;  %v12121_v11 = vld [vmem:[#allocation4 + $0x28] sm:$0x77]  ;;  %v4814_v17 = vrot.slane %v4797_v44, 4 }
 0x5ea   :  { %v4355_v53 = vsel %vm493_vm14, %v12075_v51, %v4354_v61  ;;  %v4357_v40 = vsel %vm493_vm14, %v4330_v4, %v4356_v38  ;;  %v12124_v61 = vld [vmem:[#allocation4 + $0x18] sm:$0x77] }
 0x5eb   :  { %v4340_v57 = vpop.permute.xlu0 %4339  ;;  %4377 = vst [vmem:[#allocation5 + $0xc8] sm:$0x77] %v4355_v53 }
 0x5ec   :  { %v4350_v7 = vrot.slane %v4340_v57, 4  ;;  %4378 = vst [vmem:[#allocation5 + $0xd0] sm:$0x77] %v4357_v40  ;;  %4107 = vrot.lane.b32.xlu2 %v14882_v34, %s10248_s27 }
 0x5ee   :  { %v4364_v21 = vsel %vm105_vm9, %v4349_v59, %v4350_v7  ;;  %4420 = vrot.lane.b32.xlu1 %v14887_v39, %s10251_s30  ;;  %v4336_v51 = vpop.permute.xlu2 %4335 }
 0x5ef   :  { %v4365_v19 = vsel %vm493_vm14, %v4338_v30, %v4364_v21  ;;  %v4348_v4 = vrot.slane %v4336_v51, 4  ;;  %v14884_v30 = vrot.slane %v12121_v11, 6 }
 0x5f0   :  { %4382 = vst [vmem:[#allocation5 + $0xf0] sm:$0x77] %v4365_v19  ;;  %v4803_v24 = vpop.permute.xlu1 %4802 }
 0x5f1   :  { %4262 = vrot.lane.b32.xlu0 %v4246_v14, %s10249_s28  ;;  %v4360_v38 = vsel %vm105_vm9, %v4347_v20, %v4348_v4  ;;  %v4362_v53 = vsel %vm105_vm9, %v4348_v4, %v4349_v59  ;;  %v14885_v14 = vrot.slane %v12124_v61, 5  ;;  %v14886_v4 = vrot.slane %v12131_v31, 5 }
 0x5f2   :  { %v4361_v21 = vsel %vm493_vm14, %v4334_v26, %v4360_v38  ;;  %v4363_v19 = vsel %vm493_vm14, %v4336_v51, %v4362_v53  ;;  %v12146_v38 = vld [vmem:[#allocation4 + $0x40] sm:$0x7] }
 0x5f3   :  { %v4799_v40 = vpop.permute.xlu0 %4798  ;;  %4380 = vst [vmem:[#allocation5 + $0xe0] sm:$0x77] %v4361_v21  ;;  %v12148_v21 = vld [vmem:[#allocation4 + $0x30] sm:$0x77] }
 0x5f4   :  { %v4815_v34 = vrot.slane %v4799_v40, 4  ;;  %4381 = vst [vmem:[#allocation5 + $0xe8] sm:$0x77] %v4363_v19  ;;  %4113 = vrot.lane.b32.xlu2 %v14884_v30, %s10248_s27  ;;  %v4817_v19 = vrot.slane %v4803_v24, 4  ;;  %v14888_v30 = vrot.slane %v12146_v38, 6 }
 0x5f6   :  { %v4823_v20 = vsel %vm105_vm9, %v4814_v17, %v4815_v34  ;;  %4426 = vrot.lane.b32.xlu1 %v14885_v14, %s10251_s30  ;;  %v4342_v26 = vpop.permute.xlu2 %4341  ;;  %v12153_v14 = vld [vmem:[#allocation4 + $0x20] sm:$0x77] }
 0x5f7   :  { %v4824_v59 = vsel %vm879_vm2, %v4797_v44, %v4823_v20  ;;  %v4351_v51 = vrot.slane %v4342_v26, 4  ;;  %v14892_v26 = vrot.slane %v12148_v21, 5 }
 0x5f8   :  { %4847 = vst [vmem:[#allocation5 + $0x180] sm:$0x77] %v4824_v59  ;;  %v4809_v53 = vpop.permute.xlu1 %4808 }
 0x5f9   :  { %4422 = vrot.lane.b32.xlu0 %v14886_v4, %s10251_s30  ;;  %v4366_v44 = vsel %vm105_vm9, %v4350_v7, %v4351_v51  ;;  %v14895_v51 = vrot.slane %v12153_v14, 5  ;;  %v4820_v36 = vrot.slane %v4809_v53, 4 }
 0x5fa   :  { %v4367_v20 = vsel %vm493_vm14, %v4340_v57, %v4366_v44  ;;  %v4223_v44 = vld [vmem:[#allocation4 + $0x10] sm:$0x77]  ;;  %vm15000_vm14 = vmmov %vm14999_vm10 }
 0x5fb   :  { %v4805_v17 = vpop.permute.xlu0 %4804  ;;  %4383 = vst [vmem:[#allocation5 + $0xf8] sm:$0x77] %v4367_v20 }
 0x5fc   :  { %v4818_v59 = vrot.slane %v4805_v17, 4  ;;  %4119 = vrot.lane.b32.xlu2 %v14888_v30, %s10248_s27  ;;  %v12168_v30 = vld [vmem:[#allocation4] sm:$0x77] }
 0x5fe   :  { %v4829_v4 = vsel %vm105_vm9, %v4817_v19, %v4818_v59  ;;  %4432 = vrot.lane.b32.xlu1 %v14892_v26, %s10251_s30  ;;  %v4801_v57 = vpop.permute.xlu2 %4800 }
 0x5ff   :  { %v4830_v7 = vsel %vm879_vm2, %v4803_v24, %v4829_v4  ;;  %v4816_v20 = vrot.slane %v4801_v57, 4  ;;  %v4241_v4 = vrot.slane %v4223_v44, 7  ;;  %v14899_v44 = vrot.slane %v12174_v0, 5 }
 0x600   :  { %4850 = vst [vmem:[#allocation5 + $0x198] sm:$0x77] %v4830_v7  ;;  %v5268_v39 = vpop.permute.xlu1 %5267 }
 0x601   :  { %4428 = vrot.lane.b32.xlu0 %v14895_v51, %s10251_s30  ;;  %v4825_v46 = vsel %vm105_vm9, %v4815_v34, %v4816_v20  ;;  %v4827_v24 = vsel %vm105_vm9, %v4816_v20, %v4817_v19  ;;  %v14896_v51 = vrot.slane %v12168_v30, 6  ;;  %v12187_v20 = vld [vmem:[#allocation4 + $0x18] sm:$0x77] }
 0x602   :  { %v4826_v26 = vsel %vm879_vm2, %v4799_v40, %v4825_v46  ;;  %v4828_v7 = vsel %vm879_vm2, %v4801_v57, %v4827_v24  ;;  %v4226_v40 = vld [vmem:[#allocation4 + $0x28] sm:$0x77] }
 0x603   :  { %v4811_v41 = vpop.permute.xlu0 %4810  ;;  %4848 = vst [vmem:[#allocation5 + $0x188] sm:$0x77] %v4826_v26 }
 0x604   :  { %v4821_v43 = vrot.slane %v4811_v41, 4  ;;  %4849 = vst [vmem:[#allocation5 + $0x190] sm:$0x77] %v4828_v7  ;;  %4252 = vrot.lane.b32.xlu2 %v4241_v4, %s10249_s28  ;;  %v4244_v4 = vrot.slane %v4226_v40, 7  ;;  %v14901_v40 = vrot.slane %v12193_v2, 6 }
 0x606   :  { %v4835_v34 = vsel %vm105_vm9, %v4820_v36, %v4821_v43  ;;  %4574 = vrot.lane.b32.xlu1 %v14896_v51, %s10252_s6  ;;  %v4807_v46 = vpop.permute.xlu2 %4806 }
 0x607   :  { %v4836_v19 = vsel %vm879_vm2, %v4809_v53, %v4835_v34  ;;  %v4819_v57 = vrot.slane %v4807_v46, 4  ;;  %v5285_v34 = vrot.slane %v5268_v39, 4 }
 0x608   :  { %4853 = vst [vmem:[#allocation5 + $0x1b0] sm:$0x77] %v4836_v19  ;;  %v5274_v26 = vpop.permute.xlu1 %5273 }
 0x609   :  { %4434 = vrot.lane.b32.xlu0 %v14899_v44, %s10251_s30  ;;  %v4831_v24 = vsel %vm105_vm9, %v4818_v59, %v4819_v57  ;;  %v4833_v53 = vsel %vm105_vm9, %v4819_v57, %v4820_v36  ;;  %v14900_v44 = vrot.slane %v12187_v20, 6 }
 0x60a   :  { %v4832_v51 = vsel %vm879_vm2, %v4805_v17, %v4831_v24  ;;  %v4834_v19 = vsel %vm879_vm2, %v4807_v46, %v4833_v53  ;;  %v12206_v24 = vld [vmem:[#allocation4 + $0x30] sm:$0x77] }
 0x60b   :  { %v5270_v7 = vpop.permute.xlu0 %5269  ;;  %4851 = vst [vmem:[#allocation5 + $0x1a0] sm:$0x77] %v4832_v51  ;;  %v4229_v51 = vld [vmem:[#allocation4 + $0x40] sm:$0x7] }
 0x60c   :  { %v5286_v52 = vrot.slane %v5270_v7, 4  ;;  %4852 = vst [vmem:[#allocation5 + $0x1a8] sm:$0x77] %v4834_v19  ;;  %4258 = vrot.lane.b32.xlu2 %v4244_v4, %s10249_s28  ;;  %v5288_v4 = vrot.slane %v5274_v26, 4  ;;  %v4247_v19 = vrot.slane %v4229_v51, 7 }
 0x60e   :  { %v5294_v59 = vsel %vm105_vm9, %v5285_v34, %v5286_v52  ;;  %4580 = vrot.lane.b32.xlu1 %v14900_v44, %s10252_s6  ;;  %v4813_v17 = vpop.permute.xlu2 %4812  ;;  %v12210_v44 = vld [vmem:[#allocation4 + $0x20] sm:$0x77] }
 0x60f   :  { %v5295_v36 = vsel %vm1265_vm6, %v5268_v39, %v5294_v59  ;;  %v4822_v46 = vrot.slane %v4813_v17, 4  ;;  %v14909_v29 = vrot.slane %v12210_v44, 6 }
 0x610   :  { %5318 = vst [vmem:[#allocation5 + $0x240] sm:$0x77] %v5295_v36  ;;  %v5280_v57 = vpop.permute.xlu1 %5279  ;;  %v14904_v36 = vrot.slane %v12206_v24, 6 }
 0x611   :  { %4576 = vrot.lane.b32.xlu0 %v14901_v40, %s10252_s6  ;;  %v4837_v53 = vsel %vm105_vm9, %v4821_v43, %v4822_v46  ;;  %v5291_v50 = vrot.slane %v5280_v57, 4 }
 0x612   :  { %v4838_v34 = vsel %vm879_vm2, %v4811_v41, %v4837_v53  ;;  %v12220_v41 = vld [vmem:[#allocation4 + $0x10] sm:$0x77]  ;;  %v4692_v53 = vld [vmem:[#allocation4] sm:$0x77]  ;;  %vm15003_vm2 = vmmov %vm15001_vm0 }
 0x613   :  { %v5276_v39 = vpop.permute.xlu0 %5275  ;;  %4854 = vst [vmem:[#allocation5 + $0x1b8] sm:$0x77] %v4838_v34  ;;  %v4710_v8 = vrot.slane %v4692_v53, 7  ;;  %v4695_v53 = vld [vmem:[#allocation4 + $0x18] sm:$0x77] }
 0x614   :  { %v5289_v59 = vrot.slane %v5276_v39, 4  ;;  %4264 = vrot.lane.b32.xlu2 %v4247_v19, %s10249_s28  ;;  %v14908_v19 = vrot.slane %v12220_v41, 5  ;;  %v4713_v55 = vrot.slane %v4695_v53, 7 }
 0x616   :  { %v5300_v17 = vsel %vm105_vm9, %v5288_v4, %v5289_v59  ;;  %4586 = vrot.lane.b32.xlu1 %v14904_v36, %s10252_s6  ;;  %v5272_v43 = vpop.permute.xlu2 %5271 }
 0x617   :  { %v5301_v40 = vsel %vm1265_vm6, %v5274_v26, %v5300_v17  ;;  %v5287_v46 = vrot.slane %v5272_v43, 4 }
 0x618   :  { %5321 = vst [vmem:[#allocation5 + $0x258] sm:$0x77] %v5301_v40  ;;  %v3950_v51 = vpop.permute.xlu1 %3949 }
 0x619   :  { %4582 = vrot.lane.b32.xlu0 %v14909_v29, %s10252_s6  ;;  %v5296_v34 = vsel %vm105_vm9, %v5286_v52, %v5287_v46  ;;  %v5298_v26 = vsel %vm105_vm9, %v5287_v46, %v5288_v4  ;;  %v14914_v46 = vrot.slane %v12230_v28, 6 }
 0x61a   :  { %v5297_v40 = vsel %vm1265_vm6, %v5270_v7, %v5296_v34  ;;  %v5299_v36 = vsel %vm1265_vm6, %v5272_v43, %v5298_v26  ;;  %v12239_v43 = vld [vmem:[#allocation4 + $0x28] sm:$0x77] }
 0x61b   :  { %v5282_v17 = vpop.permute.xlu0 %5281  ;;  %5319 = vst [vmem:[#allocation5 + $0x248] sm:$0x77] %v5297_v40 }
 0x61c   :  { %v5292_v58 = vrot.slane %v5282_v17, 4  ;;  %5320 = vst [vmem:[#allocation5 + $0x250] sm:$0x77] %v5299_v36  ;;  %4424 = vrot.lane.b32.xlu2 %v14908_v19, %s10251_s30  ;;  %v3985_v19 = vrot.slane %v3950_v51, 4 }
 0x61e   :  { %v5306_v52 = vsel %vm105_vm9, %v5291_v50, %v5292_v58  ;;  %4719 = vrot.lane.b32.xlu1 %v4710_v8, %s10253_s7  ;;  %v5278_v7 = vpop.permute.xlu2 %5277 }
 0x61f   :  { %v5307_v4 = vsel %vm1265_vm6, %v5280_v57, %v5306_v52  ;;  %v5290_v34 = vrot.slane %v5278_v7, 4  ;;  %v14912_v57 = vrot.slane %v12239_v43, 5 }
 0x620   :  { %5324 = vst [vmem:[#allocation5 + $0x270] sm:$0x77] %v5307_v4  ;;  %v3956_v36 = vpop.permute.xlu1 %3955 }
 0x621   :  { %4588 = vrot.lane.b32.xlu0 %v14914_v46, %s10252_s6  ;;  %v5302_v26 = vsel %vm105_vm9, %v5289_v59, %v5290_v34  ;;  %v5304_v40 = vsel %vm105_vm9, %v5290_v34, %v5291_v50  ;;  %v4711_v34 = vrot.slane %v4693_v45, 7 }
 0x622   :  { %v5303_v8 = vsel %vm1265_vm6, %v5276_v39, %v5302_v26  ;;  %v5305_v4 = vsel %vm1265_vm6, %v5278_v7, %v5304_v40  ;;  %v12256_v7 = vld [vmem:[#allocation4 + $0x40] sm:$0x7]  ;;  %v4698_v40 = vld [vmem:[#allocation4 + $0x30] sm:$0x77] }
 0x623   :  { %v3952_v52 = vpop.permute.xlu0 %3951  ;;  %5322 = vst [vmem:[#allocation5 + $0x260] sm:$0x77] %v5303_v8 }
 0x624   :  { %v3986_v29 = vrot.slane %v3952_v52, 4  ;;  %5323 = vst [vmem:[#allocation5 + $0x268] sm:$0x77] %v5305_v4  ;;  %4430 = vrot.lane.b32.xlu2 %v14912_v57, %s10251_s30  ;;  %v3988_v57 = vrot.slane %v3956_v36, 4 }
 0x626   :  { %v4003_v59 = vsel %vm105_vm9, %v3985_v19, %v3986_v29  ;;  %4725 = vrot.lane.b32.xlu1 %v4713_v55, %s10253_s7  ;;  %v5284_v39 = vpop.permute.xlu2 %5283  ;;  %v4716_v55 = vrot.slane %v4698_v40, 7  ;;  %v12270_v40 = vld [vmem:[#allocation4] sm:$0x77] }
 0x627   :  { %v4004_v50 = vsel %vm14999_vm10, %v3950_v51, %v4003_v59  ;;  %v5293_v26 = vrot.slane %v5284_v39, 4  ;;  %v14913_v51 = vrot.slane %v12256_v7, 5  ;;  %v4696_v59 = vld [vmem:[#allocation4 + $0x20] sm:$0x77]  ;;  %vm15019_vm10 = vcmask 826368  }
 0x628   :  { %4051 = vst [vmem:[#allocation5] sm:$0x88] %v4004_v50  ;;  %v3962_v53 = vpop.permute.xlu1 %3961  ;;  %v4714_v39 = vrot.slane %v4696_v59, 7 }
 0x629   :  { %4721 = vrot.lane.b32.xlu0 %v4711_v34, %s10253_s7  ;;  %v5308_v8 = vsel %vm105_vm9, %v5292_v58, %v5293_v26  ;;  %v3991_v59 = vrot.slane %v3962_v53, 4 }
 0x62a   :  { %v5309_v19 = vsel %vm1265_vm6, %v5282_v17, %v5308_v8  ;;  %v12267_v17 = vld [vmem:[#allocation4 + $0x10] sm:$0x77]  ;;  %vm15007_vm6 = vcmask 891904  }
 0x62b   :  { %v3958_v4 = vpop.permute.xlu0 %3957  ;;  %5325 = vst [vmem:[#allocation5 + $0x278] sm:$0x77] %v5309_v19  ;;  %v14916_v46 = vrot.slane %v12267_v17, 6  ;;  %vm15010_vm8 = vmmov %vm15007_vm6 }
 0x62c   :  { %v3989_v45 = vrot.slane %v3958_v4, 4  ;;  %4436 = vrot.lane.b32.xlu2 %v14913_v51, %s10251_s30  ;;  %vm15012_vm5 = vmmov %vm15007_vm6 }
 0x62d   :  { %vm15013_vm11 = vmmov %vm15012_vm5 }
 0x62e   :  { %v4009_v50 = vsel %vm105_vm9, %v3988_v57, %v3989_v45  ;;  %4731 = vrot.lane.b32.xlu1 %v4716_v55, %s10253_s7  ;;  %v3954_v58 = vpop.permute.xlu2 %3953  ;;  %vm15014_vm12 = vmmov %vm15012_vm5 }
 0x62f   :  { %v4010_v34 = vsel %vm15000_vm14, %v3956_v36, %v4009_v50  ;;  %v3987_v26 = vrot.slane %v3954_v58, 4  ;;  %vm15016_vm13 = vmmov %vm15012_vm5 }
 0x630   :  { %4054 = vst [vmem:[#allocation5 + $0x18] sm:$0x88] %v4010_v34  ;;  %v4104_v8 = vpop.permute.xlu1 %4103  ;;  %vm15017_vm15 = vmmov %vm15012_vm5 }
 0x631   :  { %4727 = vrot.lane.b32.xlu0 %v4714_v39, %s10253_s7  ;;  %v4005_v19 = vsel %vm105_vm9, %v3986_v29, %v3987_v26  ;;  %v4007_v51 = vsel %vm105_vm9, %v3987_v26, %v3988_v57  ;;  %v14917_v39 = vrot.slane %v12270_v40, 5  ;;  %v4717_v26 = vrot.slane %v4699_v37, 7  ;;  %vm15021_vm14 = vmmov %vm15012_vm5 }
 0x632   :  { %v4006_v55 = vsel %vm15001_vm0, %v3952_v52, %v4005_v19  ;;  %v4008_v50 = vsel %vm15002_vm1, %v3954_v58, %v4007_v51  ;;  %v12286_v51 = vld [vmem:[#allocation4 + $0x28] sm:$0x77]  ;;  %vm15023_vm0 = vmmov %vm15019_vm10 }
 0x633   :  { %v3964_v36 = vpop.permute.xlu0 %3963  ;;  %4052 = vst [vmem:[#allocation5 + $0x8] sm:$0x88] %v4006_v55  ;;  %v12289_v55 = vld [vmem:[#allocation4 + $0x18] sm:$0x77]  ;;  %v14920_v37 = vrot.slane %v12286_v51, 6  ;;  %vm15025_vm1 = vmmov %vm15023_vm0 }
 0x634   :  { %v3992_v34 = vrot.slane %v3964_v36, 4  ;;  %4053 = vst [vmem:[#allocation5 + $0x10] sm:$0x88] %v4008_v50  ;;  %4578 = vrot.lane.b32.xlu2 %v14916_v46, %s10252_s6 }
 0x635   :  { %15004 = vst [vmem:[#allocation22_spill] sm:$0xff] %v12286_v51 }
 0x636   :  { %v4015_v29 = vsel %vm105_vm9, %v3991_v59, %v3992_v34  ;;  %4891 = vrot.lane.b32.xlu1 %v14917_v39, %s10255_s9  ;;  %v3960_v52 = vpop.permute.xlu2 %3959 }
 0x637   :  { %v4016_v57 = vsel %vm15003_vm2, %v3962_v53, %v4015_v29  ;;  %v3990_v58 = vrot.slane %v3960_v52, 4  ;;  %v4139_v29 = vrot.slane %v4104_v8, 4  ;;  %vm15026_vm2 = vmmov %vm15023_vm0 }
 0x638   :  { %4057 = vst [vmem:[#allocation5 + $0x30] sm:$0x88] %v4016_v57  ;;  %v4110_v19 = vpop.permute.xlu1 %4109 }
 0x639   :  { %4733 = vrot.lane.b32.xlu0 %v4717_v26, %s10253_s7  ;;  %v4011_v50 = vsel %vm105_vm9, %v3989_v45, %v3990_v58  ;;  %v4013_v46 = vsel %vm105_vm9, %v3990_v58, %v3991_v59  ;;  %v14921_v26 = vrot.slane %v12289_v55, 5  ;;  %v14922_v58 = vrot.slane %v12296_v13, 5 }
 0x63a   :  { %v4012_v39 = vsel %vm15005_vm3, %v3958_v4, %v4011_v50  ;;  %v4014_v57 = vsel %vm15006_vm4, %v3960_v52, %v4013_v46  ;;  %v12313_v50 = vld [vmem:[#allocation4 + $0x30] sm:$0x77]  ;;  %vm15028_vm3 = vmmov %vm15023_vm0 }
 0x63b   :  { %v4106_v53 = vpop.permute.xlu0 %4105  ;;  %4055 = vst [vmem:[#allocation5 + $0x20] sm:$0x88] %v4012_v39  ;;  %v12311_v39 = vld [vmem:[#allocation4 + $0x40] sm:$0x7]  ;;  %vm15030_vm4 = vmmov %vm15023_vm0 }
 0x63c   :  { %v4140_v27 = vrot.slane %v4106_v53, 4  ;;  %4056 = vst [vmem:[#allocation5 + $0x28] sm:$0x88] %v4014_v57  ;;  %4584 = vrot.lane.b32.xlu2 %v14920_v37, %s10252_s6  ;;  %v4142_v57 = vrot.slane %v4110_v19, 4  ;;  %v14924_v37 = vrot.slane %v12311_v39, 6 }
 0x63d   :  { %15008 = vst [vmem:[#allocation23_spill] sm:$0xff] %v12311_v39  ;;  %v12358_v39 = vld [vmem:[#allocation4 + $0x8] sm:$0x77] }
 0x63e   :  { %v4157_v45 = vsel %vm105_vm9, %v4139_v29, %v4140_v27  ;;  %4897 = vrot.lane.b32.xlu1 %v14921_v26, %s10255_s9  ;;  %v3966_v46 = vpop.permute.xlu2 %3965  ;;  %v12318_v26 = vld [vmem:[#allocation4 + $0x20] sm:$0x77]  ;;  %15018 = vst [vmem:[#allocation26_spill] sm:$0xff] %v12358_v39 }
 0x63f   :  { %v4158_v59 = vsel %vm15007_vm6, %v4104_v8, %v4157_v45  ;;  %v3993_v4 = vrot.slane %v3966_v46, 4  ;;  %v14928_v46 = vrot.slane %v12313_v50, 5  ;;  %vm15031_vm6 = vmmov %vm15023_vm0 }
 0x640   :  { %4205 = vst [vmem:[#allocation5 + $0x40] sm:$0xcc] %v4158_v59  ;;  %v4116_v52 = vpop.permute.xlu1 %4115 }
 0x641   :  { %4893 = vrot.lane.b32.xlu0 %v14922_v58, %s10255_s9  ;;  %v4017_v8 = vsel %vm105_vm9, %v3992_v34, %v3993_v4  ;;  %v14931_v4 = vrot.slane %v12318_v26, 5  ;;  %v4145_v60 = vrot.slane %v4116_v52, 4 }
 0x642   :  { %v4018_v45 = vsel %vm15009_vm7, %v3964_v36, %v4017_v8  ;;  %v4694_v8 = vld [vmem:[#allocation4 + $0x10] sm:$0x77]  ;;  %vm15032_vm7 = vcmask 809984  }
 0x643   :  { %v4112_v29 = vpop.permute.xlu0 %4111  ;;  %4058 = vst [vmem:[#allocation5 + $0x38] sm:$0x88] %v4018_v45 }
 0x644   :  { %v4143_v59 = vrot.slane %v4112_v29, 4  ;;  %4590 = vrot.lane.b32.xlu2 %v14924_v37, %s10252_s6  ;;  %v12333_v37 = vld [vmem:[#allocation4] sm:$0x77] }
 0x645   :  { %15011 = vst [vmem:[#allocation24_spill] sm:$0xff] %v12333_v37 }
 0x646   :  { %v4163_v58 = vsel %vm105_vm9, %v4142_v57, %v4143_v59  ;;  %4903 = vrot.lane.b32.xlu1 %v14928_v46, %s10255_s9  ;;  %v4108_v36 = vpop.permute.xlu2 %4107 }
 0x647   :  { %v4164_v34 = vsel %vm15010_vm8, %v4110_v19, %v4163_v58  ;;  %v4141_v45 = vrot.slane %v4108_v36, 4  ;;  %v4712_v58 = vrot.slane %v4694_v8, 7  ;;  %v14935_v8 = vrot.slane %v12339_v35, 5  ;;  %vm15034_vm8 = vmmov %vm15023_vm0 }
 0x648   :  { %4208 = vst [vmem:[#allocation5 + $0x58] sm:$0xcc] %v4164_v34  ;;  %v4249_v5 = vpop.permute.xlu1 %4248 }
 0x649   :  { %4899 = vrot.lane.b32.xlu0 %v14931_v4, %s10255_s9  ;;  %v4159_v12 = vsel %vm105_vm9, %v4140_v27, %v4141_v45  ;;  %v4161_v19 = vsel %vm105_vm9, %v4141_v45, %v4142_v57  ;;  %v14932_v4 = vrot.slane %v12333_v37, 6  ;;  %v12352_v45 = vld [vmem:[#allocation4 + $0x18] sm:$0x77] }
 0x64a   :  { %v4160_v46 = vsel %vm15012_vm5, %v4106_v53, %v4159_v12  ;;  %v4162_v34 = vsel %vm15013_vm11, %v4108_v36, %v4161_v19  ;;  %v4697_v53 = vld [vmem:[#allocation4 + $0x28] sm:$0x77]  ;;  %15015 = vst [vmem:[#allocation25_spill] sm:$0xff] %v12352_v45  ;;  %v12395_v37 = vld [vmem:[#allocation4 + $0x38] sm:$0x77]  ;;  %vm15035_vm5 = vmmov %vm15032_vm7 }
 0x64b   :  { %v4118_v49 = vpop.permute.xlu0 %4117  ;;  %4206 = vst [vmem:[#allocation5 + $0x48] sm:$0xcc] %v4160_v46  ;;  %vm15038_vm11 = vmmov %vm15035_vm5 }
 0x64c   :  { %v4146_v56 = vrot.slane %v4118_v49, 4  ;;  %4207 = vst [vmem:[#allocation5 + $0x50] sm:$0xcc] %v4162_v34  ;;  %4723 = vrot.lane.b32.xlu2 %v4712_v58, %s10253_s7  ;;  %v4715_v58 = vrot.slane %v4697_v53, 7  ;;  %v14937_v53 = vrot.slane %v12358_v39, 6 }
 0x64d   :  { %15027 = vst [vmem:[#allocation30_spill] sm:$0xff] %v12395_v37 }
 0x64e   :  { %v4169_v27 = vsel %vm105_vm9, %v4145_v60, %v4146_v56  ;;  %5045 = vrot.lane.b32.xlu1 %v14932_v4, %s10256_s10  ;;  %v4114_v12 = vpop.permute.xlu2 %4113 }
 0x64f   :  { %v4170_v57 = vsel %vm15014_vm12, %v4116_v52, %v4169_v27  ;;  %v4144_v36 = vrot.slane %v4114_v12, 4  ;;  %v4266_v27 = vrot.slane %v4249_v5, 4  ;;  %vm15039_vm12 = vmmov %vm15035_vm5 }
 0x650   :  { %4211 = vst [vmem:[#allocation5 + $0x70] sm:$0xcc] %v4170_v57  ;;  %v4255_v46 = vpop.permute.xlu1 %4254 }
 0x651   :  { %4905 = vrot.lane.b32.xlu0 %v14935_v8, %s10255_s9  ;;  %v4165_v19 = vsel %vm105_vm9, %v4143_v59, %v4144_v36  ;;  %v4167_v52 = vsel %vm105_vm9, %v4144_v36, %v4145_v60  ;;  %v14936_v8 = vrot.slane %v12352_v45, 6 }
 0x652   :  { %v4166_v4 = vsel %vm15016_vm13, %v4112_v29, %v4165_v19  ;;  %v4168_v57 = vsel %vm15017_vm15, %v4114_v12, %v4167_v52  ;;  %v12371_v19 = vld [vmem:[#allocation4 + $0x30] sm:$0x77]  ;;  %vm15040_vm13 = vmmov %vm15035_vm5 }
 0x653   :  { %v4251_v34 = vpop.permute.xlu0 %4250  ;;  %4209 = vst [vmem:[#allocation5 + $0x60] sm:$0xcc] %v4166_v4  ;;  %v4700_v4 = vld [vmem:[#allocation4 + $0x40] sm:$0x7]  ;;  %vm15043_vm15 = vmmov %vm15035_vm5 }
 0x654   :  { %v4267_v1 = vrot.slane %v4251_v34, 4  ;;  %4210 = vst [vmem:[#allocation5 + $0x68] sm:$0xcc] %v4168_v57  ;;  %4729 = vrot.lane.b32.xlu2 %v4715_v58, %s10253_s7  ;;  %v4269_v58 = vrot.slane %v4255_v46, 4  ;;  %v4718_v57 = vrot.slane %v4700_v4, 7 }
 0x655   :  { %15020 = vst [vmem:[#allocation27_spill] sm:$0xff] %v12371_v19 }
 0x656   :  { %v4275_v59 = vsel %vm105_vm9, %v4266_v27, %v4267_v1  ;;  %5051 = vrot.lane.b32.xlu1 %v14936_v8, %s10256_s10  ;;  %v4120_v29 = vpop.permute.xlu2 %4119  ;;  %v12375_v8 = vld [vmem:[#allocation4 + $0x20] sm:$0x77] }
 0x657   :  { %v4276_v60 = vsel %vm15019_vm10, %v4249_v5, %v4275_v59  ;;  %v4147_v12 = vrot.slane %v4120_v29, 4  ;;  %15022 = vst [vmem:[#allocation28_spill] sm:$0xff] %v12375_v8  ;;  %v14945_v45 = vrot.slane %v12375_v8, 6  ;;  %vm15044_vm10 = vmmov %vm15035_vm5 }
 0x658   :  { %4299 = vst [vmem:[#allocation5 + $0x80] sm:$0xee] %v4276_v60  ;;  %v4261_v36 = vpop.permute.xlu1 %4260  ;;  %v14940_v60 = vrot.slane %v12371_v19, 6 }
 0x659   :  { %5047 = vrot.lane.b32.xlu0 %v14937_v53, %s10256_s10  ;;  %v4171_v52 = vsel %vm105_vm9, %v4146_v56, %v4147_v12  ;;  %v4272_v19 = vrot.slane %v4261_v36, 4 }
 0x65a   :  { %v4172_v27 = vsel %vm15021_vm14, %v4118_v49, %v4171_v52  ;;  %v12385_v49 = vld [vmem:[#allocation4 + $0x10] sm:$0x77]  ;;  %v5163_v52 = vld [vmem:[#allocation4] sm:$0x77]  ;;  %vm15046_vm14 = vcmask 744448  }
 0x65b   :  { %v4257_v5 = vpop.permute.xlu0 %4256  ;;  %4212 = vst [vmem:[#allocation5 + $0x78] sm:$0xcc] %v4172_v27  ;;  %v5181_v8 = vrot.slane %v5163_v52, 7  ;;  %v5166_v52 = vld [vmem:[#allocation4 + $0x18] sm:$0x77] }
 0x65c   :  { %v4270_v59 = vrot.slane %v4257_v5, 4  ;;  %4735 = vrot.lane.b32.xlu2 %v4718_v57, %s10253_s7  ;;  %15024 = vst [vmem:[#allocation29_spill] sm:$0xff] %v12385_v49  ;;  %v14944_v57 = vrot.slane %v12385_v49, 5  ;;  %v5164_v49 = vld [vmem:[#allocation4 + $0x8] sm:$0x77]  ;;  %v5184_v51 = vrot.slane %v5166_v52, 7 }
 0x65e   :  { %v4281_v29 = vsel %vm105_vm9, %v4269_v58, %v4270_v59  ;;  %5057 = vrot.lane.b32.xlu1 %v14940_v60, %s10256_s10  ;;  %v4253_v56 = vpop.permute.xlu2 %4252 }
 0x65f   :  { %v4282_v53 = vsel %vm15023_vm0, %v4255_v46, %v4281_v29  ;;  %v4268_v12 = vrot.slane %v4253_v56, 4  ;;  %vm15049_vm0 = vmmov %vm15035_vm5 }
 0x660   :  { %4302 = vst [vmem:[#allocation5 + $0x98] sm:$0xee] %v4282_v53  ;;  %v4421_v4 = vpop.permute.xlu1 %4420 }
 0x661   :  { %5053 = vrot.lane.b32.xlu0 %v14945_v45, %s10256_s10  ;;  %v4277_v27 = vsel %vm105_vm9, %v4267_v1, %v4268_v12  ;;  %v4279_v46 = vsel %vm105_vm9, %v4268_v12, %v4269_v58  ;;  %v14950_v12 = vrot.slane %v12395_v37, 6 }
 0x662   :  { %v4278_v53 = vsel %vm15025_vm1, %v4251_v34, %v4277_v27  ;;  %v4280_v60 = vsel %vm15026_vm2, %v4253_v56, %v4279_v46  ;;  %v12404_v56 = vld [vmem:[#allocation4 + $0x28] sm:$0x77]  ;;  %vm15051_vm1 = vmmov %vm15046_vm14 }
 0x663   :  { %v4263_v29 = vpop.permute.xlu0 %4262  ;;  %4300 = vst [vmem:[#allocation5 + $0x88] sm:$0xee] %v4278_v53  ;;  %vm15052_vm2 = vmmov %vm15051_vm1 }
 0x664   :  { %v4273_v39 = vrot.slane %v4263_v29, 4  ;;  %4301 = vst [vmem:[#allocation5 + $0x90] sm:$0xee] %v4280_v60  ;;  %4895 = vrot.lane.b32.xlu2 %v14944_v57, %s10255_s9  ;;  %v4456_v57 = vrot.slane %v4421_v4, 4 }
 0x665   :  { %15029 = vst [vmem:[#allocation31_spill] sm:$0xff] %v12404_v56 }
 0x666   :  { %v4287_v1 = vsel %vm105_vm9, %v4272_v19, %v4273_v39  ;;  %5190 = vrot.lane.b32.xlu1 %v5181_v8, %s10257_s11  ;;  %v4259_v34 = vpop.permute.xlu2 %4258 }
 0x667   :  { %v4288_v58 = vsel %vm15028_vm3, %v4261_v36, %v4287_v1  ;;  %v4271_v27 = vrot.slane %v4259_v34, 4  ;;  %v14948_v36 = vrot.slane %v12404_v56, 5  ;;  %vm15053_vm3 = vmmov %vm15051_vm1  ;;  %v12502_v56 = vld [vmem:[#allocation4 + $0x3c] sm:$0x77] }
 0x668   :  { %4305 = vst [vmem:[#allocation5 + $0xb0] sm:$0xee] %v4288_v58  ;;  %v4427_v60 = vpop.permute.xlu1 %4426 }
 0x669   :  { %5059 = vrot.lane.b32.xlu0 %v14950_v12, %s10256_s10  ;;  %v4283_v46 = vsel %vm105_vm9, %v4270_v59, %v4271_v27  ;;  %v4285_v53 = vsel %vm105_vm9, %v4271_v27, %v4272_v19  ;;  %v5182_v27 = vrot.slane %v5164_v49, 7  ;;  %15054 = vst [vmem:[#allocation41_spill] sm:$0xff] %v12502_v56 }
 0x66a   :  { %v4284_v8 = vsel %vm15030_vm4, %v4257_v5, %v4283_v46  ;;  %v4286_v58 = vsel %vm15031_vm6, %v4259_v34, %v4285_v53  ;;  %v12421_v34 = vld [vmem:[#allocation4 + $0x40] sm:$0x7]  ;;  %v5169_v53 = vld [vmem:[#allocation4 + $0x30] sm:$0x77]  ;;  %vm15055_vm4 = vmmov %vm15051_vm1 }
 0x66b   :  { %v4423_v1 = vpop.permute.xlu0 %4422  ;;  %4303 = vst [vmem:[#allocation5 + $0xa0] sm:$0xee] %v4284_v8  ;;  %vm15056_vm6 = vmmov %vm15051_vm1 }
 0x66c   :  { %v4457_v45 = vrot.slane %v4423_v1, 4  ;;  %4304 = vst [vmem:[#allocation5 + $0xa8] sm:$0xee] %v4286_v58  ;;  %4901 = vrot.lane.b32.xlu2 %v14948_v36, %s10255_s9  ;;  %v4459_v36 = vrot.slane %v4427_v60, 4 }
 0x66d   :  { %15033 = vst [vmem:[#allocation32_spill] sm:$0xff] %v12421_v34 }
 0x66e   :  { %v4474_v59 = vsel %vm105_vm9, %v4456_v57, %v4457_v45  ;;  %5196 = vrot.lane.b32.xlu1 %v5184_v51, %s10257_s11  ;;  %v4265_v5 = vpop.permute.xlu2 %4264  ;;  %v5187_v51 = vrot.slane %v5169_v53, 7  ;;  %v12435_v53 = vld [vmem:[#allocation4 + $0x4] sm:$0x77] }
 0x66f   :  { %v4475_v19 = vsel %vm15032_vm7, %v4421_v4, %v4474_v59  ;;  %v4274_v46 = vrot.slane %v4265_v5, 4  ;;  %v14949_v4 = vrot.slane %v12421_v34, 5  ;;  %v5167_v59 = vld [vmem:[#allocation4 + $0x20] sm:$0x77]  ;;  %15037 = vst [vmem:[#allocation34_spill] sm:$0xff] %v12435_v53  ;;  %vm15057_vm7 = vmmov %vm15051_vm1 }
 0x670   :  { %4522 = vst [vmem:[#allocation5 + $0xc0] sm:$0x88] %v4475_v19  ;;  %v4433_v52 = vpop.permute.xlu1 %4432  ;;  %v5185_v5 = vrot.slane %v5167_v59, 7  ;;  %v5170_v34 = vld [vmem:[#allocation4 + $0x38] sm:$0x77] }
 0x671   :  { %5192 = vrot.lane.b32.xlu0 %v5182_v27, %s10257_s11  ;;  %v4289_v8 = vsel %vm105_vm9, %v4273_v39, %v4274_v46  ;;  %v4462_v59 = vrot.slane %v4433_v52, 4 }
 0x672   :  { %v4290_v57 = vsel %vm15034_vm8, %v4263_v29, %v4289_v8  ;;  %v12432_v29 = vld [vmem:[#allocation4 + $0x10] sm:$0x77]  ;;  %vm15058_vm8 = vcmask 736256  }
 0x673   :  { %v4429_v58 = vpop.permute.xlu0 %4428  ;;  %4306 = vst [vmem:[#allocation5 + $0xb8] sm:$0xee] %v4290_v57  ;;  %v14952_v12 = vrot.slane %v12432_v29, 6 }
 0x674   :  { %v4460_v49 = vrot.slane %v4429_v58, 4  ;;  %4907 = vrot.lane.b32.xlu2 %v14949_v4, %s10255_s9  ;;  %15036 = vst [vmem:[#allocation33_spill] sm:$0xff] %v12432_v29 }
 0x676   :  { %v4480_v19 = vsel %vm105_vm9, %v4459_v36, %v4460_v49  ;;  %5202 = vrot.lane.b32.xlu1 %v5187_v51, %s10257_s11  ;;  %v4425_v39 = vpop.permute.xlu2 %4424 }
 0x677   :  { %v4481_v27 = vsel %vm15035_vm5, %v4427_v60, %v4480_v19  ;;  %v4458_v46 = vrot.slane %v4425_v39, 4  ;;  %vm15059_vm5 = vmmov %vm15051_vm1 }
 0x678   :  { %4525 = vst [vmem:[#allocation5 + $0xd8] sm:$0x88] %v4481_v27  ;;  %v4575_v8 = vpop.permute.xlu1 %4574 }
 0x679   :  { %5198 = vrot.lane.b32.xlu0 %v5185_v5, %s10257_s11  ;;  %v4476_v57 = vsel %vm105_vm9, %v4457_v45, %v4458_v46  ;;  %v4478_v4 = vsel %vm105_vm9, %v4458_v46, %v4459_v36  ;;  %v14953_v5 = vrot.slane %v12435_v53, 6  ;;  %v5188_v46 = vrot.slane %v5170_v34, 7  ;;  %v12461_v53 = vld [vmem:[#allocation4 + $0xc] sm:$0x77] }
 0x67a   :  { %v4477_v51 = vsel %vm15038_vm11, %v4423_v1, %v4476_v57  ;;  %v4479_v19 = vsel %vm15039_vm12, %v4425_v39, %v4478_v4  ;;  %v12451_v4 = vld [vmem:[#allocation4 + $0x28] sm:$0x77]  ;;  %15045 = vst [vmem:[#allocation37_spill] sm:$0xff] %v12461_v53  ;;  %vm15061_vm11 = vmmov %vm15058_vm8 }
 0x67b   :  { %v4435_v60 = vpop.permute.xlu0 %4434  ;;  %4523 = vst [vmem:[#allocation5 + $0xc8] sm:$0x88] %v4477_v51  ;;  %v12454_v51 = vld [vmem:[#allocation4 + $0x1c] sm:$0x77]  ;;  %v14956_v34 = vrot.slane %v12451_v4, 6  ;;  %vm15063_vm12 = vmmov %vm15058_vm8 }
 0x67c   :  { %v4463_v27 = vrot.slane %v4435_v60, 4  ;;  %4524 = vst [vmem:[#allocation5 + $0xd0] sm:$0x88] %v4479_v19  ;;  %5049 = vrot.lane.b32.xlu2 %v14952_v12, %s10256_s10 }
 0x67d   :  { %15041 = vst [vmem:[#allocation35_spill] sm:$0xff] %v12451_v4 }
 0x67e   :  { %v4486_v45 = vsel %vm105_vm9, %v4462_v59, %v4463_v27  ;;  %5426 = vrot.lane.b32.xlu1 %v14953_v5, %s10259_s13  ;;  %v4431_v1 = vpop.permute.xlu2 %4430  ;;  %15042 = vst [vmem:[#allocation36_spill] sm:$0xff] %v12454_v51 }
 0x67f   :  { %v4487_v36 = vsel %vm15040_vm13, %v4433_v52, %v4486_v45  ;;  %v4461_v39 = vrot.slane %v4431_v1, 4  ;;  %v4610_v45 = vrot.slane %v4575_v8, 4  ;;  %vm15064_vm13 = vmmov %vm15058_vm8 }
 0x680   :  { %4528 = vst [vmem:[#allocation5 + $0xf0] sm:$0x88] %v4487_v36  ;;  %v4581_v57 = vpop.permute.xlu1 %4580 }
 0x681   :  { %5204 = vrot.lane.b32.xlu0 %v5188_v46, %s10257_s11  ;;  %v4482_v19 = vsel %vm105_vm9, %v4460_v49, %v4461_v39  ;;  %v4484_v12 = vsel %vm105_vm9, %v4461_v39, %v4462_v59  ;;  %v14957_v46 = vrot.slane %v12454_v51, 6  ;;  %v14958_v39 = vrot.slane %v12461_v53, 6 }
 0x682   :  { %v4483_v5 = vsel %vm15043_vm15, %v4429_v58, %v4482_v19  ;;  %v4485_v36 = vsel %vm15044_vm10, %v4431_v1, %v4484_v12  ;;  %v12478_v19 = vld [vmem:[#allocation4 + $0x34] sm:$0x77]  ;;  %vm15066_vm15 = vmmov %vm15058_vm8 }
 0x683   :  { %v4577_v52 = vpop.permute.xlu0 %4576  ;;  %4526 = vst [vmem:[#allocation5 + $0xe0] sm:$0x88] %v4483_v5  ;;  %v12476_v5 = vld [vmem:[#allocation4 + $0x40] sm:$0x7]  ;;  %vm15068_vm10 = vmmov %vm15058_vm8 }
 0x684   :  { %v4611_v29 = vrot.slane %v4577_v52, 4  ;;  %4527 = vst [vmem:[#allocation5 + $0xe8] sm:$0x88] %v4485_v36  ;;  %5055 = vrot.lane.b32.xlu2 %v14956_v34, %s10256_s10  ;;  %v4613_v36 = vrot.slane %v4581_v57, 4  ;;  %v14960_v34 = vrot.slane %v12476_v5, 6 }
 0x685   :  { %15047 = vst [vmem:[#allocation38_spill] sm:$0xff] %v12476_v5 }
 0x686   :  { %v4628_v49 = vsel %vm105_vm9, %v4610_v45, %v4611_v29  ;;  %5432 = vrot.lane.b32.xlu1 %v14957_v46, %s10259_s13  ;;  %v4437_v12 = vpop.permute.xlu2 %4436  ;;  %15048 = vst [vmem:[#allocation39_spill] sm:$0xff] %v12478_v19  ;;  %v12483_v46 = vld [vmem:[#allocation4 + $0x24] sm:$0x77] }
 0x687   :  { %v4629_v59 = vsel %vm15046_vm14, %v4575_v8, %v4628_v49  ;;  %v4464_v58 = vrot.slane %v4437_v12, 4  ;;  %15050 = vst [vmem:[#allocation40_spill] sm:$0xff] %v12483_v46  ;;  %v14965_v12 = vrot.slane %v12478_v19, 6  ;;  %vm15069_vm14 = vmmov %vm15058_vm8 }
 0x688   :  { %4676 = vst [vmem:[#allocation5 + $0x100] sm:$0xcc] %v4629_v59  ;;  %v4587_v1 = vpop.permute.xlu1 %4586 }
 0x689   :  { %5428 = vrot.lane.b32.xlu0 %v14958_v39, %s10259_s13  ;;  %v4488_v8 = vsel %vm105_vm9, %v4463_v27, %v4464_v58  ;;  %v14968_v58 = vrot.slane %v12483_v46, 6  ;;  %v4616_v53 = vrot.slane %v4587_v1, 4 }
 0x68a   :  { %v4489_v49 = vsel %vm15049_vm0, %v4435_v60, %v4488_v8  ;;  %v5165_v8 = vld [vmem:[#allocation4 + $0x10] sm:$0x77]  ;;  %vm15071_vm0 = vcmask 89088  }
 0x68b   :  { %v4583_v45 = vpop.permute.xlu0 %4582  ;;  %4529 = vst [vmem:[#allocation5 + $0xf8] sm:$0x88] %v4489_v49 }
 0x68c   :  { %v4614_v59 = vrot.slane %v4583_v45, 4  ;;  %5061 = vrot.lane.b32.xlu2 %v14960_v34, %s10256_s10  ;;  %v5545_v34 = vld [vmem:[#allocation4 + $0xc] sm:$0x77] }
 0x68d   :  { %v5563_v37 = vrot.slane %v5545_v34, 7 }
 0x68e   :  { %v4634_v39 = vsel %vm105_vm9, %v4613_v36, %v4614_v59  ;;  %5438 = vrot.lane.b32.xlu1 %v14965_v12, %s10259_s13  ;;  %v4579_v60 = vpop.permute.xlu2 %4578 }
 0x68f   :  { %v4635_v27 = vsel %vm15051_vm1, %v4581_v57, %v4634_v39  ;;  %v4612_v49 = vrot.slane %v4579_v60, 4  ;;  %v5183_v39 = vrot.slane %v5165_v8, 7  ;;  %vm15073_vm1 = vmmov %vm15058_vm8 }
 0x690   :  { %4679 = vst [vmem:[#allocation5 + $0x118] sm:$0xcc] %v4635_v27  ;;  %v4720_v5 = vpop.permute.xlu1 %4719 }
 0x691   :  { %5434 = vrot.lane.b32.xlu0 %v14968_v58, %s10259_s13  ;;  %v4630_v4 = vsel %vm105_vm9, %v4611_v29, %v4612_v49  ;;  %v4632_v57 = vsel %vm105_vm9, %v4612_v49, %v4613_v36  ;;  %v14970_v36 = vrot.slane %v12502_v56, 6 }
 0x692   :  { %v4631_v19 = vsel %vm15052_vm2, %v4577_v52, %v4630_v4  ;;  %v4633_v27 = vsel %vm15053_vm3, %v4579_v60, %v4632_v57  ;;  %v5168_v52 = vld [vmem:[#allocation4 + $0x28] sm:$0x77]  ;;  %vm15075_vm2 = vmmov %vm15071_vm0 }
 0x693   :  { %v4589_v51 = vpop.permute.xlu0 %4588  ;;  %4677 = vst [vmem:[#allocation5 + $0x108] sm:$0xcc] %v4631_v19  ;;  %v5548_v19 = vld [vmem:[#allocation4 + $0x24] sm:$0x77]  ;;  %v5186_v57 = vrot.slane %v5168_v52, 7  ;;  %vm15077_vm3 = vmmov %vm15071_vm0 }
 0x694   :  { %v4617_v12 = vrot.slane %v4589_v51, 4  ;;  %4678 = vst [vmem:[#allocation5 + $0x110] sm:$0xcc] %v4633_v27  ;;  %5194 = vrot.lane.b32.xlu2 %v5183_v39, %s10257_s11  ;;  %v5566_v46 = vrot.slane %v5548_v19, 7 }
 0x696   :  { %v4640_v58 = vsel %vm105_vm9, %v4616_v53, %v4617_v12  ;;  %5573 = vrot.lane.b32.xlu1 %v5563_v37, %s10260_s14  ;;  %v4585_v4 = vpop.permute.xlu2 %4584 }
 0x697   :  { %v4641_v29 = vsel %vm15055_vm4, %v4587_v1, %v4640_v58  ;;  %v4615_v60 = vrot.slane %v4585_v4, 4  ;;  %v4737_v58 = vrot.slane %v4720_v5, 4  ;;  %vm15078_vm4 = vmmov %vm15071_vm0 }
 0x698   :  { %4682 = vst [vmem:[#allocation5 + $0x130] sm:$0xcc] %v4641_v29  ;;  %v4726_v34 = vpop.permute.xlu1 %4725  ;;  %v5546_v29 = vld [vmem:[#allocation4 + $0x14] sm:$0x77] }
 0x699   :  { %5440 = vrot.lane.b32.xlu0 %v14970_v36, %s10259_s13  ;;  %v4636_v8 = vsel %vm105_vm9, %v4614_v59, %v4615_v60  ;;  %v4638_v49 = vsel %vm105_vm9, %v4615_v60, %v4616_v53  ;;  %v5564_v56 = vrot.slane %v5546_v29, 7 }
 0x69a   :  { %v4637_v39 = vsel %vm15056_vm6, %v4583_v45, %v4636_v8  ;;  %v4639_v37 = vsel %vm15057_vm7, %v4585_v4, %v4638_v49  ;;  %v5171_v45 = vld [vmem:[#allocation4 + $0x40] sm:$0x7]  ;;  %v4740_v8 = vrot.slane %v4726_v34, 4  ;;  %vm15080_vm6 = vmmov %vm15071_vm0 }
 0x69b   :  { %v4722_v1 = vpop.permute.xlu0 %4721  ;;  %4680 = vst [vmem:[#allocation5 + $0x120] sm:$0xcc] %v4637_v39  ;;  %v15062_v39 = vrot.slane %v11979_v9, 5  ;;  %vm15083_vm7 = vmmov %vm15071_vm0 }
 0x69c   :  { %v4738_v27 = vrot.slane %v4722_v1, 4  ;;  %4681 = vst [vmem:[#allocation5 + $0x128] sm:$0xcc] %v4639_v37  ;;  %5200 = vrot.lane.b32.xlu2 %v5186_v57, %s10257_s11  ;;  %v5189_v57 = vrot.slane %v5171_v45, 7 }
 0x69d   :  { %v3941_v37 = vrot.slane %v15062_v39, 4 }
 0x69e   :  { %v4746_v36 = vsel %vm105_vm9, %v4737_v58, %v4738_v27  ;;  %5579 = vrot.lane.b32.xlu1 %v5566_v46, %s10260_s14  ;;  %v4591_v53 = vpop.permute.xlu2 %4590 }
 0x69f   :  { %v4747_v59 = vsel %vm15058_vm8, %v4720_v5, %v4746_v36  ;;  %v4618_v52 = vrot.slane %v4591_v53, 4  ;;  %v15060_v5 = vrot.slane %v11969_v33, 5  ;;  %vm15084_vm8 = vmmov %vm15071_vm0 }
 0x6a0   :  { %4770 = vst [vmem:[#allocation5 + $0x140] sm:$0xee] %v4747_v59  ;;  %v4732_v4 = vpop.permute.xlu1 %4731 }
 0x6a1   :  { %5575 = vrot.lane.b32.xlu0 %v5564_v56, %s10260_s14  ;;  %v4642_v60 = vsel %vm105_vm9, %v4617_v12, %v4618_v52  ;;  %v3940_v36 = vrot.slane %v15060_v5, 4  ;;  %v4743_v45 = vrot.slane %v4732_v4, 4 }
 0x6a2   :  { %v4643_v49 = vsel %vm15059_vm5, %v4589_v51, %v4642_v60  ;;  %v12531_v51 = vld [vmem:[#allocation4 + $0x14] sm:$0x77]  ;;  %vm15086_vm5 = vcmask 80896  }
 0x6a3   :  { %v4728_v19 = vpop.permute.xlu0 %4727  ;;  %4683 = vst [vmem:[#allocation5 + $0x138] sm:$0xcc] %v4643_v49  ;;  %v5410_v52 = vrot.slane %v12531_v51, 6 }
 0x6a4   :  { %v4741_v58 = vrot.slane %v4728_v19, 4  ;;  %5206 = vrot.lane.b32.xlu2 %v5189_v57, %s10257_s11  ;;  %v15065_v57 = vrot.slane %v11977_v6, 5 }
 0x6a6   :  { %v4752_v46 = vsel %vm105_vm9, %v4740_v8, %v4741_v58  ;;  %3967 = vrot.lane.b32.xlu1 %v3940_v36, %s10247_s26  ;;  %v4724_v12 = vpop.permute.xlu2 %4723  ;;  %v3943_v5 = vrot.slane %v15065_v57, 4  ;;  %v15067_v36 = vrot.slane %v11992_v10, 5 }
 0x6a7   :  { %v4753_v56 = vsel %vm15061_vm11, %v4726_v34, %v4752_v46  ;;  %v4739_v29 = vrot.slane %v4724_v12, 4  ;;  %vm15088_vm11 = vmmov %vm15071_vm0 }
 0x6a8   :  { %4773 = vst [vmem:[#allocation5 + $0x158] sm:$0xee] %v4753_v56  ;;  %v4892_v33 = vpop.permute.xlu1 %4891  ;;  %v3944_v46 = vrot.slane %v15067_v36, 4  ;;  %v12549_v56 = vld [vmem:[#allocation4 + $0x2c] sm:$0x77] }
 0x6a9   :  { %3969 = vrot.lane.b32.xlu0 %v3941_v37, %s10247_s26  ;;  %v4748_v59 = vsel %vm105_vm9, %v4738_v27, %v4739_v29  ;;  %v4750_v53 = vsel %vm105_vm9, %v4739_v29, %v4740_v8  ;;  %v5413_v29 = vrot.slane %v12549_v56, 6 }
 0x6aa   :  { %v4749_v9 = vsel %vm15063_vm12, %v4722_v1, %v4748_v59  ;;  %v4751_v60 = vsel %vm15064_vm13, %v4724_v12, %v4750_v53  ;;  %v4927_v59 = vrot.slane %v4892_v33, 4  ;;  %vm15091_vm12 = vmmov %vm15086_vm5 }
 0x6ab   :  { %v4734_v34 = vpop.permute.xlu0 %4733  ;;  %4771 = vst [vmem:[#allocation5 + $0x148] sm:$0xee] %v4749_v9  ;;  %vm15094_vm13 = vmmov %vm15086_vm5 }
 0x6ac   :  { %v4744_v49 = vrot.slane %v4734_v34, 4  ;;  %4772 = vst [vmem:[#allocation5 + $0x150] sm:$0xee] %v4751_v60  ;;  %5430 = vrot.lane.b32.xlu2 %v5410_v52, %s10259_s13  ;;  %v15070_v60 = vrot.slane %v11990_v22, 5  ;;  %v5544_v22 = vld [vmem:[#allocation4 + $0x4] sm:$0x77] }
 0x6ae   :  { %v4758_v27 = vsel %vm105_vm9, %v4743_v45, %v4744_v49  ;;  %3973 = vrot.lane.b32.xlu1 %v3943_v5, %s10247_s26  ;;  %v4730_v1 = vpop.permute.xlu2 %4729  ;;  %v3946_v57 = vrot.slane %v15070_v60, 4  ;;  %v15072_v5 = vrot.slane %v12005_v47, 5  ;;  %v15074_v47 = vrot.slane %v12003_v32, 6 }
 0x6af   :  { %v4759_v8 = vsel %vm15066_vm15, %v4732_v4, %v4758_v27  ;;  %v4742_v6 = vrot.slane %v4730_v1, 4  ;;  %v15076_v60 = vrot.slane %v12020_v15, 6  ;;  %vm15095_vm15 = vmmov %vm15086_vm5 }
 0x6b0   :  { %4776 = vst [vmem:[#allocation5 + $0x170] sm:$0xee] %v4759_v8  ;;  %v4898_v39 = vpop.permute.xlu1 %4897  ;;  %v3947_v27 = vrot.slane %v15072_v5, 4 }
 0x6b1   :  { %3975 = vrot.lane.b32.xlu0 %v3944_v46, %s10247_s26  ;;  %v4754_v37 = vsel %vm105_vm9, %v4741_v58, %v4742_v6  ;;  %v4756_v12 = vsel %vm105_vm9, %v4742_v6, %v4743_v45  ;;  %v4930_v6 = vrot.slane %v4898_v39, 4 }
 0x6b2   :  { %v4755_v10 = vsel %vm15068_vm10, %v4728_v19, %v4754_v37  ;;  %v4757_v53 = vsel %vm15069_vm14, %v4730_v1, %v4756_v12  ;;  %v5562_v12 = vrot.slane %v5544_v22, 7  ;;  %vm15097_vm10 = vmmov %vm15086_vm5 }
 0x6b3   :  { %v4894_v4 = vpop.permute.xlu0 %4893  ;;  %4774 = vst [vmem:[#allocation5 + $0x160] sm:$0xee] %v4755_v10  ;;  %vm15100_vm14 = vmmov %vm15086_vm5 }
 0x6b4   :  { %v4928_v9 = vrot.slane %v4894_v4, 4  ;;  %4775 = vst [vmem:[#allocation5 + $0x168] sm:$0xee] %v4757_v53  ;;  %5436 = vrot.lane.b32.xlu2 %v5413_v29, %s10259_s13 }
 0x6b6   :  { %v4945_v58 = vsel %vm105_vm9, %v4927_v59, %v4928_v9  ;;  %3979 = vrot.lane.b32.xlu1 %v3946_v57, %s10247_s26  ;;  %v4736_v19 = vpop.permute.xlu2 %4735  ;;  %v4094_v59 = vrot.slane %v15074_v47, 4  ;;  %v4095_v57 = vrot.slane %v15076_v60, 4  ;;  %v15082_v60 = vrot.slane %v12050_v54, 5 }
 0x6b7   :  { %v4946_v45 = vsel %vm15071_vm0, %v4892_v33, %v4945_v58  ;;  %v4745_v8 = vrot.slane %v4736_v19, 4  ;;  %v15087_v54 = vrot.slane %v12057_v18, 6  ;;  %v15090_v18 = vrot.slane %v12104_v23, 5  ;;  %vm15101_vm0 = vmmov %vm15086_vm5 }
 0x6b8   :  { %4993 = vst [vmem:[#allocation5 + $0x180] sm:$0x88] %v4946_v45  ;;  %v4904_v36 = vpop.permute.xlu1 %4903 }
 0x6b9   :  { %3981 = vrot.lane.b32.xlu0 %v3947_v27, %s10247_s26  ;;  %v4760_v46 = vsel %vm105_vm9, %v4744_v49, %v4745_v8  ;;  %v4933_v8 = vrot.slane %v4904_v36, 4 }
 0x6ba   :  { %v4761_v37 = vsel %vm15073_vm1, %v4734_v34, %v4760_v46  ;;  %v5547_v34 = vld [vmem:[#allocation4 + $0x1c] sm:$0x77]  ;;  %v15079_v46 = vrot.slane %v12016_v63, 6  ;;  %vm15103_vm1 = vcmask 72704  }
 0x6bb   :  { %v4900_v1 = vpop.permute.xlu0 %4899  ;;  %4777 = vst [vmem:[#allocation5 + $0x178] sm:$0xee] %v4761_v37  ;;  %v5565_v27 = vrot.slane %v5547_v34, 7 }
 0x6bc   :  { %v4931_v33 = vrot.slane %v4900_v1, 4  ;;  %5571 = vrot.lane.b32.xlu2 %v5562_v12, %s10260_s14  ;;  %v4097_v37 = vrot.slane %v15079_v46, 4 }
 0x6be   :  { %v4951_v10 = vsel %vm105_vm9, %v4930_v6, %v4931_v33  ;;  %4121 = vrot.lane.b32.xlu1 %v4094_v59, %s10248_s27  ;;  %v4896_v49 = vpop.permute.xlu2 %4895 }
 0x6bf   :  { %v4952_v53 = vsel %vm15075_vm2, %v4898_v39, %v4951_v10  ;;  %v4929_v58 = vrot.slane %v4896_v49, 4  ;;  %vm15105_vm2 = vmmov %vm15101_vm0 }
 0x6c0   :  { %4996 = vst [vmem:[#allocation5 + $0x198] sm:$0x88] %v4952_v53  ;;  %v5046_v45 = vpop.permute.xlu1 %5045 }
 0x6c1   :  { %4123 = vrot.lane.b32.xlu0 %v4095_v57, %s10248_s27  ;;  %v4947_v32 = vsel %vm105_vm9, %v4928_v9, %v4929_v58  ;;  %v4949_v5 = vsel %vm105_vm9, %v4929_v58, %v4930_v6  ;;  %v15081_v6 = vrot.slane %v12035_v25, 6  ;;  %v3942_v57 = vrot.slane %v15082_v60, 4 }
 0x6c2   :  { %v4948_v39 = vsel %vm15077_vm3, %v4894_v4, %v4947_v32  ;;  %v4950_v15 = vsel %vm15078_vm4, %v4896_v49, %v4949_v5  ;;  %v15085_v32 = vrot.slane %v12031_v48, 6  ;;  %vm15108_vm3 = vmmov %vm15103_vm1 }
 0x6c3   :  { %v4906_v19 = vpop.permute.xlu0 %4905  ;;  %4994 = vst [vmem:[#allocation5 + $0x188] sm:$0x88] %v4948_v39  ;;  %v4098_v47 = vrot.slane %v15081_v6, 4  ;;  %vm15111_vm4 = vmmov %vm15103_vm1 }
 0x6c4   :  { %v4934_v22 = vrot.slane %v4906_v19, 4  ;;  %4995 = vst [vmem:[#allocation5 + $0x190] sm:$0x88] %v4950_v15  ;;  %5577 = vrot.lane.b32.xlu2 %v5565_v27, %s10260_s14  ;;  %v4100_v5 = vrot.slane %v15085_v32, 4 }
 0x6c6   :  { %v4957_v12 = vsel %vm105_vm9, %v4933_v8, %v4934_v22  ;;  %4127 = vrot.lane.b32.xlu1 %v4097_v37, %s10248_s27  ;;  %v4902_v4 = vpop.permute.xlu2 %4901 }
 0x6c7   :  { %v4958_v9 = vsel %vm15080_vm6, %v4904_v36, %v4957_v12  ;;  %v4932_v59 = vrot.slane %v4902_v4, 4  ;;  %v5081_v36 = vrot.slane %v5046_v45, 4  ;;  %vm15112_vm6 = vmmov %vm15103_vm1 }
 0x6c8   :  { %4999 = vst [vmem:[#allocation5 + $0x1b0] sm:$0x88] %v4958_v9  ;;  %v5052_v10 = vpop.permute.xlu1 %5051  ;;  %v15089_v9 = vrot.slane %v12065_v16, 5 }
 0x6c9   :  { %4129 = vrot.lane.b32.xlu0 %v4098_v47, %s10248_s27  ;;  %v4953_v63 = vsel %vm105_vm9, %v4931_v33, %v4932_v59  ;;  %v4955_v53 = vsel %vm105_vm9, %v4932_v59, %v4933_v8  ;;  %v4101_v8 = vrot.slane %v15087_v54, 4  ;;  %v5084_v37 = vrot.slane %v5052_v10, 4 }
 0x6ca   :  { %v4954_v25 = vsel %vm15083_vm7, %v4900_v1, %v4953_v63  ;;  %v4956_v34 = vsel %vm15084_vm8, %v4902_v4, %v4955_v53  ;;  %v4411_v47 = vrot.slane %v15090_v18, 4  ;;  %v15102_v18 = vrot.slane %v12148_v21, 5  ;;  %vm15114_vm7 = vmmov %vm15103_vm1 }
 0x6cb   :  { %v5048_v49 = vpop.permute.xlu0 %5047  ;;  %4997 = vst [vmem:[#allocation5 + $0x1a0] sm:$0x88] %v4954_v25  ;;  %vm15117_vm8 = vmmov %vm15103_vm1 }
 0x6cc   :  { %v5082_v58 = vrot.slane %v5048_v49, 4  ;;  %4998 = vst [vmem:[#allocation5 + $0x1a8] sm:$0x88] %v4956_v34  ;;  %3971 = vrot.lane.b32.xlu2 %v3942_v57, %s10247_s26  ;;  %v15093_v57 = vrot.slane %v12086_v42, 5  ;;  %v15098_v42 = vrot.slane %v12153_v14, 5 }
 0x6ce   :  { %v5099_v33 = vsel %vm105_vm9, %v5081_v36, %v5082_v58  ;;  %4133 = vrot.lane.b32.xlu1 %v4100_v5, %s10248_s27  ;;  %v4908_v1 = vpop.permute.xlu2 %4907  ;;  %v3948_v36 = vrot.slane %v15093_v57, 4  ;;  %v15096_v5 = vrot.slane %v12124_v61, 5  ;;  %v4415_v54 = vrot.slane %v15098_v42, 4 }
 0x6cf   :  { %v5100_v27 = vsel %vm15086_vm5, %v5046_v45, %v5099_v33  ;;  %v4935_v39 = vrot.slane %v4908_v1, 4  ;;  %v3945_v45 = vrot.slane %v15089_v9, 4  ;;  %vm15118_vm5 = vmmov %vm15103_vm1 }
 0x6d0   :  { %5147 = vst [vmem:[#allocation5 + $0x1c0] sm:$0xcc] %v5100_v27  ;;  %v5058_v15 = vpop.permute.xlu1 %5057  ;;  %v4414_v33 = vrot.slane %v15096_v5, 4 }
 0x6d1   :  { %4135 = vrot.lane.b32.xlu0 %v4101_v8, %s10248_s27  ;;  %v4959_v48 = vsel %vm105_vm9, %v4934_v22, %v4935_v39  ;;  %v15092_v22 = vrot.slane %v12131_v31, 5 }
 0x6d2   :  { %v4960_v12 = vsel %vm15088_vm11, %v4906_v19, %v4959_v48  ;;  %v15099_v48 = vrot.slane %v12101_v62, 6  ;;  %v15104_v62 = vrot.slane %v12174_v0, 5  ;;  %v15107_v0 = vrot.slane %v12168_v30, 6 }
 0x6d3   :  { %v5054_v46 = vpop.permute.xlu0 %5053  ;;  %5000 = vst [vmem:[#allocation5 + $0x1b8] sm:$0x88] %v4960_v12  ;;  %v4412_v63 = vrot.slane %v15092_v22, 4  ;;  %vm15120_vm11 = vcmask 1039360  }
 0x6d4   :  { %v5085_v6 = vrot.slane %v5054_v46, 4  ;;  %3977 = vrot.lane.b32.xlu2 %v3945_v45, %s10247_s26 }
 0x6d6   :  { %v5105_v4 = vsel %vm105_vm9, %v5084_v37, %v5085_v6  ;;  %4438 = vrot.lane.b32.xlu1 %v4411_v47, %s10251_s30  ;;  %v5050_v19 = vpop.permute.xlu2 %5049  ;;  %v4417_v47 = vrot.slane %v15102_v18, 4 }
 0x6d7   :  { %v5106_v59 = vsel %vm15091_vm12, %v5052_v10, %v5105_v4  ;;  %v5083_v16 = vrot.slane %v5050_v19, 4  ;;  %v5087_v10 = vrot.slane %v5058_v15, 4  ;;  %vm15122_vm12 = vmmov %vm15103_vm1 }
 0x6d8   :  { %5150 = vst [vmem:[#allocation5 + $0x1d8] sm:$0xcc] %v5106_v59  ;;  %v5191_v53 = vpop.permute.xlu1 %5190  ;;  %v4418_v59 = vrot.slane %v15104_v62, 4 }
 0x6d9   :  { %4440 = vrot.lane.b32.xlu0 %v4412_v63, %s10251_s30  ;;  %v5101_v23 = vsel %vm105_vm9, %v5082_v58, %v5083_v16  ;;  %v5103_v60 = vsel %vm105_vm9, %v5083_v16, %v5084_v37  ;;  %v4096_v37 = vrot.slane %v15099_v48, 4 }
 0x6da   :  { %v5102_v31 = vsel %vm15094_vm13, %v5048_v49, %v5101_v23  ;;  %v5104_v34 = vsel %vm15095_vm15, %v5050_v19, %v5103_v60  ;;  %v15106_v60 = vrot.slane %v12121_v11, 6  ;;  %vm15125_vm13 = vmmov %vm15120_vm11 }
 0x6db   :  { %v5060_v25 = vpop.permute.xlu0 %5059  ;;  %5148 = vst [vmem:[#allocation5 + $0x1c8] sm:$0xcc] %v5102_v31  ;;  %vm15128_vm15 = vmmov %vm15120_vm11 }
 0x6dc   :  { %v5088_v32 = vrot.slane %v5060_v25, 4  ;;  %5149 = vst [vmem:[#allocation5 + $0x1d0] sm:$0xcc] %v5104_v34  ;;  %3983 = vrot.lane.b32.xlu2 %v3948_v36, %s10247_s26  ;;  %v4565_v36 = vrot.slane %v15107_v0, 4  ;;  %v15109_v34 = vrot.slane %v12193_v2, 6  ;;  %v15123_v0 = vrot.slane %v12239_v43, 5 }
 0x6dd   :  { %s15229_s26 = smov 27  }
 0x6de   :  { %v5111_v58 = vsel %vm105_vm9, %v5087_v10, %v5088_v32  ;;  %4444 = vrot.lane.b32.xlu1 %v4414_v33, %s10251_s30  ;;  %v5056_v49 = vpop.permute.xlu2 %5055 }
 0x6df   :  { %v5112_v27 = vsel %vm15097_vm10, %v5058_v15, %v5111_v58  ;;  %v5086_v8 = vrot.slane %v5056_v49, 4  ;;  %v5208_v15 = vrot.slane %v5191_v53, 4  ;;  %v15110_v58 = vrot.slane %v12146_v38, 6  ;;  %vm15129_vm10 = vmmov %vm15120_vm11 }
 0x6e0   :  { %5153 = vst [vmem:[#allocation5 + $0x1f0] sm:$0xcc] %v5112_v27  ;;  %v5197_v1 = vpop.permute.xlu1 %5196  ;;  %v15115_v38 = vrot.slane %v12210_v44, 6 }
 0x6e1   :  { %4446 = vrot.lane.b32.xlu0 %v4415_v54, %s10251_s30  ;;  %v5107_v61 = vsel %vm105_vm9, %v5085_v6, %v5086_v8  ;;  %v5109_v39 = vsel %vm105_vm9, %v5086_v8, %v5087_v10  ;;  %v5211_v16 = vrot.slane %v5197_v1, 4  ;;  %v4102_v27 = vrot.slane %v15110_v58, 4 }
 0x6e2   :  { %v5108_v14 = vsel %vm15100_vm14, %v5054_v46, %v5107_v61  ;;  %v5110_v9 = vsel %vm15101_vm0, %v5056_v49, %v5109_v39  ;;  %vm15131_vm14 = vmmov %vm15129_vm10 }
 0x6e3   :  { %v5193_v12 = vpop.permute.xlu0 %5192  ;;  %5151 = vst [vmem:[#allocation5 + $0x1e0] sm:$0xcc] %v5108_v14  ;;  %vm15132_vm0 = vmmov %vm15129_vm10 }
 0x6e4   :  { %v5209_v45 = vrot.slane %v5193_v12, 4  ;;  %5152 = vst [vmem:[#allocation5 + $0x1e8] sm:$0xcc] %v5110_v9  ;;  %4125 = vrot.lane.b32.xlu2 %v4096_v37, %s10248_s27  ;;  %v4569_v37 = vrot.slane %v15115_v38, 4 }
 0x6e6   :  { %v5217_v6 = vsel %vm105_vm9, %v5208_v15, %v5209_v45  ;;  %4450 = vrot.lane.b32.xlu1 %v4417_v47, %s10251_s30  ;;  %v5062_v46 = vpop.permute.xlu2 %5061 }
 0x6e7   :  { %v5218_v4 = vsel %vm15103_vm1, %v5191_v53, %v5217_v6  ;;  %v5089_v22 = vrot.slane %v5062_v46, 4  ;;  %v4099_v53 = vrot.slane %v15106_v60, 4  ;;  %vm15135_vm1 = vmmov %vm15132_vm0 }
 0x6e8   :  { %5241 = vst [vmem:[#allocation5 + $0x200] sm:$0xee] %v5218_v4  ;;  %v5203_v63 = vpop.permute.xlu1 %5202 }
 0x6e9   :  { %4452 = vrot.lane.b32.xlu0 %v4418_v59, %s10251_s30  ;;  %v5113_v21 = vsel %vm105_vm9, %v5088_v32, %v5089_v22  ;;  %v4566_v32 = vrot.slane %v15109_v34, 4  ;;  %v5214_v54 = vrot.slane %v5203_v63, 4  ;;  %v15119_v59 = vrot.slane %v12206_v24, 6 }
 0x6ea   :  { %v5114_v23 = vsel %vm15105_vm2, %v5060_v25, %v5113_v21  ;;  %vm15136_vm2 = vmmov %vm15132_vm0 }
 0x6eb   :  { %v5199_v19 = vpop.permute.xlu0 %5198  ;;  %5154 = vst [vmem:[#allocation5 + $0x1f8] sm:$0xcc] %v5114_v23  ;;  %v4571_v46 = vrot.slane %v15119_v59, 4  ;;  %v15137_v59 = vrot.slane %v12313_v50, 5 }
 0x6ec   :  { %v5212_v57 = vrot.slane %v5199_v19, 4  ;;  %4131 = vrot.lane.b32.xlu2 %v4099_v53, %s10248_s27 }
 0x6ee   :  { %v5223_v10 = vsel %vm105_vm9, %v5211_v16, %v5212_v57  ;;  %4592 = vrot.lane.b32.xlu1 %v4565_v36, %s10252_s6  ;;  %v5195_v25 = vpop.permute.xlu2 %5194  ;;  %v4416_v36 = vrot.slane %v15123_v0, 4 }
 0x6ef   :  { %v5224_v31 = vsel %vm15108_vm3, %v5197_v1, %v5223_v10  ;;  %v5210_v11 = vrot.slane %v5195_v25, 4  ;;  %v15113_v1 = vrot.slane %v12187_v20, 6  ;;  %vm15138_vm3 = vcmask 973824  }
 0x6f0   :  { %5244 = vst [vmem:[#allocation5 + $0x218] sm:$0xee] %v5224_v31  ;;  %v5427_v5 = vpop.permute.xlu1 %5426 }
 0x6f1   :  { %4594 = vrot.lane.b32.xlu0 %v4566_v32, %s10252_s6  ;;  %v5219_v30 = vsel %vm105_vm9, %v5209_v45, %v5210_v11  ;;  %v5221_v33 = vsel %vm105_vm9, %v5210_v11, %v5211_v16  ;;  %v4568_v61 = vrot.slane %v15113_v1, 4  ;;  %v15116_v45 = vrot.slane %v12220_v41, 5 }
 0x6f2   :  { %v5220_v2 = vsel %vm15111_vm4, %v5193_v12, %v5219_v30  ;;  %v5222_v49 = vsel %vm15112_vm6, %v5195_v25, %v5221_v33  ;;  %v5462_v6 = vrot.slane %v5427_v5, 4  ;;  %v15121_v41 = vrot.slane %v12230_v28, 6  ;;  %vm15140_vm4 = vmmov %vm15138_vm3 }
 0x6f3   :  { %v5205_v42 = vpop.permute.xlu0 %5204  ;;  %5242 = vst [vmem:[#allocation5 + $0x208] sm:$0xee] %v5220_v2  ;;  %v4413_v18 = vrot.slane %v15116_v45, 4  ;;  %v15124_v28 = vrot.slane %v12270_v40, 5  ;;  %v10145_v32 = vunpack.i.l.bf16 %v11788_v3  ;;  %v15126_v11 = vrot.slane %v12296_v13, 5 }
 0x6f4   :  { %v5215_v8 = vrot.slane %v5205_v42, 4  ;;  %5243 = vst [vmem:[#allocation5 + $0x210] sm:$0xee] %v5222_v49  ;;  %4137 = vrot.lane.b32.xlu2 %v4102_v27, %s10248_s27  ;;  %v4572_v21 = vrot.slane %v15121_v41, 4  ;;  %vm15145_vm6 = vcmask 900096  }
 0x6f5   :  { %v4882_v31 = vrot.slane %v15124_v28, 4  ;;  %v5470_v33 = vrot.slane %v10145_v32, 4  ;;  %v15146_v32 = vld [vmem:[#allocation26_spill] sm:$0xff] }
 0x6f6   :  { %v5229_v39 = vsel %vm105_vm9, %v5214_v54, %v5215_v8  ;;  %4598 = vrot.lane.b32.xlu1 %v4568_v61, %s10252_s6  ;;  %v5201_v12 = vpop.permute.xlu2 %5200  ;;  %v15130_v61 = vrot.slane %v12289_v55, 5 }
 0x6f7   :  { %v5230_v48 = vsel %vm15114_vm7, %v5203_v63, %v5229_v39  ;;  %v5213_v15 = vrot.slane %v5201_v12, 4  ;;  %vm15148_vm7 = vmmov %vm15138_vm3 }
 0x6f8   :  { %5247 = vst [vmem:[#allocation5 + $0x230] sm:$0xee] %v5230_v48  ;;  %v5433_v14 = vpop.permute.xlu1 %5432  ;;  %v4885_v39 = vrot.slane %v15130_v61, 4  ;;  %v15152_v61 = vld [vmem:[#allocation25_spill] sm:$0xff] }
 0x6f9   :  { %4600 = vrot.lane.b32.xlu0 %v4569_v37, %s10252_s6  ;;  %v5225_v20 = vsel %vm105_vm9, %v5212_v57, %v5213_v15  ;;  %v5227_v9 = vsel %vm105_vm9, %v5213_v15, %v5214_v54  ;;  %v5465_v53 = vrot.slane %v5433_v14, 4 }
 0x6fa   :  { %v5226_v44 = vsel %vm15117_vm8, %v5199_v19, %v5225_v20  ;;  %v5228_v4 = vsel %vm15118_vm5, %v5201_v12, %v5227_v9  ;;  %v15133_v12 = vrot.slane %v12318_v26, 5  ;;  %vm15149_vm8 = vmmov %vm15138_vm3 }
 0x6fb   :  { %v5429_v47 = vpop.permute.xlu0 %5428  ;;  %5245 = vst [vmem:[#allocation5 + $0x220] sm:$0xee] %v5226_v44  ;;  %vm15154_vm5 = vmmov %vm15145_vm6 }
 0x6fc   :  { %v5463_v62 = vrot.slane %v5429_v47, 4  ;;  %5246 = vst [vmem:[#allocation5 + $0x228] sm:$0xee] %v5228_v4  ;;  %4442 = vrot.lane.b32.xlu2 %v4413_v18, %s10251_s30  ;;  %v4886_v15 = vrot.slane %v15133_v12, 4  ;;  %v15134_v18 = vrot.slane %v12267_v17, 6  ;;  %v15139_v17 = vrot.slane %v12339_v35, 5 }
 0x6fd   :  { %v15143_v35 = vld [vmem:[#allocation24_spill] sm:$0xff] }
 0x6fe   :  { %v5480_v22 = vsel %vm105_vm9, %v5462_v6, %v5463_v62  ;;  %4604 = vrot.lane.b32.xlu1 %v4571_v46, %s10252_s6  ;;  %v5207_v19 = vpop.permute.xlu2 %5206  ;;  %v4888_v46 = vrot.slane %v15137_v59, 4  ;;  %v4889_v41 = vrot.slane %v15139_v17, 4 }
 0x6ff   :  { %v5481_v63 = vsel %vm15120_vm11, %v5427_v5, %v5480_v22  ;;  %v5216_v16 = vrot.slane %v5207_v19, 4  ;;  %v4883_v5 = vrot.slane %v15126_v11, 4  ;;  %vm15157_vm11 = vmmov %vm15154_vm5 }
 0x700   :  { %5528 = vst [vmem:[#allocation5 + $0x280] sm:$0xcc] %v5481_v63  ;;  %v5439_v23 = vpop.permute.xlu1 %5438 }
 0x701   :  { %4606 = vrot.lane.b32.xlu0 %v4572_v21, %s10252_s6  ;;  %v5231_v24 = vsel %vm105_vm9, %v5215_v8, %v5216_v16  ;;  %v5468_v49 = vrot.slane %v5439_v23, 4 }
 0x702   :  { %v5232_v57 = vsel %vm15122_vm12, %v5205_v42, %v5231_v24  ;;  %v15127_v42 = vrot.slane %v12256_v7, 5  ;;  %vm15158_vm12 = vmmov %vm15154_vm5 }
 0x703   :  { %v5435_v60 = vpop.permute.xlu0 %5434  ;;  %5248 = vst [vmem:[#allocation5 + $0x238] sm:$0xee] %v5232_v57 }
 0x704   :  { %v5466_v10 = vrot.slane %v5435_v60, 4  ;;  %4448 = vrot.lane.b32.xlu2 %v4416_v36, %s10251_s30  ;;  %v4419_v54 = vrot.slane %v15127_v42, 4 }
 0x706   :  { %v5486_v34 = vsel %vm105_vm9, %v5465_v53, %v5466_v10  ;;  %4909 = vrot.lane.b32.xlu1 %v4882_v31, %s10255_s9  ;;  %v5431_v43 = vpop.permute.xlu2 %5430 }
 0x707   :  { %v5487_v25 = vsel %vm15125_vm13, %v5433_v14, %v5486_v34  ;;  %v5464_v30 = vrot.slane %v5431_v43, 4  ;;  %vm15163_vm13 = vmmov %vm15154_vm5 }
 0x708   :  { %5531 = vst [vmem:[#allocation5 + $0x298] sm:$0xcc] %v5487_v25  ;;  %v5574_v40 = vpop.permute.xlu1 %5573  ;;  %v15147_v25 = vrot.slane %v15146_v32, 6 }
 0x709   :  { %4911 = vrot.lane.b32.xlu0 %v4883_v5, %s10255_s9  ;;  %v5482_v58 = vsel %vm105_vm9, %v5463_v62, %v5464_v30  ;;  %v5484_v27 = vsel %vm105_vm9, %v5464_v30, %v5465_v53  ;;  %v5590_v26 = vrot.slane %v5574_v40, 4  ;;  %v15141_v53 = vld [vmem:[#allocation22_spill] sm:$0xff] }
 0x70a   :  { %v5483_v13 = vsel %vm15128_vm15, %v5429_v47, %v5482_v58  ;;  %v5485_v8 = vsel %vm15129_vm10, %v5431_v43, %v5484_v27  ;;  %v4567_v47 = vrot.slane %v15134_v18, 4  ;;  %v15142_v57 = vrot.slane %v15141_v53, 6  ;;  %vm15166_vm15 = vmmov %vm15154_vm5 }
 0x70b   :  { %v5441_v2 = vpop.permute.xlu0 %5440  ;;  %5529 = vst [vmem:[#allocation5 + $0x288] sm:$0xcc] %v5483_v13  ;;  %v5037_v11 = vrot.slane %v15147_v25, 4  ;;  %vm15167_vm10 = vmmov %vm15154_vm5  ;;  %v15170_v25 = vld [vmem:[#allocation34_spill] sm:$0xff] }
 0x70c   :  { %v5469_v1 = vrot.slane %v5441_v2, 4  ;;  %5530 = vst [vmem:[#allocation5 + $0x290] sm:$0xcc] %v5485_v8  ;;  %4454 = vrot.lane.b32.xlu2 %v4419_v54, %s10251_s30  ;;  %v4570_v0 = vrot.slane %v15142_v57, 4 }
 0x70e   :  { %v5492_v48 = vsel %vm105_vm9, %v5468_v49, %v5469_v1  ;;  %v5494_v38 = vsel %vm105_vm9, %v5469_v1, %v5470_v33  ;;  %4915 = vrot.lane.b32.xlu1 %v4885_v39, %s10255_s9  ;;  %v5437_v14 = vpop.permute.xlu2 %5436  ;;  %v15153_v39 = vrot.slane %v15152_v61, 6  ;;  %v15176_v61 = vld [vmem:[#allocation32_spill] sm:$0xff] }
 0x70f   :  { %v5493_v7 = vsel %vm15131_vm14, %v5439_v23, %v5492_v48  ;;  %v5495_v37 = vsel %vm15132_vm0, %v5441_v2, %v5494_v38  ;;  %v5467_v55 = vrot.slane %v5437_v14, 4  ;;  %vm15172_vm14 = vcmask 891904   ;;  %vm15175_vm0 = vmmov %vm15154_vm5 }
 0x710   :  { %5534 = vst [vmem:[#allocation5 + $0x2b0] sm:$0xcc] %v5493_v7  ;;  %v12724_v20 = vpop.permute.xlu1 %5579  ;;  %v5039_v48 = vrot.slane %v15153_v39, 4  ;;  %v15177_v39 = vrot.slane %v15176_v61, 5 }
 0x711   :  { %5535 = vst [vmem:[#allocation5 + $0x2b8] sm:$0xcc] %v5495_v37  ;;  %4917 = vrot.lane.b32.xlu0 %v4886_v15, %s10255_s9  ;;  %v5488_v9 = vsel %vm105_vm9, %v5466_v10, %v5467_v55  ;;  %v5490_v45 = vsel %vm105_vm9, %v5467_v55, %v5468_v49  ;;  %v15144_v10 = vrot.slane %v15143_v35, 6  ;;  %v5593_v43 = vrot.slane %v12724_v20, 4  ;;  %v15150_v49 = vld [vmem:[#allocation23_spill] sm:$0xff]  ;;  %v15155_v37 = vld [vmem:[#allocation28_spill] sm:$0xff] }
 0x712   :  { %v5489_v44 = vsel %vm15135_vm1, %v5435_v60, %v5488_v9  ;;  %v5491_v4 = vsel %vm15136_vm2, %v5437_v14, %v5490_v45  ;;  %v15151_v13 = vrot.slane %v15150_v49, 6  ;;  %v15156_v12 = vrot.slane %v15155_v37, 6  ;;  %vm15180_vm1 = vmmov %vm15172_vm14 }
 0x713   :  { %v5576_v6 = vpop.permute.xlu0 %5575  ;;  %5532 = vst [vmem:[#allocation5 + $0x2a0] sm:$0xcc] %v5489_v44  ;;  %v5036_v28 = vrot.slane %v15144_v10, 4  ;;  %vm15183_vm2 = vmmov %vm15180_vm1 }
 0x714   :  { %v5591_v62 = vrot.slane %v5576_v6, 4  ;;  %5533 = vst [vmem:[#allocation5 + $0x2a8] sm:$0xcc] %v5491_v4  ;;  %4596 = vrot.lane.b32.xlu2 %v4567_v47, %s10252_s6  ;;  %v4573_v8 = vrot.slane %v15151_v13, 4  ;;  %v5040_v15 = vrot.slane %v15156_v12, 4  ;;  %v15159_v4 = vld [vmem:[#allocation29_spill] sm:$0xff] }
 0x716   :  { %v5600_v22 = vsel %vm105_vm9, %v5590_v26, %v5591_v62  ;;  %4921 = vrot.lane.b32.xlu1 %v4888_v46, %s10255_s9  ;;  %v5572_v21 = vpop.permute.xlu2 %5571 }
 0x717   :  { %v5601_v63 = vsel %vm15138_vm3, %v5574_v40, %v5600_v22  ;;  %v5589_v19 = vrot.slane %v5572_v21, 4  ;;  %v15161_v22 = vld [vmem:[#allocation27_spill] sm:$0xff]  ;;  %vm15184_vm3 = vmmov %vm15180_vm1 }
 0x718   :  { %5623 = vst [vmem:[#allocation5 + $0x2c8] sm:$0xee] %v5601_v63  ;;  %v3968_v16 = vpop.permute.xlu1 %3967  ;;  %v15162_v63 = vrot.slane %v15161_v22, 6  ;;  %v15185_v22 = vld [vmem:[#allocation33_spill] sm:$0xff] }
 0x719   :  { %4923 = vrot.lane.b32.xlu0 %v4889_v41, %s10255_s9  ;;  %v3994_v50 = vrot.slane %v3968_v16, 4  ;;  %v5598_v23 = vsel %vm105_vm9, %v5589_v19, %v5590_v26  ;;  %v15164_v19 = vld [vmem:[#allocation30_spill] sm:$0xff] }
 0x71a   :  { %v5599_v60 = vsel %vm15140_vm4, %v5572_v21, %v5598_v23  ;;  %v5042_v17 = vrot.slane %v15162_v63, 4  ;;  %v15186_v63 = vrot.slane %v15185_v22, 6  ;;  %vm15189_vm4 = vmmov %vm15180_vm1 }
 0x71b   :  { %v3970_v24 = vpop.permute.xlu0 %3969  ;;  %5622 = vst [vmem:[#allocation5 + $0x2c0] sm:$0xee] %v5599_v60 }
 0x71c   :  { %v3995_v36 = vrot.slane %v3970_v24, 4  ;;  %4602 = vrot.lane.b32.xlu2 %v4570_v0, %s10252_s6 }
 0x71e   :  { %v4019_v31 = vsel %vm105_vm9, %v3994_v50, %v3995_v36  ;;  %5063 = vrot.lane.b32.xlu1 %v5036_v28, %s10256_s10  ;;  %v5578_v5 = vpop.permute.xlu2 %5577  ;;  %v15168_v28 = vld [vmem:[#allocation31_spill] sm:$0xff] }
 0x71f   :  { %v4020_v34 = vsel %vm15145_vm6, %v3968_v16, %v4019_v31  ;;  %v5592_v30 = vrot.slane %v5578_v5, 4  ;;  %v15165_v16 = vrot.slane %v15164_v19, 6  ;;  %v15169_v31 = vrot.slane %v15168_v28, 5  ;;  %vm15192_vm6 = vmmov %vm15180_vm1 }
 0x720   :  { %4059 = vst [vmem:[#allocation5 + $0x40] sm:$0x33] %v4020_v34  ;;  %v3974_v40 = vpop.permute.xlu1 %3973 }
 0x721   :  { %5065 = vrot.lane.b32.xlu0 %v5037_v11, %s10256_s10  ;;  %v3997_v33 = vrot.slane %v3974_v40, 4  ;;  %v5602_v58 = vsel %vm105_vm9, %v5591_v62, %v5592_v30  ;;  %v5604_v27 = vsel %vm105_vm9, %v5592_v30, %v5593_v43  ;;  %v15160_v62 = vrot.slane %v15159_v4, 5 }
 0x722   :  { %v5603_v54 = vsel %vm15148_vm7, %v5576_v6, %v5602_v58  ;;  %v5605_v2 = vsel %vm15149_vm8, %v5578_v5, %v5604_v27  ;;  %v5043_v50 = vrot.slane %v15165_v16, 4  ;;  %v4887_v34 = vrot.slane %v15169_v31, 4  ;;  %vm15193_vm7 = vmmov %vm15180_vm1 }
 0x723   :  { %v3976_v42 = vpop.permute.xlu0 %3975  ;;  %5624 = vst [vmem:[#allocation5 + $0x2d0] sm:$0xee] %v5603_v54  ;;  %v4884_v59 = vrot.slane %v15160_v62, 4  ;;  %v15171_v11 = vrot.slane %v15170_v25, 6  ;;  %vm15196_vm8 = vcmask 809984  }
 0x724   :  { %v3998_v1 = vrot.slane %v3976_v42, 4  ;;  %5625 = vst [vmem:[#allocation5 + $0x2d8] sm:$0xee] %v5605_v2  ;;  %4608 = vrot.lane.b32.xlu2 %v4573_v8, %s10252_s6 }
 0x725   :  { %v5417_v5 = vrot.slane %v15171_v11, 4 }
 0x726   :  { %v4025_v38 = vsel %vm105_vm9, %v3997_v33, %v3998_v1  ;;  %5069 = vrot.lane.b32.xlu1 %v5039_v48, %s10256_s10  ;;  %v3972_v14 = vpop.permute.xlu2 %3971  ;;  %v4890_v48 = vrot.slane %v15177_v39, 4 }
 0x727   :  { %v4026_v7 = vsel %vm15154_vm5, %v3974_v40, %v4025_v38  ;;  %v3996_v55 = vrot.slane %v3972_v14, 4  ;;  %vm15197_vm5 = vmmov %vm15180_vm1 }
 0x728   :  { %4062 = vst [vmem:[#allocation5 + $0x58] sm:$0x33] %v4026_v7  ;;  %v3980_v9 = vpop.permute.xlu1 %3979  ;;  %v15178_v7 = vld [vmem:[#allocation36_spill] sm:$0xff] }
 0x729   :  { %5071 = vrot.lane.b32.xlu0 %v5040_v15, %s10256_s10  ;;  %v4000_v45 = vrot.slane %v3980_v9, 4  ;;  %v4021_v18 = vsel %vm105_vm9, %v3995_v36, %v3996_v55  ;;  %v4023_v47 = vsel %vm105_vm9, %v3996_v55, %v3997_v33  ;;  %v15173_v33 = vld [vmem:[#allocation37_spill] sm:$0xff]  ;;  %v15179_v37 = vrot.slane %v15178_v7, 6  ;;  %v15181_v55 = vld [vmem:[#allocation40_spill] sm:$0xff] }
 0x72a   :  { %v4022_v26 = vsel %vm15157_vm11, %v3970_v24, %v4021_v18  ;;  %v4024_v44 = vsel %vm15158_vm12, %v3972_v14, %v4023_v47  ;;  %v15174_v58 = vrot.slane %v15173_v33, 6  ;;  %vm15200_vm11 = vmmov %vm15196_vm8 }
 0x72b   :  { %v3982_v6 = vpop.permute.xlu0 %3981  ;;  %4060 = vst [vmem:[#allocation5 + $0x48] sm:$0x33] %v4022_v26  ;;  %v5420_v12 = vrot.slane %v15179_v37, 4  ;;  %vm15201_vm12 = vmmov %vm15196_vm8 }
 0x72c   :  { %v4001_v46 = vrot.slane %v3982_v6, 4  ;;  %4061 = vst [vmem:[#allocation5 + $0x50] sm:$0x33] %v4024_v44  ;;  %4913 = vrot.lane.b32.xlu2 %v4884_v59, %s10255_s9  ;;  %v5418_v27 = vrot.slane %v15174_v58, 4  ;;  %v5549_v58 = vld [vmem:[#allocation4 + $0x2c] sm:$0x77] }
 0x72e   :  { %v4031_v41 = vsel %vm105_vm9, %v4000_v45, %v4001_v46  ;;  %5075 = vrot.lane.b32.xlu1 %v5042_v17, %s10256_s10  ;;  %v3978_v23 = vpop.permute.xlu2 %3977  ;;  %v5038_v17 = vrot.slane %v15186_v63, 4 }
 0x72f   :  { %v4032_v21 = vsel %vm15163_vm13, %v3980_v9, %v4031_v41  ;;  %v3999_v24 = vrot.slane %v3978_v23, 4  ;;  %v15182_v9 = vrot.slane %v15181_v55, 6  ;;  %vm15202_vm13 = vmmov %vm15196_vm8 }
 0x730   :  { %4065 = vst [vmem:[#allocation5 + $0x70] sm:$0x33] %v4032_v21  ;;  %v4122_v60 = vpop.permute.xlu1 %4121  ;;  %v15187_v21 = vld [vmem:[#allocation39_spill] sm:$0xff] }
 0x731   :  { %5077 = vrot.lane.b32.xlu0 %v5043_v50, %s10256_s10  ;;  %v4148_v53 = vrot.slane %v4122_v60, 4  ;;  %v4027_v57 = vsel %vm105_vm9, %v3998_v1, %v3999_v24  ;;  %v4029_v0 = vsel %vm105_vm9, %v3999_v24, %v4000_v45  ;;  %v5421_v45 = vrot.slane %v15182_v9, 4 }
 0x732   :  { %v4028_v35 = vsel %vm15166_vm15, %v3976_v42, %v4027_v57  ;;  %v4030_v10 = vsel %vm15167_vm10, %v3978_v23, %v4029_v0  ;;  %v15188_v19 = vrot.slane %v15187_v21, 6  ;;  %v12825_v23 = vld [vmem:[#allocation4 + $0x4] sm:$0x77]  ;;  %vm15203_vm15 = vmmov %vm15196_vm8 }
 0x733   :  { %v4124_v36 = vpop.permute.xlu0 %4123  ;;  %4063 = vst [vmem:[#allocation5 + $0x60] sm:$0x33] %v4028_v35  ;;  %vm15204_vm10 = vmmov %vm15196_vm8 }
 0x734   :  { %v4149_v32 = vrot.slane %v4124_v36, 4  ;;  %4064 = vst [vmem:[#allocation5 + $0x68] sm:$0x33] %v4030_v10  ;;  %4919 = vrot.lane.b32.xlu2 %v4887_v34, %s10255_s9  ;;  %v5423_v16 = vrot.slane %v15188_v19, 4  ;;  %v6821_v10 = vrot.slane %v12825_v23, 6 }
 0x735   :  { %v6015_v19 = vld [vmem:[#allocation4 + $0x4] sm:$0x77] }
 0x736   :  { %v4173_v30 = vsel %vm105_vm9, %v4148_v53, %v4149_v32  ;;  %5444 = vrot.lane.b32.xlu1 %v5417_v5, %s10259_s13  ;;  %v3984_v42 = vpop.permute.xlu2 %3983  ;;  %v15194_v5 = vld [vmem:[#allocation35_spill] sm:$0xff] }
 0x737   :  { %v4174_v40 = vsel %vm15172_vm14, %v4122_v60, %v4173_v30  ;;  %v4002_v54 = vrot.slane %v3984_v42, 4  ;;  %v15190_v60 = vld [vmem:[#allocation41_spill] sm:$0xff]  ;;  %v15195_v30 = vrot.slane %v15194_v5, 6  ;;  %vm15205_vm14 = vmmov %vm15196_vm8 }
 0x738   :  { %4213 = vst [vmem:[#allocation5 + $0x80] sm:$0x11] %v4174_v40  ;;  %v4128_v2 = vpop.permute.xlu1 %4127  ;;  %v15191_v53 = vrot.slane %v15190_v60, 6  ;;  %v6033_v60 = vrot.slane %v6015_v19, 7 }
 0x739   :  { %5446 = vrot.lane.b32.xlu0 %v5418_v27, %s10259_s13  ;;  %v4151_v49 = vrot.slane %v4128_v2, 4  ;;  %v4033_v13 = vsel %vm105_vm9, %v4001_v46, %v4002_v54  ;;  %v5041_v40 = vrot.slane %v15195_v30, 4  ;;  %v6830_v27 = vrot.slane %v6821_v10, 4  ;;  %v12843_v54 = vld [vmem:[#allocation4 + $0xc] sm:$0x77] }
 0x73a   :  { %v4034_v1 = vsel %vm15175_vm0, %v3982_v6, %v4033_v13  ;;  %v5424_v57 = vrot.slane %v15191_v53, 4  ;;  %v5880_v39 = vrot.slane %v12843_v54, 6  ;;  %vm15206_vm0 = vcmask 744448  }
 0x73b   :  { %v4130_v8 = vpop.permute.xlu0 %4129  ;;  %4066 = vst [vmem:[#allocation5 + $0x78] sm:$0x33] %v4034_v1 }
 0x73c   :  { %v4152_v38 = vrot.slane %v4130_v8, 4  ;;  %4925 = vrot.lane.b32.xlu2 %v4890_v48, %s10255_s9 }
 0x73e   :  { %v4179_v15 = vsel %vm105_vm9, %v4151_v49, %v4152_v38  ;;  %5450 = vrot.lane.b32.xlu1 %v5420_v12, %s10259_s13  ;;  %v4126_v18 = vpop.permute.xlu2 %4125 }
 0x73f   :  { %v4180_v14 = vsel %vm15180_vm1, %v4128_v2, %v4179_v15  ;;  %v4150_v47 = vrot.slane %v4126_v18, 4  ;;  %v15198_v15 = vld [vmem:[#allocation38_spill] sm:$0xff]  ;;  %vm15207_vm1 = vmmov %vm15196_vm8 }
 0x740   :  { %4216 = vst [vmem:[#allocation5 + $0x98] sm:$0x11] %v4180_v14  ;;  %v4134_v6 = vpop.permute.xlu1 %4133  ;;  %v15199_v14 = vrot.slane %v15198_v15, 6 }
 0x741   :  { %5452 = vrot.lane.b32.xlu0 %v5421_v45, %s10259_s13  ;;  %v4154_v26 = vrot.slane %v4134_v6, 4  ;;  %v4175_v44 = vsel %vm105_vm9, %v4149_v32, %v4150_v47  ;;  %v4177_v4 = vsel %vm105_vm9, %v4150_v47, %v4151_v49  ;;  %v5567_v49 = vrot.slane %v5549_v58, 7 }
 0x742   :  { %v4176_v59 = vsel %vm15183_vm2, %v4124_v36, %v4175_v44  ;;  %v4178_v46 = vsel %vm15184_vm3, %v4126_v18, %v4177_v4  ;;  %v5044_v55 = vrot.slane %v15199_v14, 4  ;;  %v5889_v45 = vrot.slane %v5880_v39, 4  ;;  %vm15208_vm2 = vmmov %vm15206_vm0 }
 0x743   :  { %v4136_v62 = vpop.permute.xlu0 %4135  ;;  %4214 = vst [vmem:[#allocation5 + $0x88] sm:$0x11] %v4176_v59  ;;  %vm15209_vm3 = vmmov %vm15206_vm0 }
 0x744   :  { %v4155_v41 = vrot.slane %v4136_v62, 4  ;;  %4215 = vst [vmem:[#allocation5 + $0x90] sm:$0x11] %v4178_v46  ;;  %5067 = vrot.lane.b32.xlu2 %v5038_v17, %s10256_s10 }
 0x746   :  { %v4185_v50 = vsel %vm105_vm9, %v4154_v26, %v4155_v41  ;;  %5456 = vrot.lane.b32.xlu1 %v5423_v16, %s10259_s13  ;;  %v4132_v0 = vpop.permute.xlu2 %4131 }
 0x747   :  { %v4186_v24 = vsel %vm15189_vm4, %v4134_v6, %v4185_v50  ;;  %v4153_v36 = vrot.slane %v4132_v0, 4  ;;  %v6101_v50 = vld [vmem:[#allocation4 + $0x4] sm:$0x77]  ;;  %vm15210_vm4 = vmmov %vm15206_vm0 }
 0x748   :  { %4219 = vst [vmem:[#allocation5 + $0xb0] sm:$0x11] %v4186_v24  ;;  %v4439_v35 = vpop.permute.xlu1 %4438 }
 0x749   :  { %5458 = vrot.lane.b32.xlu0 %v5424_v57, %s10259_s13  ;;  %v4465_v28 = vrot.slane %v4439_v35, 4  ;;  %v4181_v31 = vsel %vm105_vm9, %v4152_v38, %v4153_v36  ;;  %v4183_v34 = vsel %vm105_vm9, %v4153_v36, %v4154_v26 }
 0x74a   :  { %v4182_v25 = vsel %vm15192_vm6, %v4130_v8, %v4181_v31  ;;  %v4184_v11 = vsel %vm15193_vm7, %v4132_v0, %v4183_v34  ;;  %v12847_v8 = vld [vmem:[#allocation4 + $0xc] sm:$0x77]  ;;  %vm15211_vm6 = vmmov %vm15206_vm0 }
 0x74b   :  { %v4441_v32 = vpop.permute.xlu0 %4440  ;;  %4217 = vst [vmem:[#allocation5 + $0xa0] sm:$0x11] %v4182_v25  ;;  %v6822_v37 = vrot.slane %v12847_v8, 6  ;;  %v12876_v0 = vld [vmem:[#allocation4 + $0xc] sm:$0x77]  ;;  %vm15212_vm7 = vmmov %vm15206_vm0 }
 0x74c   :  { %v4466_v33 = vrot.slane %v4441_v32, 4  ;;  %4218 = vst [vmem:[#allocation5 + $0xa8] sm:$0x11] %v4184_v11  ;;  %5073 = vrot.lane.b32.xlu2 %v5041_v40, %s10256_s10  ;;  %v6197_v11 = vrot.slane %v12876_v0, 5 }
 0x74d   :  { %v6831_v6 = vrot.slane %v6822_v37, 4 }
 0x74e   :  { %v4490_v42 = vsel %vm105_vm9, %v4465_v28, %v4466_v33  ;;  %6857 = vrot.lane.b32.xlu1 %v6830_v27, %s10271_s25  ;;  %v4138_v13 = vpop.permute.xlu2 %4137 }
 0x74f   :  { %v4491_v2 = vsel %vm15196_vm8, %v4439_v35, %v4490_v42  ;;  %v4156_v1 = vrot.slane %v4138_v13, 4  ;;  %v12892_v42 = vld [vmem:[#allocation4 + $0x4] sm:$0x77]  ;;  %vm15213_vm8 = vmmov %vm15206_vm0 }
 0x750   :  { %4530 = vst [vmem:[#allocation5 + $0x100] sm:$0x33] %v4491_v2  ;;  %v4445_v61 = vpop.permute.xlu1 %4444 }
 0x751   :  { %5581 = vrot.lane.b32.xlu0 %v5567_v49, %s10260_s14  ;;  %v4468_v48 = vrot.slane %v4445_v61, 4  ;;  %v4187_v38 = vsel %vm105_vm9, %v4155_v41, %v4156_v1  ;;  %v5419_v41 = vrot.slane %v5410_v52, 4 }
 0x752   :  { %v4188_v12 = vsel %vm15197_vm5, %v4136_v62, %v4187_v38  ;;  %v5861_v38 = vld [vmem:[#allocation4 + $0x4] sm:$0x77]  ;;  %vm15214_vm5 = vcmask 89088  }
 0x753   :  { %v4447_v7 = vpop.permute.xlu0 %4446  ;;  %4220 = vst [vmem:[#allocation5 + $0xb8] sm:$0x11] %v4188_v12  ;;  %v5708_v12 = vld [vmem:[#allocation4 + $0xc] sm:$0x77] }
 0x754   :  { %v4469_v9 = vrot.slane %v4447_v7, 4  ;;  %5079 = vrot.lane.b32.xlu2 %v5044_v55, %s10256_s10  ;;  %v5630_v55 = vld [vmem:[#allocation4 + $0x4] sm:$0x77] }
 0x756   :  { %v4496_v18 = vsel %vm105_vm9, %v4468_v48, %v4469_v9  ;;  %5917 = vrot.lane.b32.xlu1 %v5889_v45, %s10263_s17  ;;  %v4443_v26 = vpop.permute.xlu2 %4442 }
 0x757   :  { %v4497_v47 = vsel %vm15200_vm11, %v4445_v61, %v4496_v18  ;;  %v4467_v44 = vrot.slane %v4443_v26, 4  ;;  %vm15215_vm11 = vmmov %vm15206_vm0 }
 0x758   :  { %4533 = vst [vmem:[#allocation5 + $0x118] sm:$0x33] %v4497_v47  ;;  %v4451_v4 = vpop.permute.xlu1 %4450  ;;  %v5726_v47 = vrot.slane %v5708_v12, 5 }
 0x759   :  { %6859 = vrot.lane.b32.xlu0 %v6831_v6, %s10271_s25  ;;  %v4471_v62 = vrot.slane %v4451_v4, 4  ;;  %v4492_v59 = vsel %vm105_vm9, %v4466_v33, %v4467_v44  ;;  %v4494_v46 = vsel %vm105_vm9, %v4467_v44, %v4468_v48  ;;  %v6102_v33 = vld [vmem:[#allocation4 + $0xc] sm:$0x77]  ;;  %v5725_v48 = vrot.slane %v12892_v42, 5 }
 0x75a   :  { %v4493_v63 = vsel %vm15201_vm12, %v4441_v32, %v4492_v59  ;;  %v4495_v17 = vsel %vm15202_vm13, %v4443_v26, %v4494_v46  ;;  %v5422_v32 = vrot.slane %v5413_v29, 4  ;;  %v5550_v29 = vld [vmem:[#allocation4 + $0x34] sm:$0x77]  ;;  %vm15216_vm12 = vmmov %vm15214_vm5 }
 0x75b   :  { %v4453_v22 = vpop.permute.xlu0 %4452  ;;  %4531 = vst [vmem:[#allocation5 + $0x108] sm:$0x33] %v4493_v63  ;;  %v5568_v1 = vrot.slane %v5550_v29, 7  ;;  %v5735_v63 = vrot.slane %v5726_v47, 4  ;;  %vm15217_vm13 = vmmov %vm15214_vm5  ;;  %v5734_v23 = vrot.slane %v5725_v48, 4 }
 0x75c   :  { %v4472_v21 = vrot.slane %v4453_v22, 4  ;;  %4532 = vst [vmem:[#allocation5 + $0x110] sm:$0x33] %v4495_v17  ;;  %5448 = vrot.lane.b32.xlu2 %v5419_v41, %s10259_s13 }
 0x75e   :  { %v4502_v16 = vsel %vm105_vm9, %v4471_v62, %v4472_v21  ;;  %6119 = vrot.lane.b32.xlu1 %v6101_v50, %s10265_s19  ;;  %v4449_v53 = vpop.permute.xlu2 %4448 }
 0x75f   :  { %v4503_v24 = vsel %vm15203_vm15, %v4451_v4, %v4502_v16  ;;  %v4470_v57 = vrot.slane %v4449_v53, 4  ;;  %v6016_v16 = vld [vmem:[#allocation4 + $0xc] sm:$0x77]  ;;  %vm15218_vm15 = vmmov %vm15214_vm5 }
 0x760   :  { %4536 = vst [vmem:[#allocation5 + $0x130] sm:$0x33] %v4503_v24  ;;  %v4593_v51 = vpop.permute.xlu1 %4592 }
 0x761   :  { %6042 = vrot.lane.b32.xlu0 %v6033_v60, %s10264_s18  ;;  %v4619_v52 = vrot.slane %v4593_v51, 4  ;;  %v4498_v36 = vsel %vm105_vm9, %v4469_v9, %v4470_v57  ;;  %v4500_v35 = vsel %vm105_vm9, %v4470_v57, %v4471_v62  ;;  %v5879_v9 = vrot.slane %v5861_v38, 6  ;;  %v6573_v38 = vld [vmem:[#allocation4 + $0xc] sm:$0x77] }
 0x762   :  { %v4499_v31 = vsel %vm15204_vm10, %v4447_v7, %v4498_v36  ;;  %v4501_v34 = vsel %vm15205_vm14, %v4449_v53, %v4500_v35  ;;  %v6034_v36 = vrot.slane %v6016_v16, 7  ;;  %vm15219_vm10 = vmmov %vm15214_vm5 }
 0x763   :  { %v4595_v28 = vpop.permute.xlu0 %4594  ;;  %4534 = vst [vmem:[#allocation5 + $0x120] sm:$0x33] %v4499_v31  ;;  %v5888_v46 = vrot.slane %v5879_v9, 4  ;;  %v6572_v31 = vld [vmem:[#allocation4 + $0x4] sm:$0x77]  ;;  %vm15220_vm14 = vmmov %vm15214_vm5 }
 0x764   :  { %v4620_v25 = vrot.slane %v4595_v28, 4  ;;  %4535 = vst [vmem:[#allocation5 + $0x128] sm:$0x33] %v4501_v34  ;;  %5454 = vrot.lane.b32.xlu2 %v5422_v32, %s10259_s13 }
 0x766   :  { %v4644_v5 = vsel %vm105_vm9, %v4619_v52, %v4620_v25  ;;  %6216 = vrot.lane.b32.xlu1 %v6197_v11, %s10266_s20  ;;  %v4455_v40 = vpop.permute.xlu2 %4454 }
 0x767   :  { %v4645_v30 = vsel %vm15206_vm0, %v4593_v51, %v4644_v5  ;;  %v4473_v56 = vrot.slane %v4455_v40, 4  ;;  %v12922_v5 = vld [vmem:[#allocation4 + $0x4] sm:$0x77]  ;;  %vm15221_vm0 = vmmov %vm15214_vm5 }
 0x768   :  { %4684 = vst [vmem:[#allocation5 + $0x140] sm:$0x11] %v4645_v30  ;;  %v4599_v58 = vpop.permute.xlu1 %4598 }
 0x769   :  { %6121 = vrot.lane.b32.xlu0 %v6102_v33, %s10265_s19  ;;  %v4622_v27 = vrot.slane %v4599_v58, 4  ;;  %v4504_v2 = vsel %vm105_vm9, %v4472_v21, %v4473_v56  ;;  %v12924_v33 = vld [vmem:[#allocation4 + $0xc] sm:$0x77] }
 0x76a   :  { %v4505_v13 = vsel %vm15207_vm1, %v4453_v22, %v4504_v2  ;;  %vm15222_vm1 = vcmask 80896  }
 0x76b   :  { %v4601_v49 = vpop.permute.xlu0 %4600  ;;  %4537 = vst [vmem:[#allocation5 + $0x138] sm:$0x33] %v4505_v13 }
 0x76c   :  { %v4623_v61 = vrot.slane %v4601_v49, 4  ;;  %5583 = vrot.lane.b32.xlu2 %v5568_v1, %s10260_s14 }
 0x76e   :  { %v4650_v7 = vsel %vm105_vm9, %v4622_v27, %v4623_v61  ;;  %5743 = vrot.lane.b32.xlu1 %v5725_v48, %s10262_s16  ;;  %v4597_v14 = vpop.permute.xlu2 %4596 }
 0x76f   :  { %v4651_v15 = vsel %vm15208_vm2, %v4599_v58, %v4650_v7  ;;  %v4621_v45 = vrot.slane %v4597_v14, 4  ;;  %v12938_v7 = vld [vmem:[#allocation4 + $0x4] sm:$0x77]  ;;  %vm15223_vm2 = vmmov %vm15221_vm0 }
 0x770   :  { %4687 = vst [vmem:[#allocation5 + $0x158] sm:$0x11] %v4651_v15  ;;  %v4605_v18 = vpop.permute.xlu1 %4604 }
 0x771   :  { %5648 = vrot.lane.b32.xlu0 %v5630_v55, %s10261_s15  ;;  %v4625_v6 = vrot.slane %v4605_v18, 4  ;;  %v4646_v26 = vsel %vm105_vm9, %v4620_v25, %v4621_v45  ;;  %v4648_v44 = vsel %vm105_vm9, %v4621_v45, %v4622_v27  ;;  %v6196_v27 = vrot.slane %v12922_v5, 5 }
 0x772   :  { %v4647_v62 = vsel %vm15209_vm3, %v4595_v28, %v4646_v26  ;;  %v4649_v59 = vsel %vm15210_vm4, %v4597_v14, %v4648_v44  ;;  %v5631_v44 = vld [vmem:[#allocation4 + $0xc] sm:$0x77]  ;;  %vm15224_vm3 = vmmov %vm15222_vm1 }
 0x773   :  { %v4607_v4 = vpop.permute.xlu0 %4606  ;;  %4685 = vst [vmem:[#allocation5 + $0x148] sm:$0x11] %v4647_v62  ;;  %vm15226_vm4 = vmmov %vm15222_vm1 }
 0x774   :  { %v4626_v22 = vrot.slane %v4607_v4, 4  ;;  %4686 = vst [vmem:[#allocation5 + $0x150] sm:$0x11] %v4649_v59  ;;  %5915 = vrot.lane.b32.xlu2 %v5888_v46, %s10263_s17 }
 0x776   :  { %v4656_v17 = vsel %vm105_vm9, %v4625_v6, %v4626_v22  ;;  %5763 = vrot.lane.b32.xlu1 %v5735_v63, %s10262_s16  ;;  %v4603_v21 = vpop.permute.xlu2 %4602 }
 0x777   :  { %v4657_v41 = vsel %vm15211_vm6, %v4605_v18, %v4656_v17  ;;  %v4624_v19 = vrot.slane %v4603_v21, 4  ;;  %v6667_v18 = vrot.slane %v12938_v7, 5  ;;  %vm15227_vm6 = vmmov %vm15222_vm1  ;;  %v6017_v7 = vld [vmem:[#allocation4 + $0x14] sm:$0x77] }
 0x778   :  { %4690 = vst [vmem:[#allocation5 + $0x170] sm:$0x11] %v4657_v41  ;;  %v4910_v50 = vpop.permute.xlu1 %4909 }
 0x779   :  { %5745 = vrot.lane.b32.xlu0 %v5726_v47, %s10262_s16  ;;  %v4936_v24 = vrot.slane %v4910_v50, 4  ;;  %v4652_v60 = vsel %vm105_vm9, %v4623_v61, %v4624_v19  ;;  %v4654_v53 = vsel %vm105_vm9, %v4624_v19, %v4625_v6  ;;  %v6676_v59 = vrot.slane %v6667_v18, 4 }
 0x77a   :  { %v4653_v51 = vsel %vm15212_vm7, %v4601_v49, %v4652_v60  ;;  %v4655_v52 = vsel %vm15213_vm8, %v4603_v21, %v4654_v53  ;;  %v6668_v49 = vrot.slane %v12924_v33, 5  ;;  %v6332_v53 = vld [vmem:[#allocation4 + $0x4] sm:$0x77]  ;;  %vm15228_vm7 = vmmov %vm15222_vm1 }
 0x77b   :  { %v4912_v57 = vpop.permute.xlu0 %4911  ;;  %4688 = vst [vmem:[#allocation5 + $0x160] sm:$0x11] %v4653_v51  ;;  %v6350_v0 = vrot.slane %v6332_v53, 6  ;;  %vm15230_vm8 = vmmov %vm15222_vm1 }
 0x77c   :  { %v4937_v35 = vrot.slane %v4912_v57, 4  ;;  %4689 = vst [vmem:[#allocation5 + $0x168] sm:$0x11] %v4655_v52  ;;  %6044 = vrot.lane.b32.xlu2 %v6034_v36, %s10264_s18 }
 0x77e   :  { %v4961_v28 = vsel %vm105_vm9, %v4936_v24, %v4937_v35  ;;  %6590 = vrot.lane.b32.xlu1 %v6572_v31, %s10269_s23  ;;  %v4609_v32 = vpop.permute.xlu2 %4608  ;;  %v6206_v24 = vrot.slane %v6197_v11, 4  ;;  %v6359_v31 = vrot.slane %v6350_v0, 4 }
 0x77f   :  { %v4962_v34 = vsel %vm15214_vm5, %v4910_v50, %v4961_v28  ;;  %v4627_v25 = vrot.slane %v4609_v32, 4  ;;  %v12978_v32 = vld [vmem:[#allocation4 + $0xc] sm:$0x77]  ;;  %vm15231_vm5 = vmmov %vm15222_vm1 }
 0x780   :  { %5001 = vst [vmem:[#allocation5 + $0x1c0] sm:$0x33] %v4962_v34  ;;  %v4916_v30 = vpop.permute.xlu1 %4915 }
 0x781   :  { %5897 = vrot.lane.b32.xlu0 %v5879_v9, %s10263_s17  ;;  %v4939_v40 = vrot.slane %v4916_v30, 4  ;;  %v4658_v56 = vsel %vm105_vm9, %v4626_v22, %v4627_v25 }
 0x782   :  { %v4659_v58 = vsel %vm15215_vm11, %v4607_v4, %v4658_v56  ;;  %v6487_v56 = vld [vmem:[#allocation4 + $0xc] sm:$0x77]  ;;  %vm15232_vm11 = vcmask 1039360  }
 0x783   :  { %v4918_v29 = vpop.permute.xlu0 %4917  ;;  %4691 = vst [vmem:[#allocation5 + $0x178] sm:$0x11] %v4659_v58  ;;  %v6351_v58 = vrot.slane %v12978_v32, 6  ;;  %v6486_v32 = vld [vmem:[#allocation4 + $0x4] sm:$0x77] }
 0x784   :  { %v4940_v2 = vrot.slane %v4918_v29, 4  ;;  %6214 = vrot.lane.b32.xlu2 %v6196_v27, %s10266_s20 }
 0x786   :  { %v4967_v13 = vsel %vm105_vm9, %v4939_v40, %v4940_v2  ;;  %6687 = vrot.lane.b32.xlu1 %v6668_v49, %s10270_s24  ;;  %v4914_v61 = vpop.permute.xlu2 %4913 }
 0x787   :  { %v4968_v1 = vsel %vm15216_vm12, %v4916_v30, %v4967_v13  ;;  %v4938_v12 = vrot.slane %v4914_v61, 4  ;;  %vm15233_vm12 = vmmov %vm15222_vm1 }
 0x788   :  { %5004 = vst [vmem:[#allocation5 + $0x1d8] sm:$0x33] %v4968_v1  ;;  %v4922_v15 = vpop.permute.xlu1 %4921 }
 0x789   :  { %6592 = vrot.lane.b32.xlu0 %v6573_v38, %s10269_s23  ;;  %v4942_v14 = vrot.slane %v4922_v15, 4  ;;  %v4963_v55 = vsel %vm105_vm9, %v4937_v35, %v4938_v12  ;;  %v4965_v9 = vsel %vm105_vm9, %v4938_v12, %v4939_v40 }
 0x78a   :  { %v4964_v47 = vsel %vm15217_vm13, %v4912_v57, %v4963_v55  ;;  %v4966_v6 = vsel %vm15218_vm15, %v4914_v61, %v4965_v9  ;;  %v6505_v61 = vrot.slane %v6487_v56, 7  ;;  %v12994_v55 = vld [vmem:[#allocation4 + $0x14] sm:$0x77]  ;;  %vm15234_vm13 = vmmov %vm15232_vm11 }
 0x78b   :  { %v4924_v45 = vpop.permute.xlu0 %4923  ;;  %5002 = vst [vmem:[#allocation5 + $0x1c8] sm:$0x33] %v4964_v47  ;;  %vm15235_vm15 = vmmov %vm15232_vm11 }
 0x78c   :  { %v4943_v26 = vrot.slane %v4924_v45, 4  ;;  %5003 = vst [vmem:[#allocation5 + $0x1d0] sm:$0x33] %v4966_v6  ;;  %5650 = vrot.lane.b32.xlu2 %v5631_v44, %s10261_s15  ;;  %v5881_v44 = vrot.slane %v12994_v55, 6 }
 0x78e   :  { %v4973_v4 = vsel %vm105_vm9, %v4942_v14, %v4943_v26  ;;  %6839 = vrot.lane.b32.xlu1 %v6821_v10, %s10271_s25  ;;  %v4920_v46 = vpop.permute.xlu2 %4919 }
 0x78f   :  { %v4974_v62 = vsel %vm15219_vm10, %v4922_v15, %v4973_v4  ;;  %v4941_v22 = vrot.slane %v4920_v46, 4  ;;  %v6360_v15 = vrot.slane %v6351_v58, 4  ;;  %vm15236_vm10 = vmmov %vm15232_vm11 }
 0x790   :  { %5007 = vst [vmem:[#allocation5 + $0x1f0] sm:$0x33] %v4974_v62  ;;  %v5064_v63 = vpop.permute.xlu1 %5063 }
 0x791   :  { %6703 = vrot.lane.b32.xlu0 %v6676_v59, %s10270_s24  ;;  %v5090_v17 = vrot.slane %v5064_v63, 4  ;;  %v4969_v41 = vsel %vm105_vm9, %v4940_v2, %v4941_v22  ;;  %v4971_v21 = vsel %vm105_vm9, %v4941_v22, %v4942_v14  ;;  %v6677_v59 = vrot.slane %v6668_v49, 4 }
 0x792   :  { %v4970_v16 = vsel %vm15220_vm14, %v4918_v29, %v4969_v41  ;;  %v4972_v50 = vsel %vm15221_vm0, %v4920_v46, %v4971_v21  ;;  %v6035_v22 = vrot.slane %v6017_v7, 7  ;;  %v5890_v41 = vrot.slane %v5881_v44, 4  ;;  %vm15237_vm14 = vmmov %vm15236_vm10  ;;  %v13051_v7 = vld [vmem:[#allocation4 + $0x1c] sm:$0x77] }
 0x793   :  { %v5066_v19 = vpop.permute.xlu0 %5065  ;;  %5005 = vst [vmem:[#allocation5 + $0x1e0] sm:$0x33] %v4970_v16  ;;  %vm15238_vm0 = vmmov %vm15236_vm10 }
 0x794   :  { %v5091_v10 = vrot.slane %v5066_v19, 4  ;;  %5006 = vst [vmem:[#allocation5 + $0x1e8] sm:$0x33] %v4972_v50  ;;  %5761 = vrot.lane.b32.xlu2 %v5734_v23, %s10262_s16 }
 0x796   :  { %v5115_v60 = vsel %vm105_vm9, %v5090_v17, %v5091_v10  ;;  %6234 = vrot.lane.b32.xlu1 %v6206_v24, %s10266_s20  ;;  %v4926_v51 = vpop.permute.xlu2 %4925 }
 0x797   :  { %v5116_v57 = vsel %vm15222_vm1, %v5064_v63, %v5115_v60  ;;  %v4944_v52 = vrot.slane %v4926_v51, 4  ;;  %v6018_v60 = vld [vmem:[#allocation4 + $0x1c] sm:$0x77]  ;;  %v13017_v51 = vld [vmem:[#allocation4 + $0x14] sm:$0x77]  ;;  %vm15239_vm1 = vmmov %vm15238_vm0 }
 0x798   :  { %5155 = vst [vmem:[#allocation5 + $0x200] sm:$0x11] %v5116_v57  ;;  %v5070_v42 = vpop.permute.xlu1 %5069  ;;  %v6104_v57 = vld [vmem:[#allocation4 + $0x1c] sm:$0x77] }
 0x799   :  { %6841 = vrot.lane.b32.xlu0 %v6822_v37, %s10271_s25  ;;  %v5093_v11 = vrot.slane %v5070_v42, 4  ;;  %v4975_v48 = vsel %vm105_vm9, %v4943_v26, %v4944_v52 }
 0x79a   :  { %v4976_v35 = vsel %vm15223_vm2, %v4924_v45, %v4975_v48  ;;  %v6823_v48 = vrot.slane %v13017_v51, 6  ;;  %vm15240_vm2 = vmmov %vm15238_vm0  ;;  %v5633_v51 = vld [vmem:[#allocation4 + $0x1c] sm:$0x77] }
 0x79b   :  { %v5072_v36 = vpop.permute.xlu0 %5071  ;;  %5008 = vst [vmem:[#allocation5 + $0x1f8] sm:$0x33] %v4976_v35 }
 0x79c   :  { %v5094_v28 = vrot.slane %v5072_v36, 4  ;;  %5899 = vrot.lane.b32.xlu2 %v5880_v39, %s10263_s17 }
 0x79e   :  { %v5121_v34 = vsel %vm105_vm9, %v5093_v11, %v5094_v28  ;;  %6386 = vrot.lane.b32.xlu1 %v6359_v31, %s15225_s0  ;;  %v5068_v37 = vpop.permute.xlu2 %5067 }
 0x79f   :  { %v5122_v8 = vsel %vm15224_vm3, %v5070_v42, %v5121_v34  ;;  %v5092_v25 = vrot.slane %v5068_v37, 4  ;;  %v6036_v42 = vrot.slane %v6018_v60, 7  ;;  %vm15241_vm3 = vcmask 973824  }
 0x7a0   :  { %5158 = vst [vmem:[#allocation5 + $0x218] sm:$0x11] %v5122_v8  ;;  %v5076_v30 = vpop.permute.xlu1 %5075 }
 0x7a1   :  { %6368 = vrot.lane.b32.xlu0 %v6350_v0, %s15225_s0  ;;  %v5096_v40 = vrot.slane %v5076_v30, 4  ;;  %v5117_v29 = vsel %vm105_vm9, %v5091_v10, %v5092_v25  ;;  %v5119_v54 = vsel %vm105_vm9, %v5092_v25, %v5093_v11  ;;  %v6205_v10 = vrot.slane %v6196_v27, 4  ;;  %v13028_v25 = vld [vmem:[#allocation4 + $0x14] sm:$0x77] }
 0x7a2   :  { %v5118_v2 = vsel %vm15226_vm4, %v5066_v19, %v5117_v29  ;;  %v5120_v13 = vsel %vm15227_vm6, %v5068_v37, %v5119_v54  ;;  %v10146_v0 = vunpack.i.h.bf16 %v11788_v3  ;;  %vm15242_vm4 = vmmov %vm15241_vm3  ;;  %vm15243_vm6 = vcmask 138240  }
 0x7a3   :  { %v5078_v39 = vpop.permute.xlu0 %5077  ;;  %5156 = vst [vmem:[#allocation5 + $0x208] sm:$0x11] %v5118_v2 }
 0x7a4   :  { %v5097_v1 = vrot.slane %v5078_v39, 4  ;;  %5157 = vst [vmem:[#allocation5 + $0x210] sm:$0x11] %v5120_v13  ;;  %6685 = vrot.lane.b32.xlu2 %v6667_v18, %s10270_s24  ;;  %v5479_v34 = vrot.slane %v10146_v0, 4 }
 0x7a6   :  { %v5127_v38 = vsel %vm105_vm9, %v5096_v40, %v5097_v1  ;;  %6515 = vrot.lane.b32.xlu1 %v6505_v61, %s15229_s26  ;;  %v5074_v14 = vpop.permute.xlu2 %5073 }
 0x7a7   :  { %v5128_v12 = vsel %vm15228_vm7, %v5076_v30, %v5127_v38  ;;  %v5095_v9 = vrot.slane %v5074_v14, 4  ;;  %v6832_v30 = vrot.slane %v6823_v48, 4  ;;  %vm15244_vm7 = vcmask 318464  }
 0x7a8   :  { %5161 = vst [vmem:[#allocation5 + $0x230] sm:$0x11] %v5128_v12  ;;  %v5445_v45 = vpop.permute.xlu1 %5444 }
 0x7a9   :  { %6388 = vrot.lane.b32.xlu0 %v6360_v15, %s15225_s0  ;;  %v5471_v47 = vrot.slane %v5445_v45, 4  ;;  %v5123_v18 = vsel %vm105_vm9, %v5094_v28, %v5095_v9  ;;  %v5125_v6 = vsel %vm105_vm9, %v5095_v9, %v5096_v40  ;;  %v6504_v9 = vrot.slane %v6486_v32, 7 }
 0x7aa   :  { %v5124_v4 = vsel %vm15230_vm8, %v5072_v36, %v5123_v18  ;;  %v5126_v62 = vsel %vm15231_vm5, %v5074_v14, %v5125_v6  ;;  %v5710_v6 = vld [vmem:[#allocation4 + $0x1c] sm:$0x77]  ;;  %vm7976_vm8 = vcmask 1040384   ;;  %vm15245_vm5 = vcmask 310272  }
 0x7ab   :  { %v5447_v26 = vpop.permute.xlu0 %5446  ;;  %5159 = vst [vmem:[#allocation5 + $0x220] sm:$0x11] %v5124_v4 }
 0x7ac   :  { %v5472_v46 = vrot.slane %v5447_v26, 4  ;;  %5160 = vst [vmem:[#allocation5 + $0x228] sm:$0x11] %v5126_v62  ;;  %6705 = vrot.lane.b32.xlu2 %v6677_v59, %s10270_s24  ;;  %v5632_v62 = vld [vmem:[#allocation4 + $0x14] sm:$0x77]  ;;  %v5882_v59 = vrot.slane %v13051_v7, 6 }
 0x7ae   :  { %v5496_v63 = vsel %vm105_vm9, %v5471_v47, %v5472_v46  ;;  %6046 = vrot.lane.b32.xlu1 %v6035_v22, %s10264_s18  ;;  %v5080_v21 = vpop.permute.xlu2 %5079 }
 0x7af   :  { %v5497_v17 = vsel %vm15232_vm11, %v5445_v45, %v5496_v63  ;;  %v5098_v19 = vrot.slane %v5080_v21, 4  ;;  %v5891_v21 = vrot.slane %v5882_v59, 4  ;;  %vm15246_vm11 = vcmask 302080  }
 0x7b0   :  { %5536 = vst [vmem:[#allocation5 + $0x2c0] sm:$0x11] %v5497_v17  ;;  %v5451_v33 = vpop.permute.xlu1 %5450 }
 0x7b1   :  { %5919 = vrot.lane.b32.xlu0 %v5890_v41, %s10263_s17  ;;  %v5474_v49 = vrot.slane %v5451_v33, 4  ;;  %v5129_v16 = vsel %vm105_vm9, %v5097_v1, %v5098_v19  ;;  %v13044_v1 = vld [vmem:[#allocation4 + $0x14] sm:$0x77] }
 0x7b2   :  { %v5130_v23 = vsel %vm15233_vm12, %v5078_v39, %v5129_v16  ;;  %v6198_v39 = vrot.slane %v13028_v25, 5  ;;  %v5727_v47 = vrot.slane %v13044_v1, 5  ;;  %vm15247_vm12 = vcmask 236544  }
 0x7b3   :  { %v5453_v50 = vpop.permute.xlu0 %5452  ;;  %5162 = vst [vmem:[#allocation5 + $0x238] sm:$0x11] %v5130_v23 }
 0x7b4   :  { %v5475_v24 = vrot.slane %v5453_v50, 4  ;;  %6232 = vrot.lane.b32.xlu2 %v6205_v10, %s10266_s20 }
 0x7b6   :  { %v5502_v53 = vsel %vm105_vm9, %v5474_v49, %v5475_v24  ;;  %6125 = vrot.lane.b32.xlu1 %v6104_v57, %s10265_s19  ;;  %v5449_v5 = vpop.permute.xlu2 %5448 }
 0x7b7   :  { %v5503_v52 = vsel %vm15234_vm13, %v5451_v33, %v5502_v53  ;;  %v5473_v27 = vrot.slane %v5449_v5, 4  ;;  %vm15248_vm13 = vcmask 965632  }
 0x7b8   :  { %5539 = vst [vmem:[#allocation5 + $0x2d8] sm:$0x11] %v5503_v52  ;;  %v5457_v11 = vpop.permute.xlu1 %5456  ;;  %v6103_v52 = vld [vmem:[#allocation4 + $0x14] sm:$0x77] }
 0x7b9   :  { %6048 = vrot.lane.b32.xlu0 %v6036_v42, %s10264_s18  ;;  %v5477_v36 = vrot.slane %v5457_v11, 4  ;;  %v5498_v35 = vsel %vm105_vm9, %v5472_v46, %v5473_v27  ;;  %v5500_v28 = vsel %vm105_vm9, %v5473_v27, %v5474_v49  ;;  %v6574_v42 = vld [vmem:[#allocation4 + $0x14] sm:$0x77] }
 0x7ba   :  { %v5499_v8 = vsel %vm15235_vm15, %v5447_v26, %v5498_v35  ;;  %v5501_v37 = vsel %vm15236_vm10, %v5449_v5, %v5500_v28  ;;  %vm15249_vm15 = vcmask 957440  }
 0x7bb   :  { %v5459_v31 = vpop.permute.xlu0 %5458  ;;  %5537 = vst [vmem:[#allocation5 + $0x2c8] sm:$0x11] %v5499_v8  ;;  %vm15250_vm10 = vmmov %vm15249_vm15 }
 0x7bc   :  { %v5478_v3 = vrot.slane %v5459_v31, 4  ;;  %5538 = vst [vmem:[#allocation5 + $0x2d0] sm:$0x11] %v5501_v37  ;;  %6370 = vrot.lane.b32.xlu2 %v6351_v58, %s15225_s0 }
 0x7be   :  { %v5510_v40 = vsel %vm105_vm9, %v5478_v3, %v5479_v34  ;;  %v5508_v56 = vsel %vm105_vm9, %v5477_v36, %v5478_v3  ;;  %6861 = vrot.lane.b32.xlu1 %v6832_v30, %s10271_s25  ;;  %v5455_v2 = vpop.permute.xlu2 %5454 }
 0x7bf   :  { %v5511_v29 = vsel %vm15237_vm14, %v5459_v31, %v5510_v40  ;;  %v5509_v54 = vsel %vm15238_vm0, %v5457_v11, %v5508_v56  ;;  %v5476_v13 = vrot.slane %v5455_v2, 4  ;;  %v13094_v11 = vld [vmem:[#allocation4 + $0x1c] sm:$0x77]  ;;  %vm15251_vm14 = vmmov %vm15244_vm7  ;;  %vm15252_vm0 = vcmask 154624  }
 0x7c0   :  { %5543 = vst [vmem:[#allocation5 + $0x2f8] sm:$0x11] %v5511_v29  ;;  %v6858_v58 = vpop.permute.xlu1 %6857  ;;  %v6199_v30 = vrot.slane %v13094_v11, 5 }
 0x7c1   :  { %5542 = vst [vmem:[#allocation5 + $0x2f0] sm:$0x11] %v5509_v54  ;;  %6218 = vrot.lane.b32.xlu0 %v6198_v39, %s10266_s20  ;;  %v5504_v61 = vsel %vm105_vm9, %v5475_v24, %v5476_v13  ;;  %v5506_v38 = vsel %vm105_vm9, %v5476_v13, %v5477_v36  ;;  %v6884_v17 = vrot.slane %v6858_v58, 4  ;;  %v13112_v54 = vld [vmem:[#allocation4 + $0x14] sm:$0x77] }
 0x7c2   :  { %v5505_v15 = vsel %vm15239_vm1, %v5453_v50, %v5504_v61  ;;  %v5507_v14 = vsel %vm15240_vm2, %v5455_v2, %v5506_v38  ;;  %v13120_v13 = vld [vmem:[#allocation4 + $0x14] sm:$0x77]  ;;  %v6669_v61 = vrot.slane %v13112_v54, 5  ;;  %v6575_v54 = vld [vmem:[#allocation4 + $0x1c] sm:$0x77]  ;;  %vm15253_vm1 = vcmask 146432  }
 0x7c3   :  { %v5582_v12 = vpop.permute.xlu0 %5581  ;;  %5540 = vst [vmem:[#allocation5 + $0x2e0] sm:$0x11] %v5505_v15  ;;  %vm15254_vm2 = vmmov %vm15253_vm1 }
 0x7c4   :  { %v5594_v45 = vrot.slane %v5582_v12, 4  ;;  %5541 = vst [vmem:[#allocation5 + $0x2e8] sm:$0x11] %v5507_v14  ;;  %6513 = vrot.lane.b32.xlu2 %v6504_v9, %s15229_s26  ;;  %v6352_v14 = vrot.slane %v13120_v13, 6 }
 0x7c6   :  { %v5606_v18 = vsel %vm105_vm9, %v5593_v43, %v5594_v45  ;;  %5747 = vrot.lane.b32.xlu1 %v5727_v47, %s10262_s16  ;;  %v13062_v4 = vpop.permute.xlu2 %5583  ;;  %v5728_v43 = vrot.slane %v5710_v6, 5 }
 0x7c7   :  { %v5607_v26 = vsel %vm15241_vm3, %v12724_v20, %v5606_v18  ;;  %v14972_v46 = vrot.slane %v13062_v4, 4  ;;  %vm15255_vm3 = vmmov %vm15243_vm6 }
 0x7c8   :  { %5626 = vst [vmem:[#allocation5 + $0x2e0] sm:$0xee] %v5607_v26  ;;  %v13067_v22 = vpop.permute.xlu1 %5917  ;;  %v5737_v33 = vrot.slane %v5728_v43, 4  ;;  %v6207_v26 = vrot.slane %v6198_v39, 4 }
 0x7c9   :  { %5652 = vrot.lane.b32.xlu0 %v5632_v62, %s10261_s15  ;;  %v5608_v20 = vsel %vm105_vm9, %v5594_v45, %v14972_v46  ;;  %v5943_v50 = vrot.slane %v13067_v22, 4  ;;  %v13142_v62 = vld [vmem:[#allocation4 + $0x24] sm:$0x77] }
 0x7ca   :  { %v5609_v41 = vsel %vm15242_vm4, %v5582_v12, %v5608_v20  ;;  %vm15256_vm4 = vmmov %vm15247_vm12 }
 0x7cb   :  { %v13072_v63 = vpop.permute.xlu0 %6859  ;;  %5627 = vst [vmem:[#allocation5 + $0x2e8] sm:$0xee] %v5609_v41  ;;  %v5736_v41 = vrot.slane %v5727_v47, 4 }
 0x7cc   :  { %v6885_v19 = vrot.slane %v13072_v63, 4  ;;  %5921 = vrot.lane.b32.xlu2 %v5891_v21, %s10263_s17  ;;  %v5883_v21 = vrot.slane %v13142_v62, 6 }
 0x7ce   :  { %v6909_v49 = vsel %vm105_vm9, %v6884_v17, %v6885_v19  ;;  %5767 = vrot.lane.b32.xlu1 %v5737_v33, %s10262_s16  ;;  %v5916_v23 = vpop.permute.xlu2 %5915 }
 0x7cf   :  { %v6910_v16 = vsel %vm15243_vm6, %v6858_v58, %v6909_v49  ;;  %v5942_v10 = vrot.slane %v5916_v23, 4  ;;  %vm15257_vm6 = vcmask 228352  }
 0x7d0   :  { %6949 = vst [vmem:[#allocation5 + $0x500] sm:$0x11] %v6910_v16  ;;  %v6120_v24 = vpop.permute.xlu1 %6119  ;;  %v6488_v16 = vld [vmem:[#allocation4 + $0x14] sm:$0x77] }
 0x7d1   :  { %5749 = vrot.lane.b32.xlu0 %v5728_v43, %s10262_s16  ;;  %v5967_v60 = vsel %vm105_vm9, %v5942_v10, %v5943_v50  ;;  %v6137_v37 = vrot.slane %v6120_v24, 4 }
 0x7d2   :  { %v5968_v57 = vsel %vm15244_vm7, %v5916_v23, %v5967_v60  ;;  %vm15258_vm7 = vmmov %vm15257_vm6 }
 0x7d3   :  { %v6043_v53 = vpop.permute.xlu0 %6042  ;;  %6007 = vst [vmem:[#allocation5 + $0x380] sm:$0x11] %v5968_v57 }
 0x7d4   :  { %6123 = vrot.lane.b32.xlu2 %v6103_v52, %s10265_s19  ;;  %v6060_v0 = vrot.slane %v6043_v53, 4  ;;  %v5892_v52 = vrot.slane %v5883_v21, 4 }
 0x7d6   :  { %6594 = vrot.lane.b32.xlu1 %v6574_v42, %s10269_s23  ;;  %v13092_v27 = vpop.permute.xlu2 %6044 }
 0x7d7   :  { %v7118_v5 = vld [vmem:[#allocation5 + $0x500] sm:$0x11]  ;;  %v6061_v28 = vrot.slane %v13092_v27, 4 }
 0x7d8   :  { %v7620_v36 = vunpack.c.l.b16 %v7118_v5  ;;  %v7621_v35 = vunpack.c.h.b16 %v7118_v5  ;;  %v13100_v31 = vpop.permute.xlu1 %6216  ;;  %v6506_v5 = vrot.slane %v6488_v16, 7 }
 0x7d9   :  { %5901 = vrot.lane.b32.xlu0 %v5881_v44, %s10263_s17  ;;  %v6069_v3 = vsel %vm105_vm9, %v6060_v0, %v6061_v28  ;;  %v6251_v58 = vrot.slane %v13100_v31, 4 }
 0x7da   :  { %v7796_v34 = vpack.c.b16 %v7620_v36, %v7620_v36  ;;  %v7797_v8 = vpack.c.b16 %v7621_v35, %v7621_v35  ;;  %v6070_v56 = vsel %vm15245_vm5, %v6043_v53, %v6069_v3  ;;  %v13173_v3 = vld [vmem:[#allocation4 + $0x24] sm:$0x77]  ;;  %vm15259_vm5 = vcmask 220160  }
 0x7db   :  { %v13106_v40 = vpop.permute.xlu0 %6121  ;;  %6093 = vst [vmem:[#allocation5 + $0x380] sm:$0xee] %v6070_v56 }
 0x7dc   :  { %v6138_v29 = vrot.slane %v13106_v40, 4  ;;  %v7978_v55 = vsel %vm7976_vm8, %v7796_v34, 0  ;;  %v7981_v44 = vsel %vm7976_vm8, %v7797_v8, 0  ;;  %6220 = vrot.lane.b32.xlu2 %v6199_v30, %s10266_s20 }
 0x7dd   :  { %8043 = vmatpush.bf16.msra.mxu1 %v7978_v55  ;;  %8069 = vmatpush.bf16.msra.mxu3 %v7981_v44  ;;  %v6019_v55 = vld [vmem:[#allocation4 + $0x24] sm:$0x77]  ;;  %v6200_v44 = vrot.slane %v13173_v3, 5 }
 0x7de   :  { %v6146_v2 = vsel %vm105_vm9, %v6137_v37, %v6138_v29  ;;  %6843 = vrot.lane.b32.xlu1 %v6823_v48, %s10271_s25  ;;  %v6215_v38 = vpop.permute.xlu2 %6214  ;;  %v6361_v48 = vrot.slane %v6352_v14, 4 }
 0x7df   :  { %v6147_v32 = vsel %vm15246_vm11, %v6120_v24, %v6146_v2  ;;  %v6250_v12 = vrot.slane %v6215_v38, 4  ;;  %vm15260_vm11 = vcmask 310272  }
 0x7e0   :  { %6170 = vst [vmem:[#allocation5 + $0x3c0] sm:$0x77] %v6147_v32  ;;  %v5744_v15 = vpop.permute.xlu1 %5743  ;;  %v6037_v32 = vrot.slane %v6019_v55, 7 }
 0x7e1   :  { %6689 = vrot.lane.b32.xlu0 %v6669_v61, %s10270_s24  ;;  %v6268_v9 = vsel %vm105_vm9, %v6250_v12, %v6251_v58  ;;  %v5779_v23 = vrot.slane %v5744_v15, 4 }
 0x7e2   :  { %v6269_v18 = vsel %vm15247_vm12, %v6215_v38, %v6268_v9  ;;  %v9618_v39 = vld [vmem:[#allocation5 + $0x380] sm:$0xf]  ;;  %v10064_v33 = vld [vmem:[#allocation5 + $0x384] sm:$0xf]  ;;  %v13180_v38 = vld [vmem:[#allocation4 + $0x1c] sm:$0x77] }
 0x7e3   :  { %v5649_v45 = vpop.permute.xlu0 %5648  ;;  %6316 = vst [vmem:[#allocation5 + $0x3c0] sm:$0x88] %v6269_v18  ;;  %v6670_v7 = vrot.slane %v13180_v38, 5  ;;  %vm15261_vm12 = vmmov %vm15251_vm14 }
 0x7e4   :  { %5654 = vrot.lane.b32.xlu2 %v5633_v51, %s10261_s15  ;;  %v5666_v6 = vrot.slane %v5649_v45, 4 }
 0x7e6   :  { %6390 = vrot.lane.b32.xlu1 %v6361_v48, %s15225_s0  ;;  %v13144_v43 = vpop.permute.xlu2 %5650  ;;  %v6678_v48 = vrot.slane %v6669_v61, 4 }
 0x7e7   :  { %v5667_v20 = vrot.slane %v13144_v43, 4 }
 0x7e8   :  { %v13148_v17 = vpop.permute.xlu1 %5763 }
 0x7e9   :  { %6236 = vrot.lane.b32.xlu0 %v6207_v26, %s10266_s20  ;;  %v5675_v25 = vsel %vm105_vm9, %v5666_v6, %v5667_v20  ;;  %v5789_v0 = vrot.slane %v13148_v17, 4 }
 0x7ea   :  { %v5676_v10 = vsel %vm15248_vm13, %v5649_v45, %v5675_v25  ;;  %v10072_v24 = vld [vmem:[#allocation5 + $0x3bc] sm:$0xf0]  ;;  %v9620_v60 = vld [vmem:[#allocation5 + $0x3c0] sm:$0xf0]  ;;  %vm15262_vm13 = vmmov %vm15261_vm12 }
 0x7eb   :  { %v13156_v49 = vpop.permute.xlu0 %5745  ;;  %5699 = vst [vmem:[#allocation5 + $0x300] sm:$0x77] %v5676_v10  ;;  %v9619_v1 = vor.u32 %v10072_v24, %v9618_v39  ;;  %v9623_v47 = vor.u32 %v10064_v33, %v9620_v60  ;;  %v6806_v60 = vld [vmem:[#allocation4 + $0x1c] sm:$0x77] }
 0x7ec   :  { %v5780_v53 = vrot.slane %v13156_v49, 4  ;;  %5765 = vrot.lane.b32.xlu2 %v5736_v41, %s10262_s16  ;;  %v6679_v41 = vrot.slane %v6670_v7, 4 }
 0x7ed   :  { %8025 = vmatpush.bf16.msra.mxu0 %v9619_v1  ;;  %8051 = vmatpush.bf16.msra.mxu2 %v9623_v47  ;;  %v5711_v1 = vld [vmem:[#allocation4 + $0x24] sm:$0x77] }
 0x7ee   :  { %v5797_v57 = vsel %vm105_vm9, %v5779_v23, %v5780_v53  ;;  %v5762_v36 = vpop.permute.xlu2 %5761  ;;  %5923 = vrot.lane.b32.xlu1 %v5892_v52, %s10263_s17 }
 0x7ef   :  { %v5798_v42 = vsel %vm15249_vm15, %v5744_v15, %v5797_v57  ;;  %v5788_v35 = vrot.slane %v5762_v36, 4  ;;  %vm15263_vm15 = vmmov %vm15260_vm11 }
 0x7f0   :  { %5845 = vst [vmem:[#allocation5 + $0x300] sm:$0x88] %v5798_v42  ;;  %v6591_v34 = vpop.permute.xlu1 %6590 }
 0x7f1   :  { %6517 = vrot.lane.b32.xlu0 %v6506_v5, %s15229_s26  ;;  %v5813_v8 = vsel %vm105_vm9, %v5788_v35, %v5789_v0  ;;  %v6608_v18 = vrot.slane %v6591_v34, 4  ;;  %v10040_v35 = vld [vmem:[#allocation5 + $0x2bc] sm:$0xf0] }
 0x7f2   :  { %v5814_v56 = vsel %vm15250_vm10, %v5762_v36, %v5813_v8  ;;  %v5729_v8 = vrot.slane %v5711_v1, 5  ;;  %vm15264_vm10 = vcmask 302080  }
 0x7f3   :  { %v5898_v37 = vpop.permute.xlu0 %5897  ;;  %5853 = vst [vmem:[#allocation5 + $0x340] sm:$0x33] %v5814_v56  ;;  %v6824_v56 = vrot.slane %v6806_v60, 6 }
 0x7f4   :  { %5903 = vrot.lane.b32.xlu2 %v5882_v59, %s10263_s17  ;;  %v5933_v2 = vrot.slane %v5898_v37, 4 }
 0x7f6   :  { %v13182_v12 = vpop.permute.xlu2 %5899  ;;  %6222 = vrot.lane.b32.xlu1 %v6200_v44, %s10266_s20 }
 0x7f7   :  { %v5934_v15 = vrot.slane %v13182_v12, 4  ;;  %v9554_v10 = vld [vmem:[#allocation5 + $0x300] sm:$0xf]  ;;  %v10048_v52 = vld [vmem:[#allocation5 + $0x304] sm:$0xf] }
 0x7f8   :  { %v13189_v9 = vpop.permute.xlu1 %6687 }
 0x7f9   :  { %6050 = vrot.lane.b32.xlu0 %v6037_v32, %s10264_s18  ;;  %v5951_v59 = vsel %vm105_vm9, %v5933_v2, %v5934_v15  ;;  %v6722_v39 = vrot.slane %v13189_v9, 4  ;;  %v9490_v2 = vld [vmem:[#allocation5 + $0x280] sm:$0xf]  ;;  %v10032_v32 = vld [vmem:[#allocation5 + $0x284] sm:$0xf] }
 0x7fa   :  { %v5952_v51 = vsel %vm15251_vm14, %v5898_v37, %v5951_v59  ;;  %vm15265_vm14 = vmmov %vm15264_vm10 }
 0x7fb   :  { %v13195_v45 = vpop.permute.xlu0 %6592  ;;  %5999 = vst [vmem:[#allocation5 + $0x340] sm:$0xcc] %v5952_v51 }
 0x7fc   :  { %v6609_v6 = vrot.slane %v13195_v45, 4  ;;  %6707 = vrot.lane.b32.xlu2 %v6678_v48, %s10270_s24  ;;  %v10016_v48 = vld [vmem:[#allocation5 + $0x204] sm:$0xf] }
 0x7fe   :  { %v6617_v26 = vsel %vm105_vm9, %v6608_v18, %v6609_v6  ;;  %v6686_v33 = vpop.permute.xlu2 %6685  ;;  %6709 = vrot.lane.b32.xlu1 %v6679_v41, %s10270_s24  ;;  %v9491_v18 = vor.u32 %v10040_v35, %v9490_v2  ;;  %v6833_v41 = vrot.slane %v6824_v56, 4 }
 0x7ff   :  { %v6618_v25 = vsel %vm15252_vm0, %v6591_v34, %v6617_v26  ;;  %v6721_v61 = vrot.slane %v6686_v33, 4  ;;  %v9492_v34 = vld [vmem:[#allocation5 + $0x2c0] sm:$0xf0]  ;;  %vm15266_vm0 = vmmov %vm15255_vm3 }
 0x800   :  { %6641 = vst [vmem:[#allocation5 + $0x480] sm:$0x77] %v6618_v25  ;;  %v6840_v16 = vpop.permute.xlu1 %6839  ;;  %v9495_v51 = vor.u32 %v10032_v32, %v9492_v34  ;;  %v9362_v34 = vld [vmem:[#allocation5 + $0x180] sm:$0xf] }
 0x801   :  { %6596 = vrot.lane.b32.xlu0 %v6575_v54, %s10269_s23  ;;  %v6739_v23 = vsel %vm105_vm9, %v6721_v61, %v6722_v39  ;;  %v10024_v61 = vld [vmem:[#allocation5 + $0x23c] sm:$0xf0] }
 0x802   :  { %v6740_v47 = vsel %vm15253_vm1, %v6686_v33, %v6739_v23  ;;  %v10056_v57 = vld [vmem:[#allocation5 + $0x33c] sm:$0xf0]  ;;  %v9556_v42 = vld [vmem:[#allocation5 + $0x340] sm:$0xf0]  ;;  %v6875_v33 = vrot.slane %v6840_v16, 4  ;;  %vm15267_vm1 = vmmov %vm15256_vm4 }
 0x803   :  { %v6704_v24 = vpop.permute.xlu0 %6703  ;;  %6787 = vst [vmem:[#allocation5 + $0x480] sm:$0x88] %v6740_v47  ;;  %v9555_v5 = vor.u32 %v10056_v57, %v9554_v10  ;;  %v9559_v36 = vor.u32 %v10048_v52, %v9556_v42  ;;  %v9428_v23 = vld [vmem:[#allocation5 + $0x240] sm:$0xf0]  ;;  %v10008_v57 = vld [vmem:[#allocation5 + $0x1bc] sm:$0xf0] }
 0x804   :  { %6372 = vrot.lane.b32.xlu2 %v6352_v14, %s15225_s0  ;;  %v6730_v37 = vrot.slane %v6704_v24, 4  ;;  %v9426_v14 = vld [vmem:[#allocation5 + $0x200] sm:$0xf]  ;;  %v9431_v1 = vor.u32 %v10016_v48, %v9428_v23  ;;  %v9364_v52 = vld [vmem:[#allocation5 + $0x1c0] sm:$0xf0]  ;;  %v6208_v42 = vrot.slane %v6199_v30, 4  ;;  %v9363_v2 = vor.u32 %v10008_v57, %v9362_v34 }
 0x805   :  { %8026 = vmatpush.bf16.msra.mxu0 %v9555_v5  ;;  %8052 = vmatpush.bf16.msra.mxu2 %v9559_v36  ;;  %v9427_v60 = vor.u32 %v10024_v61, %v9426_v14  ;;  %v5738_v36 = vrot.slane %v5729_v8, 4  ;;  %v9992_v30 = vld [vmem:[#allocation5 + $0x13c] sm:$0xf0] }
 0x806   :  { %v13218_v55 = vpop.permute.xlu2 %6705  ;;  %5751 = vrot.lane.b32.xlu1 %v5729_v8, %s10262_s16  ;;  %v6105_v8 = vld [vmem:[#allocation4 + $0x24] sm:$0x77] }
 0x807   :  { %v6731_v59 = vrot.slane %v13218_v55, 4  ;;  %v9234_v23 = vld [vmem:[#allocation5 + $0x80] sm:$0xf] }
 0x808   :  { %v13223_v13 = vpop.permute.xlu1 %6234  ;;  %v9976_v34 = vld [vmem:[#allocation5 + $0xbc] sm:$0xf0] }
 0x809   :  { %6845 = vrot.lane.b32.xlu0 %v6824_v56, %s10271_s25  ;;  %v6755_v26 = vsel %vm105_vm9, %v6730_v37, %v6731_v59  ;;  %8027 = vmatpush.bf16.msra.mxu0 %v9491_v18  ;;  %v6260_v5 = vrot.slane %v13223_v13, 4  ;;  %v10000_v37 = vld [vmem:[#allocation5 + $0x184] sm:$0xf] }
 0x80a   :  { %8053 = vmatpush.bf16.msra.mxu2 %v9495_v51  ;;  %v6756_v54 = vsel %vm15254_vm2, %v6704_v24, %v6755_v26  ;;  %v9367_v32 = vor.u32 %v10000_v37, %v9364_v52  ;;  %v9300_v18 = vld [vmem:[#allocation5 + $0x140] sm:$0xf0]  ;;  %v6489_v51 = vld [vmem:[#allocation4 + $0x1c] sm:$0x77]  ;;  %v9298_v26 = vld [vmem:[#allocation5 + $0x100] sm:$0xf] }
 0x80b   :  { %v13228_v25 = vpop.permute.xlu0 %6841  ;;  %6795 = vst [vmem:[#allocation5 + $0x4c0] sm:$0x33] %v6756_v54  ;;  %v9299_v54 = vor.u32 %v9992_v30, %v9298_v26  ;;  %v10096_v57 = vld [vmem:[#allocation5 + $0x484] sm:$0xf]  ;;  %vm15268_vm2 = vmmov %vm15267_vm1 }
 0x80c   :  { %v6876_v10 = vrot.slane %v13228_v25, 4  ;;  %6863 = vrot.lane.b32.xlu2 %v6833_v41, %s10271_s25  ;;  %v9984_v41 = vld [vmem:[#allocation5 + $0x104] sm:$0xf] }
 0x80d   :  { %8028 = vmatpush.bf16.msra.mxu0 %v9427_v60  ;;  %v9303_v61 = vor.u32 %v9984_v41, %v9300_v18  ;;  %v6507_v60 = vrot.slane %v6489_v51, 7  ;;  %v9236_v37 = vld [vmem:[#allocation5 + $0xc0] sm:$0xf0]  ;;  %v9235_v18 = vor.u32 %v9976_v34, %v9234_v23 }
 0x80e   :  { %v6893_v47 = vsel %vm105_vm9, %v6875_v33, %v6876_v10  ;;  %8054 = vmatpush.bf16.msra.mxu2 %v9431_v1  ;;  %v6233_v35 = vpop.permute.xlu2 %6232  ;;  %6238 = vrot.lane.b32.xlu1 %v6208_v42, %s10266_s20  ;;  %v13246_v33 = vld [vmem:[#allocation4 + $0x1c] sm:$0x77]  ;;  %v9968_v1 = vld [vmem:[#allocation5 + $0x84] sm:$0xf] }
 0x80f   :  { %v6894_v24 = vsel %vm15255_vm3, %v6840_v16, %v6893_v47  ;;  %v6259_v56 = vrot.slane %v6233_v35, 4  ;;  %v9746_v47 = vld [vmem:[#allocation5 + $0x480] sm:$0xf]  ;;  %v6353_v42 = vrot.slane %v13246_v33, 6  ;;  %v9239_v51 = vor.u32 %v9968_v1, %v9236_v37  ;;  %v9952_v1 = vld [vmem:[#allocation5 + $0x4] sm:$0xf] }
 0x810   :  { %6941 = vst [vmem:[#allocation5 + $0x4c0] sm:$0xcc] %v6894_v24  ;;  %v6387_v11 = vpop.permute.xlu1 %6386  ;;  %v6106_v37 = vld [vmem:[#allocation4 + $0x2c] sm:$0x77]  ;;  %vm15269_vm3 = vcmask 957440  }
 0x811   :  { %5769 = vrot.lane.b32.xlu0 %v5738_v36, %s10262_s16  ;;  %v6284_v16 = vsel %vm105_vm9, %v6259_v56, %v6260_v5  ;;  %8029 = vmatpush.bf16.msra.mxu0 %v9363_v2 }
 0x812   :  { %8055 = vmatpush.bf16.msra.mxu2 %v9367_v32  ;;  %v6285_v48 = vsel %vm15256_vm4, %v6233_v35, %v6284_v16  ;;  %v13253_v32 = vld [vmem:[#allocation4 + $0x2c] sm:$0x77]  ;;  %vm15270_vm4 = vcmask 965632  }
 0x813   :  { %v6369_v14 = vpop.permute.xlu0 %6368  ;;  %6324 = vst [vmem:[#allocation5 + $0x400] sm:$0x33] %v6285_v48  ;;  %v9172_v48 = vld [vmem:[#allocation5 + $0x40] sm:$0xf0] }
 0x814   :  { %6127 = vrot.lane.b32.xlu2 %v6105_v8, %s10265_s19  ;;  %v6404_v52 = vrot.slane %v6369_v14, 4  ;;  %v9960_v8 = vld [vmem:[#allocation5 + $0x3c] sm:$0xf0] }
 0x815   :  { %8030 = vmatpush.bf16.msra.mxu0 %v9299_v54  ;;  %v5884_v54 = vrot.slane %v13253_v32, 6 }
 0x816   :  { %8056 = vmatpush.bf16.msra.mxu2 %v9303_v61  ;;  %v13250_v35 = vpop.permute.xlu2 %6370  ;;  %6519 = vrot.lane.b32.xlu1 %v6507_v60, %s15229_s26  ;;  %v6413_v61 = vrot.slane %v6387_v11, 4  ;;  %v9170_v60 = vld [vmem:[#allocation5] sm:$0xf] }
 0x817   :  { %v10104_v24 = vld [vmem:[#allocation5 + $0x4bc] sm:$0xf0]  ;;  %v9748_v36 = vld [vmem:[#allocation5 + $0x4c0] sm:$0xf0]  ;;  %v6405_v30 = vrot.slane %v13250_v35, 4  ;;  %v5893_v34 = vrot.slane %v5884_v54, 4 }
 0x818   :  { %v9747_v56 = vor.u32 %v10104_v24, %v9746_v47  ;;  %v9751_v2 = vor.u32 %v10096_v57, %v9748_v36  ;;  %v13259_v16 = vpop.permute.xlu1 %6515  ;;  %v9171_v57 = vor.u32 %v9960_v8, %v9170_v60  ;;  %v9175_v24 = vor.u32 %v9952_v1, %v9172_v48 }
 0x819   :  { %6374 = vrot.lane.b32.xlu0 %v6353_v42, %s15225_s0  ;;  %v6422_v26 = vsel %vm105_vm9, %v6404_v52, %v6405_v30  ;;  %8031 = vmatpush.bf16.msra.mxu0 %v9235_v18 }
 0x81a   :  { %8044 = vmatpush.bf16.msra.mxu1 %v9747_v56  ;;  %8070 = vmatpush.bf16.msra.mxu3 %v9751_v2  ;;  %v6423_v23 = vsel %vm15257_vm6, %v6369_v14, %v6422_v26  ;;  %v6532_v14 = vrot.slane %v13259_v16, 4  ;;  %v13288_v26 = vld [vmem:[#allocation4 + $0x2c] sm:$0x77]  ;;  %vm15271_vm6 = vmmov %vm15270_vm4 }
 0x81b   :  { %8057 = vmatpush.bf16.msra.mxu2 %v9239_v51  ;;  %v13264_v41 = vpop.permute.xlu0 %6388  ;;  %6470 = vst [vmem:[#allocation5 + $0x400] sm:$0xcc] %v6423_v23 }
 0x81c   :  { %v6414_v47 = vrot.slane %v13264_v41, 4  ;;  %6691 = vrot.lane.b32.xlu2 %v6670_v7, %s10270_s24 }
 0x81d   :  { %8032 = vmatpush.bf16.msra.mxu0 %v9171_v57  ;;  %v6201_v57 = vrot.slane %v13288_v26, 5  ;;  %v9506_v26 = vld [vmem:[#allocation5 + $0x290] sm:$0xf] }
 0x81e   :  { %v6438_v52 = vsel %vm105_vm9, %v6413_v61, %v6414_v47  ;;  %v6514_v56 = vpop.permute.xlu2 %6513  ;;  %6129 = vrot.lane.b32.xlu1 %v6106_v37, %s10265_s19  ;;  %v5634_v61 = vld [vmem:[#allocation4 + $0x24] sm:$0x77]  ;;  %v13313_v37 = vld [vmem:[#allocation4 + $0x2c] sm:$0x77] }
 0x81f   :  { %8058 = vmatpush.bf16.msra.mxu2 %v9175_v24  ;;  %v6439_v36 = vsel %vm15258_vm7, %v6387_v11, %v6438_v52  ;;  %v6531_v38 = vrot.slane %v6514_v56, 4  ;;  %vm15272_vm7 = vmmov %vm15269_vm3 }
 0x820   :  { %6478 = vst [vmem:[#allocation5 + $0x440] sm:$0x11] %v6439_v36  ;;  %v6047_v7 = vpop.permute.xlu1 %6046 }
 0x821   :  { %5925 = vrot.lane.b32.xlu0 %v5893_v34, %s10263_s17  ;;  %v6062_v2 = vrot.slane %v6047_v7, 4  ;;  %v6540_v18 = vsel %vm105_vm9, %v6531_v38, %v6532_v14 }
 0x822   :  { %v6541_v51 = vsel %vm15259_vm5, %v6514_v56, %v6540_v18  ;;  %v10080_v36 = vld [vmem:[#allocation5 + $0x404] sm:$0xf]  ;;  %vm15273_vm5 = vmmov %vm15269_vm3 }
 0x823   :  { %v5920_v11 = vpop.permute.xlu0 %5919  ;;  %v6071_v48 = vsel %vm105_vm9, %v6061_v28, %v6062_v2  ;;  %6564 = vst [vmem:[#allocation5 + $0x440] sm:$0xee] %v6541_v51  ;;  %v5635_v28 = vld [vmem:[#allocation4 + $0x2c] sm:$0x77] }
 0x824   :  { %v5944_v8 = vrot.slane %v5920_v11, 4  ;;  %v6072_v23 = vsel %vm15260_vm11, %v13092_v27, %v6071_v48  ;;  %5656 = vrot.lane.b32.xlu2 %v5634_v61, %s10261_s15  ;;  %vm15274_vm11 = vmmov %vm15269_vm3 }
 0x825   :  { %6094 = vst [vmem:[#allocation5 + $0x388] sm:$0xee] %v6072_v23 }
 0x826   :  { %v5969_v60 = vsel %vm105_vm9, %v5943_v50, %v5944_v8  ;;  %v13299_v24 = vpop.permute.xlu2 %5921  ;;  %5658 = vrot.lane.b32.xlu1 %v5635_v28, %s10261_s15  ;;  %v9682_v50 = vld [vmem:[#allocation5 + $0x400] sm:$0xf] }
 0x827   :  { %v5970_v1 = vsel %vm15261_vm12, %v13067_v22, %v5969_v60  ;;  %v5945_v27 = vrot.slane %v13299_v24, 4  ;;  %v5730_v60 = vrot.slane %v13313_v37, 5  ;;  %vm15275_vm12 = vcmask 154624  }
 0x828   :  { %6008 = vst [vmem:[#allocation5 + $0x388] sm:$0x11] %v5970_v1  ;;  %v13306_v52 = vpop.permute.xlu1 %6125  ;;  %v13326_v1 = vld [vmem:[#allocation4 + $0x24] sm:$0x77] }
 0x829   :  { %6224 = vrot.lane.b32.xlu0 %v6201_v57, %s10266_s20  ;;  %v5971_v22 = vsel %vm105_vm9, %v5944_v8, %v5945_v27 }
 0x82a   :  { %v5972_v56 = vsel %vm15262_vm13, %v5920_v11, %v5971_v22  ;;  %v10088_v38 = vld [vmem:[#allocation5 + $0x43c] sm:$0xf0]  ;;  %v9684_v18 = vld [vmem:[#allocation5 + $0x440] sm:$0xf0]  ;;  %v6140_v11 = vrot.slane %v13306_v52, 4 }
 0x82b   :  { %v13311_v34 = vpop.permute.xlu0 %6048  ;;  %6009 = vst [vmem:[#allocation5 + $0x390] sm:$0x11] %v5972_v56  ;;  %v9683_v48 = vor.u32 %v10088_v38, %v9682_v50  ;;  %v9687_v61 = vor.u32 %v10080_v36, %v9684_v18 }
 0x82c   :  { %v6063_v51 = vrot.slane %v13311_v34, 4  ;;  %5905 = vrot.lane.b32.xlu2 %v5883_v21, %s10263_s17 }
 0x82d   :  { %8045 = vmatpush.bf16.msra.mxu1 %v9683_v48  ;;  %8071 = vmatpush.bf16.msra.mxu3 %v9687_v61  ;;  %v6576_v48 = vld [vmem:[#allocation4 + $0x24] sm:$0x77]  ;;  %v6020_v61 = vld [vmem:[#allocation4 + $0x2c] sm:$0x77] }
 0x82e   :  { %v6073_v8 = vsel %vm105_vm9, %v6062_v2, %v6063_v51  ;;  %v6124_v28 = vpop.permute.xlu2 %6123  ;;  %5907 = vrot.lane.b32.xlu1 %v5884_v54, %s10263_s17  ;;  %v6671_v2 = vrot.slane %v13326_v1, 5  ;;  %v6362_v54 = vrot.slane %v6353_v42, 4 }
 0x82f   :  { %v6074_v23 = vsel %vm15263_vm15, %v6047_v7, %v6073_v8  ;;  %v6139_v62 = vrot.slane %v6124_v28, 4  ;;  %vm15276_vm15 = vmmov %vm15262_vm13 }
 0x830   :  { %6095 = vst [vmem:[#allocation5 + $0x390] sm:$0xee] %v6074_v23  ;;  %v13334_v21 = vpop.permute.xlu1 %6861  ;;  %v6680_v33 = vrot.slane %v6671_v2, 4  ;;  %v6807_v23 = vld [vmem:[#allocation4 + $0x24] sm:$0x77] }
 0x831   :  { %5753 = vrot.lane.b32.xlu0 %v5730_v60, %s10262_s16  ;;  %v6886_v7 = vrot.slane %v13334_v21, 4  ;;  %v6148_v22 = vsel %vm105_vm9, %v6138_v29, %v6139_v62  ;;  %v6150_v32 = vsel %vm105_vm9, %v6139_v62, %v6140_v11 }
 0x832   :  { %v6149_v36 = vsel %vm15264_vm10, %v13106_v40, %v6148_v22  ;;  %v6151_v56 = vsel %vm15265_vm14, %v6124_v28, %v6150_v32  ;;  %v6336_v28 = vld [vmem:[#allocation4 + $0x24] sm:$0x77]  ;;  %v6038_v32 = vrot.slane %v6020_v61, 7  ;;  %vm15277_vm10 = vmmov %vm15266_vm0  ;;  %vm15278_vm14 = vcmask 146432  }
 0x833   :  { %v6219_v50 = vpop.permute.xlu0 %6218  ;;  %v6911_v29 = vsel %vm105_vm9, %v6885_v19, %v6886_v7  ;;  %6171 = vst [vmem:[#allocation5 + $0x3c8] sm:$0x77] %v6149_v36 }
 0x834   :  { %v6252_v38 = vrot.slane %v6219_v50, 4  ;;  %v6912_v18 = vsel %vm15266_vm0, %v13072_v63, %v6911_v29  ;;  %6172 = vst [vmem:[#allocation5 + $0x3d0] sm:$0x77] %v6151_v56  ;;  %6392 = vrot.lane.b32.xlu2 %v6362_v54, %s15225_s0  ;;  %v6825_v29 = vrot.slane %v6807_v23, 6  ;;  %vm7972_vm0 = vcmask 277504  }
 0x835   :  { %6950 = vst [vmem:[#allocation5 + $0x508] sm:$0x11] %v6912_v18  ;;  %v6354_v18 = vrot.slane %v6336_v28, 6 }
 0x836   :  { %v6270_v40 = vsel %vm105_vm9, %v6251_v58, %v6252_v38  ;;  %v13364_v19 = vpop.permute.xlu2 %6220  ;;  %6711 = vrot.lane.b32.xlu1 %v6680_v33, %s10270_s24 }
 0x837   :  { %v6271_v42 = vsel %vm15267_vm1, %v13100_v31, %v6270_v40  ;;  %v6253_v63 = vrot.slane %v13364_v19, 4  ;;  %v13378_v40 = vld [vmem:[#allocation4 + $0x34] sm:$0x77]  ;;  %vm15279_vm1 = vmmov %vm15278_vm14 }
 0x838   :  { %6317 = vst [vmem:[#allocation5 + $0x3c8] sm:$0x88] %v6271_v42  ;;  %v5748_v8 = vpop.permute.xlu1 %5747 }
 0x839   :  { %6598 = vrot.lane.b32.xlu0 %v6576_v48, %s10269_s23  ;;  %v5781_v58 = vrot.slane %v5748_v8, 4  ;;  %v6272_v31 = vsel %vm105_vm9, %v6252_v38, %v6253_v63  ;;  %v9626_v38 = vld [vmem:[#allocation5 + $0x388] sm:$0xf]  ;;  %v10065_v48 = vld [vmem:[#allocation5 + $0x38c] sm:$0xf] }
 0x83a   :  { %v6273_v22 = vsel %vm15268_vm2, %v6219_v50, %v6272_v31  ;;  %vm15280_vm2 = vcmask 228352  }
 0x83b   :  { %v5653_v62 = vpop.permute.xlu0 %5652  ;;  %v5799_v36 = vsel %vm105_vm9, %v5780_v53, %v5781_v58  ;;  %6318 = vst [vmem:[#allocation5 + $0x3d0] sm:$0x88] %v6273_v22 }
 0x83c   :  { %v5668_v54 = vrot.slane %v5653_v62, 4  ;;  %v5800_v56 = vsel %vm15269_vm3, %v13156_v49, %v5799_v36  ;;  %6052 = vrot.lane.b32.xlu2 %v6038_v32, %s10264_s18  ;;  %v7119_v33 = vld [vmem:[#allocation5 + $0x508] sm:$0x11]  ;;  %vm15281_vm3 = vcmask 236544  }
 0x83d   :  { %5846 = vst [vmem:[#allocation5 + $0x308] sm:$0x88] %v5800_v56  ;;  %v7622_v49 = vunpack.c.l.b16 %v7119_v33  ;;  %v7623_v23 = vunpack.c.h.b16 %v7119_v33  ;;  %v5885_v56 = vrot.slane %v13378_v40, 6  ;;  %v9380_v40 = vld [vmem:[#allocation5 + $0x1d0] sm:$0xf0] }
 0x83e   :  { %v5677_v50 = vsel %vm105_vm9, %v5667_v20, %v5668_v54  ;;  %v13386_v28 = vpop.permute.xlu2 %5654  ;;  %6376 = vrot.lane.b32.xlu1 %v6354_v18, %s15225_s0 }
 0x83f   :  { %v5678_v53 = vsel %vm15270_vm4, %v13144_v43, %v5677_v50  ;;  %v10073_v42 = vld [vmem:[#allocation5 + $0x3c4] sm:$0xf0]  ;;  %v9628_v61 = vld [vmem:[#allocation5 + $0x3c8] sm:$0xf0]  ;;  %v5669_v20 = vrot.slane %v13386_v28, 4  ;;  %v7798_v36 = vpack.c.b16 %v7622_v49, %v7622_v49  ;;  %v7799_v43 = vpack.c.b16 %v7623_v23, %v7623_v23  ;;  %vm15282_vm4 = vmmov %vm15280_vm2 }
 0x840   :  { %5700 = vst [vmem:[#allocation5 + $0x308] sm:$0x77] %v5678_v53  ;;  %v9627_v31 = vor.u32 %v10073_v42, %v9626_v38  ;;  %v9631_v22 = vor.u32 %v10065_v48, %v9628_v61  ;;  %v13391_v32 = vpop.permute.xlu1 %5767  ;;  %v6834_v48 = vrot.slane %v6825_v29, 4  ;;  %v5894_v49 = vrot.slane %v5885_v56, 4 }
 0x841   :  { %6847 = vrot.lane.b32.xlu0 %v6825_v29, %s10271_s25  ;;  %v5679_v50 = vsel %vm105_vm9, %v5668_v54, %v5669_v20  ;;  %v7984_v38 = vsel %vm7976_vm8, %v7798_v36, 0  ;;  %v7987_v53 = vsel %vm7976_vm8, %v7799_v43, 0 }
 0x842   :  { %8077 = vmatpush.bf16.msrb.mxu1 %v9627_v31  ;;  %8103 = vmatpush.bf16.msrb.mxu0 %v9631_v22  ;;  %v5680_v42 = vsel %vm15271_vm6, %v5653_v62, %v5679_v50  ;;  %v14977_v31 = vrot.slane %v13391_v32, 4  ;;  %v6363_v62 = vrot.slane %v6354_v18, 4  ;;  %v5739_v18 = vrot.slane %v5730_v60, 4  ;;  %vm15283_vm6 = vmmov %vm15262_vm13 }
 0x843   :  { %v13397_v33 = vpop.permute.xlu0 %5749  ;;  %8095 = vmatpush.bf16.msrb.mxu3 %v7984_v38  ;;  %8121 = vmatpush.bf16.msrb.mxu2 %v7987_v53  ;;  %5701 = vst [vmem:[#allocation5 + $0x310] sm:$0x77] %v5680_v42  ;;  %v13424_v38 = vld [vmem:[#allocation4 + $0x34] sm:$0x77] }
 0x844   :  { %v5782_v61 = vrot.slane %v13397_v33, 4  ;;  %6865 = vrot.lane.b32.xlu2 %v6834_v48, %s10271_s25  ;;  %v14973_v60 = vrot.slane %v13424_v38, 5 }
 0x846   :  { %v5801_v54 = vsel %vm105_vm9, %v5781_v58, %v5782_v61  ;;  %v5766_v29 = vpop.permute.xlu2 %5765  ;;  %5927 = vrot.lane.b32.xlu1 %v5894_v49, %s10263_s17 }
 0x847   :  { %v5802_v23 = vsel %vm15272_vm7, %v5748_v8, %v5801_v54  ;;  %v5790_v22 = vrot.slane %v5766_v29, 4  ;;  %v6021_v54 = vld [vmem:[#allocation4 + $0x34] sm:$0x77]  ;;  %vm15284_vm7 = vcmask 220160  }
 0x848   :  { %5847 = vst [vmem:[#allocation5 + $0x310] sm:$0x88] %v5802_v23  ;;  %v13413_v36 = vpop.permute.xlu1 %6594  ;;  %v6039_v23 = vrot.slane %v6021_v54, 7 }
 0x849   :  { %6394 = vrot.lane.b32.xlu0 %v6363_v62, %s15225_s0  ;;  %v6610_v43 = vrot.slane %v13413_v36, 4  ;;  %v5815_v58 = vsel %vm105_vm9, %v5789_v0, %v5790_v22  ;;  %v5817_v8 = vsel %vm105_vm9, %v5790_v22, %v14977_v31  ;;  %v9993_v31 = vld [vmem:[#allocation5 + $0x144] sm:$0xf0] }
 0x84a   :  { %v5816_v53 = vsel %vm15273_vm5, %v13148_v17, %v5815_v58  ;;  %v5818_v42 = vsel %vm15274_vm11, %v5766_v29, %v5817_v8  ;;  %v5713_v8 = vld [vmem:[#allocation4 + $0x34] sm:$0x77]  ;;  %vm15285_vm5 = vmmov %vm15277_vm10 }
 0x84b   :  { %v5902_v50 = vpop.permute.xlu0 %5901  ;;  %v6619_v0 = vsel %vm105_vm9, %v6609_v6, %v6610_v43  ;;  %5854 = vst [vmem:[#allocation5 + $0x348] sm:$0x33] %v5816_v53  ;;  %v13443_v6 = vld [vmem:[#allocation4 + $0x2c] sm:$0x77]  ;;  %v5731_v54 = vrot.slane %v5713_v8, 5  ;;  %vm15286_vm11 = vmmov %vm15281_vm3 }
 0x84c   :  { %v5935_v48 = vrot.slane %v5902_v50, 4  ;;  %v6620_v37 = vsel %vm15275_vm12, %v13195_v45, %v6619_v0  ;;  %5855 = vst [vmem:[#allocation5 + $0x350] sm:$0x33] %v5818_v42  ;;  %5771 = vrot.lane.b32.xlu2 %v5739_v18, %s10262_s16  ;;  %vm15287_vm12 = vcmask 310272  }
 0x84d   :  { %6642 = vst [vmem:[#allocation5 + $0x488] sm:$0x77] %v6620_v37 }
 0x84e   :  { %v5953_v17 = vsel %vm105_vm9, %v5934_v15, %v5935_v48  ;;  %v13445_v62 = vpop.permute.xlu2 %5903  ;;  %6226 = vrot.lane.b32.xlu1 %v14973_v60, %s10266_s20 }
 0x84f   :  { %v5954_v49 = vsel %vm15262_vm13, %v13182_v12, %v5953_v17  ;;  %v14976_v45 = vrot.slane %v13445_v62, 4  ;;  %v6826_v12 = vrot.slane %v13443_v6, 6  ;;  %v10049_v17 = vld [vmem:[#allocation5 + $0x30c] sm:$0xf]  ;;  %vm15288_vm13 = vcmask 302080  }
 0x850   :  { %6000 = vst [vmem:[#allocation5 + $0x348] sm:$0xcc] %v5954_v49  ;;  %v13452_v15 = vpop.permute.xlu1 %6843  ;;  %v6107_v6 = vld [vmem:[#allocation4 + $0x34] sm:$0x77] }
 0x851   :  { %6054 = vrot.lane.b32.xlu0 %v6039_v23, %s10264_s18  ;;  %v6877_v29 = vrot.slane %v13452_v15, 4  ;;  %v5955_v22 = vsel %vm105_vm9, %v5935_v48, %v14976_v45  ;;  %v6835_v48 = vrot.slane %v6826_v12, 4  ;;  %v10001_v45 = vld [vmem:[#allocation5 + $0x18c] sm:$0xf] }
 0x852   :  { %v5956_v18 = vsel %vm15276_vm15, %v5902_v50, %v5955_v22  ;;  %vm15289_vm15 = vmmov %vm15279_vm1 }
 0x853   :  { %v13459_v58 = vpop.permute.xlu0 %6689  ;;  %v6895_v42 = vsel %vm105_vm9, %v6876_v10, %v6877_v29  ;;  %6001 = vst [vmem:[#allocation5 + $0x350] sm:$0xcc] %v5956_v18  ;;  %v9562_v10 = vld [vmem:[#allocation5 + $0x308] sm:$0xf] }
 0x854   :  { %v6723_v53 = vrot.slane %v13459_v58, 4  ;;  %v6896_v0 = vsel %vm15277_vm10, %v13228_v25, %v6895_v42  ;;  %6693 = vrot.lane.b32.xlu2 %v6671_v2, %s10270_s24  ;;  %vm15290_vm10 = vcmask 154624  }
 0x855   :  { %6942 = vst [vmem:[#allocation5 + $0x4c8] sm:$0xcc] %v6896_v0 }
 0x856   :  { %v6741_v50 = vsel %vm105_vm9, %v6722_v39, %v6723_v53  ;;  %v13482_v1 = vpop.permute.xlu2 %6707  ;;  %5755 = vrot.lane.b32.xlu1 %v5731_v54, %s10262_s16  ;;  %v6957_v39 = vld [vmem:[%s14848_s3] sm:$0xff] }
 0x857   :  { %v6742_v37 = vsel %vm15278_vm14, %v13189_v9, %v6741_v50  ;;  %v10057_v25 = vld [vmem:[#allocation5 + $0x344] sm:$0xf0]  ;;  %v9564_v49 = vld [vmem:[#allocation5 + $0x348] sm:$0xf0]  ;;  %v6732_v22 = vrot.slane %v13482_v1, 4  ;;  %v7127_v18 = vunpack.c.l.b16 %v6957_v39  ;;  %v7128_v42 = vunpack.c.h.b16 %v6957_v39  ;;  %vm15291_vm14 = vmmov %vm15279_vm1 }
 0x858   :  { %6788 = vst [vmem:[#allocation5 + $0x488] sm:$0x88] %v6742_v37  ;;  %v9563_v2 = vor.u32 %v10057_v25, %v9562_v10  ;;  %v9567_v23 = vor.u32 %v10049_v17, %v9564_v49  ;;  %v13490_v8 = vpop.permute.xlu1 %6390  ;;  %v10041_v9 = vld [vmem:[#allocation5 + $0x2c4] sm:$0xf0]  ;;  %v9500_v50 = vld [vmem:[#allocation5 + $0x2c8] sm:$0xf0] }
 0x859   :  { %6867 = vrot.lane.b32.xlu0 %v6835_v48, %s10271_s25  ;;  %v14974_v0 = vrot.slane %v13490_v8, 4  ;;  %v6757_v10 = vsel %vm105_vm9, %v6731_v59, %v6732_v22  ;;  %v6209_v48 = vrot.slane %v6200_v44, 4  ;;  %v9498_v25 = vld [vmem:[#allocation5 + $0x288] sm:$0xf]  ;;  %v13502_v17 = vpack.c.b16 %v7127_v18, %v7127_v18  ;;  %v10033_v44 = vld [vmem:[#allocation5 + $0x28c] sm:$0xf] }
 0x85a   :  { %8078 = vmatpush.bf16.msrb.mxu1 %v9563_v2  ;;  %8104 = vmatpush.bf16.msrb.mxu0 %v9567_v23  ;;  %v13504_v49 = vpack.c.b16 %v7128_v42, %v7128_v42  ;;  %v6758_v2 = vsel %vm15279_vm1, %v13218_v55, %v6757_v10  ;;  %v9499_v3 = vor.u32 %v10041_v9, %v9498_v25  ;;  %v9434_v42 = vld [vmem:[#allocation5 + $0x208] sm:$0xf]  ;;  %v5740_v9 = vrot.slane %v5731_v54, 4 }
 0x85b   :  { %v13500_v37 = vpop.permute.xlu0 %6236  ;;  %v6440_v59 = vsel %vm105_vm9, %v6414_v47, %v14974_v0  ;;  %6796 = vst [vmem:[#allocation5 + $0x4c8] sm:$0x33] %v6758_v2  ;;  %v9503_v18 = vor.u32 %v10033_v44, %v9500_v50  ;;  %8059 = vmatmul.bf16.vlgmr.msra.gmra.mxu2 %v13502_v17  ;;  %v10017_v47 = vld [vmem:[#allocation5 + $0x20c] sm:$0xf]  ;;  %v6577_v50 = vld [vmem:[#allocation4 + $0x2c] sm:$0x77]  ;;  %8033 = vmatmul.bf16.vlgmr.msra.gmra.mxu0 %v13502_v17 }
 0x85c   :  { %v6261_v23 = vrot.slane %v13500_v37, 4  ;;  %v6441_v39 = vsel %vm15280_vm2, %v13264_v41, %v6440_v59  ;;  %9809 = vmatmul.msk.bf16.vlgmr.msra.gmra.mxu3 %vm7972_vm0, %v13504_v49  ;;  %6240 = vrot.lane.b32.xlu2 %v6209_v48, %s10266_s20  ;;  %v10025_v10 = vld [vmem:[#allocation5 + $0x244] sm:$0xf0]  ;;  %vm15292_vm1 = vcmask 957440   ;;  %vm15293_vm2 = vmmov %vm15285_vm5 }
 0x85d   :  { %6479 = vst [vmem:[#allocation5 + $0x448] sm:$0x11] %v6441_v39  ;;  %9808 = vmatmul.msk.bf16.vlgmr.msra.gmra.mxu1 %vm7972_vm0, %v13504_v49  ;;  %v9435_v25 = vor.u32 %v10025_v10, %v9434_v42  ;;  %v10009_v59 = vld [vmem:[#allocation5 + $0x1c4] sm:$0xf0] }
 0x85e   :  { %v6286_v55 = vsel %vm105_vm9, %v6260_v5, %v6261_v23  ;;  %8079 = vmatpush.bf16.msrb.mxu1 %v9499_v3  ;;  %8105 = vmatpush.bf16.msrb.mxu0 %v9503_v18  ;;  %v13529_v48 = vpop.permute.xlu2 %6372  ;;  %v9436_v5 = vld [vmem:[#allocation5 + $0x248] sm:$0xf0]  ;;  %v13537_v18 = vld [vmem:[#allocation4 + $0x2c] sm:$0x77] }
 0x85f   :  { %v6287_v41 = vsel %vm15281_vm3, %v13223_v13, %v6286_v55  ;;  %6600 = vrot.lane.b32.xlu1 %v6577_v50, %s10269_s23  ;;  %v14975_v2 = vrot.slane %v13529_v48, 4  ;;  %v6490_v13 = vld [vmem:[#allocation4 + $0x24] sm:$0x77]  ;;  %v9439_v54 = vor.u32 %v10017_v47, %v9436_v5  ;;  %v9754_v3 = vld [vmem:[#allocation5 + $0x488] sm:$0xf]  ;;  %vm15294_vm3 = vcmask 965632  }
 0x860   :  { %6325 = vst [vmem:[#allocation5 + $0x408] sm:$0x33] %v6287_v41  ;;  %v10097_v44 = vld [vmem:[#allocation5 + $0x48c] sm:$0xf]  ;;  %v13535_v39 = vpop.permute.xlu1 %5923  ;;  %v9370_v47 = vld [vmem:[#allocation5 + $0x188] sm:$0xf] }
 0x861   :  { %5773 = vrot.lane.b32.xlu0 %v5740_v9, %s10262_s16  ;;  %v6424_v42 = vsel %vm105_vm9, %v6405_v30, %v14975_v2  ;;  %v5946_v41 = vrot.slane %v13535_v39, 4  ;;  %v9372_v9 = vld [vmem:[#allocation5 + $0x1c8] sm:$0xf0]  ;;  %v13547_v50 = vld [vmem:[#allocation4 + $0x3c] sm:$0x77]  ;;  %v9371_v0 = vor.u32 %v10009_v59, %v9370_v47  ;;  %v6672_v59 = vrot.slane %v13537_v18, 5 }
 0x862   :  { %8080 = vmatpush.bf16.msrb.mxu1 %v9435_v25  ;;  %8106 = vmatpush.bf16.msrb.mxu0 %v9439_v54  ;;  %v6425_v10 = vsel %vm15282_vm4, %v13250_v35, %v6424_v42  ;;  %v6508_v25 = vrot.slane %v6490_v13, 7  ;;  %v10105_v5 = vld [vmem:[#allocation5 + $0x4c4] sm:$0xf0]  ;;  %v9756_v46 = vld [vmem:[#allocation5 + $0x4c8] sm:$0xf0]  ;;  %vm15296_vm4 = vmmov %vm15286_vm11 }
 0x863   :  { %v13544_v55 = vpop.permute.xlu0 %6517  ;;  %6471 = vst [vmem:[#allocation5 + $0x408] sm:$0xcc] %v6425_v10  ;;  %v9755_v30 = vor.u32 %v10105_v5, %v9754_v3  ;;  %v9759_v54 = vor.u32 %v10097_v44, %v9756_v46  ;;  %v5973_v2 = vsel %vm105_vm9, %v5945_v27, %v5946_v41  ;;  %v9375_v46 = vor.u32 %v10001_v45, %v9372_v9  ;;  %v9306_v3 = vld [vmem:[#allocation5 + $0x108] sm:$0xf]  ;;  %v9308_v44 = vld [vmem:[#allocation5 + $0x148] sm:$0xf0] }
 0x864   :  { %v6533_v60 = vrot.slane %v13544_v55, 4  ;;  %6521 = vrot.lane.b32.xlu2 %v6508_v25, %s15229_s26  ;;  %v5974_v13 = vsel %vm15283_vm6, %v13299_v24, %v5973_v2  ;;  %v5886_v24 = vrot.slane %v13547_v50, 6  ;;  %v9977_v10 = vld [vmem:[#allocation5 + $0xc4] sm:$0xf0]  ;;  %v9969_v25 = vld [vmem:[#allocation5 + $0x8c] sm:$0xf]  ;;  %vm15297_vm6 = vmmov %vm15292_vm1 }
 0x865   :  { %8096 = vmatpush.bf16.msrb.mxu3 %v9755_v30  ;;  %8122 = vmatpush.bf16.msrb.mxu2 %v9759_v54  ;;  %6010 = vst [vmem:[#allocation5 + $0x398] sm:$0x11] %v5974_v13  ;;  %v13791_v50 = vld [vmem:[#allocation4 + $0x34] sm:$0x77] }
 0x866   :  { %v6542_v35 = vsel %vm105_vm9, %v6532_v14, %v6533_v60  ;;  %8081 = vmatpush.bf16.msrb.mxu1 %v9371_v0  ;;  %v13568_v42 = vpop.permute.xlu2 %6863  ;;  %8107 = vmatpush.bf16.msrb.mxu0 %v9375_v46  ;;  %v9307_v14 = vor.u32 %v9993_v31, %v9306_v3  ;;  %v9242_v0 = vld [vmem:[#allocation5 + $0x88] sm:$0xf]  ;;  %v5895_v13 = vrot.slane %v5886_v24, 4 }
 0x867   :  { %v6543_v27 = vsel %vm15284_vm7, %v13259_v16, %v6542_v35  ;;  %6849 = vrot.lane.b32.xlu1 %v6826_v12, %s10271_s25  ;;  %v14978_v45 = vrot.slane %v13568_v42, 4  ;;  %v9985_v16 = vld [vmem:[#allocation5 + $0x10c] sm:$0xf]  ;;  %v9243_v54 = vor.u32 %v9977_v10, %v9242_v0  ;;  %v9961_v46 = vld [vmem:[#allocation5 + $0x44] sm:$0xf0]  ;;  %vm15299_vm7 = vcmask 318464  }
 0x868   :  { %6565 = vst [vmem:[#allocation5 + $0x448] sm:$0xee] %v6543_v27  ;;  %v9311_v2 = vor.u32 %v9985_v16, %v9308_v44  ;;  %v13578_v47 = vpop.permute.xlu1 %6222  ;;  %v9244_v35 = vld [vmem:[#allocation5 + $0xc8] sm:$0xf0]  ;;  %v6108_v27 = vld [vmem:[#allocation4 + $0x3c] sm:$0x77] }
 0x869   :  { %6695 = vrot.lane.b32.xlu0 %v6672_v59, %s10270_s24  ;;  %v6913_v31 = vsel %vm105_vm9, %v6886_v7, %v14978_v45  ;;  %v14979_v9 = vrot.slane %v13578_v47, 4  ;;  %v9178_v3 = vld [vmem:[#allocation5 + $0x8] sm:$0xf]  ;;  %v9180_v44 = vld [vmem:[#allocation5 + $0x48] sm:$0xf0]  ;;  %v9247_v0 = vor.u32 %v9969_v25, %v9244_v35 }
 0x86a   :  { %8082 = vmatpush.bf16.msrb.mxu1 %v9307_v14  ;;  %v6914_v5 = vsel %vm15285_vm5, %v13334_v21, %v6913_v31  ;;  %8108 = vmatpush.bf16.msrb.mxu0 %v9311_v2  ;;  %v10074_v21 = vld [vmem:[#allocation5 + $0x3cc] sm:$0xf0]  ;;  %v9690_v2 = vld [vmem:[#allocation5 + $0x408] sm:$0xf]  ;;  %v10081_v31 = vld [vmem:[#allocation5 + $0x40c] sm:$0xf] }
 0x86b   :  { %v13585_v12 = vpop.permute.xlu0 %6050  ;;  %6951 = vst [vmem:[#allocation5 + $0x510] sm:$0x11] %v6914_v5  ;;  %v6274_v7 = vsel %vm105_vm9, %v6253_v63, %v14979_v9  ;;  %v9636_v63 = vld [vmem:[#allocation5 + $0x3d0] sm:$0xf0]  ;;  %v9953_v35 = vld [vmem:[#allocation5 + $0xc] sm:$0xf] }
 0x86c   :  { %v6064_v30 = vrot.slane %v13585_v12, 4  ;;  %6131 = vrot.lane.b32.xlu2 %v6107_v6, %s10265_s19  ;;  %v6275_v16 = vsel %vm15286_vm11, %v13364_v19, %v6274_v7  ;;  %vm15301_vm5 = vcmask 220160   ;;  %vm15302_vm11 = vcmask 228352  }
 0x86d   :  { %6319 = vst [vmem:[#allocation5 + $0x3d8] sm:$0x88] %v6275_v16 }
 0x86e   :  { %v6075_v14 = vsel %vm105_vm9, %v6063_v51, %v6064_v30  ;;  %8083 = vmatpush.bf16.msrb.mxu1 %v9243_v54  ;;  %v13608_v45 = vpop.permute.xlu2 %6127  ;;  %8109 = vmatpush.bf16.msrb.mxu0 %v9247_v0  ;;  %v9179_v51 = vor.u32 %v9961_v46, %v9178_v3  ;;  %v9634_v54 = vld [vmem:[#allocation5 + $0x390] sm:$0xf]  ;;  %v9572_v3 = vld [vmem:[#allocation5 + $0x350] sm:$0xf0] }
 0x86f   :  { %v6076_v10 = vsel %vm15287_vm12, %v13311_v34, %v6075_v14  ;;  %v10089_v5 = vld [vmem:[#allocation5 + $0x444] sm:$0xf0]  ;;  %v9692_v6 = vld [vmem:[#allocation5 + $0x448] sm:$0xf0]  ;;  %6133 = vrot.lane.b32.xlu1 %v6108_v27, %s10265_s19  ;;  %v6141_v25 = vrot.slane %v13608_v45, 4  ;;  %v9635_v7 = vor.u32 %v10074_v21, %v9634_v54  ;;  %v9183_v14 = vor.u32 %v9953_v35, %v9180_v44  ;;  %vm15304_vm12 = vmmov %vm15302_vm11 }
 0x870   :  { %6096 = vst [vmem:[#allocation5 + $0x398] sm:$0xee] %v6076_v10  ;;  %v9691_v9 = vor.u32 %v10089_v5, %v9690_v2  ;;  %v9695_v19 = vor.u32 %v10081_v31, %v9692_v6  ;;  %v10066_v34 = vld [vmem:[#allocation5 + $0x394] sm:$0xf]  ;;  %v13613_v16 = vpop.permute.xlu1 %6709  ;;  %v10058_v0 = vld [vmem:[#allocation5 + $0x34c] sm:$0xf0] }
 0x871   :  { %5929 = vrot.lane.b32.xlu0 %v5895_v13, %s10263_s17  ;;  %v9639_v10 = vor.u32 %v10066_v34, %v9636_v63  ;;  %v6152_v46 = vsel %vm105_vm9, %v6140_v11, %v6141_v25  ;;  %v6733_v13 = vrot.slane %v13613_v16, 4  ;;  %v13623_v21 = vld [vmem:[#allocation4 + $0x3c] sm:$0x77]  ;;  %v9570_v31 = vld [vmem:[#allocation5 + $0x310] sm:$0xf]  ;;  %v6210_v54 = vrot.slane %v6201_v57, 4 }
 0x872   :  { %8084 = vmatpush.bf16.msrb.mxu1 %v9179_v51  ;;  %8097 = vmatpush.bf16.msrb.mxu3 %v9691_v9  ;;  %v6153_v9 = vsel %vm15288_vm13, %v13306_v52, %v6152_v46  ;;  %v13628_v2 = vld [vmem:[#allocation5 + $0x510] sm:$0x11]  ;;  %v9571_v6 = vor.u32 %v10058_v0, %v9570_v31 }
 0x873   :  { %8123 = vmatpush.bf16.msrb.mxu2 %v9695_v19  ;;  %v13620_v27 = vpop.permute.xlu0 %6596  ;;  %8110 = vmatpush.bf16.msrb.mxu0 %v9183_v14  ;;  %6173 = vst [vmem:[#allocation5 + $0x3d8] sm:$0x77] %v6153_v9  ;;  %v5636_v11 = vld [vmem:[#allocation4 + $0x34] sm:$0x77]  ;;  %v6759_v63 = vsel %vm105_vm9, %v6732_v22, %v6733_v13  ;;  %v7624_v5 = vunpack.c.l.b16 %v13628_v2  ;;  %v10050_v51 = vld [vmem:[#allocation5 + $0x314] sm:$0xf] }
 0x874   :  { %v6611_v44 = vrot.slane %v13620_v27, 4  ;;  %5660 = vrot.lane.b32.xlu2 %v5636_v11, %s10261_s15  ;;  %v6760_v22 = vsel %vm15289_vm15, %v13482_v1, %v6759_v63  ;;  %v9575_v19 = vor.u32 %v10050_v51, %v9572_v3  ;;  %v10042_v35 = vld [vmem:[#allocation5 + $0x2cc] sm:$0xf0]  ;;  %v14981_v14 = vrot.slane %v13623_v21, 5  ;;  %v10034_v0 = vld [vmem:[#allocation5 + $0x294] sm:$0xf]  ;;  %vm15305_vm15 = vmmov %vm15299_vm7 }
 0x875   :  { %9810 = vmatmul.msk.bf16.vlgmr.msrb.gmra.mxu3 %vm7972_vm0, %v13504_v49  ;;  %8085 = vmatmul.bf16.vlgmr.msrb.gmra.mxu1 %v13502_v17  ;;  %6797 = vst [vmem:[#allocation5 + $0x4d0] sm:$0x33] %v6760_v22  ;;  %v7800_v34 = vpack.c.b16 %v7624_v5, %v7624_v5  ;;  %v9442_v31 = vld [vmem:[#allocation5 + $0x210] sm:$0xf]  ;;  %v13665_v11 = vld [vmem:[#allocation4 + $0x2c] sm:$0x77] }
 0x876   :  { %8129 = vmatpush.bf16.msra.mxu3 %v9635_v7  ;;  %v6621_v52 = vsel %vm105_vm9, %v6610_v43, %v6611_v44  ;;  %9811 = vmatmul.msk.bf16.vlgmr.msrb.gmra.mxu2 %vm7972_vm0, %v13504_v49  ;;  %v9508_v43 = vld [vmem:[#allocation5 + $0x2d0] sm:$0xf0]  ;;  %v13655_v1 = vpop.permute.xlu2 %6691 }
 0x877   :  { %8155 = vmatpush.bf16.msra.mxu2 %v9639_v10  ;;  %v6622_v7 = vsel %vm15290_vm10, %v13413_v36, %v6621_v52  ;;  %8111 = vmatmul.bf16.vlgmr.msrb.gmra.mxu0 %v13502_v17  ;;  %v6724_v57 = vrot.slane %v13655_v1, 4  ;;  %v7990_v10 = vsel %vm7976_vm8, %v7800_v34, 0  ;;  %v9507_v36 = vor.u32 %v10042_v35, %v9506_v26  ;;  %v10067_v46 = vld [vmem:[#allocation5 + $0x39c] sm:$0xf]  ;;  %v10018_v51 = vld [vmem:[#allocation5 + $0x214] sm:$0xf] }
 0x878   :  { %6643 = vst [vmem:[#allocation5 + $0x490] sm:$0x77] %v6622_v7  ;;  %6242 = vrot.lane.b32.xlu1 %v6210_v54, %s10266_s20  ;;  %8147 = vmatpush.bf16.msra.mxu1 %v7990_v10  ;;  %v13663_v3 = vpop.permute.xlu1 %5751  ;;  %v9511_v9 = vor.u32 %v10034_v0, %v9508_v43  ;;  %v6491_v52 = vld [vmem:[#allocation4 + $0x2c] sm:$0x77]  ;;  %v10026_v35 = vld [vmem:[#allocation5 + $0x24c] sm:$0xf0] }
 0x879   :  { %6228 = vrot.lane.b32.xlu0 %v14981_v14, %s10266_s20  ;;  %v6743_v63 = vsel %vm105_vm9, %v6723_v53, %v6724_v57  ;;  %v9443_v34 = vor.u32 %v10026_v35, %v9442_v31  ;;  %v9444_v43 = vld [vmem:[#allocation5 + $0x250] sm:$0xf0]  ;;  %v6355_v26 = vrot.slane %v13665_v11, 6  ;;  %v6509_v0 = vrot.slane %v6491_v52, 7  ;;  %v9994_v52 = vld [vmem:[#allocation5 + $0x14c] sm:$0xf0] }
 0x87a   :  { %8130 = vmatpush.bf16.msra.mxu3 %v9571_v6  ;;  %v5783_v6 = vrot.slane %v13663_v3, 4  ;;  %v6744_v22 = vsel %vm15291_vm14, %v13459_v58, %v6743_v63  ;;  %vm15307_vm10 = vcmask 310272   ;;  %v9452_v14 = vld [vmem:[#allocation5 + $0x258] sm:$0xf0]  ;;  %vm15309_vm14 = vmmov %vm15294_vm3 }
 0x87b   :  { %8156 = vmatpush.bf16.msra.mxu2 %v9575_v19  ;;  %v13672_v5 = vpop.permute.xlu0 %6845  ;;  %v9644_v19 = vld [vmem:[#allocation5 + $0x3d8] sm:$0xf0]  ;;  %6789 = vst [vmem:[#allocation5 + $0x490] sm:$0x88] %v6744_v22 }
 0x87c   :  { %v6878_v54 = vrot.slane %v13672_v5, 4  ;;  %v9647_v7 = vor.u32 %v10067_v46, %v9644_v19  ;;  %v5803_v53 = vsel %vm105_vm9, %v5782_v61, %v5783_v6  ;;  %5909 = vrot.lane.b32.xlu2 %v5885_v56, %s10263_s17  ;;  %v10010_v61 = vld [vmem:[#allocation5 + $0x1cc] sm:$0xf0]  ;;  %v13696_v56 = vld [vmem:[#allocation4 + $0x3c] sm:$0x77] }
 0x87d   :  { %v5804_v10 = vsel %vm15292_vm1, %v13397_v33, %v5803_v53  ;;  %v5732_v22 = vrot.slane %v13696_v56, 5  ;;  %v9316_v53 = vld [vmem:[#allocation5 + $0x150] sm:$0xf0]  ;;  %vm15310_vm1 = vmmov %vm15296_vm4 }
 0x87e   :  { %8131 = vmatpush.bf16.msra.mxu3 %v9507_v36  ;;  %v6897_v58 = vsel %vm105_vm9, %v6877_v29, %v6878_v54  ;;  %v9447_v36 = vor.u32 %v10018_v51, %v9444_v43  ;;  %8207 = vmatpush.bf16.msra.mxu0 %v9647_v7  ;;  %5848 = vst [vmem:[#allocation5 + $0x318] sm:$0x88] %v5804_v10  ;;  %v9378_v29 = vld [vmem:[#allocation5 + $0x190] sm:$0xf]  ;;  %v6681_v43 = vrot.slane %v6672_v59, 4 }
 0x87f   :  { %8157 = vmatpush.bf16.msra.mxu2 %v9511_v9  ;;  %v6898_v46 = vsel %vm15293_vm2, %v13452_v15, %v6897_v58  ;;  %v13698_v9 = vpop.permute.xlu2 %5656  ;;  %v9379_v31 = vor.u32 %v10010_v61, %v9378_v29  ;;  %v10002_v15 = vld [vmem:[#allocation5 + $0x194] sm:$0xf]  ;;  %v9314_v10 = vld [vmem:[#allocation5 + $0x110] sm:$0xf] }
 0x880   :  { %6943 = vst [vmem:[#allocation5 + $0x4d0] sm:$0xcc] %v6898_v46  ;;  %6523 = vrot.lane.b32.xlu1 %v6509_v0, %s15229_s26  ;;  %v5670_v33 = vrot.slane %v13698_v9, 4  ;;  %v13705_v63 = vpop.permute.xlu1 %6238  ;;  %v9383_v51 = vor.u32 %v10002_v15, %v9380_v40  ;;  %v9986_v0 = vld [vmem:[#allocation5 + $0x114] sm:$0xf]  ;;  %v5741_v46 = vrot.slane %v5732_v22, 4 }
 0x881   :  { %6378 = vrot.lane.b32.xlu0 %v6355_v26, %s15225_s0  ;;  %v6262_v7 = vrot.slane %v13705_v63, 4  ;;  %v9319_v61 = vor.u32 %v9986_v0, %v9316_v53  ;;  %v9250_v40 = vld [vmem:[#allocation5 + $0x90] sm:$0xf]  ;;  %v9970_v29 = vld [vmem:[#allocation5 + $0x94] sm:$0xf]  ;;  %v15298_v0 = vrot.slane %v13445_v62, 4 }
 0x882   :  { %8132 = vmatpush.bf16.msra.mxu3 %v9443_v34  ;;  %v5681_v19 = vsel %vm105_vm9, %v5669_v20, %v5670_v33  ;;  %v9978_v53 = vld [vmem:[#allocation5 + $0xcc] sm:$0xf0] }
 0x883   :  { %8158 = vmatpush.bf16.msra.mxu2 %v9447_v36  ;;  %v13713_v35 = vpop.permute.xlu0 %5769  ;;  %v5682_v34 = vsel %vm15294_vm3, %v13386_v28, %v5681_v19  ;;  %v6288_v20 = vsel %vm105_vm9, %v6261_v23, %v6262_v7  ;;  %v9315_v36 = vor.u32 %v9994_v52, %v9314_v10  ;;  %v15295_v28 = vrot.slane %v13391_v32, 4  ;;  %v9252_v10 = vld [vmem:[#allocation5 + $0xd0] sm:$0xf0]  ;;  %vm15312_vm3 = vmmov %vm15299_vm7 }
 0x884   :  { %v5792_v58 = vrot.slane %v13713_v35, 4  ;;  %5702 = vst [vmem:[#allocation5 + $0x318] sm:$0x77] %v5682_v34  ;;  %6713 = vrot.lane.b32.xlu2 %v6681_v43, %s10270_s24  ;;  %v6289_v59 = vsel %vm15296_vm4, %v13500_v37, %v6288_v20  ;;  %v5637_v37 = vld [vmem:[#allocation4 + $0x3c] sm:$0x77]  ;;  %v9251_v43 = vor.u32 %v9978_v53, %v9250_v40  ;;  %vm15313_vm4 = vmmov %vm15297_vm6 }
 0x885   :  { %6326 = vst [vmem:[#allocation5 + $0x410] sm:$0x33] %v6289_v59  ;;  %v6809_v53 = vld [vmem:[#allocation4 + $0x34] sm:$0x77] }
 0x886   :  { %8133 = vmatpush.bf16.msra.mxu3 %v9379_v31  ;;  %v5819_v18 = vsel %vm105_vm9, %v15295_v28, %v5792_v58  ;;  %v9762_v31 = vld [vmem:[#allocation5 + $0x490] sm:$0xf] }
 0x887   :  { %8159 = vmatpush.bf16.msra.mxu2 %v9383_v51  ;;  %v5820_v23 = vsel %vm15297_vm6, %v13391_v32, %v5819_v18  ;;  %v10106_v15 = vld [vmem:[#allocation5 + $0x4cc] sm:$0xf0]  ;;  %v7625_v51 = vunpack.c.h.b16 %v13628_v2  ;;  %v13739_v52 = vpop.permute.xlu2 %5905  ;;  %v6022_v32 = vld [vmem:[#allocation4 + $0x3c] sm:$0x77]  ;;  %v9255_v2 = vor.u32 %v9970_v29, %v9252_v10  ;;  %vm15314_vm6 = vmmov %vm15313_vm4 }
 0x888   :  { %5856 = vst [vmem:[#allocation5 + $0x358] sm:$0x33] %v5820_v23  ;;  %5775 = vrot.lane.b32.xlu1 %v5741_v46, %s10262_s16  ;;  %v9763_v19 = vor.u32 %v10106_v15, %v9762_v31  ;;  %v5937_v34 = vrot.slane %v13739_v52, 4  ;;  %v13744_v20 = vpop.permute.xlu1 %6519  ;;  %v6040_v23 = vrot.slane %v6022_v32, 7  ;;  %v9186_v31 = vld [vmem:[#allocation5 + $0x10] sm:$0xf] }
 0x889   :  { %5662 = vrot.lane.b32.xlu0 %v5637_v37, %s10261_s15  ;;  %v6534_v59 = vrot.slane %v13744_v20, 4  ;;  %v7801_v46 = vpack.c.b16 %v7625_v51, %v7625_v51 }
 0x88a   :  { %8134 = vmatpush.bf16.msra.mxu3 %v9315_v36  ;;  %8148 = vmatpush.bf16.msra.mxu1 %v9763_v19  ;;  %v9962_v36 = vld [vmem:[#allocation5 + $0x4c] sm:$0xf0]  ;;  %v5957_v28 = vsel %vm105_vm9, %v15298_v0, %v5937_v34  ;;  %v9954_v19 = vld [vmem:[#allocation5 + $0x14] sm:$0xf] }
 0x88b   :  { %8160 = vmatpush.bf16.msra.mxu2 %v9319_v61  ;;  %v13751_v18 = vpop.permute.xlu0 %6374  ;;  %v9188_v61 = vld [vmem:[#allocation5 + $0x50] sm:$0xf0]  ;;  %v5958_v40 = vsel %vm15299_vm7, %v13445_v62, %v5957_v28  ;;  %v6544_v15 = vsel %vm105_vm9, %v6533_v60, %v6534_v59  ;;  %v9187_v37 = vor.u32 %v9962_v36, %v9186_v31  ;;  %v15300_v62 = vrot.slane %v13529_v48, 4  ;;  %v6578_v0 = vld [vmem:[#allocation4 + $0x34] sm:$0x77] }
 0x88c   :  { %v6407_v29 = vrot.slane %v13751_v18, 4  ;;  %6002 = vst [vmem:[#allocation5 + $0x358] sm:$0xcc] %v5958_v40  ;;  %6056 = vrot.lane.b32.xlu2 %v6040_v23, %s10264_s18  ;;  %v6545_v32 = vsel %vm15301_vm5, %v13544_v55, %v6544_v15  ;;  %v7993_v60 = vsel %vm7976_vm8, %v7801_v46, 0  ;;  %v6827_v28 = vrot.slane %v6809_v53, 6 }
 0x88d   :  { %6566 = vst [vmem:[#allocation5 + $0x450] sm:$0xee] %v6545_v32  ;;  %v15303_v46 = vrot.slane %v13490_v8, 4  ;;  %vm15315_vm7 = vcmask 146432   ;;  %vm15316_vm5 = vcmask 154624  }
 0x88e   :  { %8135 = vmatpush.bf16.msra.mxu3 %v9251_v43  ;;  %v6426_v51 = vsel %vm105_vm9, %v15300_v62, %v6407_v29  ;;  %v9191_v43 = vor.u32 %v9954_v19, %v9188_v61  ;;  %v10051_v19 = vld [vmem:[#allocation5 + $0x31c] sm:$0xf] }
 0x88f   :  { %8161 = vmatpush.bf16.msra.mxu2 %v9255_v2  ;;  %v6427_v10 = vsel %vm15302_vm11, %v13529_v48, %v6426_v51  ;;  %v9764_v2 = vld [vmem:[#allocation5 + $0x4d0] sm:$0xf0]  ;;  %v13773_v36 = vpop.permute.xlu2 %6392  ;;  %vm15317_vm11 = vmmov %vm15315_vm7 }
 0x890   :  { %6472 = vst [vmem:[#allocation5 + $0x410] sm:$0xcc] %v6427_v10  ;;  %v6416_v40 = vrot.slane %v13773_v36, 4  ;;  %6602 = vrot.lane.b32.xlu1 %v6578_v0, %s10269_s23  ;;  %v10098_v48 = vld [vmem:[#allocation5 + $0x494] sm:$0xf]  ;;  %v13780_v55 = vpop.permute.xlu1 %6129 }
 0x891   :  { %5911 = vrot.lane.b32.xlu0 %v5886_v24, %s10263_s17  ;;  %v9767_v61 = vor.u32 %v10098_v48, %v9764_v2  ;;  %v14980_v15 = vrot.slane %v13780_v55, 4  ;;  %v9516_v10 = vld [vmem:[#allocation5 + $0x2d8] sm:$0xf0] }
 0x892   :  { %8136 = vmatpush.bf16.msra.mxu3 %v9187_v37  ;;  %v6442_v23 = vsel %vm105_vm9, %v15303_v46, %v6416_v40  ;;  %v6836_v37 = vrot.slane %v6827_v28, 4  ;;  %v10035_v48 = vld [vmem:[#allocation5 + $0x29c] sm:$0xf] }
 0x893   :  { %8162 = vmatpush.bf16.msra.mxu2 %v9191_v43  ;;  %v13788_v31 = vpop.permute.xlu0 %5925  ;;  %v6443_v24 = vsel %vm15304_vm12, %v13490_v8, %v6442_v23  ;;  %v9580_v53 = vld [vmem:[#allocation5 + $0x358] sm:$0xf0]  ;;  %v6154_v32 = vsel %vm105_vm9, %v6141_v25, %v14980_v15  ;;  %v6673_v25 = vrot.slane %v13791_v50, 5 }
 0x894   :  { %v5947_v62 = vrot.slane %v13788_v31, 4  ;;  %6480 = vst [vmem:[#allocation5 + $0x450] sm:$0x11] %v6443_v24  ;;  %v9583_v51 = vor.u32 %v10051_v19, %v9580_v53  ;;  %6869 = vrot.lane.b32.xlu2 %v6836_v37, %s10271_s25  ;;  %v6155_v43 = vsel %vm15288_vm13, %v13608_v45, %v6154_v32  ;;  %v10019_v23 = vld [vmem:[#allocation5 + $0x21c] sm:$0xf]  ;;  %v15306_v32 = vrot.slane %v13424_v38, 5  ;;  %vm15318_vm13 = vmmov %vm15293_vm2 }
 0x895   :  { %8137 = vmatmul.bf16.vlgmr.msra.gmra.mxu3 %v13502_v17  ;;  %6174 = vst [vmem:[#allocation5 + $0x3e0] sm:$0x77] %v6155_v43  ;;  %v9455_v11 = vor.u32 %v10019_v23, %v9452_v14 }
 0x896   :  { %8173 = vmatpush.bf16.msrb.mxu3 %v7993_v60  ;;  %8163 = vmatmul.bf16.vlgmr.msra.gmra.mxu2 %v13502_v17  ;;  %v5975_v8 = vsel %vm105_vm9, %v5946_v41, %v5947_v62  ;;  %v13810_v60 = vld [vmem:[#allocation4 + $0x34] sm:$0x77]  ;;  %v9519_v41 = vor.u32 %v10035_v48, %v9516_v10  ;;  %v6364_v10 = vrot.slane %v6355_v26, 4  ;;  %v15308_v26 = vrot.slane %v13578_v47, 4 }
 0x897   :  { %8208 = vmatpush.bf16.msra.mxu0 %v9583_v51  ;;  %v5976_v2 = vsel %vm15305_vm15, %v13535_v39, %v5975_v8  ;;  %v13815_v0 = vpop.permute.xlu2 %6052  ;;  %v6356_v45 = vrot.slane %v13810_v60, 6  ;;  %v9698_v46 = vld [vmem:[#allocation5 + $0x410] sm:$0xf]  ;;  %v10082_v39 = vld [vmem:[#allocation5 + $0x414] sm:$0xf]  ;;  %v6211_v8 = vrot.slane %v15306_v32, 4  ;;  %vm15319_vm15 = vmmov %vm15310_vm1 }
 0x898   :  { %6011 = vst [vmem:[#allocation5 + $0x3a0] sm:$0x11] %v5976_v2  ;;  %6851 = vrot.lane.b32.xlu1 %v6827_v28, %s10271_s25  ;;  %v13823_v24 = vpop.permute.xlu1 %5658  ;;  %v9642_v51 = vld [vmem:[#allocation5 + $0x398] sm:$0xf]  ;;  %v9388_v32 = vld [vmem:[#allocation5 + $0x1d8] sm:$0xf0] }
 0x899   :  { %6697 = vrot.lane.b32.xlu0 %v6673_v25, %s10270_s24  ;;  %v5671_v53 = vrot.slane %v13823_v24, 4  ;;  %v10075_v28 = vld [vmem:[#allocation5 + $0x3d4] sm:$0xf0] }
 0x89a   :  { %8174 = vmatpush.bf16.msrb.mxu3 %v9767_v61  ;;  %v6065_v61 = vrot.slane %v13815_v0, 4 }
 0x89b   :  { %8209 = vmatpush.bf16.msra.mxu0 %v9519_v41  ;;  %v13830_v19 = vpop.permute.xlu0 %6224  ;;  %v10090_v2 = vld [vmem:[#allocation5 + $0x44c] sm:$0xf0]  ;;  %v9700_v48 = vld [vmem:[#allocation5 + $0x450] sm:$0xf0]  ;;  %v5683_v38 = vsel %vm105_vm9, %v5670_v33, %v5671_v53 }
 0x89c   :  { %v6077_v37 = vsel %vm105_vm9, %v6064_v30, %v6065_v61  ;;  %v6255_v30 = vrot.slane %v13830_v19, 4  ;;  %v9699_v41 = vor.u32 %v10090_v2, %v9698_v46  ;;  %v9703_v15 = vor.u32 %v10082_v39, %v9700_v48  ;;  %6396 = vrot.lane.b32.xlu2 %v6364_v10, %s15225_s0  ;;  %v10003_v10 = vld [vmem:[#allocation5 + $0x19c] sm:$0xf]  ;;  %v9578_v2 = vld [vmem:[#allocation5 + $0x318] sm:$0xf] }
 0x89d   :  { %v6078_v43 = vsel %vm15307_vm10, %v13585_v12, %v6077_v37  ;;  %v6365_v12 = vrot.slane %v6356_v45, 4  ;;  %v5684_v39 = vsel %vm15309_vm14, %v13698_v9, %v5683_v38  ;;  %v9643_v37 = vor.u32 %v10075_v28, %v9642_v51  ;;  %v6023_v28 = vld [vmem:[#allocation4 + $0x44] sm:$0x7]  ;;  %vm15320_vm10 = vmmov %vm15312_vm3 }
 0x89e   :  { %6097 = vst [vmem:[#allocation5 + $0x3a0] sm:$0xee] %v6078_v43  ;;  %v6276_v46 = vsel %vm105_vm9, %v15308_v26, %v6255_v30  ;;  %8149 = vmatpush.bf16.msra.mxu1 %v9699_v41  ;;  %8175 = vmatpush.bf16.msrb.mxu3 %v9703_v15  ;;  %v10059_v43 = vld [vmem:[#allocation5 + $0x354] sm:$0xf0]  ;;  %v9391_v9 = vor.u32 %v10003_v10, %v9388_v32  ;;  %v15311_v48 = vrot.slane %v13568_v42, 4  ;;  %vm15321_vm14 = vmmov %vm15304_vm12 }
 0x89f   :  { %v6277_v33 = vsel %vm15310_vm1, %v13578_v47, %v6276_v46  ;;  %5703 = vst [vmem:[#allocation5 + $0x320] sm:$0x77] %v5684_v39  ;;  %8210 = vmatpush.bf16.msra.mxu0 %v9455_v11  ;;  %v13857_v14 = vpop.permute.xlu2 %6865  ;;  %v9579_v15 = vor.u32 %v10059_v43, %v9578_v2  ;;  %v6492_v47 = vld [vmem:[#allocation4 + $0x34] sm:$0x77]  ;;  %v9324_v41 = vld [vmem:[#allocation5 + $0x158] sm:$0xf0] }
 0x8a0   :  { %6320 = vst [vmem:[#allocation5 + $0x3e0] sm:$0x88] %v6277_v33  ;;  %v6888_v23 = vrot.slane %v13857_v14, 4  ;;  %6398 = vrot.lane.b32.xlu1 %v6365_v12, %s15225_s0  ;;  %v13862_v51 = vpop.permute.xlu1 %5907  ;;  %v10043_v11 = vld [vmem:[#allocation5 + $0x2d4] sm:$0xf0]  ;;  %v6510_v32 = vrot.slane %v6492_v47, 7 }
 0x8a1   :  { %6244 = vrot.lane.b32.xlu0 %v6211_v8, %s10266_s20  ;;  %9812 = vmatmul.msk.bf16.vlgmr.msra.gmra.mxu1 %vm7972_vm0, %v13504_v49  ;;  %v5938_v12 = vrot.slane %v13862_v51, 4  ;;  %v9514_v39 = vld [vmem:[#allocation5 + $0x298] sm:$0xf]  ;;  %v6041_v43 = vrot.slane %v6023_v28, 7  ;;  %vm15322_vm1 = vcmask 220160  }
 0x8a2   :  { %8181 = vmatpush.bf16.msrb.mxu1 %v9643_v37  ;;  %v6915_v8 = vsel %vm105_vm9, %v15311_v48, %v6888_v23  ;;  %v9987_v37 = vld [vmem:[#allocation5 + $0x11c] sm:$0xf]  ;;  %v9450_v47 = vld [vmem:[#allocation5 + $0x218] sm:$0xf] }
 0x8a3   :  { %v13873_v38 = vpop.permute.xlu0 %5753  ;;  %v6916_v26 = vsel %vm15293_vm2, %v13568_v42, %v6915_v8  ;;  %8211 = vmatpush.bf16.msra.mxu0 %v9391_v9  ;;  %v5959_v33 = vsel %vm105_vm9, %v5937_v34, %v5938_v12  ;;  %v9327_v42 = vor.u32 %v9987_v37, %v9324_v41  ;;  %v9515_v9 = vor.u32 %v10043_v11, %v9514_v39  ;;  %v13898_v28 = vld [vmem:[#allocation4 + $0x3c] sm:$0x77]  ;;  %v9260_v48 = vld [vmem:[#allocation5 + $0xd8] sm:$0xf0]  ;;  %vm15323_vm2 = vmmov %vm15319_vm15 }
 0x8a4   :  { %v5784_v46 = vrot.slane %v13873_v38, 4  ;;  %6952 = vst [vmem:[#allocation5 + $0x518] sm:$0x11] %v6916_v26  ;;  %5757 = vrot.lane.b32.xlu2 %v5732_v22, %s10262_s16  ;;  %v5960_v2 = vsel %vm15312_vm3, %v13739_v52, %v5959_v33  ;;  %v5551_v22 = vld [vmem:[#allocation4 + $0x3c] sm:$0x77]  ;;  %vm15325_vm3 = vcmask 310272  }
 0x8a5   :  { %9813 = vmatmul.msk.bf16.vlgmr.msrb.gmra.mxu3 %vm7972_vm0, %v13504_v49  ;;  %6003 = vst [vmem:[#allocation5 + $0x360] sm:$0xcc] %v5960_v2  ;;  %v10027_v8 = vld [vmem:[#allocation5 + $0x254] sm:$0xf0]  ;;  %v9196_v26 = vld [vmem:[#allocation5 + $0x58] sm:$0xf0] }
 0x8a6   :  { %8182 = vmatpush.bf16.msrb.mxu1 %v9579_v15  ;;  %v5805_v10 = vsel %vm105_vm9, %v5783_v6, %v5784_v46  ;;  %v9971_v15 = vld [vmem:[#allocation5 + $0x9c] sm:$0xf]  ;;  %v9451_v52 = vor.u32 %v10027_v8, %v9450_v47  ;;  %v10011_v33 = vld [vmem:[#allocation5 + $0x1d4] sm:$0xf0] }
 0x8a7   :  { %v5806_v34 = vsel %vm15313_vm4, %v13663_v3, %v5805_v10  ;;  %8212 = vmatpush.bf16.msra.mxu0 %v9327_v42  ;;  %v13896_v56 = vpop.permute.xlu2 %5771  ;;  %v9263_v3 = vor.u32 %v9971_v15, %v9260_v48  ;;  %v5569_v42 = vrot.slane %v5551_v22, 7  ;;  %vm15327_vm4 = vcmask 302080  }
 0x8a8   :  { %5849 = vst [vmem:[#allocation5 + $0x320] sm:$0x88] %v5806_v34  ;;  %v5793_v6 = vrot.slane %v13896_v56, 4  ;;  %6058 = vrot.lane.b32.xlu1 %v6041_v43, %s10264_s18  ;;  %v13903_v41 = vpop.permute.xlu1 %6711  ;;  %v9386_v34 = vld [vmem:[#allocation5 + $0x198] sm:$0xf] }
 0x8a9   :  { %6525 = vrot.lane.b32.xlu0 %v6510_v32, %s15229_s26  ;;  %v6734_v37 = vrot.slane %v13903_v41, 4  ;;  %v6828_v32 = vrot.slane %v13898_v28, 6  ;;  %v9387_v8 = vor.u32 %v10011_v33, %v9386_v34 }
 0x8aa   :  { %8183 = vmatpush.bf16.msrb.mxu1 %v9515_v9  ;;  %v5821_v11 = vsel %vm105_vm9, %v5792_v58, %v5793_v6  ;;  %v9955_v9 = vld [vmem:[#allocation5 + $0x1c] sm:$0xf] }
 0x8ab   :  { %v13910_v39 = vpop.permute.xlu0 %6598  ;;  %v5822_v43 = vsel %vm15314_vm6, %v13713_v35, %v5821_v11  ;;  %8213 = vmatpush.bf16.msra.mxu0 %v9263_v3  ;;  %v7121_v2 = vld [vmem:[#allocation5 + $0x518] sm:$0x11]  ;;  %v6761_v58 = vsel %vm105_vm9, %v6733_v13, %v6734_v37  ;;  %v9199_v35 = vor.u32 %v9955_v9, %v9196_v26  ;;  %v6837_v26 = vrot.slane %v6828_v32, 4 }
 0x8ac   :  { %v6612_v10 = vrot.slane %v13910_v39, 4  ;;  %5857 = vst [vmem:[#allocation5 + $0x360] sm:$0x33] %v5822_v43  ;;  %v7626_v15 = vunpack.c.l.b16 %v7121_v2  ;;  %v7627_v47 = vunpack.c.h.b16 %v7121_v2  ;;  %5585 = vrot.lane.b32.xlu2 %v5569_v42, %s10260_s14  ;;  %v6762_v48 = vsel %vm15315_vm7, %v13613_v16, %v6761_v58  ;;  %v6109_v3 = vld [vmem:[#allocation4 + $0x44] sm:$0x7]  ;;  %vm15328_vm7 = vmmov %vm15318_vm13 }
 0x8ad   :  { %6798 = vst [vmem:[#allocation5 + $0x4d8] sm:$0x33] %v6762_v48  ;;  %v9995_v43 = vld [vmem:[#allocation5 + $0x154] sm:$0xf0]  ;;  %v5552_v58 = vld [vmem:[#allocation4 + $0x44] sm:$0x7] }
 0x8ae   :  { %8184 = vmatpush.bf16.msrb.mxu1 %v9451_v52  ;;  %v6623_v22 = vsel %vm105_vm9, %v6611_v44, %v6612_v10  ;;  %v7802_v52 = vpack.c.b16 %v7626_v15, %v7626_v15  ;;  %v7803_v11 = vpack.c.b16 %v7627_v47, %v7627_v47  ;;  %v9322_v2 = vld [vmem:[#allocation5 + $0x118] sm:$0xf]  ;;  %v6682_v48 = vrot.slane %v6673_v25, 4 }
 0x8af   :  { %v6624_v13 = vsel %vm15316_vm5, %v13620_v27, %v6623_v22  ;;  %8214 = vmatpush.bf16.msra.mxu0 %v9199_v35  ;;  %v13934_v42 = vpop.permute.xlu2 %6693  ;;  %v9323_v27 = vor.u32 %v9995_v43, %v9322_v2  ;;  %v9258_v35 = vld [vmem:[#allocation5 + $0x98] sm:$0xf]  ;;  %vm15329_vm5 = vcmask 965632  }
 0x8b0   :  { %6644 = vst [vmem:[#allocation5 + $0x498] sm:$0x77] %v6624_v13  ;;  %v6725_v44 = vrot.slane %v13934_v42, 4  ;;  %v7996_v16 = vsel %vm7976_vm8, %v7802_v52, 0  ;;  %v7999_v33 = vsel %vm7976_vm8, %v7803_v11, 0  ;;  %6871 = vrot.lane.b32.xlu1 %v6837_v26, %s10271_s25  ;;  %v13941_v9 = vpop.permute.xlu1 %6376  ;;  %v5570_v13 = vrot.slane %v5552_v58, 7 }
 0x8b1   :  { %6135 = vrot.lane.b32.xlu0 %v6109_v3, %s10265_s19  ;;  %8199 = vmatpush.bf16.msra.mxu3 %v7996_v16  ;;  %v6408_v47 = vrot.slane %v13941_v9, 4  ;;  %v9979_v3 = vld [vmem:[#allocation5 + $0xd4] sm:$0xf0]  ;;  %v5638_v52 = vld [vmem:[#allocation4 + $0x44] sm:$0x7] }
 0x8b2   :  { %8185 = vmatpush.bf16.msrb.mxu1 %v9387_v8  ;;  %8225 = vmatpush.bf16.msrb.mxu2 %v7999_v33  ;;  %v6745_v34 = vsel %vm105_vm9, %v6724_v57, %v6725_v44  ;;  %v9259_v25 = vor.u32 %v9979_v3, %v9258_v35  ;;  %v13970_v11 = vld [vmem:[#allocation4 + $0x3c] sm:$0x77]  ;;  %v5869_v26 = vld [vmem:[#allocation4 + $0x44] sm:$0x7] }
 0x8b3   :  { %v13948_v15 = vpop.permute.xlu0 %6847  ;;  %8215 = vmatmul.bf16.vlgmr.msra.gmra.mxu0 %v13502_v17  ;;  %v6746_v22 = vsel %vm15317_vm11, %v13655_v1, %v6745_v34  ;;  %v6428_v57 = vsel %vm105_vm9, %v6407_v29, %v6408_v47  ;;  %v9963_v43 = vld [vmem:[#allocation5 + $0x54] sm:$0xf0]  ;;  %vm15330_vm11 = vcmask 154624  }
 0x8b4   :  { %v6879_v8 = vrot.slane %v13948_v15, 4  ;;  %6790 = vst [vmem:[#allocation5 + $0x498] sm:$0x88] %v6746_v22  ;;  %6715 = vrot.lane.b32.xlu2 %v6682_v48, %s10270_s24  ;;  %v6429_v50 = vsel %vm15304_vm12, %v13751_v18, %v6428_v57  ;;  %vm15331_vm12 = vmmov %vm15314_vm6 }
 0x8b5   :  { %6473 = vst [vmem:[#allocation5 + $0x418] sm:$0xcc] %v6429_v50 }
 0x8b6   :  { %8186 = vmatpush.bf16.msrb.mxu1 %v9323_v27  ;;  %v6899_v1 = vsel %vm105_vm9, %v6878_v54, %v6879_v8  ;;  %v9194_v54 = vld [vmem:[#allocation5 + $0x18] sm:$0xf]  ;;  %v6674_v27 = vrot.slane %v13970_v11, 5 }
 0x8b7   :  { %v6900_v29 = vsel %vm15318_vm13, %v13672_v5, %v6899_v1  ;;  %v13974_v16 = vpop.permute.xlu2 %6240  ;;  %v9195_v18 = vor.u32 %v9963_v43, %v9194_v54  ;;  %v5887_v5 = vrot.slane %v5869_v26, 6  ;;  %vm15332_vm13 = vmmov %vm15320_vm10 }
 0x8b8   :  { %6944 = vst [vmem:[#allocation5 + $0x4d8] sm:$0xcc] %v6900_v29  ;;  %v6263_v33 = vrot.slane %v13974_v16, 4  ;;  %5587 = vrot.lane.b32.xlu1 %v5570_v13, %s10260_s14  ;;  %v13979_v2 = vpop.permute.xlu1 %5927  ;;  %v6683_v3 = vrot.slane %v6674_v27, 4 }
 0x8b9   :  { %5664 = vrot.lane.b32.xlu0 %v5638_v52, %s10261_s15  ;;  %v5948_v35 = vrot.slane %v13979_v2, 4  ;;  %v5896_v13 = vrot.slane %v5887_v5, 4 }
 0x8ba   :  { %8187 = vmatpush.bf16.msrb.mxu1 %v9259_v25  ;;  %v6290_v58 = vsel %vm105_vm9, %v6262_v7, %v6263_v33 }
 0x8bb   :  { %v13987_v34 = vpop.permute.xlu0 %6394  ;;  %v6291_v22 = vsel %vm15319_vm15, %v13705_v63, %v6290_v58  ;;  %v5977_v57 = vsel %vm105_vm9, %v5947_v62, %v5948_v35  ;;  %v9770_v1 = vld [vmem:[#allocation5 + $0x498] sm:$0xf]  ;;  %v10099_v50 = vld [vmem:[#allocation5 + $0x49c] sm:$0xf]  ;;  %v10149_v43 = vpack.i.bf16 %v5887_v5, %v5896_v13  ;;  %vm15333_vm15 = vmmov %vm15328_vm7 }
 0x8bc   :  { %v14982_v48 = vrot.slane %v13987_v34, 4  ;;  %6327 = vst [vmem:[#allocation5 + $0x418] sm:$0x33] %v6291_v22  ;;  %6380 = vrot.lane.b32.xlu2 %v6356_v45, %s15225_s0  ;;  %v5978_v7 = vsel %vm15320_vm10, %v13788_v31, %v5977_v57  ;;  %v15324_v57 = vrot.slane %v13623_v21, 5  ;;  %v6493_v21 = vld [vmem:[#allocation4 + $0x3c] sm:$0x77] }
 0x8bd   :  { %6012 = vst [vmem:[#allocation5 + $0x3a8] sm:$0x11] %v5978_v7  ;;  %vm15334_vm10 = vcmask 146432  }
 0x8be   :  { %8188 = vmatpush.bf16.msrb.mxu1 %v9195_v18  ;;  %v6444_v63 = vsel %vm105_vm9, %v6416_v40, %v14982_v48  ;;  %v6579_v40 = vld [vmem:[#allocation4 + $0x3c] sm:$0x77]  ;;  %v10068_v48 = vld [vmem:[#allocation5 + $0x3a4] sm:$0xf] }
 0x8bf   :  { %v6445_v62 = vsel %vm15321_vm14, %v13773_v36, %v6444_v63  ;;  %v10107_v60 = vld [vmem:[#allocation5 + $0x4d4] sm:$0xf0]  ;;  %v9772_v45 = vld [vmem:[#allocation5 + $0x4d8] sm:$0xf0]  ;;  %v14013_v25 = vpop.permute.xlu2 %6521  ;;  %v6212_v63 = vrot.slane %v15324_v57, 4  ;;  %v6511_v57 = vrot.slane %v6493_v21, 7  ;;  %vm15335_vm14 = vmmov %vm15334_vm10 }
 0x8c0   :  { %6481 = vst [vmem:[#allocation5 + $0x458] sm:$0x11] %v6445_v62  ;;  %v9771_v52 = vor.u32 %v10107_v60, %v9770_v1  ;;  %v9775_v31 = vor.u32 %v10099_v50, %v9772_v45  ;;  %v6535_v29 = vrot.slane %v14013_v25, 4  ;;  %6717 = vrot.lane.b32.xlu1 %v6683_v3, %s10270_s24  ;;  %v14018_v36 = vpop.permute.xlu1 %6226  ;;  %v14048_v3 = vld [vmem:[#allocation4 + $0x44] sm:$0x7] }
 0x8c1   :  { %8189 = vmatmul.bf16.vlgmr.msrb.gmra.mxu1 %v13502_v17  ;;  %6604 = vrot.lane.b32.xlu0 %v6579_v40, %s10269_s23  ;;  %v6256_v18 = vrot.slane %v14018_v36, 4  ;;  %v14052_v1 = vld [vmem:[#allocation4 + $0x3c] sm:$0x77]  ;;  %v9650_v50 = vld [vmem:[#allocation5 + $0x3a0] sm:$0xf]  ;;  %v15326_v40 = vrot.slane %v13780_v55, 4 }
 0x8c2   :  { %8200 = vmatpush.bf16.msra.mxu3 %v9771_v52  ;;  %8226 = vmatpush.bf16.msrb.mxu2 %v9775_v31  ;;  %v6546_v26 = vsel %vm105_vm9, %v6534_v59, %v6535_v29  ;;  %v10076_v62 = vld [vmem:[#allocation5 + $0x3dc] sm:$0xf0]  ;;  %v9652_v60 = vld [vmem:[#allocation5 + $0x3e0] sm:$0xf0] }
 0x8c3   :  { %v14025_v54 = vpop.permute.xlu0 %6054  ;;  %v6547_v58 = vsel %vm15322_vm1, %v13744_v20, %v6546_v26  ;;  %v6278_v5 = vsel %vm105_vm9, %v6255_v30, %v6256_v18  ;;  %v5715_v30 = vld [vmem:[#allocation4 + $0x44] sm:$0x7]  ;;  %v9706_v31 = vld [vmem:[#allocation5 + $0x418] sm:$0xf]  ;;  %v6357_v26 = vrot.slane %v14052_v1, 6  ;;  %vm15336_vm1 = vmmov %vm15327_vm4 }
 0x8c4   :  { %v6066_v22 = vrot.slane %v14025_v54, 4  ;;  %6567 = vst [vmem:[#allocation5 + $0x458] sm:$0xee] %v6547_v58  ;;  %10150 = vrot.lane.b32.xlu2 %v10149_v43, %s10263_s17  ;;  %v6279_v20 = vsel %vm15323_vm2, %v13830_v19, %v6278_v5  ;;  %v5733_v45 = vrot.slane %v5715_v30, 5  ;;  %v10083_v28 = vld [vmem:[#allocation5 + $0x41c] sm:$0xf]  ;;  %vm15337_vm2 = vmmov %vm15332_vm13 }
 0x8c5   :  { %6321 = vst [vmem:[#allocation5 + $0x3e8] sm:$0x88] %v6279_v20 }
 0x8c6   :  { %v6079_v59 = vsel %vm105_vm9, %v6065_v61, %v6066_v22 }
 0x8c7   :  { %v6080_v7 = vsel %vm15325_vm3, %v13815_v0, %v6079_v59  ;;  %v14050_v13 = vpop.permute.xlu2 %6131  ;;  %v6204_v0 = vrot.slane %v14048_v3, 5 }
 0x8c8   :  { %6098 = vst [vmem:[#allocation5 + $0x3a8] sm:$0xee] %v6080_v7  ;;  %v6143_v61 = vrot.slane %v14050_v13, 4  ;;  %6246 = vrot.lane.b32.xlu1 %v6212_v63, %s10266_s20  ;;  %v14060_v19 = vpop.permute.xlu1 %5755 }
 0x8c9   :  { %6853 = vrot.lane.b32.xlu0 %v6828_v32, %s10271_s25  ;;  %v5785_v43 = vrot.slane %v14060_v19, 4 }
 0x8ca   :  { %v6156_v52 = vsel %vm105_vm9, %v15326_v40, %v6143_v61  ;;  %v9651_v40 = vor.u32 %v10076_v62, %v9650_v50  ;;  %v10052_v50 = vld [vmem:[#allocation5 + $0x324] sm:$0xf] }
 0x8cb   :  { %v14067_v32 = vpop.permute.xlu0 %6867  ;;  %v6157_v58 = vsel %vm15327_vm4, %v13780_v55, %v6156_v52  ;;  %v10091_v5 = vld [vmem:[#allocation5 + $0x454] sm:$0xf0]  ;;  %v9708_v59 = vld [vmem:[#allocation5 + $0x458] sm:$0xf0]  ;;  %v5807_v30 = vsel %vm105_vm9, %v5784_v46, %v5785_v43  ;;  %v9655_v52 = vor.u32 %v10068_v48, %v9652_v60  ;;  %v9588_v62 = vld [vmem:[#allocation5 + $0x360] sm:$0xf0] }
 0x8cc   :  { %v6889_v20 = vrot.slane %v14067_v32, 4  ;;  %6175 = vst [vmem:[#allocation5 + $0x3e8] sm:$0x77] %v6157_v58  ;;  %v9707_v63 = vor.u32 %v10091_v5, %v9706_v31  ;;  %v9711_v7 = vor.u32 %v10083_v28, %v9708_v59  ;;  %6230 = vrot.lane.b32.xlu2 %v6204_v0, %s10266_s20  ;;  %v5808_v21 = vsel %vm15314_vm6, %v13873_v38, %v5807_v30  ;;  %v9586_v31 = vld [vmem:[#allocation5 + $0x320] sm:$0xf] }
 0x8cd   :  { %v10060_v28 = vld [vmem:[#allocation5 + $0x35c] sm:$0xf0]  ;;  %v5742_v58 = vrot.slane %v5733_v45, 4  ;;  %5850 = vst [vmem:[#allocation5 + $0x328] sm:$0x88] %v5808_v21  ;;  %v9591_v48 = vor.u32 %v10052_v50, %v9588_v62  ;;  %vm15338_vm4 = vcmask 236544  }
 0x8ce   :  { %v6917_v55 = vsel %vm105_vm9, %v6888_v23, %v6889_v20  ;;  %8201 = vmatpush.bf16.msra.mxu3 %v9707_v63  ;;  %8227 = vmatpush.bf16.msrb.mxu2 %v9711_v7  ;;  %v9587_v38 = vor.u32 %v10060_v28, %v9586_v31  ;;  %v14100_v59 = vld [vmem:[#allocation4 + $0x44] sm:$0x7]  ;;  %v10044_v7 = vld [vmem:[#allocation5 + $0x2dc] sm:$0xf0]  ;;  %v9524_v30 = vld [vmem:[#allocation5 + $0x2e0] sm:$0xf0] }
 0x8cf   :  { %v6918_v46 = vsel %vm15328_vm7, %v13857_v14, %v6917_v55  ;;  %v14091_v5 = vpop.permute.xlu2 %5660  ;;  %v10154_v60 = vpack.i.bf16 %v5742_v58, %v5733_v45  ;;  %v9522_v21 = vld [vmem:[#allocation5 + $0x2a0] sm:$0xf]  ;;  %v6213_v31 = vrot.slane %v6204_v0, 4  ;;  %v6358_v28 = vrot.slane %v14100_v59, 6  ;;  %v10020_v62 = vld [vmem:[#allocation5 + $0x224] sm:$0xf]  ;;  %vm15339_vm6 = vmmov %vm15338_vm4 }
 0x8d0   :  { %6953 = vst [vmem:[#allocation5 + $0x520] sm:$0x11] %v6918_v46  ;;  %v5672_v23 = vrot.slane %v14091_v5, 4  ;;  %6527 = vrot.lane.b32.xlu1 %v6511_v57, %s15229_s26  ;;  %v9523_v46 = vor.u32 %v10044_v7, %v9522_v21 }
 0x8d1   :  { %6382 = vrot.lane.b32.xlu0 %v6357_v26, %s15225_s0  ;;  %v14098_v14 = vpop.permute.xlu1 %6600  ;;  %9814 = vmatmul.msk.bf16.vlgmr.msra.gmra.mxu3 %vm7972_vm0, %v13504_v49 }
 0x8d2   :  { %8233 = vmatpush.bf16.msrb.mxu3 %v9651_v40  ;;  %8259 = vmatpush.bf16.msra.mxu2 %v9655_v52  ;;  %v5685_v63 = vsel %vm105_vm9, %v5671_v53, %v5672_v23  ;;  %v6613_v45 = vrot.slane %v14098_v14, 4  ;;  %v10036_v52 = vld [vmem:[#allocation5 + $0x2a4] sm:$0xf] }
 0x8d3   :  { %9815 = vmatmul.msk.bf16.vlgmr.msrb.gmra.mxu2 %vm7972_vm0, %v13504_v49  ;;  %v14111_v57 = vpop.permute.xlu0 %5773  ;;  %v5686_v40 = vsel %vm15329_vm5, %v13823_v24, %v5685_v63  ;;  %v9527_v50 = vor.u32 %v10036_v52, %v9524_v30  ;;  %v9460_v30 = vld [vmem:[#allocation5 + $0x260] sm:$0xf0]  ;;  %vm15340_vm5 = vcmask 220160  }
 0x8d4   :  { %v5794_v55 = vrot.slane %v14111_v57, 4  ;;  %5704 = vst [vmem:[#allocation5 + $0x328] sm:$0x77] %v5686_v40  ;;  %v6625_v53 = vsel %vm105_vm9, %v6612_v10, %v6613_v45  ;;  %10155 = vrot.lane.b32.xlu2 %v10154_v60, %s10262_s16  ;;  %v9458_v10 = vld [vmem:[#allocation5 + $0x220] sm:$0xf]  ;;  %v9463_v40 = vor.u32 %v10020_v62, %v9460_v30 }
 0x8d5   :  { %v6626_v58 = vsel %vm15330_vm11, %v13910_v39, %v6625_v53  ;;  %v10012_v53 = vld [vmem:[#allocation5 + $0x1dc] sm:$0xf0]  ;;  %vm15341_vm11 = vcmask 228352  }
 0x8d6   :  { %8234 = vmatpush.bf16.msrb.mxu3 %v9587_v38  ;;  %8260 = vmatpush.bf16.msra.mxu2 %v9591_v48  ;;  %v5823_v24 = vsel %vm105_vm9, %v5793_v6, %v5794_v55  ;;  %v6580_v38 = vld [vmem:[#allocation4 + $0x44] sm:$0x7]  ;;  %6645 = vst [vmem:[#allocation5 + $0x4a0] sm:$0x77] %v6626_v58  ;;  %v10028_v6 = vld [vmem:[#allocation5 + $0x25c] sm:$0xf0] }
 0x8d7   :  { %v5824_v3 = vsel %vm15331_vm12, %v13896_v56, %v5823_v24  ;;  %v7122_v0 = vld [vmem:[#allocation5 + $0x520] sm:$0x11]  ;;  %v6811_v48 = vld [vmem:[#allocation4 + $0x44] sm:$0x7]  ;;  %v14135_v60 = vpop.permute.xlu2 %5909  ;;  %v9459_v7 = vor.u32 %v10028_v6, %v9458_v10  ;;  %v6367_v56 = vrot.slane %v6358_v28, 4  ;;  %vm15343_vm12 = vmmov %vm15341_vm11 }
 0x8d8   :  { %5858 = vst [vmem:[#allocation5 + $0x368] sm:$0x33] %v5824_v3  ;;  %v7628_v59 = vunpack.c.l.b16 %v7122_v0  ;;  %v7629_v63 = vunpack.c.h.b16 %v7122_v0  ;;  %v5939_v39 = vrot.slane %v14135_v60, 4  ;;  %6248 = vrot.lane.b32.xlu1 %v6213_v31, %s10266_s20  ;;  %v6829_v58 = vrot.slane %v6811_v48, 6  ;;  %v9394_v3 = vld [vmem:[#allocation5 + $0x1a0] sm:$0xf] }
 0x8d9   :  { %6606 = vrot.lane.b32.xlu0 %v6580_v38, %s10269_s23  ;;  %v14140_v21 = vpop.permute.xlu1 %6849  ;;  %v9396_v38 = vld [vmem:[#allocation5 + $0x1e0] sm:$0xf0]  ;;  %v9395_v6 = vor.u32 %v10012_v53, %v9394_v3  ;;  %v9330_v53 = vld [vmem:[#allocation5 + $0x120] sm:$0xf] }
 0x8da   :  { %8235 = vmatpush.bf16.msrb.mxu3 %v9523_v46  ;;  %8261 = vmatpush.bf16.msra.mxu2 %v9527_v50  ;;  %v7804_v52 = vpack.c.b16 %v7628_v59, %v7628_v59  ;;  %v7805_v24 = vpack.c.b16 %v7629_v63, %v7629_v63  ;;  %v5961_v46 = vsel %vm105_vm9, %v5938_v12, %v5939_v39  ;;  %v6880_v10 = vrot.slane %v14140_v21, 4  ;;  %v10004_v59 = vld [vmem:[#allocation5 + $0x1a4] sm:$0xf]  ;;  %v9266_v3 = vld [vmem:[#allocation5 + $0xa0] sm:$0xf] }
 0x8db   :  { %v14147_v50 = vpop.permute.xlu0 %6695  ;;  %v5962_v31 = vsel %vm15332_vm13, %v13862_v51, %v5961_v46  ;;  %v10169_v51 = vpack.i.bf16 %v6367_v56, %v6358_v28  ;;  %v9399_v30 = vor.u32 %v10004_v59, %v9396_v38  ;;  %v9996_v28 = vld [vmem:[#allocation5 + $0x15c] sm:$0xf0]  ;;  %v9332_v56 = vld [vmem:[#allocation5 + $0x160] sm:$0xf0]  ;;  %vm15344_vm13 = vcmask 957440  }
 0x8dc   :  { %v6726_v62 = vrot.slane %v14147_v50, 4  ;;  %v8002_v0 = vsel %vm7976_vm8, %v7804_v52, 0  ;;  %v8005_v48 = vsel %vm7976_vm8, %v7805_v24, 0  ;;  %6004 = vst [vmem:[#allocation5 + $0x368] sm:$0xcc] %v5962_v31  ;;  %v6901_v12 = vsel %vm105_vm9, %v6879_v8, %v6880_v10  ;;  %6699 = vrot.lane.b32.xlu2 %v6674_v27, %s10270_s24 }
 0x8dd   :  { %8251 = vmatpush.bf16.msra.mxu1 %v8002_v0  ;;  %8277 = vmatpush.bf16.msrb.mxu0 %v8005_v48  ;;  %v6838_v8 = vrot.slane %v6829_v58, 4  ;;  %v9972_v0 = vld [vmem:[#allocation5 + $0xa4] sm:$0xf] }
 0x8de   :  { %8236 = vmatpush.bf16.msrb.mxu3 %v9459_v7  ;;  %8262 = vmatpush.bf16.msra.mxu2 %v9463_v40  ;;  %v6747_v63 = vsel %vm105_vm9, %v6725_v44, %v6726_v62  ;;  %v6902_v7 = vsel %vm15333_vm15, %v13948_v15, %v6901_v12  ;;  %v9988_v44 = vld [vmem:[#allocation5 + $0x124] sm:$0xf]  ;;  %v9331_v15 = vor.u32 %v9996_v28, %v9330_v53  ;;  %v9980_v12 = vld [vmem:[#allocation5 + $0xdc] sm:$0xf0]  ;;  %vm15345_vm15 = vcmask 965632  }
 0x8df   :  { %v6748_v40 = vsel %vm15334_vm10, %v13934_v42, %v6747_v63  ;;  %6945 = vst [vmem:[#allocation5 + $0x4e0] sm:$0xcc] %v6902_v7  ;;  %v14172_v11 = vpop.permute.xlu2 %6713  ;;  %v9335_v52 = vor.u32 %v9988_v44, %v9332_v56  ;;  %v10159_v24 = vpack.i.bf16 %v6829_v58, %v6838_v8  ;;  %v9964_v7 = vld [vmem:[#allocation5 + $0x5c] sm:$0xf0]  ;;  %v6657_v8 = vld [vmem:[#allocation4 + $0x44] sm:$0x7]  ;;  %vm15346_vm10 = vmmov %vm15344_vm13 }
 0x8e0   :  { %6791 = vst [vmem:[#allocation5 + $0x4a0] sm:$0x88] %v6748_v40  ;;  %v6735_v27 = vrot.slane %v14172_v11, 4  ;;  %v9956_v56 = vld [vmem:[#allocation5 + $0x24] sm:$0xf] }
 0x8e1   :  { %10170 = vrot.lane.b32.xlu0 %v10169_v51, %s15225_s0  ;;  %v14176_v46 = vpop.permute.xlu1 %6133  ;;  %v9267_v51 = vor.u32 %v9980_v12, %v9266_v3 }
 0x8e2   :  { %8237 = vmatpush.bf16.msrb.mxu3 %v9395_v6  ;;  %8263 = vmatpush.bf16.msra.mxu2 %v9399_v30  ;;  %v6763_v42 = vsel %vm105_vm9, %v6734_v37, %v6735_v27  ;;  %v6144_v31 = vrot.slane %v14176_v46, 4  ;;  %v9268_v6 = vld [vmem:[#allocation5 + $0xe0] sm:$0xf0] }
 0x8e3   :  { %v14183_v38 = vpop.permute.xlu0 %5929  ;;  %v6764_v48 = vsel %vm15335_vm14, %v13903_v41, %v6763_v42  ;;  %v9271_v63 = vor.u32 %v9972_v0, %v9268_v6  ;;  %vm15347_vm14 = vmmov %vm15337_vm2 }
 0x8e4   :  { %v5949_v58 = vrot.slane %v14183_v38, 4  ;;  %6799 = vst [vmem:[#allocation5 + $0x4e0] sm:$0x33] %v6764_v48  ;;  %v6158_v37 = vsel %vm105_vm9, %v6143_v61, %v6144_v31  ;;  %10160 = vrot.lane.b32.xlu2 %v10159_v24, %s10271_s25  ;;  %v9204_v61 = vld [vmem:[#allocation5 + $0x60] sm:$0xf0]  ;;  %v6675_v24 = vrot.slane %v6657_v8, 5 }
 0x8e5   :  { %v6159_v59 = vsel %vm15336_vm1, %v14050_v13, %v6158_v37  ;;  %v9207_v13 = vor.u32 %v9956_v56, %v9204_v61  ;;  %v6366_v48 = vrot.slane %v6357_v26, 4  ;;  %vm15348_vm1 = vcmask 154624  }
 0x8e6   :  { %8238 = vmatpush.bf16.msrb.mxu3 %v9331_v15  ;;  %8264 = vmatpush.bf16.msra.mxu2 %v9335_v52  ;;  %v5979_v41 = vsel %vm105_vm9, %v5948_v35, %v5949_v58  ;;  %6176 = vst [vmem:[#allocation5 + $0x3f0] sm:$0x77] %v6159_v59  ;;  %v9202_v35 = vld [vmem:[#allocation5 + $0x20] sm:$0xf]  ;;  %v6684_v26 = vrot.slane %v6675_v24, 4 }
 0x8e7   :  { %v5980_v30 = vsel %vm15337_vm2, %v13979_v2, %v5979_v41  ;;  %v14204_v40 = vpop.permute.xlu2 %6056  ;;  %v9203_v53 = vor.u32 %v9964_v7, %v9202_v35  ;;  %v9778_v44 = vld [vmem:[#allocation5 + $0x4a0] sm:$0xf]  ;;  %v10100_v15 = vld [vmem:[#allocation5 + $0x4a4] sm:$0xf]  ;;  %vm15350_vm2 = vcmask 973824  }
 0x8e8   :  { %6013 = vst [vmem:[#allocation5 + $0x3b0] sm:$0x11] %v5980_v30  ;;  %v6067_v28 = vrot.slane %v14204_v40, 4 }
 0x8ea   :  { %8239 = vmatpush.bf16.msrb.mxu3 %v9267_v51  ;;  %8265 = vmatpush.bf16.msra.mxu2 %v9271_v63  ;;  %v14207_v52 = vpop.permute.xlu1 %6242  ;;  %v6081_v2 = vsel %vm105_vm9, %v6066_v22, %v6067_v28 }
 0x8eb   :  { %v14214_v42 = vpop.permute.xlu0 %6228  ;;  %v6264_v3 = vrot.slane %v14207_v52, 4  ;;  %v6082_v0 = vsel %vm15325_vm3, %v14025_v54, %v6081_v2  ;;  %v10108_v37 = vld [vmem:[#allocation5 + $0x4dc] sm:$0xf0]  ;;  %v9780_v12 = vld [vmem:[#allocation5 + $0x4e0] sm:$0xf0]  ;;  %vm15351_vm3 = vcmask 146432  }
 0x8ec   :  { %v6257_v6 = vrot.slane %v14214_v42, 4  ;;  %6099 = vst [vmem:[#allocation5 + $0x3b0] sm:$0xee] %v6082_v0  ;;  %v9779_v41 = vor.u32 %v10108_v37, %v9778_v44  ;;  %v9783_v59 = vor.u32 %v10100_v15, %v9780_v12  ;;  %6400 = vrot.lane.b32.xlu2 %v6366_v48, %s15225_s0 }
 0x8ed   :  { %v6292_v22 = vsel %vm105_vm9, %v6263_v33, %v6264_v3 }
 0x8ee   :  { %8240 = vmatpush.bf16.msrb.mxu3 %v9203_v53  ;;  %8266 = vmatpush.bf16.msra.mxu2 %v9207_v13  ;;  %v6280_v54 = vsel %vm105_vm9, %v6256_v18, %v6257_v6  ;;  %v6293_v1 = vsel %vm15338_vm4, %v13974_v16, %v6292_v22  ;;  %v10164_v18 = vpack.i.bf16 %v6684_v26, %v6675_v24  ;;  %v6494_v53 = vld [vmem:[#allocation4 + $0x44] sm:$0x7]  ;;  %vm15352_vm4 = vmmov %vm15328_vm7 }
 0x8ef   :  { %8252 = vmatpush.bf16.msra.mxu1 %v9779_v41  ;;  %8278 = vmatpush.bf16.msrb.mxu0 %v9783_v59  ;;  %v6281_v51 = vsel %vm15339_vm6, %v14018_v36, %v6280_v54  ;;  %6328 = vst [vmem:[#allocation5 + $0x420] sm:$0x33] %v6293_v1  ;;  %v14237_v33 = vpop.permute.xlu2 %6869  ;;  %v6512_v44 = vrot.slane %v6494_v53, 7  ;;  %vm15353_vm6 = vmmov %vm15351_vm3 }
 0x8f0   :  { %6322 = vst [vmem:[#allocation5 + $0x3f0] sm:$0x88] %v6281_v51  ;;  %v6890_v63 = vrot.slane %v14237_v33, 4 }
 0x8f1   :  { %8241 = vmatmul.bf16.vlgmr.msrb.gmra.mxu3 %v13502_v17  ;;  %8267 = vmatmul.bf16.vlgmr.msra.gmra.mxu2 %v13502_v17 }
 0x8f2   :  { %v14242_v7 = vpop.permute.xlu1 %6523  ;;  %v6919_v16 = vsel %vm105_vm9, %v6889_v20, %v6890_v63 }
 0x8f3   :  { %v14249_v36 = vpop.permute.xlu0 %6378  ;;  %v6536_v30 = vrot.slane %v14242_v7, 4  ;;  %v6920_v61 = vsel %vm15328_vm7, %v14067_v32, %v6919_v16  ;;  %vm15354_vm7 = vcmask 236544  }
 0x8f4   :  { %v6409_v8 = vrot.slane %v14249_v36, 4  ;;  %6954 = vst [vmem:[#allocation5 + $0x528] sm:$0x11] %v6920_v61  ;;  %10165 = vrot.lane.b32.xlu2 %v10164_v18, %s10270_s24 }
 0x8f5   :  { %v6548_v35 = vsel %vm105_vm9, %v6535_v29, %v6536_v30 }
 0x8f6   :  { %v6430_v20 = vsel %vm105_vm9, %v6408_v47, %v6409_v8  ;;  %v6549_v32 = vsel %vm15340_vm5, %v14013_v25, %v6548_v35  ;;  %v15342_v47 = vrot.slane %v13987_v34, 4  ;;  %vm15355_vm5 = vmmov %vm15341_vm11 }
 0x8f7   :  { %v6431_v56 = vsel %vm15341_vm11, %v13941_v9, %v6430_v20  ;;  %6568 = vst [vmem:[#allocation5 + $0x460] sm:$0xee] %v6549_v32  ;;  %v14270_v13 = vpop.permute.xlu2 %6396  ;;  %v10077_v20 = vld [vmem:[#allocation5 + $0x3e4] sm:$0xf0]  ;;  %v10069_v32 = vld [vmem:[#allocation5 + $0x3ac] sm:$0xf]  ;;  %vm15356_vm11 = vmmov %vm15355_vm5 }
 0x8f8   :  { %6474 = vst [vmem:[#allocation5 + $0x420] sm:$0xcc] %v6431_v56  ;;  %v6418_v29 = vrot.slane %v14270_v13, 4  ;;  %v9660_v56 = vld [vmem:[#allocation5 + $0x3e8] sm:$0xf0] }
 0x8fa   :  { %v14273_v15 = vpop.permute.xlu1 %5775  ;;  %v6446_v24 = vsel %vm105_vm9, %v15342_v47, %v6418_v29 }
 0x8fb   :  { %v14280_v25 = vpop.permute.xlu0 %5662  ;;  %v5795_v9 = vrot.slane %v14273_v15, 4  ;;  %v6447_v2 = vsel %vm15343_vm12, %v13987_v34, %v6446_v24  ;;  %v7123_v48 = vld [vmem:[#allocation5 + $0x528] sm:$0x11]  ;;  %vm15357_vm12 = vcmask 220160  }
 0x8fc   :  { %v5673_v0 = vrot.slane %v14280_v25, 4  ;;  %6482 = vst [vmem:[#allocation5 + $0x460] sm:$0x11] %v6447_v2  ;;  %v7630_v12 = vunpack.c.l.b16 %v7123_v48  ;;  %v7631_v41 = vunpack.c.h.b16 %v7123_v48  ;;  %6529 = vrot.lane.b32.xlu2 %v6512_v44, %s15229_s26 }
 0x8fd   :  { %v5825_v37 = vsel %vm105_vm9, %v5794_v55, %v5795_v9 }
 0x8fe   :  { %v5687_v34 = vsel %vm105_vm9, %v5672_v23, %v5673_v0  ;;  %v5826_v59 = vsel %vm15344_vm13, %v14111_v57, %v5825_v37  ;;  %v7806_v54 = vpack.c.b16 %v7630_v12, %v7630_v12  ;;  %v7807_v1 = vpack.c.b16 %v7631_v41, %v7631_v41  ;;  %v9658_v57 = vld [vmem:[#allocation5 + $0x3a8] sm:$0xf] }
 0x8ff   :  { %v5688_v22 = vsel %vm15345_vm15, %v14091_v5, %v5687_v34  ;;  %5859 = vst [vmem:[#allocation5 + $0x370] sm:$0x33] %v5826_v59  ;;  %v14301_v55 = vpop.permute.xlu2 %5757  ;;  %v9714_v23 = vld [vmem:[#allocation5 + $0x420] sm:$0xf]  ;;  %v10084_v16 = vld [vmem:[#allocation5 + $0x424] sm:$0xf]  ;;  %v9659_v12 = vor.u32 %v10077_v20, %v9658_v57  ;;  %v9663_v41 = vor.u32 %v10069_v32, %v9660_v56  ;;  %vm15359_vm15 = vmmov %vm15347_vm14 }
 0x900   :  { %5705 = vst [vmem:[#allocation5 + $0x330] sm:$0x77] %v5688_v22  ;;  %v5786_v26 = vrot.slane %v14301_v55, 4  ;;  %v8008_v51 = vsel %vm7976_vm8, %v7806_v54, 0  ;;  %v8011_v18 = vsel %vm7976_vm8, %v7807_v1, 0  ;;  %vm15358_vm13 = vcmask 310272  }
 0x901   :  { %8303 = vmatpush.bf16.msra.mxu3 %v8008_v51  ;;  %8329 = vmatpush.bf16.msrb.mxu2 %v8011_v18  ;;  %v10061_v22 = vld [vmem:[#allocation5 + $0x364] sm:$0xf0]  ;;  %v9596_v54 = vld [vmem:[#allocation5 + $0x368] sm:$0xf0]  ;;  %v15349_v18 = vrot.slane %v13062_v4, 4 }
 0x902   :  { %v5809_v5 = vsel %vm105_vm9, %v5785_v43, %v5786_v26  ;;  %v14313_v35 = vpop.permute.xlu1 %6602  ;;  %v9594_v1 = vld [vmem:[#allocation5 + $0x328] sm:$0xf]  ;;  %v10053_v51 = vld [vmem:[#allocation5 + $0x32c] sm:$0xf] }
 0x903   :  { %v14311_v61 = vpop.permute.xlu0 %5911  ;;  %v5810_v53 = vsel %vm15346_vm10, %v14060_v19, %v5809_v5  ;;  %v10092_v44 = vld [vmem:[#allocation5 + $0x45c] sm:$0xf0]  ;;  %v9716_v47 = vld [vmem:[#allocation5 + $0x460] sm:$0xf0]  ;;  %v6614_v2 = vrot.slane %v14313_v35, 4  ;;  %vm15360_vm10 = vmmov %vm15347_vm14 }
 0x904   :  { %v5940_v24 = vrot.slane %v14311_v61, 4  ;;  %5851 = vst [vmem:[#allocation5 + $0x330] sm:$0x88] %v5810_v53  ;;  %v9715_v48 = vor.u32 %v10092_v44, %v9714_v23  ;;  %v9719_v37 = vor.u32 %v10084_v16, %v9716_v47  ;;  %v10045_v5 = vld [vmem:[#allocation5 + $0x2e4] sm:$0xf0] }
 0x905   :  { %v6627_v19 = vsel %vm105_vm9, %v6613_v45, %v6614_v2  ;;  %v9532_v20 = vld [vmem:[#allocation5 + $0x2e8] sm:$0xf0]  ;;  %v9530_v44 = vld [vmem:[#allocation5 + $0x2a8] sm:$0xf] }
 0x906   :  { %v5963_v43 = vsel %vm105_vm9, %v5939_v39, %v5940_v24  ;;  %8253 = vmatpush.bf16.msra.mxu1 %v9715_v48  ;;  %8279 = vmatpush.bf16.msrb.mxu0 %v9719_v37  ;;  %v6628_v59 = vsel %vm15348_vm1, %v14098_v14, %v6627_v19  ;;  %v9599_v14 = vor.u32 %v10053_v51, %v9596_v54  ;;  %v10037_v47 = vld [vmem:[#allocation5 + $0x2ac] sm:$0xf]  ;;  %vm15362_vm1 = vmmov %vm15352_vm4 }
 0x907   :  { %v5964_v34 = vsel %vm15347_vm14, %v14135_v60, %v5963_v43  ;;  %v14333_v39 = vpop.permute.xlu2 %5585  ;;  %6646 = vst [vmem:[#allocation5 + $0x4a8] sm:$0x77] %v6628_v59  ;;  %v9595_v60 = vor.u32 %v10061_v22, %v9594_v1  ;;  %v9531_v37 = vor.u32 %v10045_v5, %v9530_v44  ;;  %v9535_v43 = vor.u32 %v10037_v47, %v9532_v20  ;;  %v10029_v59 = vld [vmem:[#allocation5 + $0x264] sm:$0xf0] }
 0x908   :  { %6005 = vst [vmem:[#allocation5 + $0x370] sm:$0xcc] %v5964_v34  ;;  %v5596_v45 = vrot.slane %v14333_v39, 4  ;;  %v10021_v34 = vld [vmem:[#allocation5 + $0x22c] sm:$0xf]  ;;  %vm15361_vm14 = vcmask 302080  }
 0x909   :  { %9816 = vmatmul.msk.bf16.vlgmr.msra.gmra.mxu1 %vm7972_vm0, %v13504_v49  ;;  %9817 = vmatmul.msk.bf16.vlgmr.msrb.gmra.mxu0 %vm7972_vm0, %v13504_v49  ;;  %v9402_v20 = vld [vmem:[#allocation5 + $0x1a8] sm:$0xf] }
 0x90a   :  { %8285 = vmatpush.bf16.msrb.mxu1 %v9659_v12  ;;  %8311 = vmatpush.bf16.msra.mxu0 %v9663_v41  ;;  %v5610_v23 = vsel %vm105_vm9, %v15349_v18, %v5596_v45  ;;  %v14347_v57 = vpop.permute.xlu1 %6851  ;;  %v9466_v41 = vld [vmem:[#allocation5 + $0x228] sm:$0xf] }
 0x90b   :  { %v14345_v16 = vpop.permute.xlu0 %6697  ;;  %v5611_v32 = vsel %vm15350_vm2, %v13062_v4, %v5610_v23  ;;  %v6881_v53 = vrot.slane %v14347_v57, 4  ;;  %v9467_v54 = vor.u32 %v10029_v59, %v9466_v41  ;;  %v9989_v41 = vld [vmem:[#allocation5 + $0x12c] sm:$0xf]  ;;  %vm15363_vm2 = vmmov %vm15354_vm7 }
 0x90c   :  { %v6727_v56 = vrot.slane %v14345_v16, 4  ;;  %5628 = vst [vmem:[#allocation5 + $0x2f0] sm:$0xee] %v5611_v32  ;;  %v10005_v32 = vld [vmem:[#allocation5 + $0x1ac] sm:$0xf] }
 0x90d   :  { %v6903_v4 = vsel %vm105_vm9, %v6880_v10, %v6881_v53  ;;  %v9468_v10 = vld [vmem:[#allocation5 + $0x268] sm:$0xf0] }
 0x90e   :  { %8286 = vmatpush.bf16.msrb.mxu1 %v9595_v60  ;;  %8312 = vmatpush.bf16.msra.mxu0 %v9599_v14  ;;  %v6749_v48 = vsel %vm105_vm9, %v6726_v62, %v6727_v56  ;;  %v6904_v12 = vsel %vm15352_vm4, %v14140_v21, %v6903_v4  ;;  %v9471_v1 = vor.u32 %v10021_v34, %v9468_v10  ;;  %v10013_v60 = vld [vmem:[#allocation5 + $0x1e4] sm:$0xf0]  ;;  %v9404_v14 = vld [vmem:[#allocation5 + $0x1e8] sm:$0xf0]  ;;  %vm15365_vm4 = vcmask 973824  }
 0x90f   :  { %v6750_v19 = vsel %vm15351_vm3, %v14147_v50, %v6749_v48  ;;  %v14367_v62 = vpop.permute.xlu2 %6715  ;;  %6946 = vst [vmem:[#allocation5 + $0x4e8] sm:$0xcc] %v6904_v12  ;;  %v9403_v44 = vor.u32 %v10013_v60, %v9402_v20  ;;  %v9407_v47 = vor.u32 %v10005_v32, %v9404_v14  ;;  %v14399_v12 = vpop.f32.mrf.mxu3  ;;  %v9973_v60 = vld [vmem:[#allocation5 + $0xac] sm:$0xf]  ;;  %vm15364_vm3 = vcmask 965632  }
 0x910   :  { %6792 = vst [vmem:[#allocation5 + $0x4a8] sm:$0x88] %v6750_v19  ;;  %v6736_v22 = vrot.slane %v14367_v62, 4  ;;  %v9338_v19 = vld [vmem:[#allocation5 + $0x128] sm:$0xf] }
 0x912   :  { %8287 = vmatpush.bf16.msrb.mxu1 %v9531_v37  ;;  %8313 = vmatpush.bf16.msra.mxu0 %v9535_v43  ;;  %v6765_v21 = vsel %vm105_vm9, %v6735_v27, %v6736_v22  ;;  %v14377_v51 = vpop.permute.xlu1 %6398  ;;  %v9997_v37 = vld [vmem:[#allocation5 + $0x164] sm:$0xf0]  ;;  %v9340_v43 = vld [vmem:[#allocation5 + $0x168] sm:$0xf0] }
 0x913   :  { %v14375_v50 = vpop.permute.xlu0 %6244  ;;  %v6766_v18 = vsel %vm15353_vm6, %v14172_v11, %v6765_v21  ;;  %v6419_v5 = vrot.slane %v14377_v51, 4  ;;  %v9339_v34 = vor.u32 %v9997_v37, %v9338_v19  ;;  %v9343_v59 = vor.u32 %v9989_v41, %v9340_v43  ;;  %v9274_v21 = vld [vmem:[#allocation5 + $0xa8] sm:$0xf] }
 0x914   :  { %v6265_v23 = vrot.slane %v14375_v50, 4  ;;  %6800 = vst [vmem:[#allocation5 + $0x4e8] sm:$0x33] %v6766_v18  ;;  %v9965_v41 = vld [vmem:[#allocation5 + $0x64] sm:$0xf0]  ;;  %vm15366_vm6 = vcmask 957440  }
 0x915   :  { %v6448_v11 = vsel %vm105_vm9, %v6418_v29, %v6419_v5 }
 0x916   :  { %8288 = vmatpush.bf16.msrb.mxu1 %v9467_v54  ;;  %8314 = vmatpush.bf16.msra.mxu0 %v9471_v1  ;;  %v6294_v27 = vsel %vm105_vm9, %v6264_v3, %v6265_v23  ;;  %v6449_v4 = vsel %vm15355_vm5, %v14270_v13, %v6448_v11  ;;  %vm15368_vm5 = vcmask 154624  }
 0x917   :  { %v6295_v48 = vsel %vm15354_vm7, %v14207_v52, %v6294_v27  ;;  %v14397_v3 = vpop.permute.xlu2 %6380  ;;  %6483 = vst [vmem:[#allocation5 + $0x468] sm:$0x11] %v6449_v4  ;;  %v9786_v52 = vld [vmem:[#allocation5 + $0x4a8] sm:$0xf]  ;;  %v10101_v10 = vld [vmem:[#allocation5 + $0x4ac] sm:$0xf]  ;;  %vm15367_vm7 = vmmov %vm15366_vm6 }
 0x918   :  { %6329 = vst [vmem:[#allocation5 + $0x428] sm:$0x33] %v6295_v48  ;;  %v6410_v29 = vrot.slane %v14397_v3, 4 }
 0x91a   :  { %8289 = vmatpush.bf16.msrb.mxu1 %v9403_v44  ;;  %8315 = vmatpush.bf16.msra.mxu0 %v9407_v47  ;;  %v6432_v13 = vsel %vm105_vm9, %v6409_v8, %v6410_v29  ;;  %v6059_v1 = vpop.permute.xlu1 %6058  ;;  %v9981_v47 = vld [vmem:[#allocation5 + $0xe4] sm:$0xf0]  ;;  %v9276_v8 = vld [vmem:[#allocation5 + $0xe8] sm:$0xf0] }
 0x91b   :  { %v14407_v54 = vpop.permute.xlu0 %6525  ;;  %v6433_v14 = vsel %vm15356_vm11, %v14249_v36, %v6432_v13  ;;  %v10109_v18 = vld [vmem:[#allocation5 + $0x4e4] sm:$0xf0]  ;;  %v9788_v20 = vld [vmem:[#allocation5 + $0x4e8] sm:$0xf0]  ;;  %v6068_v27 = vrot.slane %v6059_v1, 4  ;;  %v9275_v4 = vor.u32 %v9981_v47, %v9274_v21  ;;  %v9279_v37 = vor.u32 %v9973_v60, %v9276_v8 }
 0x91c   :  { %v6537_v32 = vrot.slane %v14407_v54, 4  ;;  %6475 = vst [vmem:[#allocation5 + $0x428] sm:$0xcc] %v6433_v14  ;;  %v9787_v11 = vor.u32 %v10109_v18, %v9786_v52  ;;  %v9791_v44 = vor.u32 %v10101_v10, %v9788_v20  ;;  %v9210_v10 = vld [vmem:[#allocation5 + $0x28] sm:$0xf]  ;;  %vm15369_vm11 = vcmask 146432  }
 0x91d   :  { %v6083_v36 = vsel %vm105_vm9, %v6067_v28, %v6068_v27  ;;  %v9957_v13 = vld [vmem:[#allocation5 + $0x2c] sm:$0xf]  ;;  %v9211_v1 = vor.u32 %v9965_v41, %v9210_v10  ;;  %v9666_v41 = vld [vmem:[#allocation5 + $0x3b0] sm:$0xf]  ;;  %v9604_v10 = vld [vmem:[#allocation5 + $0x370] sm:$0xf0] }
 0x91e   :  { %8290 = vmatpush.bf16.msrb.mxu1 %v9339_v34  ;;  %8316 = vmatpush.bf16.msra.mxu0 %v9343_v59  ;;  %v6550_v48 = vsel %vm105_vm9, %v6536_v30, %v6537_v32  ;;  %v6084_v19 = vsel %vm15358_vm13, %v14204_v40, %v6083_v36  ;;  %v9212_v34 = vld [vmem:[#allocation5 + $0x68] sm:$0xf0]  ;;  %v8075_v59 = vpop.f32.mrf.mxu3  ;;  %vm15371_vm13 = vmmov %vm15362_vm1 }
 0x91f   :  { %8304 = vmatpush.bf16.msra.mxu3 %v9787_v11  ;;  %8330 = vmatpush.bf16.msrb.mxu2 %v9791_v44  ;;  %v6551_v43 = vsel %vm15357_vm12, %v14242_v7, %v6550_v48  ;;  %v10151_v30 = vpop.permute.xlu2 %10150  ;;  %6100 = vst [vmem:[#allocation5 + $0x3b8] sm:$0xee] %v6084_v19  ;;  %v9215_v21 = vor.u32 %v9957_v13, %v9212_v34  ;;  %v10078_v44 = vld [vmem:[#allocation5 + $0x3ec] sm:$0xf0]  ;;  %v10070_v34 = vld [vmem:[#allocation5 + $0x3b4] sm:$0xf]  ;;  %vm15370_vm12 = vmmov %vm15369_vm11 }
 0x920   :  { %6569 = vst [vmem:[#allocation5 + $0x468] sm:$0xee] %v6551_v43  ;;  %v10153_v52 = vunpack.i.h.bf16 %v10151_v30  ;;  %v10152_v28 = vunpack.i.l.bf16 %v10151_v30  ;;  %v14451_v30 = vpop.f32.mrf.mxu1 }
 0x922   :  { %8291 = vmatpush.bf16.msrb.mxu1 %v9275_v4  ;;  %8317 = vmatpush.bf16.msra.mxu0 %v9279_v37  ;;  %v5941_v60 = vrot.slane %v10153_v52, 4  ;;  %v5950_v14 = vrot.slane %v10152_v28, 4  ;;  %v14424_v18 = vpop.permute.xlu1 %6871 }
 0x923   :  { %v6136_v7 = vpop.permute.xlu0 %6135  ;;  %v6891_v20 = vrot.slane %v14424_v18, 4  ;;  %v9722_v36 = vld [vmem:[#allocation5 + $0x428] sm:$0xf]  ;;  %v10085_v4 = vld [vmem:[#allocation5 + $0x42c] sm:$0xf] }
 0x924   :  { %v6145_v40 = vrot.slane %v6136_v7, 4  ;;  %v5965_v27 = vsel %vm105_vm9, %v5940_v24, %v5941_v60  ;;  %v5981_v11 = vsel %vm105_vm9, %v5949_v58, %v5950_v14  ;;  %v9668_v58 = vld [vmem:[#allocation5 + $0x3f0] sm:$0xf0] }
 0x925   :  { %v5966_v47 = vsel %vm15359_vm15, %v14311_v61, %v5965_v27  ;;  %v5982_v8 = vsel %vm15360_vm10, %v14183_v38, %v5981_v11  ;;  %v6921_v24 = vsel %vm105_vm9, %v6890_v63, %v6891_v20  ;;  %v9671_v52 = vor.u32 %v10070_v34, %v9668_v58  ;;  %v10054_v27 = vld [vmem:[#allocation5 + $0x334] sm:$0xf]  ;;  %vm15372_vm15 = vmmov %vm15363_vm2 }
 0x926   :  { %8292 = vmatpush.bf16.msrb.mxu1 %v9211_v1  ;;  %8318 = vmatpush.bf16.msra.mxu0 %v9215_v21  ;;  %v6160_v48 = vsel %vm105_vm9, %v6144_v31, %v6145_v40  ;;  %6006 = vst [vmem:[#allocation5 + $0x378] sm:$0xcc] %v5966_v47  ;;  %v6922_v38 = vsel %vm15362_vm1, %v14237_v33, %v6921_v24  ;;  %v14453_v28 = vpop.f32.mrf.mxu3  ;;  %v10062_v33 = vld [vmem:[#allocation5 + $0x36c] sm:$0xf0]  ;;  %v10022_v34 = vld [vmem:[#allocation5 + $0x234] sm:$0xf]  ;;  %vm15373_vm10 = vmmov %vm15362_vm1 }
 0x927   :  { %v6161_v61 = vsel %vm15361_vm14, %v14176_v46, %v6160_v48  ;;  %v10093_v37 = vld [vmem:[#allocation5 + $0x464] sm:$0xf0]  ;;  %v9724_v43 = vld [vmem:[#allocation5 + $0x468] sm:$0xf0]  ;;  %6014 = vst [vmem:[#allocation5 + $0x3b8] sm:$0x11] %v5982_v8  ;;  %v6231_v31 = vpop.permute.xlu2 %6230  ;;  %v9667_v46 = vor.u32 %v10078_v44, %v9666_v41  ;;  %v8060_v44 = vpop.f32.mrf.mxu2  ;;  %vm15374_vm14 = vmmov %vm15362_vm1 }
 0x928   :  { %v9723_v19 = vor.u32 %v10093_v37, %v9722_v36  ;;  %v9727_v63 = vor.u32 %v10085_v4, %v9724_v43  ;;  %6177 = vst [vmem:[#allocation5 + $0x3f8] sm:$0x77] %v6161_v61  ;;  %v6258_v59 = vrot.slane %v6231_v31, 4  ;;  %v9602_v40 = vld [vmem:[#allocation5 + $0x330] sm:$0xf]  ;;  %v14471_v24 = vadd.f32 %v14399_v12, %v8060_v44 }
 0x929   :  { %8293 = vmatmul.bf16.vlgmr.msrb.gmra.mxu1 %v13502_v17  ;;  %8319 = vmatmul.bf16.vlgmr.msra.gmra.mxu0 %v13502_v17  ;;  %6955 = vst [vmem:[#allocation5 + $0x530] sm:$0x11] %v6922_v38  ;;  %v9603_v11 = vor.u32 %v10062_v33, %v9602_v40  ;;  %v10046_v8 = vld [vmem:[#allocation5 + $0x2ec] sm:$0xf0]  ;;  %v9540_v48 = vld [vmem:[#allocation5 + $0x2f0] sm:$0xf0]  ;;  %v8049_v38 = vpop.f32.mrf.mxu1 }
 0x92a   :  { %8305 = vmatpush.bf16.msra.mxu3 %v9723_v19  ;;  %8331 = vmatpush.bf16.msrb.mxu2 %v9727_v63  ;;  %v6282_v13 = vsel %vm105_vm9, %v6257_v6, %v6258_v59  ;;  %v5588_v21 = vpop.permute.xlu1 %5587  ;;  %v9607_v6 = vor.u32 %v10054_v27, %v9604_v10  ;;  %v10038_v61 = vld [vmem:[#allocation5 + $0x2b4] sm:$0xf]  ;;  %v9998_v38 = vld [vmem:[#allocation5 + $0x16c] sm:$0xf0]  ;;  %vm15375_vm1 = vcmask 228352  }
 0x92b   :  { %v5665_v1 = vpop.permute.xlu0 %5664  ;;  %v6283_v60 = vsel %vm15363_vm2, %v14214_v42, %v6282_v13  ;;  %v5597_v7 = vrot.slane %v5588_v21, 4  ;;  %v9543_v31 = vor.u32 %v10038_v61, %v9540_v48  ;;  %v10030_v21 = vld [vmem:[#allocation5 + $0x26c] sm:$0xf0]  ;;  %vm15376_vm2 = vcmask 220160  }
 0x92c   :  { %v5674_v14 = vrot.slane %v5665_v1, 4  ;;  %6323 = vst [vmem:[#allocation5 + $0x3f8] sm:$0x88] %v6283_v60  ;;  %v9476_v60 = vld [vmem:[#allocation5 + $0x270] sm:$0xf0] }
 0x92d   :  { %9818 = vmatmul.msk.bf16.vlgmr.msra.gmra.mxu3 %vm7972_vm0, %v13504_v49  ;;  %9819 = vmatmul.msk.bf16.vlgmr.msrb.gmra.mxu2 %vm7972_vm0, %v13504_v49  ;;  %v5612_v42 = vsel %vm105_vm9, %v5596_v45, %v5597_v7  ;;  %v9479_v27 = vor.u32 %v10022_v34, %v9476_v60 }
 0x92e   :  { %8337 = vmatpush.bf16.msrb.mxu3 %v9667_v46  ;;  %8363 = vmatpush.bf16.msra.mxu2 %v9671_v52  ;;  %v5689_v47 = vsel %vm105_vm9, %v5673_v0, %v5674_v14  ;;  %v5613_v4 = vsel %vm15365_vm4, %v14333_v39, %v5612_v42  ;;  %v9538_v0 = vld [vmem:[#allocation5 + $0x2b0] sm:$0xf]  ;;  %v8101_v19 = vpop.f32.mrf.mxu3  ;;  %v9412_v42 = vld [vmem:[#allocation5 + $0x1f0] sm:$0xf0]  ;;  %vm15378_vm4 = vmmov %vm15368_vm5 }
 0x92f   :  { %v5690_v36 = vsel %vm15364_vm3, %v14280_v25, %v5689_v47  ;;  %v10156_v58 = vpop.permute.xlu2 %10155  ;;  %5629 = vst [vmem:[#allocation5 + $0x2f8] sm:$0xee] %v5613_v4  ;;  %v9539_v43 = vor.u32 %v10046_v8, %v9538_v0  ;;  %v9474_v25 = vld [vmem:[#allocation5 + $0x230] sm:$0xf]  ;;  %vm15377_vm3 = vmmov %vm15375_vm1 }
 0x930   :  { %5706 = vst [vmem:[#allocation5 + $0x338] sm:$0x77] %v5690_v36  ;;  %v10158_v45 = vunpack.i.h.bf16 %v10156_v58  ;;  %v10157_v37 = vunpack.i.l.bf16 %v10156_v58  ;;  %v7124_v12 = vld [vmem:[#allocation5 + $0x530] sm:$0x11]  ;;  %v9475_v40 = vor.u32 %v10030_v21, %v9474_v25 }
 0x931   :  { %v7632_v63 = vunpack.c.l.b16 %v7124_v12  ;;  %v7633_v41 = vunpack.c.h.b16 %v7124_v12  ;;  %v10006_v36 = vld [vmem:[#allocation5 + $0x1b4] sm:$0xf]  ;;  %v8086_v4 = vpop.f32.mrf.mxu1 }
 0x932   :  { %8338 = vmatpush.bf16.msrb.mxu3 %v9603_v11  ;;  %8364 = vmatpush.bf16.msra.mxu2 %v9607_v6  ;;  %v5796_v59 = vrot.slane %v10158_v45, 4  ;;  %v5787_v39 = vrot.slane %v10157_v37, 4  ;;  %v14479_v52 = vpop.permute.xlu1 %6717  ;;  %v8062_v11 = vpop.f32.mrf.mxu2  ;;  %v9415_v0 = vor.u32 %v10006_v36, %v9412_v42  ;;  %v9348_v45 = vld [vmem:[#allocation5 + $0x170] sm:$0xf0] }
 0x933   :  { %v14477_v46 = vpop.permute.xlu0 %6604  ;;  %v6737_v10 = vrot.slane %v14479_v52, 4  ;;  %v7808_v13 = vpack.c.b16 %v7632_v63, %v7632_v63  ;;  %v7809_v1 = vpack.c.b16 %v7633_v41, %v7633_v41  ;;  %v9346_v63 = vld [vmem:[#allocation5 + $0x130] sm:$0xf]  ;;  %v9990_v41 = vld [vmem:[#allocation5 + $0x134] sm:$0xf] }
 0x934   :  { %v6615_v33 = vrot.slane %v14477_v46, 4  ;;  %v5827_v14 = vsel %vm105_vm9, %v5795_v9, %v5796_v59  ;;  %v5811_v7 = vsel %vm105_vm9, %v5786_v26, %v5787_v39  ;;  %v10014_v26 = vld [vmem:[#allocation5 + $0x1ec] sm:$0xf0]  ;;  %v9347_v25 = vor.u32 %v9998_v38, %v9346_v63  ;;  %v8034_v59 = vpop.f32.mrf.mxu0 }
 0x935   :  { %v5828_v6 = vsel %vm15366_vm6, %v14273_v15, %v5827_v14  ;;  %v5812_v44 = vsel %vm15367_vm7, %v14301_v55, %v5811_v7  ;;  %v6767_v9 = vsel %vm105_vm9, %v6736_v22, %v6737_v10  ;;  %v8014_v8 = vsel %vm7976_vm8, %v7808_v13, 0  ;;  %v9410_v22 = vld [vmem:[#allocation5 + $0x1b0] sm:$0xf]  ;;  %vm15379_vm6 = vmmov %vm15372_vm15 }
 0x936   :  { %8339 = vmatpush.bf16.msrb.mxu3 %v9539_v43  ;;  %8365 = vmatpush.bf16.msra.mxu2 %v9543_v31  ;;  %v6629_v47 = vsel %vm105_vm9, %v6614_v2, %v6615_v33  ;;  %5860 = vst [vmem:[#allocation5 + $0x378] sm:$0x33] %v5828_v6  ;;  %v6768_v55 = vsel %vm15369_vm11, %v14367_v62, %v6767_v9  ;;  %v8017_v48 = vsel %vm7976_vm8, %v7809_v1, 0  ;;  %v14515_v61 = vpop.f32.mrf.mxu3  ;;  %v9282_v13 = vld [vmem:[#allocation5 + $0xb0] sm:$0xf]  ;;  %vm15380_vm7 = vmmov %vm15369_vm11 }
 0x937   :  { %v6630_v15 = vsel %vm15368_vm5, %v14313_v35, %v6629_v47  ;;  %5852 = vst [vmem:[#allocation5 + $0x338] sm:$0x88] %v5812_v44  ;;  %v14509_v2 = vpop.permute.xlu2 %6699  ;;  %8355 = vmatpush.bf16.msra.mxu1 %v8014_v8  ;;  %8381 = vmatpush.bf16.msrb.mxu0 %v8017_v48  ;;  %v9411_v58 = vor.u32 %v10014_v26, %v9410_v22  ;;  %v9974_v1 = vld [vmem:[#allocation5 + $0xb4] sm:$0xf]  ;;  %v9982_v7 = vld [vmem:[#allocation5 + $0xec] sm:$0xf0]  ;;  %vm15382_vm5 = vmmov %vm15375_vm1 }
 0x938   :  { %6647 = vst [vmem:[#allocation5 + $0x4b0] sm:$0x77] %v6630_v15  ;;  %v6728_v35 = vrot.slane %v14509_v2, 4  ;;  %v14513_v62 = vadd.f32 %v14453_v28, %v8086_v4  ;;  %v9351_v34 = vor.u32 %v9990_v41, %v9348_v45  ;;  %v14538_v21 = vadd.f32 %v14451_v30, %v8034_v59  ;;  %v9966_v47 = vld [vmem:[#allocation5 + $0x6c] sm:$0xf0]  ;;  %vm15383_vm11 = vmmov %vm15375_vm1 }
 0x939   :  { %6801 = vst [vmem:[#allocation5 + $0x4f0] sm:$0x33] %v6768_v55  ;;  %v9283_v6 = vor.u32 %v9982_v7, %v9282_v13  ;;  %v9220_v9 = vld [vmem:[#allocation5 + $0x70] sm:$0xf0]  ;;  %v9218_v8 = vld [vmem:[#allocation5 + $0x30] sm:$0xf] }
 0x93a   :  { %8340 = vmatpush.bf16.msrb.mxu3 %v9475_v40  ;;  %8366 = vmatpush.bf16.msra.mxu2 %v9479_v27  ;;  %v6751_v37 = vsel %vm105_vm9, %v6727_v56, %v6728_v35  ;;  %v14522_v31 = vpop.permute.xlu1 %6246  ;;  %v14527_v39 = vpop.f32.mrf.mxu2  ;;  %v9284_v40 = vld [vmem:[#allocation5 + $0xf0] sm:$0xf0]  ;;  %v9219_v4 = vor.u32 %v9966_v47, %v9218_v8  ;;  %v10079_v47 = vld [vmem:[#allocation5 + $0x3f4] sm:$0xf0] }
 0x93b   :  { %v6854_v43 = vpop.permute.xlu0 %6853  ;;  %v6752_v28 = vsel %vm15370_vm12, %v14345_v16, %v6751_v37  ;;  %v6266_v19 = vrot.slane %v14522_v31, 4  ;;  %v8088_v27 = vpop.f32.mrf.mxu1  ;;  %v9287_v44 = vor.u32 %v9974_v1, %v9284_v40  ;;  %v9958_v48 = vld [vmem:[#allocation5 + $0x34] sm:$0xf]  ;;  %vm15384_vm12 = vmmov %vm15376_vm2 }
 0x93c   :  { %v6882_v12 = vrot.slane %v6854_v43, 4  ;;  %6793 = vst [vmem:[#allocation5 + $0x4b0] sm:$0x88] %v6752_v28 }
 0x93d   :  { %v6296_v16 = vsel %vm105_vm9, %v6265_v23, %v6266_v19 }
 0x93e   :  { %8341 = vmatpush.bf16.msrb.mxu3 %v9411_v58  ;;  %8367 = vmatpush.bf16.msra.mxu2 %v9415_v0  ;;  %v6905_v56 = vsel %vm105_vm9, %v6881_v53, %v6882_v12  ;;  %v6297_v14 = vsel %vm15372_vm15, %v14375_v50, %v6296_v16  ;;  %v8140_v30 = vpop.f32.mrf.mxu3  ;;  %v9223_v58 = vor.u32 %v9958_v48, %v9220_v9  ;;  %v8036_v0 = vpop.f32.mrf.mxu0 }
 0x93f   :  { %v6906_v60 = vsel %vm15371_vm13, %v14347_v57, %v6905_v56  ;;  %v10161_v53 = vpop.permute.xlu2 %10160  ;;  %6330 = vst [vmem:[#allocation5 + $0x430] sm:$0x33] %v6297_v14  ;;  %v9676_v0 = vld [vmem:[#allocation5 + $0x3f8] sm:$0xf0] }
 0x940   :  { %6947 = vst [vmem:[#allocation5 + $0x4f0] sm:$0xcc] %v6906_v60  ;;  %v10163_v23 = vunpack.i.h.bf16 %v10161_v53  ;;  %v10162_v11 = vunpack.i.l.bf16 %v10161_v53 }
 0x942   :  { %8342 = vmatpush.bf16.msrb.mxu3 %v9347_v25  ;;  %8368 = vmatpush.bf16.msra.mxu2 %v9351_v34  ;;  %v6883_v26 = vrot.slane %v10163_v23, 4  ;;  %v6892_v57 = vrot.slane %v10162_v11, 4  ;;  %v14546_v50 = vpop.permute.xlu1 %6527  ;;  %v8127_v38 = vpop.f32.mrf.mxu2 }
 0x943   :  { %v14544_v42 = vpop.permute.xlu0 %6382  ;;  %v6538_v55 = vrot.slane %v14546_v50, 4  ;;  %v10102_v63 = vld [vmem:[#allocation5 + $0x4b4] sm:$0xf]  ;;  %v8151_v56 = vpop.f32.mrf.mxu1 }
 0x944   :  { %v6411_v15 = vrot.slane %v14544_v42, 4  ;;  %v6907_v22 = vsel %vm105_vm9, %v6882_v12, %v6883_v26  ;;  %v6923_v36 = vsel %vm105_vm9, %v6891_v20, %v6892_v57  ;;  %v9794_v12 = vld [vmem:[#allocation5 + $0x4b0] sm:$0xf]  ;;  %v14575_v16 = vadd.f32 %v8151_v56, %v14515_v61 }
 0x945   :  { %v6908_v45 = vsel %vm15373_vm10, %v6854_v43, %v6907_v22  ;;  %v6924_v37 = vsel %vm15374_vm14, %v14424_v18, %v6923_v36  ;;  %v6552_v20 = vsel %vm105_vm9, %v6537_v32, %v6538_v55  ;;  %v9674_v22 = vld [vmem:[#allocation5 + $0x3b8] sm:$0xf] }
 0x946   :  { %8343 = vmatpush.bf16.msrb.mxu3 %v9283_v6  ;;  %8369 = vmatpush.bf16.msra.mxu2 %v9287_v44  ;;  %v6434_v28 = vsel %vm105_vm9, %v6410_v29, %v6411_v15  ;;  %6948 = vst [vmem:[#allocation5 + $0x4f8] sm:$0xcc] %v6908_v45  ;;  %v6553_v18 = vsel %vm15376_vm2, %v14407_v54, %v6552_v20  ;;  %v8112_v53 = vpop.f32.mrf.mxu0 }
 0x947   :  { %v6435_v43 = vsel %vm15375_vm1, %v14397_v3, %v6434_v28  ;;  %v10110_v41 = vld [vmem:[#allocation5 + $0x4ec] sm:$0xf0]  ;;  %v9796_v25 = vld [vmem:[#allocation5 + $0x4f0] sm:$0xf0]  ;;  %6956 = vst [vmem:[#allocation5 + $0x538] sm:$0x11] %v6924_v37  ;;  %v14571_v29 = vpop.permute.xlu2 %6400  ;;  %v8177_v3 = vpop.f32.mrf.mxu3  ;;  %v14593_v27 = vadd.f32 %v14527_v39, %v8112_v53 }
 0x948   :  { %v9795_v34 = vor.u32 %v10110_v41, %v9794_v12  ;;  %v9799_v59 = vor.u32 %v10102_v63, %v9796_v25  ;;  %6476 = vst [vmem:[#allocation5 + $0x430] sm:$0xcc] %v6435_v43  ;;  %v6420_v32 = vrot.slane %v14571_v29, 4 }
 0x949   :  { %6570 = vst [vmem:[#allocation5 + $0x470] sm:$0xee] %v6553_v18 }
 0x94a   :  { %8344 = vmatpush.bf16.msrb.mxu3 %v9219_v4  ;;  %8370 = vmatpush.bf16.msra.mxu2 %v9223_v58  ;;  %v6450_v54 = vsel %vm105_vm9, %v6419_v5, %v6420_v32  ;;  %v6249_v1 = vpop.permute.xlu1 %6248  ;;  %v8164_v7 = vpop.f32.mrf.mxu2 }
 0x94b   :  { %8356 = vmatpush.bf16.msra.mxu1 %v9795_v34  ;;  %8382 = vmatpush.bf16.msrb.mxu0 %v9799_v59  ;;  %v6607_v13 = vpop.permute.xlu0 %6606  ;;  %v6451_v61 = vsel %vm15377_vm3, %v14377_v51, %v6450_v54  ;;  %v6267_v14 = vrot.slane %v6249_v1, 4  ;;  %v14595_v23 = vadd.f32 %v8177_v3, %v8164_v7  ;;  %v8153_v9 = vpop.f32.mrf.mxu1  ;;  %v10071_v54 = vld [vmem:[#allocation5 + $0x3bc] sm:$0xf] }
 0x94c   :  { %v6616_v60 = vrot.slane %v6607_v13, 4  ;;  %6484 = vst [vmem:[#allocation5 + $0x470] sm:$0x11] %v6451_v61  ;;  %v10063_v13 = vld [vmem:[#allocation5 + $0x374] sm:$0xf0]  ;;  %v9679_v1 = vor.u32 %v10071_v54, %v9676_v0 }
 0x94d   :  { %8345 = vmatmul.bf16.vlgmr.msrb.gmra.mxu3 %v13502_v17  ;;  %8371 = vmatmul.bf16.vlgmr.msra.gmra.mxu2 %v13502_v17  ;;  %v6298_v5 = vsel %vm105_vm9, %v6266_v19, %v6267_v14  ;;  %v9612_v14 = vld [vmem:[#allocation5 + $0x378] sm:$0xf0] }
 0x94e   :  { %v6631_v40 = vsel %vm105_vm9, %v6615_v33, %v6616_v60  ;;  %v6299_v11 = vsel %vm15379_vm6, %v14522_v31, %v6298_v5  ;;  %v7125_v6 = vld [vmem:[#allocation5 + $0x538] sm:$0x11]  ;;  %v9675_v31 = vor.u32 %v10079_v47, %v9674_v22  ;;  %v8114_v41 = vpop.f32.mrf.mxu0 }
 0x94f   :  { %v6632_v51 = vsel %vm15378_vm4, %v14477_v46, %v6631_v40  ;;  %v10166_v44 = vpop.permute.xlu2 %10165  ;;  %v7634_v30 = vunpack.c.l.b16 %v7125_v6  ;;  %v7635_v33 = vunpack.c.h.b16 %v7125_v6  ;;  %6331 = vst [vmem:[#allocation5 + $0x438] sm:$0x33] %v6299_v11  ;;  %v8179_v39 = vpop.f32.mrf.mxu3  ;;  %v9730_v48 = vld [vmem:[#allocation5 + $0x430] sm:$0xf]  ;;  %v10086_v4 = vld [vmem:[#allocation5 + $0x434] sm:$0xf] }
 0x950   :  { %6648 = vst [vmem:[#allocation5 + $0x4b8] sm:$0x77] %v6632_v51  ;;  %v10168_v19 = vunpack.i.h.bf16 %v10166_v44  ;;  %v10167_v26 = vunpack.i.l.bf16 %v10166_v44  ;;  %v10047_v6 = vld [vmem:[#allocation5 + $0x2f4] sm:$0xf0]  ;;  %v9548_v44 = vld [vmem:[#allocation5 + $0x2f8] sm:$0xf0] }
 0x951   :  { %v7810_v57 = vpack.c.b16 %v7634_v30, %v7634_v30  ;;  %v7811_v8 = vpack.c.b16 %v7635_v33, %v7635_v33  ;;  %v9546_v30 = vld [vmem:[#allocation5 + $0x2b8] sm:$0xf] }
 0x952   :  { %v6738_v36 = vrot.slane %v10168_v19, 4  ;;  %v6729_v46 = vrot.slane %v10167_v26, 4  ;;  %v8166_v25 = vpop.f32.mrf.mxu2  ;;  %v9547_v9 = vor.u32 %v10047_v6, %v9546_v30  ;;  %v10039_v19 = vld [vmem:[#allocation5 + $0x2bc] sm:$0xf]  ;;  %v9482_v22 = vld [vmem:[#allocation5 + $0x238] sm:$0xf] }
 0x953   :  { %v10171_v58 = vpop.permute.xlu0 %10170  ;;  %v8020_v38 = vsel %vm7976_vm8, %v7810_v57, 0  ;;  %v8023_v45 = vsel %vm7976_vm8, %v7811_v8, 0  ;;  %v10094_v37 = vld [vmem:[#allocation5 + $0x46c] sm:$0xf0]  ;;  %v9732_v28 = vld [vmem:[#allocation5 + $0x470] sm:$0xf0]  ;;  %vm15381_vm8 = vmmov %vm15380_vm7  ;;  %v9551_v57 = vor.u32 %v10039_v19, %v9548_v44 }
 0x954   :  { %v10173_v20 = vunpack.i.h.bf16 %v10171_v58  ;;  %v10172_v12 = vunpack.i.l.bf16 %v10171_v58  ;;  %v6769_v63 = vsel %vm105_vm9, %v6737_v10, %v6738_v36  ;;  %v6753_v43 = vsel %vm105_vm9, %v6728_v35, %v6729_v46  ;;  %8407 = vmatpush.bf16.msra.mxu3 %v8020_v38  ;;  %8433 = vmatpush.bf16.msrb.mxu2 %v8023_v45  ;;  %v9610_v35 = vld [vmem:[#allocation5 + $0x338] sm:$0xf]  ;;  %v10023_v46 = vld [vmem:[#allocation5 + $0x23c] sm:$0xf] }
 0x955   :  { %v9731_v18 = vor.u32 %v10094_v37, %v9730_v48  ;;  %v6770_v34 = vsel %vm15380_vm7, %v14479_v52, %v6769_v63  ;;  %v6754_v59 = vsel %vm15381_vm8, %v14509_v2, %v6753_v43  ;;  %v9735_v56 = vor.u32 %v10086_v4, %v9732_v28  ;;  %v10055_v52 = vld [vmem:[#allocation5 + $0x33c] sm:$0xf]  ;;  %v8190_v2 = vpop.f32.mrf.mxu1  ;;  %v10031_v58 = vld [vmem:[#allocation5 + $0x274] sm:$0xf0] }
 0x956   :  { %v6421_v3 = vrot.slane %v10173_v20, 4  ;;  %6802 = vst [vmem:[#allocation5 + $0x4f8] sm:$0x33] %v6770_v34  ;;  %v6412_v10 = vrot.slane %v10172_v12, 4  ;;  %v8216_v33 = vpop.f32.mrf.mxu0  ;;  %v9483_v0 = vor.u32 %v10031_v58, %v9482_v22  ;;  %v9484_v38 = vld [vmem:[#allocation5 + $0x278] sm:$0xf0] }
 0x957   :  { %8357 = vmatpush.bf16.msra.mxu1 %v9731_v18  ;;  %6794 = vst [vmem:[#allocation5 + $0x4b8] sm:$0x88] %v6754_v59  ;;  %8383 = vmatpush.bf16.msrb.mxu0 %v9735_v56  ;;  %v6530_v60 = vpop.permute.xlu2 %6529  ;;  %v8203_v5 = vpop.f32.mrf.mxu3  ;;  %v9487_v28 = vor.u32 %v10023_v46, %v9484_v38  ;;  %v10015_v20 = vld [vmem:[#allocation5 + $0x1f4] sm:$0xf0]  ;;  %v9420_v12 = vld [vmem:[#allocation5 + $0x1f8] sm:$0xf0] }
 0x958   :  { %v6452_v61 = vsel %vm105_vm9, %v6420_v32, %v6421_v3  ;;  %v6436_v53 = vsel %vm105_vm9, %v6411_v15, %v6412_v10  ;;  %v6539_v40 = vrot.slane %v6530_v60, 4  ;;  %v9611_v32 = vor.u32 %v10063_v13, %v9610_v35  ;;  %v9418_v18 = vld [vmem:[#allocation5 + $0x1b8] sm:$0xf]  ;;  %v10007_v3 = vld [vmem:[#allocation5 + $0x1bc] sm:$0xf]  ;;  %v15385_v58 = vld [vmem:[#allocation7_spill] sm:$0xff] }
 0x959   :  { %v6453_v7 = vsel %vm15382_vm5, %v14571_v29, %v6452_v61  ;;  %v6437_v51 = vsel %vm15383_vm11, %v14544_v42, %v6436_v53  ;;  %v14625_v11 = vadd.f32 %v8203_v5, %v8190_v2  ;;  %v9615_v29 = vor.u32 %v10055_v52, %v9612_v14  ;;  %v9999_v13 = vld [vmem:[#allocation5 + $0x174] sm:$0xf0]  ;;  %v9356_v10 = vld [vmem:[#allocation5 + $0x178] sm:$0xf0] }
 0x95a   :  { %6485 = vst [vmem:[#allocation5 + $0x478] sm:$0x11] %v6453_v7  ;;  %9820 = vmatmul.msk.bf16.vlgmr.msra.gmra.mxu1 %vm7972_vm0, %v13504_v49  ;;  %v6554_v15 = vsel %vm105_vm9, %v6538_v55, %v6539_v40  ;;  %9821 = vmatmul.msk.bf16.vlgmr.msrb.gmra.mxu0 %vm7972_vm0, %v13504_v49  ;;  %v8229_v47 = vpop.f32.mrf.mxu2  ;;  %v9419_v56 = vor.u32 %v10015_v20, %v9418_v18  ;;  %v9991_v61 = vld [vmem:[#allocation5 + $0x13c] sm:$0xf]  ;;  %v9290_v52 = vld [vmem:[#allocation5 + $0xb8] sm:$0xf] }
 0x95b   :  { %8389 = vmatpush.bf16.msrb.mxu1 %v9675_v31  ;;  %8415 = vmatpush.bf16.msra.mxu0 %v9679_v1  ;;  %6477 = vst [vmem:[#allocation5 + $0x438] sm:$0xcc] %v6437_v51  ;;  %v6555_v42 = vsel %vm15384_vm12, %v14546_v50, %v6554_v15  ;;  %v14634_v55 = vadd.f32 %v8229_v47, %v8216_v33  ;;  %v9354_v1 = vld [vmem:[#allocation5 + $0x138] sm:$0xf]  ;;  %v9975_v14 = vld [vmem:[#allocation5 + $0xbc] sm:$0xf] }
 0x95c   :  { %6571 = vst [vmem:[#allocation5 + $0x478] sm:$0xee] %v6555_v42  ;;  %v9423_v54 = vor.u32 %v10007_v3, %v9420_v12  ;;  %v9355_v35 = vor.u32 %v9999_v13, %v9354_v1  ;;  %v9359_v60 = vor.u32 %v9991_v61, %v9356_v10  ;;  %v9983_v2 = vld [vmem:[#allocation5 + $0xf4] sm:$0xf0]  ;;  %v9292_v7 = vld [vmem:[#allocation5 + $0xf8] sm:$0xf0] }
 0x95d   :  { %v10111_v26 = vld [vmem:[#allocation5 + $0x4f4] sm:$0xf0]  ;;  %v9804_v39 = vld [vmem:[#allocation5 + $0x4f8] sm:$0xf0]  ;;  %v8192_v4 = vpop.f32.mrf.mxu1  ;;  %v9291_v53 = vor.u32 %v9983_v2, %v9290_v52  ;;  %v9295_v40 = vor.u32 %v9975_v14, %v9292_v7 }
 0x95e   :  { %v9802_v8 = vld [vmem:[#allocation5 + $0x4b8] sm:$0xf]  ;;  %v10103_v48 = vld [vmem:[#allocation5 + $0x4bc] sm:$0xf]  ;;  %v8218_v34 = vpop.f32.mrf.mxu0 }
 0x95f   :  { %8390 = vmatpush.bf16.msrb.mxu1 %v9611_v32  ;;  %8416 = vmatpush.bf16.msra.mxu0 %v9615_v29  ;;  %v9803_v36 = vor.u32 %v10111_v26, %v9802_v8  ;;  %v9807_v50 = vor.u32 %v10103_v48, %v9804_v39  ;;  %v8205_v31 = vpop.f32.mrf.mxu3  ;;  %v9967_v5 = vld [vmem:[#allocation5 + $0x74] sm:$0xf0]  ;;  %v9228_v51 = vld [vmem:[#allocation5 + $0x78] sm:$0xf0] }
 0x960   :  { %v9226_v32 = vld [vmem:[#allocation5 + $0x38] sm:$0xf]  ;;  %v9959_v29 = vld [vmem:[#allocation5 + $0x3c] sm:$0xf]  ;;  %v15386_v31 = vld [vmem:[#allocation6_spill] sm:$0xff] }
 0x961   :  { %8408 = vmatpush.bf16.msra.mxu3 %v9803_v36  ;;  %8434 = vmatpush.bf16.msrb.mxu2 %v9807_v50  ;;  %v9227_v15 = vor.u32 %v9967_v5, %v9226_v32  ;;  %v9231_v6 = vor.u32 %v9959_v29, %v9228_v51  ;;  %v15391_v5 = vld [vmem:[#allocation12_spill] sm:$0xff] }
 0x962   :  { %v9738_v45 = vld [vmem:[#allocation5 + $0x438] sm:$0xf]  ;;  %v10087_v37 = vld [vmem:[#allocation5 + $0x43c] sm:$0xf]  ;;  %v8231_v59 = vpop.f32.mrf.mxu2  ;;  %v8448_v51 = vmul.f32 %v14625_v11, %v15391_v5 }
 0x963   :  { %8391 = vmatpush.bf16.msrb.mxu1 %v9547_v9  ;;  %8417 = vmatpush.bf16.msra.mxu0 %v9551_v57  ;;  %v10095_v63 = vld [vmem:[#allocation5 + $0x474] sm:$0xf0]  ;;  %v9740_v43 = vld [vmem:[#allocation5 + $0x478] sm:$0xf0]  ;;  %v15389_v59 = vld [vmem:[#allocation10_spill] sm:$0xff] }
 0x964   :  { %v9739_v41 = vor.u32 %v10095_v63, %v9738_v45  ;;  %v9743_v25 = vor.u32 %v10087_v37, %v9740_v43  ;;  %v15387_v45 = vld [vmem:[#allocation8_spill] sm:$0xff]  ;;  %v8482_v29 = vmul.f32 %v8448_v51, %v14625_v11 }
 0x965   :  { %v8444_v37 = vmul.f32 %v14513_v62, %v15387_v45 }
 0x966   :  { %8409 = vmatpush.bf16.msra.mxu3 %v9739_v41  ;;  %8435 = vmatpush.bf16.msrb.mxu2 %v9743_v25  ;;  %v15388_v41 = vld [vmem:[#allocation9_spill] sm:$0xff] }
 0x967   :  { %8392 = vmatpush.bf16.msrb.mxu1 %v9483_v0  ;;  %8418 = vmatpush.bf16.msra.mxu0 %v9487_v28  ;;  %v8442_v0 = vmul.f32 %v14538_v21, %v15386_v31  ;;  %v8478_v43 = vmul.f32 %v8444_v37, %v14513_v62  ;;  %v8445_v25 = vmul.f32 %v14593_v27, %v15388_v41 }
 0x969   :  { %9822 = vmatmul.msk.bf16.vlgmr.msra.gmra.mxu3 %vm7972_vm0, %v13504_v49  ;;  %9823 = vmatmul.msk.bf16.vlgmr.msrb.gmra.mxu2 %vm7972_vm0, %v13504_v49  ;;  %v8476_v28 = vmul.f32 %v8442_v0, %v14538_v21  ;;  %v8479_v3 = vmul.f32 %v8445_v25, %v14593_v27 }
 0x96b   :  { %8393 = vmatpush.bf16.msrb.mxu1 %v9419_v56  ;;  %8419 = vmatpush.bf16.msra.mxu0 %v9423_v54  ;;  %v8446_v56 = vmul.f32 %v14575_v16, %v15389_v59 }
 0x96f   :  { %8394 = vmatpush.bf16.msrb.mxu1 %v9355_v35  ;;  %8420 = vmatpush.bf16.msra.mxu0 %v9359_v60  ;;  %v8480_v35 = vmul.f32 %v8446_v56, %v14575_v16  ;;  %v15390_v60 = vld [vmem:[#allocation11_spill] sm:$0xff] }
 0x970   :  { %v8447_v52 = vmul.f32 %v14595_v23, %v15390_v60 }
 0x972   :  { %v8481_v7 = vmul.f32 %v8447_v52, %v14595_v23 }
 0x973   :  { %8395 = vmatpush.bf16.msrb.mxu1 %v9291_v53  ;;  %8421 = vmatpush.bf16.msra.mxu0 %v9295_v40 }
 0x974   :  { %v8242_v42 = vpop.f32.mrf.mxu3  ;;  %v8268_v44 = vpop.f32.mrf.mxu2 }
 0x977   :  { %8396 = vmatpush.bf16.msrb.mxu1 %v9227_v15  ;;  %8422 = vmatpush.bf16.msra.mxu0 %v9231_v6  ;;  %v15392_v6 = vld [vmem:[#allocation13_spill] sm:$0xff] }
 0x97a   :  { %8397 = vmatmul.bf16.vlgmr.msrb.gmra.mxu1 %v13502_v17  ;;  %8423 = vmatmul.bf16.vlgmr.msra.gmra.mxu0 %v13502_v17  ;;  %v8443_v17 = vmul.f32 %v14471_v24, %v15385_v58 }
 0x97c   :  { %v8244_v49 = vpop.f32.mrf.mxu3  ;;  %v8270_v30 = vpop.f32.mrf.mxu2  ;;  %v8477_v38 = vmul.f32 %v8443_v17, %v14471_v24  ;;  %v8458_v20 = vadd.f32 %v8443_v17, %v8442_v0  ;;  %v15395_v0 = vld [vmem:[#allocation16_spill] sm:$0xff] }
 0x97e   :  { %v8492_v18 = vadd.f32 %v8477_v38, %v8476_v28  ;;  %v8459_v34 = vadd.f32 %v8458_v20, %v8444_v37 }
 0x980   :  { %v8493_v54 = vadd.f32 %v8492_v18, %v8478_v43  ;;  %v8460_v13 = vadd.f32 %v8459_v34, %v8445_v25  ;;  %v15396_v43 = vld [vmem:[#allocation17_spill] sm:$0xff]  ;;  %v15397_v34 = vld [vmem:[#allocation18_spill] sm:$0xff] }
 0x982   :  { %v8494_v61 = vadd.f32 %v8493_v54, %v8479_v3  ;;  %v8461_v53 = vadd.f32 %v8460_v13, %v8446_v56 }
 0x984   :  { %v8495_v40 = vadd.f32 %v8494_v61, %v8480_v35  ;;  %v8462_v32 = vadd.f32 %v8461_v53, %v8447_v52 }
 0x986   :  { %v8255_v33 = vpop.f32.mrf.mxu1  ;;  %v8281_v47 = vpop.f32.mrf.mxu0  ;;  %v8496_v15 = vadd.f32 %v8495_v40, %v8481_v7  ;;  %v8463_v30 = vadd.f32 %v8462_v32, %v8448_v51  ;;  %v15399_v51 = vld [vmem:[#allocation20_spill] sm:$0xff] }
 0x987   :  { %v14642_v9 = vadd.f32 %v8255_v33, %v8242_v42  ;;  %v14644_v19 = vadd.f32 %v8281_v47, %v8268_v44  ;;  %v8449_v42 = vmul.f32 %v14634_v55, %v15392_v6  ;;  %v15393_v33 = vld [vmem:[#allocation14_spill] sm:$0xff] }
 0x989   :  { %v8450_v47 = vmul.f32 %v14642_v9, %v15393_v33 }
 0x98e   :  { %v8257_v26 = vpop.f32.mrf.mxu1  ;;  %v8283_v39 = vpop.f32.mrf.mxu0 }
 0x98f   :  { %v8497_v26 = vadd.f32 %v8496_v15, %v8482_v29  ;;  %v8483_v39 = vmul.f32 %v8449_v42, %v14634_v55  ;;  %v15400_v15 = vld [vmem:[#allocation21_spill] sm:$0xff] }
 0x991   :  { %v8498_v17 = vadd.f32 %v8497_v26, %v8483_v39 }
 0x9a6   :  { %v8294_v57 = vpop.f32.mrf.mxu1  ;;  %v8320_v8 = vpop.f32.mrf.mxu0 }
 0x9ae   :  { %v8296_v48 = vpop.f32.mrf.mxu1  ;;  %v8322_v22 = vpop.f32.mrf.mxu0 }
 0x9af   :  { %v8464_v22 = vadd.f32 %v8463_v30, %v8449_v42 }
 0x9b0   :  { %v8307_v36 = vpop.f32.mrf.mxu3  ;;  %v8333_v50 = vpop.f32.mrf.mxu2 }
 0x9b1   :  { %v14672_v48 = vadd.f32 %v8307_v36, %v8294_v57  ;;  %v8465_v31 = vadd.f32 %v8464_v22, %v8450_v47  ;;  %v14679_v45 = vadd.f32 %v8333_v50, %v8320_v8 }
 0x9b3   :  { %v8452_v38 = vmul.f32 %v14672_v48, %v15395_v0  ;;  %v8453_v18 = vmul.f32 %v14679_v45, %v15396_v43 }
 0x9b5   :  { %v8486_v36 = vmul.f32 %v8452_v38, %v14672_v48  ;;  %v8487_v54 = vmul.f32 %v8453_v18, %v14679_v45 }
 0x9b8   :  { %v8309_v46 = vpop.f32.mrf.mxu3  ;;  %v8335_v4 = vpop.f32.mrf.mxu2 }
 0x9b9   :  { %v8484_v46 = vmul.f32 %v8450_v47, %v14642_v9  ;;  %v15394_v4 = vld [vmem:[#allocation15_spill] sm:$0xff] }
 0x9ba   :  { %v8451_v58 = vmul.f32 %v14644_v19, %v15394_v4 }
 0x9bb   :  { %v8499_v37 = vadd.f32 %v8498_v17, %v8484_v46  ;;  %v10273_v46 = vmov 2  }
 0x9bc   :  { %v8485_v28 = vmul.f32 %v8451_v58, %v14644_v19  ;;  %v8466_v57 = vadd.f32 %v8465_v31, %v8451_v58  ;;  %10174 = vset.pattern.permute.xlu2 %v10273_v46 }
 0x9be   :  { %v8500_v41 = vadd.f32 %v8499_v37, %v8485_v28  ;;  %v8467_v25 = vadd.f32 %v8466_v57, %v8452_v38 }
 0x9c0   :  { %v8501_v3 = vadd.f32 %v8500_v41, %v8486_v36  ;;  %v8441_v41 = vld [vmem:[%s14847_s4] sm:$0xff] }
 0x9c2   :  { %v8502_v35 = vadd.f32 %v8501_v3, %v8487_v54 }
 0x9d0   :  { %v8346_v12 = vpop.f32.mrf.mxu3  ;;  %v8372_v63 = vpop.f32.mrf.mxu2 }
 0x9d7   :  { %v8359_v14 = vpop.f32.mrf.mxu1  ;;  %v8385_v2 = vpop.f32.mrf.mxu0 }
 0x9d8   :  { %v8348_v10 = vpop.f32.mrf.mxu3  ;;  %v8374_v1 = vpop.f32.mrf.mxu2  ;;  %v14682_v20 = vadd.f32 %v8359_v14, %v8346_v12  ;;  %v14689_v56 = vadd.f32 %v8385_v2, %v8372_v63  ;;  %v8468_v12 = vadd.f32 %v8467_v25, %v8453_v18 }
 0x9d9   :  { %v15398_v10 = vld [vmem:[#allocation19_spill] sm:$0xff] }
 0x9da   :  { %v8454_v59 = vmul.f32 %v14682_v20, %v15397_v34  ;;  %v8455_v1 = vmul.f32 %v14689_v56, %v15398_v10 }
 0x9dc   :  { %v8488_v13 = vmul.f32 %v8454_v59, %v14682_v20  ;;  %v8469_v61 = vadd.f32 %v8468_v12, %v8454_v59  ;;  %v8489_v14 = vmul.f32 %v8455_v1, %v14689_v56 }
 0x9de   :  { %v8503_v52 = vadd.f32 %v8502_v35, %v8488_v13  ;;  %v8470_v5 = vadd.f32 %v8469_v61, %v8455_v1 }
 0x9df   :  { %v8361_v44 = vpop.f32.mrf.mxu1  ;;  %v8387_v49 = vpop.f32.mrf.mxu0 }
 0x9e0   :  { %v8504_v6 = vadd.f32 %v8503_v52, %v8489_v14 }
 0x9ec   :  { %v8411_v8 = vpop.f32.mrf.mxu3  ;;  %v8437_v50 = vpop.f32.mrf.mxu2 }
 0x9f4   :  { %v8413_v2 = vpop.f32.mrf.mxu3  ;;  %v8439_v40 = vpop.f32.mrf.mxu2 }
 0x9f7   :  { %v8398_v60 = vpop.f32.mrf.mxu1  ;;  %v8424_v63 = vpop.f32.mrf.mxu0 }
 0x9f8   :  { %v14696_v53 = vadd.f32 %v8411_v8, %v8398_v60  ;;  %v14698_v7 = vadd.f32 %v8437_v50, %v8424_v63  ;;  %v10274_v8 = vmov 3  }
 0x9f9   :  { %10176 = vset.pattern.permute.xlu0 %v10274_v8 }
 0x9fa   :  { %v8456_v32 = vmul.f32 %v14696_v53, %v15399_v51  ;;  %v8457_v29 = vmul.f32 %v14698_v7, %v15400_v15 }
 0x9fc   :  { %v8490_v42 = vmul.f32 %v8456_v32, %v14696_v53  ;;  %v8471_v44 = vadd.f32 %v8470_v5, %v8456_v32  ;;  %v8491_v49 = vmul.f32 %v8457_v29, %v14698_v7 }
 0x9fe   :  { %v8472_v30 = vadd.f32 %v8471_v44, %v8457_v29  ;;  %v8505_v33 = vadd.f32 %v8504_v6, %v8490_v42 }
 0x9ff   :  { %v8400_v47 = vpop.f32.mrf.mxu1  ;;  %v8426_v26 = vpop.f32.mrf.mxu0 }
 0xa00   :  { %8473 = vadd.xlane.f32.xlu1 %v8472_v30  ;;  %v8506_v39 = vadd.f32 %v8505_v33, %v8491_v49 }
 0xa02   :  { %8507 = vadd.xlane.f32.xlu0 %v8506_v39 }
 0xa73   :  { %v8474_v22 = vpop.xlane.xlu1 %8473 }
 0xa74   :  { %v8475_v4 = vmul.f32 0.0009765625, %v8474_v22 }
 0xa75   :  { %v8508_v58 = vpop.xlane.xlu0 %8507 }
 0xa76   :  { %v8510_v17 = vmul.f32 %v8475_v4, %v8475_v4  ;;  %v8509_v31 = vmul.f32 0.0009765625, %v8508_v58 }
 0xa78   :  { %v8511_v0 = vsub.f32 %v8509_v31, %v8510_v17 }
 0xa7a   :  { %v8512_v38 = vadd.f32 1e-05, %v8511_v0 }
 0xa7c   :  { %10211 = vrsqrt.f32 %v8512_v38  ;;  %vm8519_vm0 = vweird.f32 %v8512_v38 }
 0xa82   :  { %v10212_v37 = vpop.eup %10211 }
 0xa83   :  { %v8514_v28 = vmul.f32 %v10212_v37, %v8512_v38  ;;  %vm8520_vm9 = vweird.f32 %v10212_v37 }
 0xa84   :  { %vm8521_vm13 = vmor %vm8519_vm0, %vm8520_vm9 }
 0xa85   :  { %v8515_v57 = vmul.f32 %v10212_v37, %v8514_v28 }
 0xa87   :  { %v8516_v36 = vmul.f32 0.5, %v8515_v57 }
 0xa89   :  { %v8517_v43 = vsub.f32 1.5, %v8516_v36 }
 0xa8b   :  { %v8518_v18 = vmul.f32 %v10212_v37, %v8517_v43 }
 0xa8d   :  { %v8522_v25 = vsel %vm8521_vm13, %v10212_v37, %v8518_v18 }
 0xa8e   :  { %v8523_v34 = vmul.f32 %v8522_v25, %v8441_v41 }
 0xa90   :  { %v8524_v59 = vmul.f32 %v8523_v34, %v8475_v4 }
 0xa92   :  { %8526 = vrot.lane.b32.xlu2 %v8524_v59, %s10258_s12 }
 0xa9a   :  { %8532 = vperm.xlu2 %10174, %v8523_v34  }
 0xaa2   :  { %10175 = vset.pattern.permute.xlu2 %v10274_v8 }
 0xaec   :  { %v8527_v50 = vpop.permute.xlu2 %8526 }
 0xaed   :  { %v8529_v3 = vsub.f32 %v8441_v41, %v8527_v50 }
 0xaef   :  { %8553 = vperm.xlu2 %10175, %v8529_v3  }
 0xaf4   :  { %v8533_v54 = vpop.permute.xlu2 %8532 }
 0xaf5   :  { %v8535_v13 = vmul.f32 %v8533_v54, %v14538_v21  ;;  %v8536_v10 = vmul.f32 %v8533_v54, %v14471_v24  ;;  %v8537_v1 = vmul.f32 %v8533_v54, %v14513_v62  ;;  %v8538_v35 = vmul.f32 %v8533_v54, %v14593_v27 }
 0xaf6   :  { %v8539_v61 = vmul.f32 %v8533_v54, %v14575_v16  ;;  %v8540_v63 = vmul.f32 %v8533_v54, %v14595_v23  ;;  %v8541_v2 = vmul.f32 %v8533_v54, %v14625_v11  ;;  %v8542_v24 = vmul.f32 %v8533_v54, %v14634_v55 }
 0xaf7   :  { %v8543_v62 = vmul.f32 %v8533_v54, %v14642_v9  ;;  %v8544_v21 = vmul.f32 %v8533_v54, %v14644_v19  ;;  %v8545_v16 = vmul.f32 %v8533_v54, %v14672_v48  ;;  %v8546_v5 = vmul.f32 %v8533_v54, %v14679_v45 }
 0xaf8   :  { %v8547_v23 = vmul.f32 %v8533_v54, %v14682_v20  ;;  %v8548_v19 = vmul.f32 %v8533_v54, %v14689_v56  ;;  %v8549_v15 = vmul.f32 %v8533_v54, %v14696_v53  ;;  %v8550_v45 = vmul.f32 %v8533_v54, %v14698_v7 }
 0xb49   :  { %v8554_v12 = vpop.permute.xlu2 %8553 }
 0xb4a   :  { %v14715_v60 = vadd.f32 %v8554_v12, %v8535_v13  ;;  %v14717_v52 = vadd.f32 %v8554_v12, %v8536_v10  ;;  %v14719_v14 = vadd.f32 %v8554_v12, %v8537_v1  ;;  %v14723_v40 = vadd.f32 %v8554_v12, %v8538_v35 }
 0xb4b   :  { %v14728_v27 = vadd.f32 %v8554_v12, %v8539_v61  ;;  %v14732_v51 = vadd.f32 %v8554_v12, %v8540_v63  ;;  %v14734_v32 = vadd.f32 %v8554_v12, %v8541_v2  ;;  %v14742_v29 = vadd.f32 %v8554_v12, %v8542_v24 }
 0xb4c   :  { %v8588_v11 = vmin.f32 %v14715_v60, 0.0  ;;  %v8589_v55 = vmin.f32 %v14717_v52, 0.0  ;;  %v8590_v9 = vmin.f32 %v14719_v14, 0.0  ;;  %v8591_v48 = vmin.f32 %v14723_v40, 0.0 }
 0xb4d   :  { %v14746_v6 = vadd.f32 %v8554_v12, %v8543_v62  ;;  %v14748_v42 = vadd.f32 %v8554_v12, %v8544_v21  ;;  %v8592_v20 = vmin.f32 %v14728_v27, 0.0  ;;  %v14751_v44 = vadd.f32 %v8554_v12, %v8545_v16 }
 0xb4e   :  { %v14753_v49 = vadd.f32 %v8554_v12, %v8546_v5  ;;  %v8593_v56 = vmin.f32 %v14732_v51, 0.0  ;;  %v8594_v53 = vmin.f32 %v14734_v32, 0.0  ;;  %v14757_v30 = vadd.f32 %v8554_v12, %v8547_v23 }
 0xb4f   :  { %v8604_v33 = vmul.f32 1.442695, %v8588_v11  ;;  %v8606_v47 = vmul.f32 1.442695, %v8589_v55  ;;  %v8608_v26 = vmul.f32 1.442695, %v8590_v9  ;;  %v14759_v7 = vadd.f32 %v8554_v12, %v8548_v19 }
 0xb50   :  { %v14761_v39 = vadd.f32 %v8554_v12, %v8549_v15  ;;  %v8595_v22 = vmin.f32 %v14742_v29, 0.0  ;;  %v8610_v46 = vmul.f32 1.442695, %v8591_v48  ;;  %v14764_v4 = vadd.f32 %v8554_v12, %v8550_v45 }
 0xb51   :  { %v8596_v58 = vmin.f32 %v14746_v6, 0.0  ;;  %10213 = vpow2.f32 %v8604_v33  ;;  %v8612_v17 = vmul.f32 1.442695, %v8592_v20  ;;  %vm8572_vm15 = vcmp.gt.f32.partialorder %v14715_v60, 0.0 }
 0xb52   :  { %v8597_v31 = vmin.f32 %v14748_v42, 0.0  ;;  %10215 = vpow2.f32 %v8606_v47  ;;  %v8614_v0 = vmul.f32 1.442695, %v8593_v56  ;;  %vm8573_vm10 = vcmp.gt.f32.partialorder %v14717_v52, 0.0 }
 0xb53   :  { %v8598_v38 = vmin.f32 %v14751_v44, 0.0  ;;  %10217 = vpow2.f32 %v8608_v26  ;;  %v8616_v37 = vmul.f32 1.442695, %v8594_v53  ;;  %vm8574_vm14 = vcmp.gt.f32.partialorder %v14719_v14, 0.0 }
 0xb54   :  { %v8599_v28 = vmin.f32 %v14753_v49, 0.0  ;;  %10219 = vpow2.f32 %v8610_v46  ;;  %v8618_v57 = vmul.f32 1.442695, %v8595_v22  ;;  %v8600_v36 = vmin.f32 %v14757_v30, 0.0 }
 0xb55   :  { %v8601_v43 = vmin.f32 %v14759_v7, 0.0  ;;  %10221 = vpow2.f32 %v8612_v17  ;;  %v8620_v18 = vmul.f32 1.442695, %v8596_v58  ;;  %vm8575_vm1 = vcmp.gt.f32.partialorder %v14723_v40, 0.0 }
 0xb56   :  { %v8602_v41 = vmin.f32 %v14761_v39, 0.0  ;;  %10223 = vpow2.f32 %v8614_v0  ;;  %v8622_v25 = vmul.f32 1.442695, %v8597_v31  ;;  %vm8576_vm2 = vcmp.gt.f32.partialorder %v14728_v27, 0.0 }
 0xb57   :  { %v10214_v34 = vpop.eup %10213  ;;  %v8603_v59 = vmin.f32 %v14764_v4, 0.0  ;;  %10225 = vpow2.f32 %v8616_v37  ;;  %v8624_v8 = vmul.f32 1.442695, %v8598_v38  ;;  %vm8577_vm3 = vcmp.gt.f32.partialorder %v14732_v51, 0.0 }
 0xb58   :  { %v10216_v50 = vpop.eup %10215  ;;  %10227 = vpow2.f32 %v8618_v57  ;;  %v8626_v3 = vmul.f32 1.442695, %v8599_v28  ;;  %v9824_v54 = vadd.f32 -1.0, %v10214_v34  ;;  %v8628_v13 = vmul.f32 1.442695, %v8600_v36 }
 0xb59   :  { %v10218_v12 = vpop.eup %10217  ;;  %10229 = vpow2.f32 %v8620_v18  ;;  %v8630_v10 = vmul.f32 1.442695, %v8601_v43  ;;  %v9825_v1 = vadd.f32 -1.0, %v10216_v50  ;;  %v8632_v61 = vmul.f32 1.442695, %v8602_v41 }
 0xb5a   :  { %v10220_v35 = vpop.eup %10219  ;;  %10231 = vpow2.f32 %v8622_v25  ;;  %v9826_v63 = vadd.f32 -1.0, %v10218_v12  ;;  %v8652_v2 = vsel %vm8572_vm15, %v14715_v60, %v9824_v54  ;;  %v8634_v62 = vmul.f32 1.442695, %v8603_v59 }
 0xb5b   :  { %v10222_v24 = vpop.eup %10221  ;;  %10233 = vpow2.f32 %v8624_v8  ;;  %v9827_v21 = vadd.f32 -1.0, %v10220_v35  ;;  %v8653_v16 = vsel %vm8573_vm10, %v14717_v52, %v9825_v1  ;;  %vm8578_vm4 = vcmp.gt.f32.partialorder %v14734_v32, 0.0 }
 0xb5c   :  { %v10224_v5 = vpop.eup %10223  ;;  %10235 = vpow2.f32 %v8626_v3  ;;  %v9828_v23 = vadd.f32 -1.0, %v10222_v24  ;;  %v8654_v11 = vsel %vm8574_vm14, %v14719_v14, %v9826_v63  ;;  %v8668_v55 = vpack.c.bf16 %v8653_v16, %v8652_v2 }
 0xb5d   :  { %v10226_v9 = vpop.eup %10225  ;;  %10237 = vpow2.f32 %v8628_v13  ;;  %v9829_v60 = vadd.f32 -1.0, %v10224_v5  ;;  %v8655_v19 = vsel %vm8575_vm1, %v14723_v40, %v9827_v21  ;;  %vm8579_vm6 = vcmp.gt.f32.partialorder %v14742_v29, 0.0 }
 0xb5e   :  { %v10228_v15 = vpop.eup %10227  ;;  %10239 = vpow2.f32 %v8630_v10  ;;  %v9830_v52 = vadd.f32 -1.0, %v10226_v9  ;;  %v8656_v48 = vsel %vm8576_vm2, %v14728_v27, %v9828_v23  ;;  %v8669_v45 = vpack.c.bf16 %v8655_v19, %v8654_v11  ;;  %8676 = vst [vmem:[%s14849_s5] sm:$0xff] %v8668_v55 }
 0xb5f   :  { %v10230_v14 = vpop.eup %10229  ;;  %10241 = vpow2.f32 %v8632_v61  ;;  %v9831_v20 = vadd.f32 -1.0, %v10228_v15  ;;  %v8657_v40 = vsel %vm8577_vm3, %v14732_v51, %v9829_v60  ;;  %vm8580_vm7 = vcmp.gt.f32.partialorder %v14746_v6, 0.0 }
 0xb60   :  { %v10232_v56 = vpop.eup %10231  ;;  %10243 = vpow2.f32 %v8634_v62  ;;  %v9832_v53 = vadd.f32 -1.0, %v10230_v14  ;;  %v8658_v27 = vsel %vm8578_vm4, %v14734_v32, %v9830_v52  ;;  %v8670_v33 = vpack.c.bf16 %v8657_v40, %v8656_v48  ;;  %8677 = vst [vmem:[%s14849_s5 + $0x8] sm:$0xff] %v8669_v45 }
 0xb61   :  { %v10234_v47 = vpop.eup %10233  ;;  %v9833_v26 = vadd.f32 -1.0, %v10232_v56  ;;  %v8659_v22 = vsel %vm8579_vm6, %v14742_v29, %v9831_v20  ;;  %vm8581_vm8 = vcmp.gt.f32.partialorder %v14748_v42, 0.0  ;;  %vm8582_vm5 = vcmp.gt.f32.partialorder %v14751_v44, 0.0 }
 0xb62   :  { %v10236_v46 = vpop.eup %10235  ;;  %v9834_v51 = vadd.f32 -1.0, %v10234_v47  ;;  %v8660_v58 = vsel %vm8580_vm7, %v14746_v6, %v9832_v53  ;;  %v8671_v17 = vpack.c.bf16 %v8659_v22, %v8658_v27  ;;  %8678 = vst [vmem:[%s14849_s5 + $0x10] sm:$0xff] %v8670_v33  ;;  %vm8583_vm11 = vcmp.gt.f32.partialorder %v14753_v49, 0.0 }
 0xb63   :  { %v10238_v32 = vpop.eup %10237  ;;  %v9835_v31 = vadd.f32 -1.0, %v10236_v46  ;;  %v8661_v0 = vsel %vm8581_vm8, %v14748_v42, %v9833_v26  ;;  %vm8584_vm12 = vcmp.gt.f32.partialorder %v14757_v30, 0.0  ;;  %vm8585_vm9 = vcmp.gt.f32.partialorder %v14759_v7, 0.0 }
 0xb64   :  { %v10240_v38 = vpop.eup %10239  ;;  %v9836_v29 = vadd.f32 -1.0, %v10238_v32  ;;  %v8662_v37 = vsel %vm8582_vm5, %v14751_v44, %v9834_v51  ;;  %v8672_v28 = vpack.c.bf16 %v8661_v0, %v8660_v58  ;;  %8679 = vst [vmem:[%s14849_s5 + $0x18] sm:$0xff] %v8671_v17  ;;  %vm8586_vm0 = vcmp.gt.f32.partialorder %v14761_v39, 0.0 }
 0xb65   :  { %v10242_v6 = vpop.eup %10241  ;;  %v9837_v57 = vadd.f32 -1.0, %v10240_v38  ;;  %v8663_v36 = vsel %vm8583_vm11, %v14753_v49, %v9835_v31  ;;  %vm8587_vm13 = vcmp.gt.f32.partialorder %v14764_v4, 0.0 }
 0xb66   :  { %v10244_v43 = vpop.eup %10243  ;;  %v9838_v42 = vadd.f32 -1.0, %v10242_v6  ;;  %v8664_v18 = vsel %vm8584_vm12, %v14757_v30, %v9836_v29  ;;  %v8673_v41 = vpack.c.bf16 %v8663_v36, %v8662_v37  ;;  %8680 = vst [vmem:[%s14849_s5 + $0x20] sm:$0xff] %v8672_v28 }
 0xb67   :  { %v9839_v44 = vadd.f32 -1.0, %v10244_v43  ;;  %v8665_v25 = vsel %vm8585_vm9, %v14759_v7, %v9837_v57 }
 0xb68   :  { %v8666_v49 = vsel %vm8586_vm0, %v14761_v39, %v9838_v42  ;;  %v8674_v34 = vpack.c.bf16 %v8665_v25, %v8664_v18  ;;  %8681 = vst [vmem:[%s14849_s5 + $0x28] sm:$0xff] %v8673_v41 }
 0xb69   :  { %v8667_v30 = vsel %vm8587_vm13, %v14764_v4, %v9839_v44 }
 0xb6a   :  { %v8675_v59 = vpack.c.bf16 %v8667_v30, %v8666_v49  ;;  %8682 = vst [vmem:[%s14849_s5 + $0x30] sm:$0xff] %v8674_v34 }
 0xb6c   :  { %8683 = vst [vmem:[%s14849_s5 + $0x38] sm:$0xff] %v8675_v59 }

</bundles_post_ra>
